<compile_context>
chip_gen: v7x
topology: tpu7x:2x2x1
jax: 0.10.0
libtpu: 0.0.40
codegen_flags: <defaults>
</compile_context>

<pallas_src>
import jax
import jax.numpy as jnp
import numpy as np
from jax import lax
from jax.experimental import pallas as pl
from jax.experimental.pallas import tpu as pltpu


_NEG_INF = -1e30
_CP = 128          # padded channel width (lane-dense)


def _round_up(x, m):
    return ((x + m - 1) // m) * m


# ---------------------------------------------------------------------------
# Kernel 1: conv1 + relu + pool1 + conv2 + relu + pool2   (one sample / grid step)
# ---------------------------------------------------------------------------
def _conv_stack_kernel(c00_ref, c01_ref, c10_ref, c11_ref,
                       w1_ref, b1_ref, w2_ref, b2_ref,
                       out_ref, p1_ref):
    # ---- conv1 (+bias+relu) fused with pool1 --------------------------------
    # Each c?? ref holds the im2col rows for one position of the 2x2 pooling
    # window, row order (i, j) with i in [0,12), j in [0,16) (j >= 12 is zero pad).
    w1 = w1_ref[...]                                             # (K1p, 128)
    z = jnp.maximum(
        jnp.maximum(
            jnp.dot(c00_ref[...], w1, preferred_element_type=jnp.float32),
            jnp.dot(c01_ref[...], w1, preferred_element_type=jnp.float32)),
        jnp.maximum(
            jnp.dot(c10_ref[...], w1, preferred_element_type=jnp.float32),
            jnp.dot(c11_ref[...], w1, preferred_element_type=jnp.float32)))
    p1 = jnp.maximum(z + b1_ref[...], 0.0)                       # (192, 128)
    # (192,128) -> (12,16,128) is a layout-neutral reshape (sublane groups of 16).
    p1_ref[...] = p1.reshape(12, 16, 128)

    # ---- conv2 via 25 in-kernel "tap" matmuls (no HBM im2col) ---------------
    acc = jnp.zeros((64, 128), jnp.float32)                      # rows = oh*8 + ow
    for di in range(5):
        for dj in range(5):
            xp = p1_ref[di:di + 8, dj:dj + 8, :]                 # (8, 8, 128)
            acc = acc + jnp.dot(xp.reshape(64, 128),
                                w2_ref[di * 5 + dj],
                                preferred_element_type=jnp.float32)

    # ---- pool2 (+bias+relu) epilogue ----------------------------------------
    acc3 = acc.reshape(8, 8, 128)                                # (oh, ow, c)
    rows = []
    for i in range(4):
        rm = jnp.maximum(acc3[2 * i], acc3[2 * i + 1])           # (8, 128): max over oh pair
        for j in range(4):
            rows.append(jnp.maximum(rm[2 * j:2 * j + 1, :],
                                    rm[2 * j + 1:2 * j + 2, :]))  # (1, 128)
    pooled = jnp.concatenate(rows, axis=0)                       # (16, 128), row = i*4+j
    out_ref[...] = jnp.maximum(pooled + b2_ref[...], 0.0)


# ---------------------------------------------------------------------------
# Kernel 2: fc1 + relu + fc2 + log_softmax
# ---------------------------------------------------------------------------
def _fc_head_kernel(x_ref, w1_ref, b1_ref, w2_ref, b2_ref, o_ref):
    h = jnp.dot(x_ref[...], w1_ref[...], preferred_element_type=jnp.float32)
    h = jnp.maximum(h + b1_ref[...], 0.0)                        # (BM, 512)
    logits = jnp.dot(h, w2_ref[...], preferred_element_type=jnp.float32)
    logits = logits + b2_ref[...]                                # padded classes get -1e30
    m = jnp.max(logits, axis=-1, keepdims=True)
    lse = m + jnp.log(jnp.sum(jnp.exp(logits - m), axis=-1, keepdims=True))
    o_ref[...] = logits - lse


# ---------------------------------------------------------------------------
# Model forward (wrapper: layout plumbing only; all math is in the two kernels)
# ---------------------------------------------------------------------------
def lenet_forward(x_nchw, p):
    """x_nchw: (N, Cin, 28, 28) f32 -> (N, classes) log-probabilities."""
    N, Cin, H, W = x_nchw.shape
    assert H == 28 and W == 28, "fc_in_features=800 implies a 28x28 input"
    classes = p["w_fc2"].shape[1]
    assert classes <= _CP

    x = jnp.transpose(x_nchw, (0, 2, 3, 1)).astype(jnp.float32)        # NHWC

    # ---- conv weights / biases, padded to lane-dense widths ----------------
    k1 = 25 * Cin
    k1p = _round_up(k1, 8)
    w1m = jnp.transpose(p["w1"], (2, 3, 1, 0)).reshape(k1, 20)          # (25*Cin, 20)
    w1m = jnp.pad(w1m, ((0, k1p - k1), (0, _CP - 20)))                  # (k1p, 128)
    b1p = jnp.pad(p["b1"], (0, _CP - 20)).reshape(1, _CP)
    w2t = jnp.transpose(p["w2"], (2, 3, 1, 0)).reshape(25, 20, 50)      # (tap, ci, co)
    w2t = jnp.pad(w2t, ((0, 0), (0, _CP - 20), (0, _CP - 50)))          # (25, 128, 128)
    b2p = jnp.pad(p["b2"], (0, _CP - 50)).reshape(1, _CP)

    # ---- 4 pooling-position im2col matrices of the raw input (small glue) --
    def build_cols(r, s):
        patches = [x[:, r + di:r + di + 24:2, s + dj:s + dj + 24:2, :]
                   for di in range(5) for dj in range(5)]
        c = jnp.concatenate(patches, axis=-1)                           # (N, 12, 12, 25*Cin)
        c = jnp.pad(c, ((0, 0), (0, 0), (0, 4), (0, k1p - k1)))         # pad j->16, K->k1p
        return c.reshape(N * 192, k1p)

    cols = [build_cols(r, s) for r in (0, 1) for s in (0, 1)]

    cparams = pltpu.CompilerParams(dimension_semantics=("parallel",),
                                   vmem_limit_bytes=32 * 1024 * 1024)

    pooled2 = pl.pallas_call(
        _conv_stack_kernel,
        out_shape=jax.ShapeDtypeStruct((N * 16, _CP), jnp.float32),
        grid=(N,),
        in_specs=[pl.BlockSpec((192, k1p), lambda b: (b, 0))] * 4 + [
            pl.BlockSpec((k1p, _CP), lambda b: (0, 0)),
            pl.BlockSpec((1, _CP), lambda b: (0, 0)),
            pl.BlockSpec((25, _CP, _CP), lambda b: (0, 0, 0)),
            pl.BlockSpec((1, _CP), lambda b: (0, 0)),
        ],
        out_specs=pl.BlockSpec((16, _CP), lambda b: (b, 0)),
        scratch_shapes=[pltpu.VMEM((12, 16, _CP), jnp.float32)],
        compiler_params=cparams,
    )(*cols, w1m, b1p, w2t, b2p)                                        # (N*16, 128)

    # ---- fc head ------------------------------------------------------------
    # pooled2 row (b*16 + i*4 + j), lane c  ->  feature f = (i*4+j)*128 + c.
    x2 = pooled2.reshape(N, 16 * _CP)

    # PyTorch flatten order for fc1 input is c*16 + i*4 + j (c < 50): permute + pad.
    wfc1 = p["w_fc1"].reshape(50, 16, 500).transpose(1, 0, 2)           # (s, c, o)
    wfc1 = jnp.pad(wfc1, ((0, 0), (0, _CP - 50), (0, 12)))              # (16, 128, 512)
    wfc1 = wfc1.reshape(16 * _CP, 512)
    bfc1 = jnp.pad(p["b_fc1"], (0, 12)).reshape(1, 512)
    wfc2 = jnp.pad(p["w_fc2"], ((0, 12), (0, _CP - classes)))           # (512, 128)
    bfc2 = jnp.pad(p["b_fc2"], (0, _CP - classes),
                   constant_values=_NEG_INF).reshape(1, _CP)

    bm = min(128, _round_up(N, 8))
    npad = _round_up(N, bm)
    x2 = jnp.pad(x2, ((0, npad - N), (0, 0)))

    out = pl.pallas_call(
        _fc_head_kernel,
        out_shape=jax.ShapeDtypeStruct((npad, _CP), jnp.float32),
        grid=(npad // bm,),
        in_specs=[
            pl.BlockSpec((bm, 16 * _CP), lambda m: (m, 0)),
            pl.BlockSpec((16 * _CP, 512), lambda m: (0, 0)),
            pl.BlockSpec((1, 512), lambda m: (0, 0)),
            pl.BlockSpec((512, _CP), lambda m: (0, 0)),
            pl.BlockSpec((1, _CP), lambda m: (0, 0)),
        ],
        out_specs=pl.BlockSpec((bm, _CP), lambda m: (m, 0)),
        compiler_params=pltpu.CompilerParams(dimension_semantics=("parallel",),
                                             vmem_limit_bytes=32 * 1024 * 1024),
    )(x2, wfc1, bfc1, wfc2, bfc2)

    return out[:N, :classes]


# ---------------------------------------------------------------------------
# Pure-JAX reference (for the self-check)
# ---------------------------------------------------------------------------
def reference_forward(x_nchw, p):
    hp = lax.Precision.HIGHEST
    y = lax.conv_general_dilated(x_nchw, p["w1"], (1, 1), "VALID",
                                 dimension_numbers=("NCHW", "OIHW", "NCHW"),
                                 precision=hp)
    y = jnp.maximum(y + p["b1"][None, :, None, None], 0.0)
    y = lax.reduce_window(y, -jnp.inf, lax.max, (1, 1, 2, 2), (1, 1, 2, 2), "VALID")
    y = lax.conv_general_dilated(y, p["w2"], (1, 1), "VALID",
                                 dimension_numbers=("NCHW", "OIHW", "NCHW"),
                                 precision=hp)
    y = jnp.maximum(y + p["b2"][None, :, None, None], 0.0)
    y = lax.reduce_window(y, -jnp.inf, lax.max, (1, 1, 2, 2), (1, 1, 2, 2), "VALID")
    y = y.reshape(y.shape[0], -1)
    y = jnp.maximum(jnp.dot(y, p["w_fc1"], precision=hp) + p["b_fc1"], 0.0)
    logits = jnp.dot(y, p["w_fc2"], precision=hp) + p["b_fc2"]
    return jax.nn.log_softmax(logits, axis=1)


# ---------------------------------------------------------------------------
# main
# ---------------------------------------------------------------------------
def make_params(num_channels, classes, key):
    ks = jax.random.split(key, 8)
    f32 = jnp.float32
    return {
        "w1": 0.10 * jax.random.normal(ks[0], (20, num_channels, 5, 5), f32),
        "b1": 0.10 * jax.random.normal(ks[1], (20,), f32),
        "w2": 0.05 * jax.random.normal(ks[2], (50, 20, 5, 5), f32),
        "b2": 0.05 * jax.random.normal(ks[3], (50,), f32),
        # Linear weights stored as (in_features, out_features) == PyTorch weight.T
        "w_fc1": 0.02 * jax.random.normal(ks[4], (800, 500), f32),
        "b_fc1": 0.02 * jax.random.normal(ks[5], (500,), f32),
        "w_fc2": 0.05 * jax.random.normal(ks[6], (500, classes), f32),
        "b_fc2": 0.05 * jax.random.normal(ks[7], (classes,), f32),
    }


if __name__ == "__main__":
    num_channels, classes = 1, 10
    batch = 2

    key = jax.random.PRNGKey(0)
    pkey, xkey = jax.random.split(key)
    params = make_params(num_channels, classes, pkey)
    # fc_in_features=800 implies a 28x28 input (MNIST-style).
    x = jax.random.normal(xkey, (batch, num_channels, 28, 28), jnp.float32)

    out = jax.jit(lenet_forward)(x, params)
    out = jax.block_until_ready(out)
    assert out.shape == (batch, classes)

    ref = reference_forward(x, params)
    np.testing.assert_allclose(np.asarray(out), np.asarray(ref), atol=2e-3, rtol=2e-3)

    # log-softmax rows must (log-)sum to 1
    np.testing.assert_allclose(np.exp(np.asarray(out)).sum(axis=1),
                               np.ones((batch,)), atol=1e-4)

    print("KERNEL_OK")
</pallas_src>

<mosaic_0001>
module attributes {stable_mosaic.version = 11 : i64} {
  func.func @_conv_stack_kernel(%arg0: i32, %arg1: memref<192x32xf32, #tpu.memory_space<vmem>>, %arg2: memref<192x32xf32, #tpu.memory_space<vmem>>, %arg3: memref<192x32xf32, #tpu.memory_space<vmem>>, %arg4: memref<192x32xf32, #tpu.memory_space<vmem>>, %arg5: memref<32x128xf32, #tpu.memory_space<vmem>>, %arg6: memref<1x128xf32, #tpu.memory_space<vmem>>, %arg7: memref<25x128x128xf32, #tpu.memory_space<vmem>>, %arg8: memref<1x128xf32, #tpu.memory_space<vmem>>, %arg9: memref<16x128xf32, #tpu.memory_space<vmem>>, %arg10: memref<12x16x128xf32, #tpu.memory_space<vmem>>) attributes {dimension_semantics = [#tpu.dimension_semantics<parallel>], iteration_bounds = array<i64: 2>, scalar_prefetch = 0 : i64, scratch_operands = 1 : i64, tpu.core_type = #tpu.core_type<tc>, window_params = [{transform_indices = @transform_0, window_bounds = array<i64: 192, 32>}, {transform_indices = @transform_1, window_bounds = array<i64: 192, 32>}, {transform_indices = @transform_2, window_bounds = array<i64: 192, 32>}, {transform_indices = @transform_3, window_bounds = array<i64: 192, 32>}, {pipeline_mode = #tpu.pipeline_mode<synchronous>, transform_indices = @transform_4, window_bounds = array<i64: 32, 128>}, {pipeline_mode = #tpu.pipeline_mode<synchronous>, transform_indices = @transform_5, window_bounds = array<i64: 1, 128>}, {pipeline_mode = #tpu.pipeline_mode<synchronous>, transform_indices = @transform_6, window_bounds = array<i64: 25, 128, 128>}, {pipeline_mode = #tpu.pipeline_mode<synchronous>, transform_indices = @transform_7, window_bounds = array<i64: 1, 128>}, {transform_indices = @transform_8, window_bounds = array<i64: 16, 128>}]} {
    %c0 = arith.constant 0 : index
    %c0_0 = arith.constant 0 : index
    %0 = vector.load %arg5[%c0, %c0_0] : memref<32x128xf32, #tpu.memory_space<vmem>>, vector<32x128xf32>
    %c0_1 = arith.constant 0 : index
    %c0_2 = arith.constant 0 : index
    %1 = vector.load %arg1[%c0_1, %c0_2] : memref<192x32xf32, #tpu.memory_space<vmem>>, vector<192x32xf32>
    %cst = arith.constant dense<0.000000e+00> : vector<192x128xf32>
    %2 = tpu.matmul %1, %0, %cst {dimension_numbers = #tpu.dot_dimension_numbers<[1], [0], [0], [1], [0, 0, 1, 1], [], []>} : vector<192x32xf32>, vector<32x128xf32>, vector<192x128xf32> -> vector<192x128xf32>
    %c0_3 = arith.constant 0 : index
    %c0_4 = arith.constant 0 : index
    %3 = vector.load %arg2[%c0_3, %c0_4] : memref<192x32xf32, #tpu.memory_space<vmem>>, vector<192x32xf32>
    %cst_5 = arith.constant dense<0.000000e+00> : vector<192x128xf32>
    %4 = tpu.matmul %3, %0, %cst_5 {dimension_numbers = #tpu.dot_dimension_numbers<[1], [0], [0], [1], [0, 0, 1, 1], [], []>} : vector<192x32xf32>, vector<32x128xf32>, vector<192x128xf32> -> vector<192x128xf32>
    %5 = arith.maximumf %2, %4 : vector<192x128xf32>
    %c0_6 = arith.constant 0 : index
    %c0_7 = arith.constant 0 : index
    %6 = vector.load %arg3[%c0_6, %c0_7] : memref<192x32xf32, #tpu.memory_space<vmem>>, vector<192x32xf32>
    %cst_8 = arith.constant dense<0.000000e+00> : vector<192x128xf32>
    %7 = tpu.matmul %6, %0, %cst_8 {dimension_numbers = #tpu.dot_dimension_numbers<[1], [0], [0], [1], [0, 0, 1, 1], [], []>} : vector<192x32xf32>, vector<32x128xf32>, vector<192x128xf32> -> vector<192x128xf32>
    %c0_9 = arith.constant 0 : index
    %c0_10 = arith.constant 0 : index
    %8 = vector.load %arg4[%c0_9, %c0_10] : memref<192x32xf32, #tpu.memory_space<vmem>>, vector<192x32xf32>
    %cst_11 = arith.constant dense<0.000000e+00> : vector<192x128xf32>
    %9 = tpu.matmul %8, %0, %cst_11 {dimension_numbers = #tpu.dot_dimension_numbers<[1], [0], [0], [1], [0, 0, 1, 1], [], []>} : vector<192x32xf32>, vector<32x128xf32>, vector<192x128xf32> -> vector<192x128xf32>
    %10 = arith.maximumf %7, %9 : vector<192x128xf32>
    %11 = arith.maximumf %5, %10 : vector<192x128xf32>
    %c0_12 = arith.constant 0 : index
    %c0_13 = arith.constant 0 : index
    %12 = vector.load %arg6[%c0_12, %c0_13] : memref<1x128xf32, #tpu.memory_space<vmem>>, vector<1x128xf32>
    %13 = vector.broadcast %12 : vector<1x128xf32> to vector<192x128xf32>
    %14 = arith.addf %11, %13 : vector<192x128xf32>
    %cst_14 = arith.constant 0.000000e+00 : f32
    %15 = vector.broadcast %cst_14 : f32 to vector<192x128xf32>
    %16 = arith.maximumf %14, %15 : vector<192x128xf32>
    %17 = vector.shape_cast %16 : vector<192x128xf32> to vector<12x16x128xf32>
    %c0_15 = arith.constant 0 : index
    %c0_16 = arith.constant 0 : index
    %c0_17 = arith.constant 0 : index
    %18 = vector.load %arg10[%c0_15, %c0_16, %c0_17] : memref<12x16x128xf32, #tpu.memory_space<vmem>>, vector<12x16x128xf32>
    tpu.vector_store %arg10[%c0_15, %c0_16, %c0_17], %17 {strides = array<i32>} : memref<12x16x128xf32, #tpu.memory_space<vmem>>, vector<12x16x128xf32>,
    %cst_18 = arith.constant 0.000000e+00 : f32
    %19 = vector.broadcast %cst_18 : f32 to vector<64x128xf32>
    %c0_19 = arith.constant 0 : index
    %c0_20 = arith.constant 0 : index
    %c0_21 = arith.constant 0 : index
    %20 = vector.load %arg10[%c0_19, %c0_20, %c0_21] : memref<12x16x128xf32, #tpu.memory_space<vmem>>, vector<8x8x128xf32>
    %21 = vector.shape_cast %20 : vector<8x8x128xf32> to vector<64x128xf32>
    %c0_22 = arith.constant 0 : index
    %c0_23 = arith.constant 0 : index
    %c0_24 = arith.constant 0 : index
    %22 = vector.load %arg7[%c0_22, %c0_23, %c0_24] : memref<25x128x128xf32, #tpu.memory_space<vmem>>, vector<1x128x128xf32>
    %23 = vector.shape_cast %22 : vector<1x128x128xf32> to vector<128x128xf32>
    %cst_25 = arith.constant dense<0.000000e+00> : vector<64x128xf32>
    %24 = tpu.matmul %21, %23, %cst_25 {dimension_numbers = #tpu.dot_dimension_numbers<[1], [0], [0], [1], [0, 0, 1, 1], [], []>} : vector<64x128xf32>, vector<128x128xf32>, vector<64x128xf32> -> vector<64x128xf32>
    %25 = arith.addf %19, %24 : vector<64x128xf32>
    %c0_26 = arith.constant 0 : index
    %c1 = arith.constant 1 : index
    %c0_27 = arith.constant 0 : index
    %26 = vector.load %arg10[%c0_26, %c1, %c0_27] : memref<12x16x128xf32, #tpu.memory_space<vmem>>, vector<8x8x128xf32>
    %27 = vector.shape_cast %26 : vector<8x8x128xf32> to vector<64x128xf32>
    %c1_28 = arith.constant 1 : index
    %c0_29 = arith.constant 0 : index
    %c0_30 = arith.constant 0 : index
    %28 = vector.load %arg7[%c1_28, %c0_29, %c0_30] : memref<25x128x128xf32, #tpu.memory_space<vmem>>, vector<1x128x128xf32>
    %29 = vector.shape_cast %28 : vector<1x128x128xf32> to vector<128x128xf32>
    %cst_31 = arith.constant dense<0.000000e+00> : vector<64x128xf32>
    %30 = tpu.matmul %27, %29, %cst_31 {dimension_numbers = #tpu.dot_dimension_numbers<[1], [0], [0], [1], [0, 0, 1, 1], [], []>} : vector<64x128xf32>, vector<128x128xf32>, vector<64x128xf32> -> vector<64x128xf32>
    %31 = arith.addf %25, %30 : vector<64x128xf32>
    %c0_32 = arith.constant 0 : index
    %c2 = arith.constant 2 : index
    %c0_33 = arith.constant 0 : index
    %32 = vector.load %arg10[%c0_32, %c2, %c0_33] : memref<12x16x128xf32, #tpu.memory_space<vmem>>, vector<8x8x128xf32>
    %33 = vector.shape_cast %32 : vector<8x8x128xf32> to vector<64x128xf32>
    %c2_34 = arith.constant 2 : index
    %c0_35 = arith.constant 0 : index
    %c0_36 = arith.constant 0 : index
    %34 = vector.load %arg7[%c2_34, %c0_35, %c0_36] : memref<25x128x128xf32, #tpu.memory_space<vmem>>, vector<1x128x128xf32>
    %35 = vector.shape_cast %34 : vector<1x128x128xf32> to vector<128x128xf32>
    %cst_37 = arith.constant dense<0.000000e+00> : vector<64x128xf32>
    %36 = tpu.matmul %33, %35, %cst_37 {dimension_numbers = #tpu.dot_dimension_numbers<[1], [0], [0], [1], [0, 0, 1, 1], [], []>} : vector<64x128xf32>, vector<128x128xf32>, vector<64x128xf32> -> vector<64x128xf32>
    %37 = arith.addf %31, %36 : vector<64x128xf32>
    %c0_38 = arith.constant 0 : index
    %c3 = arith.constant 3 : index
    %c0_39 = arith.constant 0 : index
    %38 = vector.load %arg10[%c0_38, %c3, %c0_39] : memref<12x16x128xf32, #tpu.memory_space<vmem>>, vector<8x8x128xf32>
    %39 = vector.shape_cast %38 : vector<8x8x128xf32> to vector<64x128xf32>
    %c3_40 = arith.constant 3 : index
    %c0_41 = arith.constant 0 : index
    %c0_42 = arith.constant 0 : index
    %40 = vector.load %arg7[%c3_40, %c0_41, %c0_42] : memref<25x128x128xf32, #tpu.memory_space<vmem>>, vector<1x128x128xf32>
    %41 = vector.shape_cast %40 : vector<1x128x128xf32> to vector<128x128xf32>
    %cst_43 = arith.constant dense<0.000000e+00> : vector<64x128xf32>
    %42 = tpu.matmul %39, %41, %cst_43 {dimension_numbers = #tpu.dot_dimension_numbers<[1], [0], [0], [1], [0, 0, 1, 1], [], []>} : vector<64x128xf32>, vector<128x128xf32>, vector<64x128xf32> -> vector<64x128xf32>
    %43 = arith.addf %37, %42 : vector<64x128xf32>
    %c0_44 = arith.constant 0 : index
    %c4 = arith.constant 4 : index
    %c0_45 = arith.constant 0 : index
    %44 = vector.load %arg10[%c0_44, %c4, %c0_45] : memref<12x16x128xf32, #tpu.memory_space<vmem>>, vector<8x8x128xf32>
    %45 = vector.shape_cast %44 : vector<8x8x128xf32> to vector<64x128xf32>
    %c4_46 = arith.constant 4 : index
    %c0_47 = arith.constant 0 : index
    %c0_48 = arith.constant 0 : index
    %46 = vector.load %arg7[%c4_46, %c0_47, %c0_48] : memref<25x128x128xf32, #tpu.memory_space<vmem>>, vector<1x128x128xf32>
    %47 = vector.shape_cast %46 : vector<1x128x128xf32> to vector<128x128xf32>
    %cst_49 = arith.constant dense<0.000000e+00> : vector<64x128xf32>
    %48 = tpu.matmul %45, %47, %cst_49 {dimension_numbers = #tpu.dot_dimension_numbers<[1], [0], [0], [1], [0, 0, 1, 1], [], []>} : vector<64x128xf32>, vector<128x128xf32>, vector<64x128xf32> -> vector<64x128xf32>
    %49 = arith.addf %43, %48 : vector<64x128xf32>
    %c1_50 = arith.constant 1 : index
    %c0_51 = arith.constant 0 : index
    %c0_52 = arith.constant 0 : index
    %50 = vector.load %arg10[%c1_50, %c0_51, %c0_52] : memref<12x16x128xf32, #tpu.memory_space<vmem>>, vector<8x8x128xf32>
    %51 = vector.shape_cast %50 : vector<8x8x128xf32> to vector<64x128xf32>
    %c5 = arith.constant 5 : index
    %c0_53 = arith.constant 0 : index
    %c0_54 = arith.constant 0 : index
    %52 = vector.load %arg7[%c5, %c0_53, %c0_54] : memref<25x128x128xf32, #tpu.memory_space<vmem>>, vector<1x128x128xf32>
    %53 = vector.shape_cast %52 : vector<1x128x128xf32> to vector<128x128xf32>
    %cst_55 = arith.constant dense<0.000000e+00> : vector<64x128xf32>
    %54 = tpu.matmul %51, %53, %cst_55 {dimension_numbers = #tpu.dot_dimension_numbers<[1], [0], [0], [1], [0, 0, 1, 1], [], []>} : vector<64x128xf32>, vector<128x128xf32>, vector<64x128xf32> -> vector<64x128xf32>
    %55 = arith.addf %49, %54 : vector<64x128xf32>
    %c1_56 = arith.constant 1 : index
    %c1_57 = arith.constant 1 : index
    %c0_58 = arith.constant 0 : index
    %56 = vector.load %arg10[%c1_56, %c1_57, %c0_58] : memref<12x16x128xf32, #tpu.memory_space<vmem>>, vector<8x8x128xf32>
    %57 = vector.shape_cast %56 : vector<8x8x128xf32> to vector<64x128xf32>
    %c6 = arith.constant 6 : index
    %c0_59 = arith.constant 0 : index
    %c0_60 = arith.constant 0 : index
    %58 = vector.load %arg7[%c6, %c0_59, %c0_60] : memref<25x128x128xf32, #tpu.memory_space<vmem>>, vector<1x128x128xf32>
    %59 = vector.shape_cast %58 : vector<1x128x128xf32> to vector<128x128xf32>
    %cst_61 = arith.constant dense<0.000000e+00> : vector<64x128xf32>
    %60 = tpu.matmul %57, %59, %cst_61 {dimension_numbers = #tpu.dot_dimension_numbers<[1], [0], [0], [1], [0, 0, 1, 1], [], []>} : vector<64x128xf32>, vector<128x128xf32>, vector<64x128xf32> -> vector<64x128xf32>
    %61 = arith.addf %55, %60 : vector<64x128xf32>
    %c1_62 = arith.constant 1 : index
    %c2_63 = arith.constant 2 : index
    %c0_64 = arith.constant 0 : index
    %62 = vector.load %arg10[%c1_62, %c2_63, %c0_64] : memref<12x16x128xf32, #tpu.memory_space<vmem>>, vector<8x8x128xf32>
    %63 = vector.shape_cast %62 : vector<8x8x128xf32> to vector<64x128xf32>
    %c7 = arith.constant 7 : index
    %c0_65 = arith.constant 0 : index
    %c0_66 = arith.constant 0 : index
    %64 = vector.load %arg7[%c7, %c0_65, %c0_66] : memref<25x128x128xf32, #tpu.memory_space<vmem>>, vector<1x128x128xf32>
    %65 = vector.shape_cast %64 : vector<1x128x128xf32> to vector<128x128xf32>
    %cst_67 = arith.constant dense<0.000000e+00> : vector<64x128xf32>
    %66 = tpu.matmul %63, %65, %cst_67 {dimension_numbers = #tpu.dot_dimension_numbers<[1], [0], [0], [1], [0, 0, 1, 1], [], []>} : vector<64x128xf32>, vector<128x128xf32>, vector<64x128xf32> -> vector<64x128xf32>
    %67 = arith.addf %61, %66 : vector<64x128xf32>
    %c1_68 = arith.constant 1 : index
    %c3_69 = arith.constant 3 : index
    %c0_70 = arith.constant 0 : index
    %68 = vector.load %arg10[%c1_68, %c3_69, %c0_70] : memref<12x16x128xf32, #tpu.memory_space<vmem>>, vector<8x8x128xf32>
    %69 = vector.shape_cast %68 : vector<8x8x128xf32> to vector<64x128xf32>
    %c8 = arith.constant 8 : index
    %c0_71 = arith.constant 0 : index
    %c0_72 = arith.constant 0 : index
    %70 = vector.load %arg7[%c8, %c0_71, %c0_72] : memref<25x128x128xf32, #tpu.memory_space<vmem>>, vector<1x128x128xf32>
    %71 = vector.shape_cast %70 : vector<1x128x128xf32> to vector<128x128xf32>
    %cst_73 = arith.constant dense<0.000000e+00> : vector<64x128xf32>
    %72 = tpu.matmul %69, %71, %cst_73 {dimension_numbers = #tpu.dot_dimension_numbers<[1], [0], [0], [1], [0, 0, 1, 1], [], []>} : vector<64x128xf32>, vector<128x128xf32>, vector<64x128xf32> -> vector<64x128xf32>
    %73 = arith.addf %67, %72 : vector<64x128xf32>
    %c1_74 = arith.constant 1 : index
    %c4_75 = arith.constant 4 : index
    %c0_76 = arith.constant 0 : index
    %74 = vector.load %arg10[%c1_74, %c4_75, %c0_76] : memref<12x16x128xf32, #tpu.memory_space<vmem>>, vector<8x8x128xf32>
    %75 = vector.shape_cast %74 : vector<8x8x128xf32> to vector<64x128xf32>
    %c9 = arith.constant 9 : index
    %c0_77 = arith.constant 0 : index
    %c0_78 = arith.constant 0 : index
    %76 = vector.load %arg7[%c9, %c0_77, %c0_78] : memref<25x128x128xf32, #tpu.memory_space<vmem>>, vector<1x128x128xf32>
    %77 = vector.shape_cast %76 : vector<1x128x128xf32> to vector<128x128xf32>
    %cst_79 = arith.constant dense<0.000000e+00> : vector<64x128xf32>
    %78 = tpu.matmul %75, %77, %cst_79 {dimension_numbers = #tpu.dot_dimension_numbers<[1], [0], [0], [1], [0, 0, 1, 1], [], []>} : vector<64x128xf32>, vector<128x128xf32>, vector<64x128xf32> -> vector<64x128xf32>
    %79 = arith.addf %73, %78 : vector<64x128xf32>
    %c2_80 = arith.constant 2 : index
    %c0_81 = arith.constant 0 : index
    %c0_82 = arith.constant 0 : index
    %80 = vector.load %arg10[%c2_80, %c0_81, %c0_82] : memref<12x16x128xf32, #tpu.memory_space<vmem>>, vector<8x8x128xf32>
    %81 = vector.shape_cast %80 : vector<8x8x128xf32> to vector<64x128xf32>
    %c10 = arith.constant 10 : index
    %c0_83 = arith.constant 0 : index
    %c0_84 = arith.constant 0 : index
    %82 = vector.load %arg7[%c10, %c0_83, %c0_84] : memref<25x128x128xf32, #tpu.memory_space<vmem>>, vector<1x128x128xf32>
    %83 = vector.shape_cast %82 : vector<1x128x128xf32> to vector<128x128xf32>
    %cst_85 = arith.constant dense<0.000000e+00> : vector<64x128xf32>
    %84 = tpu.matmul %81, %83, %cst_85 {dimension_numbers = #tpu.dot_dimension_numbers<[1], [0], [0], [1], [0, 0, 1, 1], [], []>} : vector<64x128xf32>, vector<128x128xf32>, vector<64x128xf32> -> vector<64x128xf32>
    %85 = arith.addf %79, %84 : vector<64x128xf32>
    %c2_86 = arith.constant 2 : index
    %c1_87 = arith.constant 1 : index
    %c0_88 = arith.constant 0 : index
    %86 = vector.load %arg10[%c2_86, %c1_87, %c0_88] : memref<12x16x128xf32, #tpu.memory_space<vmem>>, vector<8x8x128xf32>
    %87 = vector.shape_cast %86 : vector<8x8x128xf32> to vector<64x128xf32>
    %c11 = arith.constant 11 : index
    %c0_89 = arith.constant 0 : index
    %c0_90 = arith.constant 0 : index
    %88 = vector.load %arg7[%c11, %c0_89, %c0_90] : memref<25x128x128xf32, #tpu.memory_space<vmem>>, vector<1x128x128xf32>
    %89 = vector.shape_cast %88 : vector<1x128x128xf32> to vector<128x128xf32>
    %cst_91 = arith.constant dense<0.000000e+00> : vector<64x128xf32>
    %90 = tpu.matmul %87, %89, %cst_91 {dimension_numbers = #tpu.dot_dimension_numbers<[1], [0], [0], [1], [0, 0, 1, 1], [], []>} : vector<64x128xf32>, vector<128x128xf32>, vector<64x128xf32> -> vector<64x128xf32>
    %91 = arith.addf %85, %90 : vector<64x128xf32>
    %c2_92 = arith.constant 2 : index
    %c2_93 = arith.constant 2 : index
    %c0_94 = arith.constant 0 : index
    %92 = vector.load %arg10[%c2_92, %c2_93, %c0_94] : memref<12x16x128xf32, #tpu.memory_space<vmem>>, vector<8x8x128xf32>
    %93 = vector.shape_cast %92 : vector<8x8x128xf32> to vector<64x128xf32>
    %c12 = arith.constant 12 : index
    %c0_95 = arith.constant 0 : index
    %c0_96 = arith.constant 0 : index
    %94 = vector.load %arg7[%c12, %c0_95, %c0_96] : memref<25x128x128xf32, #tpu.memory_space<vmem>>, vector<1x128x128xf32>
    %95 = vector.shape_cast %94 : vector<1x128x128xf32> to vector<128x128xf32>
    %cst_97 = arith.constant dense<0.000000e+00> : vector<64x128xf32>
    %96 = tpu.matmul %93, %95, %cst_97 {dimension_numbers = #tpu.dot_dimension_numbers<[1], [0], [0], [1], [0, 0, 1, 1], [], []>} : vector<64x128xf32>, vector<128x128xf32>, vector<64x128xf32> -> vector<64x128xf32>
    %97 = arith.addf %91, %96 : vector<64x128xf32>
    %c2_98 = arith.constant 2 : index
    %c3_99 = arith.constant 3 : index
    %c0_100 = arith.constant 0 : index
    %98 = vector.load %arg10[%c2_98, %c3_99, %c0_100] : memref<12x16x128xf32, #tpu.memory_space<vmem>>, vector<8x8x128xf32>
    %99 = vector.shape_cast %98 : vector<8x8x128xf32> to vector<64x128xf32>
    %c13 = arith.constant 13 : index
    %c0_101 = arith.constant 0 : index
    %c0_102 = arith.constant 0 : index
    %100 = vector.load %arg7[%c13, %c0_101, %c0_102] : memref<25x128x128xf32, #tpu.memory_space<vmem>>, vector<1x128x128xf32>
    %101 = vector.shape_cast %100 : vector<1x128x128xf32> to vector<128x128xf32>
    %cst_103 = arith.constant dense<0.000000e+00> : vector<64x128xf32>
    %102 = tpu.matmul %99, %101, %cst_103 {dimension_numbers = #tpu.dot_dimension_numbers<[1], [0], [0], [1], [0, 0, 1, 1], [], []>} : vector<64x128xf32>, vector<128x128xf32>, vector<64x128xf32> -> vector<64x128xf32>
    %103 = arith.addf %97, %102 : vector<64x128xf32>
    %c2_104 = arith.constant 2 : index
    %c4_105 = arith.constant 4 : index
    %c0_106 = arith.constant 0 : index
    %104 = vector.load %arg10[%c2_104, %c4_105, %c0_106] : memref<12x16x128xf32, #tpu.memory_space<vmem>>, vector<8x8x128xf32>
    %105 = vector.shape_cast %104 : vector<8x8x128xf32> to vector<64x128xf32>
    %c14 = arith.constant 14 : index
    %c0_107 = arith.constant 0 : index
    %c0_108 = arith.constant 0 : index
    %106 = vector.load %arg7[%c14, %c0_107, %c0_108] : memref<25x128x128xf32, #tpu.memory_space<vmem>>, vector<1x128x128xf32>
    %107 = vector.shape_cast %106 : vector<1x128x128xf32> to vector<128x128xf32>
    %cst_109 = arith.constant dense<0.000000e+00> : vector<64x128xf32>
    %108 = tpu.matmul %105, %107, %cst_109 {dimension_numbers = #tpu.dot_dimension_numbers<[1], [0], [0], [1], [0, 0, 1, 1], [], []>} : vector<64x128xf32>, vector<128x128xf32>, vector<64x128xf32> -> vector<64x128xf32>
    %109 = arith.addf %103, %108 : vector<64x128xf32>
    %c3_110 = arith.constant 3 : index
    %c0_111 = arith.constant 0 : index
    %c0_112 = arith.constant 0 : index
    %110 = vector.load %arg10[%c3_110, %c0_111, %c0_112] : memref<12x16x128xf32, #tpu.memory_space<vmem>>, vector<8x8x128xf32>
    %111 = vector.shape_cast %110 : vector<8x8x128xf32> to vector<64x128xf32>
    %c15 = arith.constant 15 : index
    %c0_113 = arith.constant 0 : index
    %c0_114 = arith.constant 0 : index
    %112 = vector.load %arg7[%c15, %c0_113, %c0_114] : memref<25x128x128xf32, #tpu.memory_space<vmem>>, vector<1x128x128xf32>
    %113 = vector.shape_cast %112 : vector<1x128x128xf32> to vector<128x128xf32>
    %cst_115 = arith.constant dense<0.000000e+00> : vector<64x128xf32>
    %114 = tpu.matmul %111, %113, %cst_115 {dimension_numbers = #tpu.dot_dimension_numbers<[1], [0], [0], [1], [0, 0, 1, 1], [], []>} : vector<64x128xf32>, vector<128x128xf32>, vector<64x128xf32> -> vector<64x128xf32>
    %115 = arith.addf %109, %114 : vector<64x128xf32>
    %c3_116 = arith.constant 3 : index
    %c1_117 = arith.constant 1 : index
    %c0_118 = arith.constant 0 : index
    %116 = vector.load %arg10[%c3_116, %c1_117, %c0_118] : memref<12x16x128xf32, #tpu.memory_space<vmem>>, vector<8x8x128xf32>
    %117 = vector.shape_cast %116 : vector<8x8x128xf32> to vector<64x128xf32>
    %c16 = arith.constant 16 : index
    %c0_119 = arith.constant 0 : index
    %c0_120 = arith.constant 0 : index
    %118 = vector.load %arg7[%c16, %c0_119, %c0_120] : memref<25x128x128xf32, #tpu.memory_space<vmem>>, vector<1x128x128xf32>
    %119 = vector.shape_cast %118 : vector<1x128x128xf32> to vector<128x128xf32>
    %cst_121 = arith.constant dense<0.000000e+00> : vector<64x128xf32>
    %120 = tpu.matmul %117, %119, %cst_121 {dimension_numbers = #tpu.dot_dimension_numbers<[1], [0], [0], [1], [0, 0, 1, 1], [], []>} : vector<64x128xf32>, vector<128x128xf32>, vector<64x128xf32> -> vector<64x128xf32>
    %121 = arith.addf %115, %120 : vector<64x128xf32>
    %c3_122 = arith.constant 3 : index
    %c2_123 = arith.constant 2 : index
    %c0_124 = arith.constant 0 : index
    %122 = vector.load %arg10[%c3_122, %c2_123, %c0_124] : memref<12x16x128xf32, #tpu.memory_space<vmem>>, vector<8x8x128xf32>
    %123 = vector.shape_cast %122 : vector<8x8x128xf32> to vector<64x128xf32>
    %c17 = arith.constant 17 : index
    %c0_125 = arith.constant 0 : index
    %c0_126 = arith.constant 0 : index
    %124 = vector.load %arg7[%c17, %c0_125, %c0_126] : memref<25x128x128xf32, #tpu.memory_space<vmem>>, vector<1x128x128xf32>
    %125 = vector.shape_cast %124 : vector<1x128x128xf32> to vector<128x128xf32>
    %cst_127 = arith.constant dense<0.000000e+00> : vector<64x128xf32>
    %126 = tpu.matmul %123, %125, %cst_127 {dimension_numbers = #tpu.dot_dimension_numbers<[1], [0], [0], [1], [0, 0, 1, 1], [], []>} : vector<64x128xf32>, vector<128x128xf32>, vector<64x128xf32> -> vector<64x128xf32>
    %127 = arith.addf %121, %126 : vector<64x128xf32>
    %c3_128 = arith.constant 3 : index
    %c3_129 = arith.constant 3 : index
    %c0_130 = arith.constant 0 : index
    %128 = vector.load %arg10[%c3_128, %c3_129, %c0_130] : memref<12x16x128xf32, #tpu.memory_space<vmem>>, vector<8x8x128xf32>
    %129 = vector.shape_cast %128 : vector<8x8x128xf32> to vector<64x128xf32>
    %c18 = arith.constant 18 : index
    %c0_131 = arith.constant 0 : index
    %c0_132 = arith.constant 0 : index
    %130 = vector.load %arg7[%c18, %c0_131, %c0_132] : memref<25x128x128xf32, #tpu.memory_space<vmem>>, vector<1x128x128xf32>
    %131 = vector.shape_cast %130 : vector<1x128x128xf32> to vector<128x128xf32>
    %cst_133 = arith.constant dense<0.000000e+00> : vector<64x128xf32>
    %132 = tpu.matmul %129, %131, %cst_133 {dimension_numbers = #tpu.dot_dimension_numbers<[1], [0], [0], [1], [0, 0, 1, 1], [], []>} : vector<64x128xf32>, vector<128x128xf32>, vector<64x128xf32> -> vector<64x128xf32>
    %133 = arith.addf %127, %132 : vector<64x128xf32>
    %c3_134 = arith.constant 3 : index
    %c4_135 = arith.constant 4 : index
    %c0_136 = arith.constant 0 : index
    %134 = vector.load %arg10[%c3_134, %c4_135, %c0_136] : memref<12x16x128xf32, #tpu.memory_space<vmem>>, vector<8x8x128xf32>
    %135 = vector.shape_cast %134 : vector<8x8x128xf32> to vector<64x128xf32>
    %c19 = arith.constant 19 : index
    %c0_137 = arith.constant 0 : index
    %c0_138 = arith.constant 0 : index
    %136 = vector.load %arg7[%c19, %c0_137, %c0_138] : memref<25x128x128xf32, #tpu.memory_space<vmem>>, vector<1x128x128xf32>
    %137 = vector.shape_cast %136 : vector<1x128x128xf32> to vector<128x128xf32>
    %cst_139 = arith.constant dense<0.000000e+00> : vector<64x128xf32>
    %138 = tpu.matmul %135, %137, %cst_139 {dimension_numbers = #tpu.dot_dimension_numbers<[1], [0], [0], [1], [0, 0, 1, 1], [], []>} : vector<64x128xf32>, vector<128x128xf32>, vector<64x128xf32> -> vector<64x128xf32>
    %139 = arith.addf %133, %138 : vector<64x128xf32>
    %c4_140 = arith.constant 4 : index
    %c0_141 = arith.constant 0 : index
    %c0_142 = arith.constant 0 : index
    %140 = vector.load %arg10[%c4_140, %c0_141, %c0_142] : memref<12x16x128xf32, #tpu.memory_space<vmem>>, vector<8x8x128xf32>
    %141 = vector.shape_cast %140 : vector<8x8x128xf32> to vector<64x128xf32>
    %c20 = arith.constant 20 : index
    %c0_143 = arith.constant 0 : index
    %c0_144 = arith.constant 0 : index
    %142 = vector.load %arg7[%c20, %c0_143, %c0_144] : memref<25x128x128xf32, #tpu.memory_space<vmem>>, vector<1x128x128xf32>
    %143 = vector.shape_cast %142 : vector<1x128x128xf32> to vector<128x128xf32>
    %cst_145 = arith.constant dense<0.000000e+00> : vector<64x128xf32>
    %144 = tpu.matmul %141, %143, %cst_145 {dimension_numbers = #tpu.dot_dimension_numbers<[1], [0], [0], [1], [0, 0, 1, 1], [], []>} : vector<64x128xf32>, vector<128x128xf32>, vector<64x128xf32> -> vector<64x128xf32>
    %145 = arith.addf %139, %144 : vector<64x128xf32>
    %c4_146 = arith.constant 4 : index
    %c1_147 = arith.constant 1 : index
    %c0_148 = arith.constant 0 : index
    %146 = vector.load %arg10[%c4_146, %c1_147, %c0_148] : memref<12x16x128xf32, #tpu.memory_space<vmem>>, vector<8x8x128xf32>
    %147 = vector.shape_cast %146 : vector<8x8x128xf32> to vector<64x128xf32>
    %c21 = arith.constant 21 : index
    %c0_149 = arith.constant 0 : index
    %c0_150 = arith.constant 0 : index
    %148 = vector.load %arg7[%c21, %c0_149, %c0_150] : memref<25x128x128xf32, #tpu.memory_space<vmem>>, vector<1x128x128xf32>
    %149 = vector.shape_cast %148 : vector<1x128x128xf32> to vector<128x128xf32>
    %cst_151 = arith.constant dense<0.000000e+00> : vector<64x128xf32>
    %150 = tpu.matmul %147, %149, %cst_151 {dimension_numbers = #tpu.dot_dimension_numbers<[1], [0], [0], [1], [0, 0, 1, 1], [], []>} : vector<64x128xf32>, vector<128x128xf32>, vector<64x128xf32> -> vector<64x128xf32>
    %151 = arith.addf %145, %150 : vector<64x128xf32>
    %c4_152 = arith.constant 4 : index
    %c2_153 = arith.constant 2 : index
    %c0_154 = arith.constant 0 : index
    %152 = vector.load %arg10[%c4_152, %c2_153, %c0_154] : memref<12x16x128xf32, #tpu.memory_space<vmem>>, vector<8x8x128xf32>
    %153 = vector.shape_cast %152 : vector<8x8x128xf32> to vector<64x128xf32>
    %c22 = arith.constant 22 : index
    %c0_155 = arith.constant 0 : index
    %c0_156 = arith.constant 0 : index
    %154 = vector.load %arg7[%c22, %c0_155, %c0_156] : memref<25x128x128xf32, #tpu.memory_space<vmem>>, vector<1x128x128xf32>
    %155 = vector.shape_cast %154 : vector<1x128x128xf32> to vector<128x128xf32>
    %cst_157 = arith.constant dense<0.000000e+00> : vector<64x128xf32>
    %156 = tpu.matmul %153, %155, %cst_157 {dimension_numbers = #tpu.dot_dimension_numbers<[1], [0], [0], [1], [0, 0, 1, 1], [], []>} : vector<64x128xf32>, vector<128x128xf32>, vector<64x128xf32> -> vector<64x128xf32>
    %157 = arith.addf %151, %156 : vector<64x128xf32>
    %c4_158 = arith.constant 4 : index
    %c3_159 = arith.constant 3 : index
    %c0_160 = arith.constant 0 : index
    %158 = vector.load %arg10[%c4_158, %c3_159, %c0_160] : memref<12x16x128xf32, #tpu.memory_space<vmem>>, vector<8x8x128xf32>
    %159 = vector.shape_cast %158 : vector<8x8x128xf32> to vector<64x128xf32>
    %c23 = arith.constant 23 : index
    %c0_161 = arith.constant 0 : index
    %c0_162 = arith.constant 0 : index
    %160 = vector.load %arg7[%c23, %c0_161, %c0_162] : memref<25x128x128xf32, #tpu.memory_space<vmem>>, vector<1x128x128xf32>
    %161 = vector.shape_cast %160 : vector<1x128x128xf32> to vector<128x128xf32>
    %cst_163 = arith.constant dense<0.000000e+00> : vector<64x128xf32>
    %162 = tpu.matmul %159, %161, %cst_163 {dimension_numbers = #tpu.dot_dimension_numbers<[1], [0], [0], [1], [0, 0, 1, 1], [], []>} : vector<64x128xf32>, vector<128x128xf32>, vector<64x128xf32> -> vector<64x128xf32>
    %163 = arith.addf %157, %162 : vector<64x128xf32>
    %c4_164 = arith.constant 4 : index
    %c4_165 = arith.constant 4 : index
    %c0_166 = arith.constant 0 : index
    %164 = vector.load %arg10[%c4_164, %c4_165, %c0_166] : memref<12x16x128xf32, #tpu.memory_space<vmem>>, vector<8x8x128xf32>
    %165 = vector.shape_cast %164 : vector<8x8x128xf32> to vector<64x128xf32>
    %c24 = arith.constant 24 : index
    %c0_167 = arith.constant 0 : index
    %c0_168 = arith.constant 0 : index
    %166 = vector.load %arg7[%c24, %c0_167, %c0_168] : memref<25x128x128xf32, #tpu.memory_space<vmem>>, vector<1x128x128xf32>
    %167 = vector.shape_cast %166 : vector<1x128x128xf32> to vector<128x128xf32>
    %cst_169 = arith.constant dense<0.000000e+00> : vector<64x128xf32>
    %168 = tpu.matmul %165, %167, %cst_169 {dimension_numbers = #tpu.dot_dimension_numbers<[1], [0], [0], [1], [0, 0, 1, 1], [], []>} : vector<64x128xf32>, vector<128x128xf32>, vector<64x128xf32> -> vector<64x128xf32>
    %169 = arith.addf %163, %168 : vector<64x128xf32>
    %170 = vector.shape_cast %169 : vector<64x128xf32> to vector<8x8x128xf32>
    %171 = vector.extract_strided_slice %170 {offsets = [0, 0, 0], sizes = [1, 8, 128], strides = [1, 1, 1]} : vector<8x8x128xf32> to vector<1x8x128xf32>
    %172 = vector.shape_cast %171 : vector<1x8x128xf32> to vector<8x128xf32>
    %173 = vector.extract_strided_slice %170 {offsets = [1, 0, 0], sizes = [1, 8, 128], strides = [1, 1, 1]} : vector<8x8x128xf32> to vector<1x8x128xf32>
    %174 = vector.shape_cast %173 : vector<1x8x128xf32> to vector<8x128xf32>
    %175 = arith.maximumf %172, %174 : vector<8x128xf32>
    %176 = vector.extract_strided_slice %175 {offsets = [0, 0], sizes = [1, 128], strides = [1, 1]} : vector<8x128xf32> to vector<1x128xf32>
    %177 = vector.extract_strided_slice %175 {offsets = [1, 0], sizes = [1, 128], strides = [1, 1]} : vector<8x128xf32> to vector<1x128xf32>
    %178 = arith.maximumf %176, %177 : vector<1x128xf32>
    %179 = vector.extract_strided_slice %175 {offsets = [2, 0], sizes = [1, 128], strides = [1, 1]} : vector<8x128xf32> to vector<1x128xf32>
    %180 = vector.extract_strided_slice %175 {offsets = [3, 0], sizes = [1, 128], strides = [1, 1]} : vector<8x128xf32> to vector<1x128xf32>
    %181 = arith.maximumf %179, %180 : vector<1x128xf32>
    %182 = vector.extract_strided_slice %175 {offsets = [4, 0], sizes = [1, 128], strides = [1, 1]} : vector<8x128xf32> to vector<1x128xf32>
    %183 = vector.extract_strided_slice %175 {offsets = [5, 0], sizes = [1, 128], strides = [1, 1]} : vector<8x128xf32> to vector<1x128xf32>
    %184 = arith.maximumf %182, %183 : vector<1x128xf32>
    %185 = vector.extract_strided_slice %175 {offsets = [6, 0], sizes = [1, 128], strides = [1, 1]} : vector<8x128xf32> to vector<1x128xf32>
    %186 = vector.extract_strided_slice %175 {offsets = [7, 0], sizes = [1, 128], strides = [1, 1]} : vector<8x128xf32> to vector<1x128xf32>
    %187 = arith.maximumf %185, %186 : vector<1x128xf32>
    %188 = vector.extract_strided_slice %170 {offsets = [2, 0, 0], sizes = [1, 8, 128], strides = [1, 1, 1]} : vector<8x8x128xf32> to vector<1x8x128xf32>
    %189 = vector.shape_cast %188 : vector<1x8x128xf32> to vector<8x128xf32>
    %190 = vector.extract_strided_slice %170 {offsets = [3, 0, 0], sizes = [1, 8, 128], strides = [1, 1, 1]} : vector<8x8x128xf32> to vector<1x8x128xf32>
    %191 = vector.shape_cast %190 : vector<1x8x128xf32> to vector<8x128xf32>
    %192 = arith.maximumf %189, %191 : vector<8x128xf32>
    %193 = vector.extract_strided_slice %192 {offsets = [0, 0], sizes = [1, 128], strides = [1, 1]} : vector<8x128xf32> to vector<1x128xf32>
    %194 = vector.extract_strided_slice %192 {offsets = [1, 0], sizes = [1, 128], strides = [1, 1]} : vector<8x128xf32> to vector<1x128xf32>
    %195 = arith.maximumf %193, %194 : vector<1x128xf32>
    %196 = vector.extract_strided_slice %192 {offsets = [2, 0], sizes = [1, 128], strides = [1, 1]} : vector<8x128xf32> to vector<1x128xf32>
    %197 = vector.extract_strided_slice %192 {offsets = [3, 0], sizes = [1, 128], strides = [1, 1]} : vector<8x128xf32> to vector<1x128xf32>
    %198 = arith.maximumf %196, %197 : vector<1x128xf32>
    %199 = vector.extract_strided_slice %192 {offsets = [4, 0], sizes = [1, 128], strides = [1, 1]} : vector<8x128xf32> to vector<1x128xf32>
    %200 = vector.extract_strided_slice %192 {offsets = [5, 0], sizes = [1, 128], strides = [1, 1]} : vector<8x128xf32> to vector<1x128xf32>
    %201 = arith.maximumf %199, %200 : vector<1x128xf32>
    %202 = vector.extract_strided_slice %192 {offsets = [6, 0], sizes = [1, 128], strides = [1, 1]} : vector<8x128xf32> to vector<1x128xf32>
    %203 = vector.extract_strided_slice %192 {offsets = [7, 0], sizes = [1, 128], strides = [1, 1]} : vector<8x128xf32> to vector<1x128xf32>
    %204 = arith.maximumf %202, %203 : vector<1x128xf32>
    %205 = vector.extract_strided_slice %170 {offsets = [4, 0, 0], sizes = [1, 8, 128], strides = [1, 1, 1]} : vector<8x8x128xf32> to vector<1x8x128xf32>
    %206 = vector.shape_cast %205 : vector<1x8x128xf32> to vector<8x128xf32>
    %207 = vector.extract_strided_slice %170 {offsets = [5, 0, 0], sizes = [1, 8, 128], strides = [1, 1, 1]} : vector<8x8x128xf32> to vector<1x8x128xf32>
    %208 = vector.shape_cast %207 : vector<1x8x128xf32> to vector<8x128xf32>
    %209 = arith.maximumf %206, %208 : vector<8x128xf32>
    %210 = vector.extract_strided_slice %209 {offsets = [0, 0], sizes = [1, 128], strides = [1, 1]} : vector<8x128xf32> to vector<1x128xf32>
    %211 = vector.extract_strided_slice %209 {offsets = [1, 0], sizes = [1, 128], strides = [1, 1]} : vector<8x128xf32> to vector<1x128xf32>
    %212 = arith.maximumf %210, %211 : vector<1x128xf32>
    %213 = vector.extract_strided_slice %209 {offsets = [2, 0], sizes = [1, 128], strides = [1, 1]} : vector<8x128xf32> to vector<1x128xf32>
    %214 = vector.extract_strided_slice %209 {offsets = [3, 0], sizes = [1, 128], strides = [1, 1]} : vector<8x128xf32> to vector<1x128xf32>
    %215 = arith.maximumf %213, %214 : vector<1x128xf32>
    %216 = vector.extract_strided_slice %209 {offsets = [4, 0], sizes = [1, 128], strides = [1, 1]} : vector<8x128xf32> to vector<1x128xf32>
    %217 = vector.extract_strided_slice %209 {offsets = [5, 0], sizes = [1, 128], strides = [1, 1]} : vector<8x128xf32> to vector<1x128xf32>
    %218 = arith.maximumf %216, %217 : vector<1x128xf32>
    %219 = vector.extract_strided_slice %209 {offsets = [6, 0], sizes = [1, 128], strides = [1, 1]} : vector<8x128xf32> to vector<1x128xf32>
    %220 = vector.extract_strided_slice %209 {offsets = [7, 0], sizes = [1, 128], strides = [1, 1]} : vector<8x128xf32> to vector<1x128xf32>
    %221 = arith.maximumf %219, %220 : vector<1x128xf32>
    %222 = vector.extract_strided_slice %170 {offsets = [6, 0, 0], sizes = [1, 8, 128], strides = [1, 1, 1]} : vector<8x8x128xf32> to vector<1x8x128xf32>
    %223 = vector.shape_cast %222 : vector<1x8x128xf32> to vector<8x128xf32>
    %224 = vector.extract_strided_slice %170 {offsets = [7, 0, 0], sizes = [1, 8, 128], strides = [1, 1, 1]} : vector<8x8x128xf32> to vector<1x8x128xf32>
    %225 = vector.shape_cast %224 : vector<1x8x128xf32> to vector<8x128xf32>
    %226 = arith.maximumf %223, %225 : vector<8x128xf32>
    %227 = vector.extract_strided_slice %226 {offsets = [0, 0], sizes = [1, 128], strides = [1, 1]} : vector<8x128xf32> to vector<1x128xf32>
    %228 = vector.extract_strided_slice %226 {offsets = [1, 0], sizes = [1, 128], strides = [1, 1]} : vector<8x128xf32> to vector<1x128xf32>
    %229 = arith.maximumf %227, %228 : vector<1x128xf32>
    %230 = vector.extract_strided_slice %226 {offsets = [2, 0], sizes = [1, 128], strides = [1, 1]} : vector<8x128xf32> to vector<1x128xf32>
    %231 = vector.extract_strided_slice %226 {offsets = [3, 0], sizes = [1, 128], strides = [1, 1]} : vector<8x128xf32> to vector<1x128xf32>
    %232 = arith.maximumf %230, %231 : vector<1x128xf32>
    %233 = vector.extract_strided_slice %226 {offsets = [4, 0], sizes = [1, 128], strides = [1, 1]} : vector<8x128xf32> to vector<1x128xf32>
    %234 = vector.extract_strided_slice %226 {offsets = [5, 0], sizes = [1, 128], strides = [1, 1]} : vector<8x128xf32> to vector<1x128xf32>
    %235 = arith.maximumf %233, %234 : vector<1x128xf32>
    %236 = vector.extract_strided_slice %226 {offsets = [6, 0], sizes = [1, 128], strides = [1, 1]} : vector<8x128xf32> to vector<1x128xf32>
    %237 = vector.extract_strided_slice %226 {offsets = [7, 0], sizes = [1, 128], strides = [1, 1]} : vector<8x128xf32> to vector<1x128xf32>
    %238 = arith.maximumf %236, %237 : vector<1x128xf32>
    %239 = tpu.concatenate %178, %181, %184, %187, %195, %198, %201, %204, %212, %215, %218, %221, %229, %232, %235, %238 in 0 : vector<1x128xf32>, vector<1x128xf32>, vector<1x128xf32>, vector<1x128xf32>, vector<1x128xf32>, vector<1x128xf32>, vector<1x128xf32>, vector<1x128xf32>, vector<1x128xf32>, vector<1x128xf32>, vector<1x128xf32>, vector<1x128xf32>, vector<1x128xf32>, vector<1x128xf32>, vector<1x128xf32>, vector<1x128xf32> -> vector<16x128xf32>
    %c0_170 = arith.constant 0 : index
    %c0_171 = arith.constant 0 : index
    %240 = vector.load %arg8[%c0_170, %c0_171] : memref<1x128xf32, #tpu.memory_space<vmem>>, vector<1x128xf32>
    %241 = vector.broadcast %240 : vector<1x128xf32> to vector<16x128xf32>
    %242 = arith.addf %239, %241 : vector<16x128xf32>
    %cst_172 = arith.constant 0.000000e+00 : f32
    %243 = vector.broadcast %cst_172 : f32 to vector<16x128xf32>
    %244 = arith.maximumf %242, %243 : vector<16x128xf32>
    %c0_173 = arith.constant 0 : index
    %c0_174 = arith.constant 0 : index
    %245 = vector.load %arg9[%c0_173, %c0_174] : memref<16x128xf32, #tpu.memory_space<vmem>>, vector<16x128xf32>
    tpu.vector_store %arg9[%c0_173, %c0_174], %244 {strides = array<i32>} : memref<16x128xf32, #tpu.memory_space<vmem>>, vector<16x128xf32>,
    return
  }
  func.func @transform_0(%arg0: i32) -> (i32, i32) {
    %c0_i32 = arith.constant 0 : i32
    %c0_i32_0 = arith.constant 0 : i32
    return %arg0, %c0_i32 : i32, i32
  }
  func.func @transform_1(%arg0: i32) -> (i32, i32) {
    %c0_i32 = arith.constant 0 : i32
    %c0_i32_0 = arith.constant 0 : i32
    return %arg0, %c0_i32 : i32, i32
  }
  func.func @transform_2(%arg0: i32) -> (i32, i32) {
    %c0_i32 = arith.constant 0 : i32
    %c0_i32_0 = arith.constant 0 : i32
    return %arg0, %c0_i32 : i32, i32
  }
  func.func @transform_3(%arg0: i32) -> (i32, i32) {
    %c0_i32 = arith.constant 0 : i32
    %c0_i32_0 = arith.constant 0 : i32
    return %arg0, %c0_i32 : i32, i32
  }
  func.func @transform_4(%arg0: i32) -> (i32, i32) {
    %c0_i32 = arith.constant 0 : i32
    %c0_i32_0 = arith.constant 0 : i32
    %c0_i32_1 = arith.constant 0 : i32
    return %c0_i32, %c0_i32_0 : i32, i32
  }
  func.func @transform_5(%arg0: i32) -> (i32, i32) {
    %c0_i32 = arith.constant 0 : i32
    %c0_i32_0 = arith.constant 0 : i32
    %c0_i32_1 = arith.constant 0 : i32
    return %c0_i32, %c0_i32_0 : i32, i32
  }
  func.func @transform_6(%arg0: i32) -> (i32, i32, i32) {
    %c0_i32 = arith.constant 0 : i32
    %c0_i32_0 = arith.constant 0 : i32
    %c0_i32_1 = arith.constant 0 : i32
    %c0_i32_2 = arith.constant 0 : i32
    return %c0_i32, %c0_i32_0, %c0_i32_1 : i32, i32, i32
  }
  func.func @transform_7(%arg0: i32) -> (i32, i32) {
    %c0_i32 = arith.constant 0 : i32
    %c0_i32_0 = arith.constant 0 : i32
    %c0_i32_1 = arith.constant 0 : i32
    return %c0_i32, %c0_i32_0 : i32, i32
  }
  func.func @transform_8(%arg0: i32) -> (i32, i32) {
    %c0_i32 = arith.constant 0 : i32
    %c0_i32_0 = arith.constant 0 : i32
    return %arg0, %c0_i32 : i32, i32
  }
}

module attributes {stable_mosaic.version = 11 : i64} {
  func.func @_fc_head_kernel(%arg0: i32, %arg1: memref<8x2048xf32, #tpu.memory_space<vmem>>, %arg2: memref<2048x512xf32, #tpu.memory_space<vmem>>, %arg3: memref<1x512xf32, #tpu.memory_space<vmem>>, %arg4: memref<512x128xf32, #tpu.memory_space<vmem>>, %arg5: memref<1x128xf32, #tpu.memory_space<vmem>>, %arg6: memref<8x128xf32, #tpu.memory_space<vmem>>) attributes {dimension_semantics = [#tpu.dimension_semantics<parallel>], iteration_bounds = array<i64: 1>, scalar_prefetch = 0 : i64, scratch_operands = 0 : i64, tpu.core_type = #tpu.core_type<tc>, window_params = [{transform_indices = @transform_0, window_bounds = array<i64: 8, 2048>}, {pipeline_mode = #tpu.pipeline_mode<synchronous>, transform_indices = @transform_1, window_bounds = array<i64: 2048, 512>}, {pipeline_mode = #tpu.pipeline_mode<synchronous>, transform_indices = @transform_2, window_bounds = array<i64: 1, 512>}, {pipeline_mode = #tpu.pipeline_mode<synchronous>, transform_indices = @transform_3, window_bounds = array<i64: 512, 128>}, {pipeline_mode = #tpu.pipeline_mode<synchronous>, transform_indices = @transform_4, window_bounds = array<i64: 1, 128>}, {transform_indices = @transform_5, window_bounds = array<i64: 8, 128>}]} {
    %c0 = arith.constant 0 : index
    %c0_0 = arith.constant 0 : index
    %0 = vector.load %arg1[%c0, %c0_0] : memref<8x2048xf32, #tpu.memory_space<vmem>>, vector<8x2048xf32>
    %c0_1 = arith.constant 0 : index
    %c0_2 = arith.constant 0 : index
    %1 = vector.load %arg2[%c0_1, %c0_2] : memref<2048x512xf32, #tpu.memory_space<vmem>>, vector<2048x512xf32>
    %cst = arith.constant dense<0.000000e+00> : vector<8x512xf32>
    %2 = tpu.matmul %0, %1, %cst {dimension_numbers = #tpu.dot_dimension_numbers<[1], [0], [0], [1], [0, 0, 1, 1], [], []>} : vector<8x2048xf32>, vector<2048x512xf32>, vector<8x512xf32> -> vector<8x512xf32>
    %c0_3 = arith.constant 0 : index
    %c0_4 = arith.constant 0 : index
    %3 = vector.load %arg3[%c0_3, %c0_4] : memref<1x512xf32, #tpu.memory_space<vmem>>, vector<1x512xf32>
    %4 = vector.broadcast %3 : vector<1x512xf32> to vector<8x512xf32>
    %5 = arith.addf %2, %4 : vector<8x512xf32>
    %cst_5 = arith.constant 0.000000e+00 : f32
    %6 = vector.broadcast %cst_5 : f32 to vector<8x512xf32>
    %7 = arith.maximumf %5, %6 : vector<8x512xf32>
    %c0_6 = arith.constant 0 : index
    %c0_7 = arith.constant 0 : index
    %8 = vector.load %arg4[%c0_6, %c0_7] : memref<512x128xf32, #tpu.memory_space<vmem>>, vector<512x128xf32>
    %cst_8 = arith.constant dense<0.000000e+00> : vector<8x128xf32>
    %9 = tpu.matmul %7, %8, %cst_8 {dimension_numbers = #tpu.dot_dimension_numbers<[1], [0], [0], [1], [0, 0, 1, 1], [], []>} : vector<8x512xf32>, vector<512x128xf32>, vector<8x128xf32> -> vector<8x128xf32>
    %c0_9 = arith.constant 0 : index
    %c0_10 = arith.constant 0 : index
    %10 = vector.load %arg5[%c0_9, %c0_10] : memref<1x128xf32, #tpu.memory_space<vmem>>, vector<1x128xf32>
    %11 = vector.broadcast %10 : vector<1x128xf32> to vector<8x128xf32>
    %12 = arith.addf %9, %11 : vector<8x128xf32>
    %cst_11 = arith.constant dense<0xFF800000> : vector<8xf32>
    %13 = vector.multi_reduction <maximumf>, %12, %cst_11 [1] : vector<8x128xf32> to vector<8xf32>
    %14 = vector.shape_cast %13 : vector<8xf32> to vector<8x1xf32>
    %15 = vector.broadcast %14 : vector<8x1xf32> to vector<8x128xf32>
    %16 = arith.subf %12, %15 : vector<8x128xf32>
    %17 = math.exp %16 : vector<8x128xf32>
    %cst_12 = arith.constant dense<0.000000e+00> : vector<8xf32>
    %18 = vector.multi_reduction <add>, %17, %cst_12 [1] : vector<8x128xf32> to vector<8xf32>
    %19 = vector.shape_cast %18 : vector<8xf32> to vector<8x1xf32>
    %20 = math.log %19 : vector<8x1xf32>
    %21 = arith.addf %14, %20 : vector<8x1xf32>
    %22 = vector.broadcast %21 : vector<8x1xf32> to vector<8x128xf32>
    %23 = arith.subf %12, %22 : vector<8x128xf32>
    %c0_13 = arith.constant 0 : index
    %c0_14 = arith.constant 0 : index
    %24 = vector.load %arg6[%c0_13, %c0_14] : memref<8x128xf32, #tpu.memory_space<vmem>>, vector<8x128xf32>
    tpu.vector_store %arg6[%c0_13, %c0_14], %23 {strides = array<i32>} : memref<8x128xf32, #tpu.memory_space<vmem>>, vector<8x128xf32>,
    return
  }
  func.func @transform_0(%arg0: i32) -> (i32, i32) {
    %c0_i32 = arith.constant 0 : i32
    %c0_i32_0 = arith.constant 0 : i32
    return %arg0, %c0_i32 : i32, i32
  }
  func.func @transform_1(%arg0: i32) -> (i32, i32) {
    %c0_i32 = arith.constant 0 : i32
    %c0_i32_0 = arith.constant 0 : i32
    %c0_i32_1 = arith.constant 0 : i32
    return %c0_i32, %c0_i32_0 : i32, i32
  }
  func.func @transform_2(%arg0: i32) -> (i32, i32) {
    %c0_i32 = arith.constant 0 : i32
    %c0_i32_0 = arith.constant 0 : i32
    %c0_i32_1 = arith.constant 0 : i32
    return %c0_i32, %c0_i32_0 : i32, i32
  }
  func.func @transform_3(%arg0: i32) -> (i32, i32) {
    %c0_i32 = arith.constant 0 : i32
    %c0_i32_0 = arith.constant 0 : i32
    %c0_i32_1 = arith.constant 0 : i32
    return %c0_i32, %c0_i32_0 : i32, i32
  }
  func.func @transform_4(%arg0: i32) -> (i32, i32) {
    %c0_i32 = arith.constant 0 : i32
    %c0_i32_0 = arith.constant 0 : i32
    %c0_i32_1 = arith.constant 0 : i32
    return %c0_i32, %c0_i32_0 : i32, i32
  }
  func.func @transform_5(%arg0: i32) -> (i32, i32) {
    %c0_i32 = arith.constant 0 : i32
    %c0_i32_0 = arith.constant 0 : i32
    return %arg0, %c0_i32 : i32, i32
  }
}

</mosaic_0001>

<bundles_post_ra>
// kernel: lenet_forward.2
= control target key start
LH: loop header
LB: loop body
LE: loop exit
PB: predicated region body
PF: predicated region fallthrough
CT: control target
= control target key end

     0   :  { %s8838_s27 = smov 0   ;;  %s10961_s0 = inlined_call_operand.vmem [shape: f32[384,32], index: 0, kind: input, shape index: {}]   ;;  %s10962_s1 = inlined_call_operand.vmem [shape: f32[384,32], index: 1, kind: input, shape index: {}]   ;;  %s10963_s2 = inlined_call_operand.vmem [shape: f32[384,32], index: 2, kind: input, shape index: {}]   ;;  %s10964_s3 = inlined_call_operand.vmem [shape: f32[384,32], index: 3, kind: input, shape index: {}]   ;;  %s10965_s4 = inlined_call_operand.vmem [shape: f32[32,128], index: 4, kind: input, shape index: {}]   ;;  %s10966_s5 = inlined_call_operand.vmem [shape: f32[1,128], index: 5, kind: input, shape index: {}]   ;;  %s10967_s6 = inlined_call_operand.vmem [shape: f32[25,128,128], index: 6, kind: input, shape index: {}]   ;;  %s10968_s7 = inlined_call_operand.vmem [shape: f32[1,128], index: 7, kind: input, shape index: {}]   ;;  %s10969_s8 = inlined_call_operand.vmem [shape: f32[32,128], index: 8, kind: output, shape index: {}]  }
   0x1 LB: > { %s5270_s28 = sadd.s32 4294967295, %s8791_s27   ;;  %p5274_p0 = scmp.ge.s32.totalorder %s8791_s27, 1  ;;  %s8791_s27 = sphi %s8838_s27, %s18_s27  }
   0x2   : > { %p296_p1 = scmp.lt.s32.totalorder %s8791_s27, 3 }
   0x4   : > { %p297_p2 = pnand %p5274_p0, %p296_p1 }
   0x6   : > { %300 = sbr.rel (%p297_p2) target bundleno = 1032 (0x408), region = 52 }
   0xd   : > { %v375_v0 = vld [vmem:[%s10965_s4] sm:$0xff]  ;;  %v376_v1 = vld [vmem:[%s10965_s4 + $0x8] sm:$0xff]  ;;  %v377_v2 = vld [vmem:[%s10965_s4 + $0x10] sm:$0xff]  ;;  %s345_s13 = smul.u32 24, %s5270_s28  ;;  %vm403_vm0 = vcmask 261120   ;;  %s5279_s11 = sshll.u32 %s5270_s28, 1 }
   0xe   : > { %v8857_v3 = vpack.c.bf16 %v376_v1, %v375_v0  ;;  %v378_v4 = vld [vmem:[%s10965_s4 + $0x18] sm:$0xff]  ;;  %vm5144_vm1 = vcmask 1040384   ;;  %vm5146_vm2 = vcmask 1041408   ;;  %p370_p4 = scmp.lt.s32.totalorder %s5279_s11, 3  ;;  %vm5148_vm3 = vcmask 1042432  }
   0xf   : > { %v8862_v5 = vpack.c.bf16 %v378_v4, %v377_v2  ;;  %p346_p3 = scmp.lt.s32.totalorder %s345_s13, 47  ;;  %vm5150_vm4 = vcmask 1043456   ;;  %vm5152_vm5 = vcmask 1044480   ;;  %vm5154_vm6 = vcmask 1045504  }
  0x10   : > { %7754 = vmatprep.subr.bf16.mxu1 %v8857_v3  ;;  %7770 = vmatprep.subr.bf16.mxu0 %v8857_v3  ;;  %s11052_s11 = smov (!%p370_p4, %s5279_s11), 3  ;;  %vm5156_vm7 = vcmask 1046528  }
  0x11   : > { %7756 = vmatpush3.bf16.msra.mxu1 %v8857_v3  ;;  %s11050_s13 = smov (!%p346_p3, %s345_s13), 47  ;;  %7772 = vmatpush3.bf16.msra.mxu0 %v8857_v3 }
  0x12   : > { %7758 = vmatprep.subr.bf16.mxu1 %v8862_v5  ;;  %7774 = vmatprep.subr.bf16.mxu0 %v8862_v5  ;;  %s8870_s16 = sshll.u32 %s11050_s13, 3  ;;  %s5280_s13 = sshll.u32 %s11052_s11, 3 }
  0x13   : > { %s8876_s19 = scalar_lea.vmem %s10961_s0, %s8870_s16  ;;  %s8905_s22 = scalar_lea.vmem %s10963_s2, %s8870_s16 }
  0x14   : > { %v379_v6 = vld [vmem:[%s8876_s19] sm:$0xff]  ;;  %v380_v7 = vld [vmem:[%s8876_s19 + $0x8] sm:$0xff]  ;;  %v381_v8 = vld [vmem:[%s8876_s19 + $0x10] sm:$0xff]  ;;  %s8967_s25 = scalar_lea.vmem %s10962_s1, %s8870_s16  ;;  %s9044_s30 = scalar_lea.vmem %s10964_s3, %s8870_s16 }
  0x15   : > { %7760 = vmatpush3.bf16.msra.mxu1 %v8862_v5  ;;  %7776 = vmatpush3.bf16.msra.mxu0 %v8862_v5  ;;  %v382_v9 = vld [vmem:[%s8876_s19 + $0x18] sm:$0xff]  ;;  %v383_v10 = vld [vmem:[%s8876_s19 + $0x20] sm:$0xff]  ;;  %v384_v11 = vld [vmem:[%s8876_s19 + $0x28] sm:$0xff]  ;;  %s373_s16 = scalar_lea.vmem %s10969_s8, %s5280_s13 }
  0x16   : > { %6485 = vmatprep.mubr.msk.f32.mxu1 %vm403_vm0, %v379_v6  ;;  %7762 = vmatprep.subr.bf16.mxu1 %v8857_v3  ;;  %v385_v12 = vld [vmem:[%s8876_s19 + $0x30] sm:$0xff]  ;;  %v386_v13 = vld [vmem:[%s8876_s19 + $0x38] sm:$0xff]  ;;  %v387_v14 = vld [vmem:[%s8876_s19 + $0x40] sm:$0xff] }
  0x17   : > { %v388_v15 = vld [vmem:[%s8876_s19 + $0x48] sm:$0xff]  ;;  %v966_v16 = vld [vmem:[%s8905_s22] sm:$0xff]  ;;  %v389_v18 = vld [vmem:[%s8876_s19 + $0x50] sm:$0xff] }
  0x18   : > { %6486 = vmatmul.mubr.msk.f32.vlgmr.msra.gmra.mrb[0].mxu1 %vm403_vm0, %v380_v7  ;;  %v967_v17 = vld [vmem:[%s8905_s22 + $0x8] sm:$0xff]  ;;  %6573 = vmatprep.mubr.msk.f32.mxu0 %vm403_vm0, %v966_v16  ;;  %v968_v19 = vld [vmem:[%s8905_s22 + $0x10] sm:$0xff]  ;;  %v969_v20 = vld [vmem:[%s8905_s22 + $0x18] sm:$0xff] }
  0x19   : > { %7764 = vmatpush3.bf16.msra.mxu1 %v8857_v3  ;;  %6488 = vmatprep.mubr.msk.f32.mxu1 %vm403_vm0, %v381_v8  ;;  %v390_v21 = vld [vmem:[%s8876_s19 + $0x58] sm:$0xff]  ;;  %v970_v22 = vld [vmem:[%s8905_s22 + $0x20] sm:$0xff]  ;;  %v971_v24 = vld [vmem:[%s8905_s22 + $0x28] sm:$0xff] }
  0x1a   : > { %7766 = vmatprep.subr.bf16.mxu1 %v8862_v5  ;;  %6574 = vmatmul.mubr.msk.f32.vlgmr.msra.gmra.mrb[0].mxu0 %vm403_vm0, %v967_v17  ;;  %v391_v23 = vld [vmem:[%s8876_s19 + $0x60] sm:$0xff]  ;;  %v392_v25 = vld [vmem:[%s8876_s19 + $0x68] sm:$0xff]  ;;  %v972_v26 = vld [vmem:[%s8905_s22 + $0x30] sm:$0xff] }
  0x1b   : > { %6576 = vmatprep.mubr.msk.f32.mxu0 %vm403_vm0, %v968_v19  ;;  %v393_v27 = vld [vmem:[%s8876_s19 + $0x70] sm:$0xff]  ;;  %v973_v28 = vld [vmem:[%s8905_s22 + $0x38] sm:$0xff]  ;;  %v974_v30 = vld [vmem:[%s8905_s22 + $0x40] sm:$0xff] }
  0x1c   : > { %6489 = vmatmul.mubr.msk.f32.gmra.mrb[2].mxu1 %vm403_vm0, %v382_v9  ;;  %v394_v29 = vld [vmem:[%s8876_s19 + $0x78] sm:$0xff]  ;;  %v395_v31 = vld [vmem:[%s8876_s19 + $0x80] sm:$0xff]  ;;  %v975_v32 = vld [vmem:[%s8905_s22 + $0x48] sm:$0xff] }
  0x1d   : > { %6491 = vmatprep.mubr.msk.f32.mxu1 %vm403_vm0, %v383_v10  ;;  %7768 = vmatpush3.bf16.msra.mxu1 %v8862_v5  ;;  %v396_v33 = vld [vmem:[%s8876_s19 + $0x88] sm:$0xff]  ;;  %v976_v34 = vld [vmem:[%s8905_s22 + $0x50] sm:$0xff]  ;;  %v977_v36 = vld [vmem:[%s8905_s22 + $0x58] sm:$0xff] }
  0x1e   : > { %7778 = vmatprep.subr.bf16.mxu1 %v8857_v3  ;;  %6577 = vmatmul.mubr.msk.f32.gmra.mrb[2].mxu0 %vm403_vm0, %v969_v20  ;;  %v397_v35 = vld [vmem:[%s8876_s19 + $0x90] sm:$0xff]  ;;  %v398_v37 = vld [vmem:[%s8876_s19 + $0x98] sm:$0xff]  ;;  %v978_v38 = vld [vmem:[%s8905_s22 + $0x60] sm:$0xff] }
  0x1f   : > { %6579 = vmatprep.mubr.msk.f32.mxu0 %vm403_vm0, %v970_v22  ;;  %v399_v39 = vld [vmem:[%s8876_s19 + $0xa0] sm:$0xff]  ;;  %v979_v40 = vld [vmem:[%s8905_s22 + $0x68] sm:$0xff]  ;;  %v980_v42 = vld [vmem:[%s8905_s22 + $0x70] sm:$0xff] }
  0x20   : > { %6492 = vmatmul.mubr.msk.f32.gmra.mrb[4].mxu1 %vm403_vm0, %v384_v11  ;;  %v400_v41 = vld [vmem:[%s8876_s19 + $0xa8] sm:$0xff]  ;;  %v401_v43 = vld [vmem:[%s8876_s19 + $0xb0] sm:$0xff]  ;;  %v981_v44 = vld [vmem:[%s8905_s22 + $0x78] sm:$0xff] }
  0x21   : > { %6494 = vmatprep.mubr.msk.f32.mxu1 %vm403_vm0, %v385_v12  ;;  %v402_v45 = vld [vmem:[%s8876_s19 + $0xb8] sm:$0xff]  ;;  %v982_v46 = vld [vmem:[%s8905_s22 + $0x80] sm:$0xff]  ;;  %v983_v48 = vld [vmem:[%s8905_s22 + $0x88] sm:$0xff] }
  0x22   : > { %6580 = vmatmul.mubr.msk.f32.gmra.mrb[4].mxu0 %vm403_vm0, %v971_v24  ;;  %v661_v47 = vld [vmem:[%s8967_s25] sm:$0xff]  ;;  %v662_v49 = vld [vmem:[%s8967_s25 + $0x8] sm:$0xff]  ;;  %v984_v50 = vld [vmem:[%s8905_s22 + $0x90] sm:$0xff] }
  0x23   : > { %6582 = vmatprep.mubr.msk.f32.mxu0 %vm403_vm0, %v972_v26  ;;  %v663_v51 = vld [vmem:[%s8967_s25 + $0x10] sm:$0xff]  ;;  %v985_v52 = vld [vmem:[%s8905_s22 + $0x98] sm:$0xff]  ;;  %v986_v54 = vld [vmem:[%s8905_s22 + $0xa0] sm:$0xff] }
  0x24   : > { %6495 = vmatmul.mubr.msk.f32.gmra.mrb[6].mxu1 %vm403_vm0, %v386_v13  ;;  %v664_v53 = vld [vmem:[%s8967_s25 + $0x18] sm:$0xff]  ;;  %v665_v55 = vld [vmem:[%s8967_s25 + $0x20] sm:$0xff]  ;;  %v987_v56 = vld [vmem:[%s8905_s22 + $0xa8] sm:$0xff] }
  0x25   : > { %6497 = vmatprep.mubr.msk.f32.mxu1 %vm403_vm0, %v387_v14  ;;  %v666_v57 = vld [vmem:[%s8967_s25 + $0x28] sm:$0xff]  ;;  %v988_v58 = vld [vmem:[%s8905_s22 + $0xb0] sm:$0xff]  ;;  %v989_v60 = vld [vmem:[%s8905_s22 + $0xb8] sm:$0xff] }
  0x26   : > { %6583 = vmatmul.mubr.msk.f32.gmra.mrb[6].mxu0 %vm403_vm0, %v973_v28  ;;  %v667_v59 = vld [vmem:[%s8967_s25 + $0x30] sm:$0xff]  ;;  %v668_v61 = vld [vmem:[%s8967_s25 + $0x38] sm:$0xff]  ;;  %v669_v62 = vld [vmem:[%s8967_s25 + $0x40] sm:$0xff] }
  0x27   : > { %6585 = vmatprep.mubr.msk.f32.mxu0 %vm403_vm0, %v974_v30  ;;  %v670_v63 = vld [vmem:[%s8967_s25 + $0x48] sm:$0xff]  ;;  %v671_v0 = vld [vmem:[%s8967_s25 + $0x50] sm:$0xff]  ;;  %v672_v1 = vld [vmem:[%s8967_s25 + $0x58] sm:$0xff] }
  0x28   : > { %6498 = vmatmul.mubr.msk.f32.gmra.mrb[8].mxu1 %vm403_vm0, %v388_v15  ;;  %v673_v2 = vld [vmem:[%s8967_s25 + $0x60] sm:$0xff]  ;;  %v675_v4 = vld [vmem:[%s8967_s25 + $0x70] sm:$0xff]  ;;  %v678_v7 = vld [vmem:[%s8967_s25 + $0x88] sm:$0xff] }
  0x29   : > { %6500 = vmatprep.mubr.msk.f32.mxu1 %vm403_vm0, %v389_v18  ;;  %v677_v6 = vld [vmem:[%s8967_s25 + $0x80] sm:$0xff]  ;;  %v679_v8 = vld [vmem:[%s8967_s25 + $0x90] sm:$0xff]  ;;  %v680_v9 = vld [vmem:[%s8967_s25 + $0x98] sm:$0xff] }
  0x2a   : > { %6586 = vmatmul.mubr.msk.f32.gmra.mrb[8].mxu0 %vm403_vm0, %v975_v32  ;;  %v681_v10 = vld [vmem:[%s8967_s25 + $0xa0] sm:$0xff]  ;;  %v682_v11 = vld [vmem:[%s8967_s25 + $0xa8] sm:$0xff]  ;;  %v683_v12 = vld [vmem:[%s8967_s25 + $0xb0] sm:$0xff] }
  0x2b   : > { %6588 = vmatprep.mubr.msk.f32.mxu0 %vm403_vm0, %v976_v34  ;;  %v684_v13 = vld [vmem:[%s8967_s25 + $0xb8] sm:$0xff]  ;;  %v1247_v14 = vld [vmem:[%s9044_s30] sm:$0xff]  ;;  %v1248_v15 = vld [vmem:[%s9044_s30 + $0x8] sm:$0xff] }
  0x2c   : > { %6501 = vmatmul.mubr.msk.f32.gmra.mrb[10].mxu1 %vm403_vm0, %v390_v21  ;;  %v1249_v16 = vld [vmem:[%s9044_s30 + $0x10] sm:$0xff]  ;;  %v1250_v17 = vld [vmem:[%s9044_s30 + $0x18] sm:$0xff]  ;;  %v1251_v18 = vld [vmem:[%s9044_s30 + $0x20] sm:$0xff] }
  0x2d   : > { %6503 = vmatprep.mubr.msk.f32.mxu1 %vm403_vm0, %v391_v23  ;;  %v1252_v19 = vld [vmem:[%s9044_s30 + $0x28] sm:$0xff]  ;;  %v1253_v20 = vld [vmem:[%s9044_s30 + $0x30] sm:$0xff]  ;;  %v1254_v21 = vld [vmem:[%s9044_s30 + $0x38] sm:$0xff] }
  0x2e   : > { %6589 = vmatmul.mubr.msk.f32.gmra.mrb[10].mxu0 %vm403_vm0, %v977_v36  ;;  %v1255_v22 = vld [vmem:[%s9044_s30 + $0x40] sm:$0xff]  ;;  %v1256_v23 = vld [vmem:[%s9044_s30 + $0x48] sm:$0xff]  ;;  %v1257_v24 = vld [vmem:[%s9044_s30 + $0x50] sm:$0xff] }
  0x2f   : > { %6591 = vmatprep.mubr.msk.f32.mxu0 %vm403_vm0, %v978_v38  ;;  %v1259_v26 = vld [vmem:[%s9044_s30 + $0x60] sm:$0xff]  ;;  %v1261_v28 = vld [vmem:[%s9044_s30 + $0x70] sm:$0xff] }
  0x30   : > { %6504 = vmatmul.mubr.msk.f32.gmra.mrb[12].mxu1 %vm403_vm0, %v392_v25  ;;  %v1258_v25 = vld [vmem:[%s9044_s30 + $0x58] sm:$0xff]  ;;  %v1263_v30 = vld [vmem:[%s9044_s30 + $0x80] sm:$0xff]  ;;  %v1265_v32 = vld [vmem:[%s9044_s30 + $0x90] sm:$0xff] }
  0x31   : > { %6506 = vmatprep.mubr.msk.f32.mxu1 %vm403_vm0, %v393_v27  ;;  %v1260_v27 = vld [vmem:[%s9044_s30 + $0x68] sm:$0xff]  ;;  %v1267_v34 = vld [vmem:[%s9044_s30 + $0xa0] sm:$0xff]  ;;  %v1269_v36 = vld [vmem:[%s9044_s30 + $0xb0] sm:$0xff] }
  0x32   : > { %6592 = vmatmul.mubr.msk.f32.gmra.mrb[12].mxu0 %vm403_vm0, %v979_v40  ;;  %v5538_v38 = vld [vmem:[%s10967_s6 + $0x580] sm:$0xff] }
  0x33   : > { %6594 = vmatprep.mubr.msk.f32.mxu0 %vm403_vm0, %v980_v42  ;;  %v5379_v42 = vld [vmem:[%s10967_s6 + $0x88] sm:$0xff] }
  0x34   : > { %6507 = vmatmul.mubr.msk.f32.gmra.mrb[14].mxu1 %vm403_vm0, %v394_v29  ;;  %v1262_v29 = vld [vmem:[%s9044_s30 + $0x78] sm:$0xff] }
  0x35   : > { %6509 = vmatprep.mubr.msk.f32.mxu1 %vm403_vm0, %v395_v31  ;;  %v1264_v31 = vld [vmem:[%s9044_s30 + $0x88] sm:$0xff] }
  0x36   : > { %6595 = vmatmul.mubr.msk.f32.gmra.mrb[14].mxu0 %vm403_vm0, %v981_v44  ;;  %v5540_v44 = vld [vmem:[%s10967_s6 + $0x590] sm:$0xff] }
  0x37   : > { %6597 = vmatprep.mubr.msk.f32.mxu0 %vm403_vm0, %v982_v46 }
  0x38   : > { %6510 = vmatmul.mubr.msk.f32.gmra.mrb[16].mxu1 %vm403_vm0, %v396_v33  ;;  %v1266_v33 = vld [vmem:[%s9044_s30 + $0x98] sm:$0xff] }
  0x39   : > { %6512 = vmatprep.mubr.msk.f32.mxu1 %vm403_vm0, %v397_v35  ;;  %v1268_v35 = vld [vmem:[%s9044_s30 + $0xa8] sm:$0xff] }
  0x3a   : > { %6598 = vmatmul.mubr.msk.f32.gmra.mrb[16].mxu0 %vm403_vm0, %v983_v48  ;;  %v5381_v48 = vld [vmem:[%s10967_s6 + $0x98] sm:$0xff] }
  0x3b   : > { %6600 = vmatprep.mubr.msk.f32.mxu0 %vm403_vm0, %v984_v50  ;;  %v5542_v50 = vld [vmem:[%s10967_s6 + $0x5a0] sm:$0xff] }
  0x3c   : > { %6513 = vmatmul.mubr.msk.f32.gmra.mrb[18].mxu1 %vm403_vm0, %v398_v37  ;;  %v1270_v37 = vld [vmem:[%s9044_s30 + $0xb8] sm:$0xff] }
  0x3d   : > { %6515 = vmatprep.mubr.msk.f32.mxu1 %vm403_vm0, %v399_v39  ;;  %v5539_v39 = vld [vmem:[%s10967_s6 + $0x588] sm:$0xff] }
  0x3e   : > { %6601 = vmatmul.mubr.msk.f32.gmra.mrb[18].mxu0 %vm403_vm0, %v985_v52  ;;  %v8137_v40 = vpack.c.bf16 %v5539_v39, %v5538_v38  ;;  %v5382_v52 = vld [vmem:[%s10967_s6 + $0xa0] sm:$0xff] }
  0x3f   : > { %6603 = vmatprep.mubr.msk.f32.mxu0 %vm403_vm0, %v986_v54  ;;  %v5383_v54 = vld [vmem:[%s10967_s6 + $0xa8] sm:$0xff] }
  0x40   : > { %6516 = vmatmul.mubr.msk.f32.gmra.mrb[20].mxu1 %vm403_vm0, %v400_v41  ;;  %8138 = vmatprep.subr.bf16.mxu0 %v8137_v40  ;;  %v5378_v41 = vld [vmem:[%s10967_s6 + $0x80] sm:$0xff] }
  0x41   : > { %6518 = vmatprep.mubr.msk.f32.mxu1 %vm403_vm0, %v401_v43  ;;  %8140 = vmatpush3.bf16.msra.mxu0 %v8137_v40  ;;  %v7785_v43 = vpack.c.bf16 %v5379_v42, %v5378_v41 }
  0x42   : > { %6604 = vmatmul.mubr.msk.f32.gmra.mrb[20].mxu0 %vm403_vm0, %v987_v56  ;;  %v5384_v56 = vld [vmem:[%s10967_s6 + $0xb0] sm:$0xff] }
  0x43   : > { %6606 = vmatprep.mubr.msk.f32.mxu0 %vm403_vm0, %v988_v58 }
  0x44   : > { %6519 = vmatmul.mubr.msk.f32.gmra.mrb[22].mxu1 %vm403_vm0, %v402_v45  ;;  %v5541_v45 = vld [vmem:[%s10967_s6 + $0x598] sm:$0xff] }
  0x45   : > { %6529 = vmatprep.mubr.msk.f32.mxu1 %vm403_vm0, %v661_v47  ;;  %v8141_v46 = vpack.c.bf16 %v5541_v45, %v5540_v44  ;;  %v5380_v47 = vld [vmem:[%s10967_s6 + $0x90] sm:$0xff] }
  0x46   : > { %6607 = vmatmul.mubr.msk.f32.gmra.mrb[22].mxu0 %vm403_vm0, %v989_v60  ;;  %v5387_v60 = vld [vmem:[%s10967_s6 + $0xc8] sm:$0xff] }
  0x47   : > { %8142 = vmatprep.subr.bf16.mxu0 %v8141_v46 }
  0x48   : > { %6530 = vmatmul.mubr.msk.f32.vlgmr.msra.gmra.mrb[24].mxu1 %vm403_vm0, %v662_v49  ;;  %v7789_v49 = vpack.c.bf16 %v5381_v48, %v5380_v47  ;;  %8144 = vmatpush3.bf16.msra.mxu0 %v8141_v46 }
  0x49   : > { %7780 = vmatpush3.bf16.msra.mxu1 %v8857_v3  ;;  %6532 = vmatprep.mubr.msk.f32.mxu1 %vm403_vm0, %v663_v51  ;;  %v674_v3 = vld [vmem:[%s8967_s25 + $0x68] sm:$0xff] }
  0x4a   : > { %7782 = vmatprep.subr.bf16.mxu1 %v8862_v5  ;;  %v5543_v51 = vld [vmem:[%s10967_s6 + $0x5a8] sm:$0xff] }
  0x4c   : > { %6533 = vmatmul.mubr.msk.f32.gmra.mrb[26].mxu1 %vm403_vm0, %v664_v53  ;;  %v8145_v53 = vpack.c.bf16 %v5543_v51, %v5542_v50 }
  0x4d   : > { %6535 = vmatprep.mubr.msk.f32.mxu1 %vm403_vm0, %v665_v55  ;;  %7784 = vmatpush3.bf16.msra.mxu1 %v8862_v5  ;;  %v676_v5 = vld [vmem:[%s8967_s25 + $0x78] sm:$0xff]  ;;  %v7793_v55 = vpack.c.bf16 %v5383_v54, %v5382_v52 }
  0x4e   : > { %7786 = vmatprep.subr.bf16.mxu1 %v7785_v43  ;;  %8146 = vmatprep.subr.bf16.mxu0 %v8145_v53 }
  0x4f   : > { %8148 = vmatpush3.bf16.msra.mxu0 %v8145_v53 }
  0x50   : > { %6536 = vmatmul.mubr.msk.f32.gmra.mrb[28].mxu1 %vm403_vm0, %v666_v57  ;;  %v5385_v57 = vld [vmem:[%s10967_s6 + $0xb8] sm:$0xff] }
  0x51   : > { %6538 = vmatprep.mubr.msk.f32.mxu1 %vm403_vm0, %v667_v59  ;;  %v7797_v58 = vpack.c.bf16 %v5385_v57, %v5384_v56  ;;  %v5386_v59 = vld [vmem:[%s10967_s6 + $0xc0] sm:$0xff] }
  0x54   : > { %6539 = vmatmul.mubr.msk.f32.gmra.mrb[30].mxu1 %vm403_vm0, %v668_v61  ;;  %v7801_v61 = vpack.c.bf16 %v5387_v60, %v5386_v59 }
  0x55   : > { %6541 = vmatprep.mubr.msk.f32.mxu1 %vm403_vm0, %v669_v62  ;;  %v5544_v62 = vld [vmem:[%s10967_s6 + $0x5b0] sm:$0xff] }
  0x58   : > { %6542 = vmatmul.mubr.msk.f32.gmra.mrb[32].mxu1 %vm403_vm0, %v670_v63  ;;  %v5545_v63 = vld [vmem:[%s10967_s6 + $0x5b8] sm:$0xff] }
  0x59   : > { %6544 = vmatprep.mubr.msk.f32.mxu1 %vm403_vm0, %v671_v0  ;;  %v5388_v0 = vld [vmem:[%s10967_s6 + $0xd0] sm:$0xff] }
  0x5c   : > { %6545 = vmatmul.mubr.msk.f32.gmra.mrb[34].mxu1 %vm403_vm0, %v672_v1  ;;  %v8149_v1 = vpack.c.bf16 %v5545_v63, %v5544_v62 }
  0x5d   : > { %6547 = vmatprep.mubr.msk.f32.mxu1 %vm403_vm0, %v673_v2  ;;  %v5389_v2 = vld [vmem:[%s10967_s6 + $0xd8] sm:$0xff] }
  0x5e   : > { %8150 = vmatprep.subr.bf16.mxu0 %v8149_v1 }
  0x5f   : > { %8152 = vmatpush3.bf16.msra.mxu0 %v8149_v1 }
  0x60   : > { %6548 = vmatmul.mubr.msk.f32.gmra.mrb[36].mxu1 %vm403_vm0, %v674_v3  ;;  %v7805_v3 = vpack.c.bf16 %v5389_v2, %v5388_v0 }
  0x61   : > { %6550 = vmatprep.mubr.msk.f32.mxu1 %vm403_vm0, %v675_v4  ;;  %v5546_v4 = vld [vmem:[%s10967_s6 + $0x5c0] sm:$0xff] }
  0x64   : > { %6551 = vmatmul.mubr.msk.f32.gmra.mrb[38].mxu1 %vm403_vm0, %v676_v5  ;;  %v5547_v5 = vld [vmem:[%s10967_s6 + $0x5c8] sm:$0xff] }
  0x65   : > { %6553 = vmatprep.mubr.msk.f32.mxu1 %vm403_vm0, %v677_v6  ;;  %v5390_v6 = vld [vmem:[%s10967_s6 + $0xe0] sm:$0xff] }
  0x68   : > { %6554 = vmatmul.mubr.msk.f32.gmra.mrb[40].mxu1 %vm403_vm0, %v678_v7  ;;  %v8153_v7 = vpack.c.bf16 %v5547_v5, %v5546_v4 }
  0x69   : > { %6556 = vmatprep.mubr.msk.f32.mxu1 %vm403_vm0, %v679_v8  ;;  %v5391_v8 = vld [vmem:[%s10967_s6 + $0xe8] sm:$0xff] }
  0x6a   : > { %8154 = vmatprep.subr.bf16.mxu0 %v8153_v7 }
  0x6b   : > { %8156 = vmatpush3.bf16.msra.mxu0 %v8153_v7 }
  0x6c   : > { %6557 = vmatmul.mubr.msk.f32.gmra.mrb[42].mxu1 %vm403_vm0, %v680_v9  ;;  %v7809_v9 = vpack.c.bf16 %v5391_v8, %v5390_v6 }
  0x6d   : > { %6559 = vmatprep.mubr.msk.f32.mxu1 %vm403_vm0, %v681_v10  ;;  %v5548_v10 = vld [vmem:[%s10967_s6 + $0x5d0] sm:$0xff] }
  0x70   : > { %6560 = vmatmul.mubr.msk.f32.gmra.mrb[44].mxu1 %vm403_vm0, %v682_v11  ;;  %v5549_v11 = vld [vmem:[%s10967_s6 + $0x5d8] sm:$0xff] }
  0x71   : > { %6562 = vmatprep.mubr.msk.f32.mxu1 %vm403_vm0, %v683_v12  ;;  %v5392_v12 = vld [vmem:[%s10967_s6 + $0xf0] sm:$0xff] }
  0x74   : > { %6563 = vmatmul.mubr.msk.f32.gmra.mrb[46].mxu1 %vm403_vm0, %v684_v13  ;;  %v8157_v13 = vpack.c.bf16 %v5549_v11, %v5548_v10 }
  0x75   : > { %6617 = vmatprep.mubr.msk.f32.mxu1 %vm403_vm0, %v1247_v14  ;;  %v5393_v14 = vld [vmem:[%s10967_s6 + $0xf8] sm:$0xff] }
  0x76   : > { %8158 = vmatprep.subr.bf16.mxu0 %v8157_v13 }
  0x77   : > { %8160 = vmatpush3.bf16.msra.mxu0 %v8157_v13 }
  0x78   : > { %6618 = vmatmul.mubr.msk.f32.vlgmr.msra.gmra.mrb[48].mxu1 %vm403_vm0, %v1248_v15  ;;  %v7813_v15 = vpack.c.bf16 %v5393_v14, %v5392_v12 }
  0x79   : > { %6620 = vmatprep.mubr.msk.f32.mxu1 %vm403_vm0, %v1249_v16  ;;  %7788 = vmatpush3.bf16.msra.mxu1 %v7785_v43  ;;  %v5550_v16 = vld [vmem:[%s10967_s6 + $0x5e0] sm:$0xff] }
  0x7a   : > { %7790 = vmatprep.subr.bf16.mxu1 %v7789_v49 }
  0x7c   : > { %6621 = vmatmul.mubr.msk.f32.gmra.mrb[50].mxu1 %vm403_vm0, %v1250_v17  ;;  %v5551_v17 = vld [vmem:[%s10967_s6 + $0x5e8] sm:$0xff] }
  0x7d   : > { %6623 = vmatprep.mubr.msk.f32.mxu1 %vm403_vm0, %v1251_v18  ;;  %7792 = vmatpush3.bf16.msra.mxu1 %v7789_v49  ;;  %v1663_v18 = vld [vmem:[%s10967_s6] sm:$0xff] }
  0x7e   : > { %7794 = vmatprep.subr.bf16.mxu1 %v7793_v55 }
  0x80   : > { %6624 = vmatmul.mubr.msk.f32.gmra.mrb[52].mxu1 %vm403_vm0, %v1252_v19  ;;  %v8161_v19 = vpack.c.bf16 %v5551_v17, %v5550_v16 }
  0x81   : > { %6626 = vmatprep.mubr.msk.f32.mxu1 %vm403_vm0, %v1253_v20  ;;  %7796 = vmatpush3.bf16.msra.mxu1 %v7793_v55  ;;  %v1664_v20 = vld [vmem:[%s10967_s6 + $0x8] sm:$0xff] }
  0x82   : > { %7798 = vmatprep.subr.bf16.mxu1 %v7797_v58  ;;  %8162 = vmatprep.subr.bf16.mxu0 %v8161_v19 }
  0x83   : > { %8164 = vmatpush3.bf16.msra.mxu0 %v8161_v19 }
  0x84   : > { %6627 = vmatmul.mubr.msk.f32.gmra.mrb[54].mxu1 %vm403_vm0, %v1254_v21  ;;  %v9194_v21 = vpack.c.bf16 %v1664_v20, %v1663_v18 }
  0x85   : > { %6629 = vmatprep.mubr.msk.f32.mxu1 %vm403_vm0, %v1255_v22  ;;  %7800 = vmatpush3.bf16.msra.mxu1 %v7797_v58  ;;  %v5552_v22 = vld [vmem:[%s10967_s6 + $0x5f0] sm:$0xff] }
  0x86   : > { %7802 = vmatprep.subr.bf16.mxu1 %v7801_v61 }
  0x88   : > { %6630 = vmatmul.mubr.msk.f32.gmra.mrb[56].mxu1 %vm403_vm0, %v1256_v23  ;;  %v5553_v23 = vld [vmem:[%s10967_s6 + $0x5f8] sm:$0xff] }
  0x89   : > { %6632 = vmatprep.mubr.msk.f32.mxu1 %vm403_vm0, %v1257_v24  ;;  %7804 = vmatpush3.bf16.msra.mxu1 %v7801_v61  ;;  %v8165_v24 = vpack.c.bf16 %v5553_v23, %v5552_v22 }
  0x8a   : > { %7806 = vmatprep.subr.bf16.mxu1 %v7805_v3 }
  0x8b   : > { %8166 = vmatprep.subr.bf16.mxu0 %v8165_v24 }
  0x8c   : > { %6633 = vmatmul.mubr.msk.f32.gmra.mrb[58].mxu1 %vm403_vm0, %v1258_v25  ;;  %8168 = vmatpush3.bf16.msra.mxu0 %v8165_v24  ;;  %v5554_v25 = vld [vmem:[%s10967_s6 + $0x600] sm:$0xff] }
  0x8d   : > { %6635 = vmatprep.mubr.msk.f32.mxu1 %vm403_vm0, %v1259_v26  ;;  %7808 = vmatpush3.bf16.msra.mxu1 %v7805_v3  ;;  %v5555_v26 = vld [vmem:[%s10967_s6 + $0x608] sm:$0xff] }
  0x8e   : > { %7810 = vmatprep.subr.bf16.mxu1 %v7809_v9 }
  0x90   : > { %6636 = vmatmul.mubr.msk.f32.gmra.mrb[60].mxu1 %vm403_vm0, %v1260_v27  ;;  %v9209_v27 = vpack.c.bf16 %v5555_v26, %v5554_v25 }
  0x91   : > { %6638 = vmatprep.mubr.msk.f32.mxu1 %vm403_vm0, %v1261_v28  ;;  %7812 = vmatpush3.bf16.msra.mxu1 %v7809_v9 }
  0x92   : > { %7814 = vmatprep.subr.bf16.mxu1 %v7813_v15  ;;  %8170 = vmatprep.subr.bf16.mxu0 %v9209_v27 }
  0x94   : > { %6639 = vmatmul.mubr.msk.f32.gmra.mrb[62].mxu1 %vm403_vm0, %v1262_v29 }
  0x95   : > { %6641 = vmatprep.mubr.msk.f32.mxu1 %vm403_vm0, %v1263_v30  ;;  %7816 = vmatpush3.bf16.msra.mxu1 %v7813_v15 }
  0x96   : > { %7818 = vmatprep.subr.bf16.mxu1 %v9194_v21 }
  0x98   : > { %6642 = vmatmul.mubr.msk.f32.gmra.mrb[64].mxu1 %vm403_vm0, %v1264_v31 }
  0x99   : > { %6644 = vmatprep.mubr.msk.f32.mxu1 %vm403_vm0, %v1265_v32 }
  0x9c   : > { %6645 = vmatmul.mubr.msk.f32.gmra.mrb[66].mxu1 %vm403_vm0, %v1266_v33 }
  0x9d   : > { %6647 = vmatprep.mubr.msk.f32.mxu1 %vm403_vm0, %v1267_v34 }
  0xa0   : > { %6648 = vmatmul.mubr.msk.f32.gmra.mrb[68].mxu1 %vm403_vm0, %v1268_v35 }
  0xa1   : > { %6650 = vmatprep.mubr.msk.f32.mxu1 %vm403_vm0, %v1269_v36 }
  0xa4   : > { %6651 = vmatmul.mubr.msk.f32.gmra.mrb[70].mxu1 %vm403_vm0, %v1270_v37 }
  0xeb   : > { %v9212_v28 = vpop.f32.mrb[0].mxu1 }
  0xec   : > { %v9214_v29 = vpop.f32.mrb[1].mxu1 }
  0xed   : > { %v9228_v36 = vpop.f32.mrb[0].mxu0 }
  0xee   : > { %v9232_v38 = vpop.f32.mrb[1].mxu0 }
  0xef   : > { %v9216_v30 = vpop.f32.mrb[2].mxu1 }
  0xf0   : > { %v9218_v31 = vpop.f32.mrb[3].mxu1 }
  0xf1   : > { %v9236_v40 = vpop.f32.mrb[2].mxu0 }
  0xf2   : > { %v9240_v42 = vpop.f32.mrb[3].mxu0 }
  0xf3   : > { %v9220_v32 = vpop.f32.mrb[4].mxu1 }
  0xf4   : > { %v9222_v33 = vpop.f32.mrb[5].mxu1 }
  0xf5   : > { %v9244_v44 = vpop.f32.mrb[4].mxu0 }
  0xf6   : > { %v9248_v46 = vpop.f32.mrb[5].mxu0 }
  0xf7   : > { %v9224_v34 = vpop.f32.mrb[6].mxu1 }
  0xf8   : > { %v9226_v35 = vpop.f32.mrb[7].mxu1 }
  0xf9   : > { %v9252_v48 = vpop.f32.mrb[6].mxu0 }
  0xfa   : > { %v9256_v50 = vpop.f32.mrb[7].mxu0 }
  0xfb   : > { %v9230_v37 = vpop.f32.mrb[8].mxu1 }
  0xfc   : > { %v9234_v39 = vpop.f32.mrb[9].mxu1 }
  0xfd   : > { %v9260_v52 = vpop.f32.mrb[8].mxu0 }
  0xfe   : > { %v9264_v54 = vpop.f32.mrb[9].mxu0 }
  0xff   : > { %v9238_v41 = vpop.f32.mrb[10].mxu1 }
 0x100   : > { %v9242_v43 = vpop.f32.mrb[11].mxu1 }
 0x101   : > { %v9268_v56 = vpop.f32.mrb[10].mxu0 }
 0x102   : > { %v9272_v58 = vpop.f32.mrb[11].mxu0 }
 0x103   : > { %v9246_v45 = vpop.f32.mrb[12].mxu1 }
 0x104   : > { %v9250_v47 = vpop.f32.mrb[13].mxu1 }
 0x105   : > { %v9276_v60 = vpop.f32.mrb[12].mxu0 }
 0x106   : > { %v9280_v62 = vpop.f32.mrb[13].mxu0 }
 0x107   : > { %v9254_v49 = vpop.f32.mrb[14].mxu1 }
 0x108   : > { %v9258_v51 = vpop.f32.mrb[15].mxu1 }
 0x109   : > { %v9284_v0 = vpop.f32.mrb[14].mxu0 }
 0x10a   : > { %v9288_v2 = vpop.f32.mrb[15].mxu0 }
 0x10b   : > { %v9262_v53 = vpop.f32.mrb[16].mxu1 }
 0x10c   : > { %v9266_v55 = vpop.f32.mrb[17].mxu1 }
 0x10d   : > { %10985 = vst [vmem:[#allocation3_spill] sm:$0xff] %v9266_v55  ;;  %v9292_v4 = vpop.f32.mrb[16].mxu0 }
 0x10e   : > { %v9294_v6 = vpop.f32.mrb[17].mxu0 }
 0x10f   : > { %v9270_v57 = vpop.f32.mrb[18].mxu1  ;;  %10992 = vst [vmem:[#allocation10_spill] sm:$0xff] %v9294_v6 }
 0x110   : > { %10986 = vst [vmem:[#allocation4_spill] sm:$0xff] %v9270_v57  ;;  %v9274_v59 = vpop.f32.mrb[19].mxu1 }
 0x111   : > { %10987 = vst [vmem:[#allocation5_spill] sm:$0xff] %v9274_v59  ;;  %v9298_v10 = vpop.f32.mrb[18].mxu0 }
 0x112   : > { %10993 = vst [vmem:[#allocation11_spill] sm:$0xff] %v9298_v10  ;;  %v9302_v12 = vpop.f32.mrb[19].mxu0 }
 0x113   : > { %v9278_v61 = vpop.f32.mrb[20].mxu1  ;;  %10994 = vst [vmem:[#allocation12_spill] sm:$0xff] %v9302_v12 }
 0x114   : > { %10988 = vst [vmem:[#allocation6_spill] sm:$0xff] %v9278_v61  ;;  %v9282_v63 = vpop.f32.mrb[21].mxu1 }
 0x115   : > { %10989 = vst [vmem:[#allocation7_spill] sm:$0xff] %v9282_v63  ;;  %v9310_v16 = vpop.f32.mrb[20].mxu0 }
 0x116   : > { %10995 = vst [vmem:[#allocation13_spill] sm:$0xff] %v9310_v16  ;;  %v9314_v18 = vpop.f32.mrb[21].mxu0 }
 0x117   : > { %v9286_v1 = vpop.f32.mrb[22].mxu1  ;;  %10996 = vst [vmem:[#allocation14_spill] sm:$0xff] %v9314_v18 }
 0x118   : > { %10990 = vst [vmem:[#allocation8_spill] sm:$0xff] %v9286_v1  ;;  %v9290_v3 = vpop.f32.mrb[23].mxu1 }
 0x119   : > { %10991 = vst [vmem:[#allocation9_spill] sm:$0xff] %v9290_v3  ;;  %v9322_v23 = vpop.f32.mrb[22].mxu0 }
 0x11a   : > { %10997 = vst [vmem:[#allocation15_spill] sm:$0xff] %v9322_v23  ;;  %v9326_v25 = vpop.f32.mrb[23].mxu0 }
 0x11b   : > { %v6531_v5 = vpop.f32.mrb[24].mxu1  ;;  %10998 = vst [vmem:[#allocation16_spill] sm:$0xff] %v9326_v25 }
 0x11c   : > { %v943_v7 = vmax.f32 %v9212_v28, %v6531_v5  ;;  %v823_v8 = vpop.f32.mrb[25].mxu1 }
 0x11d   : > { %v942_v9 = vmax.f32 %v9214_v29, %v823_v8 }
 0x11f   : > { %v9300_v11 = vpop.f32.mrb[26].mxu1 }
 0x120   : > { %v945_v13 = vmax.f32 %v9216_v30, %v9300_v11  ;;  %v9306_v14 = vpop.f32.mrb[27].mxu1 }
 0x121   : > { %v944_v15 = vmax.f32 %v9218_v31, %v9306_v14  ;;  %v9402_v31 = vld [vmem:[%s10966_s5] ss:$0 sm:$0xff] }
 0x123   : > { %v9312_v17 = vpop.f32.mrb[28].mxu1 }
 0x124   : > { %v9318_v20 = vpop.f32.mrb[29].mxu1 }
 0x127   : > { %v9324_v24 = vpop.f32.mrb[30].mxu1 }
 0x128   : > { %v9330_v28 = vpop.f32.mrb[31].mxu1 }
 0x12b   : > { %v9334_v30 = vpop.f32.mrb[32].mxu1 }
 0x12c   : > { %v9338_v5 = vpop.f32.mrb[33].mxu1 }
 0x12f   : > { %v9342_v11 = vpop.f32.mrb[34].mxu1 }
 0x130   : > { %v9346_v26 = vpop.f32.mrb[35].mxu1 }
 0x133   : > { %v9350_v22 = vpop.f32.mrb[36].mxu1 }
 0x134   : > { %v9354_v19 = vpop.f32.mrb[37].mxu1 }
 0x137   : > { %v9358_v25 = vpop.f32.mrb[38].mxu1 }
 0x138   : > { %v9362_v23 = vpop.f32.mrb[39].mxu1 }
 0x13b   : > { %v9366_v18 = vpop.f32.mrb[40].mxu1 }
 0x13c   : > { %10999 = vst [vmem:[#allocation17_spill] sm:$0xff] %v9366_v18  ;;  %v9370_v16 = vpop.f32.mrb[41].mxu1 }
 0x13d   : > { %11000 = vst [vmem:[#allocation18_spill] sm:$0xff] %v9370_v16 }
 0x13f   : > { %v9374_v12 = vpop.f32.mrb[42].mxu1 }
 0x140   : > { %11001 = vst [vmem:[#allocation19_spill] sm:$0xff] %v9374_v12  ;;  %v9378_v10 = vpop.f32.mrb[43].mxu1 }
 0x141   : > { %11002 = vst [vmem:[#allocation20_spill] sm:$0xff] %v9378_v10 }
 0x143   : > { %v9382_v6 = vpop.f32.mrb[44].mxu1 }
 0x144   : > { %11003 = vst [vmem:[#allocation21_spill] sm:$0xff] %v9382_v6  ;;  %v9386_v18 = vpop.f32.mrb[45].mxu1 }
 0x145   : > { %11004 = vst [vmem:[#allocation22_spill] sm:$0xff] %v9386_v18 }
 0x147   : > { %v9390_v16 = vpop.f32.mrb[46].mxu1 }
 0x148   : > { %11005 = vst [vmem:[#allocation23_spill] sm:$0xff] %v9390_v16  ;;  %v9394_v12 = vpop.f32.mrb[47].mxu1 }
 0x149   : > { %11006 = vst [vmem:[#allocation24_spill] sm:$0xff] %v9394_v12 }
 0x14b   : > { %v6619_v10 = vpop.f32.mrb[48].mxu1 }
 0x14c   : > { %v1529_v59 = vmax.f32 %v9228_v36, %v6619_v10  ;;  %v1409_v57 = vpop.f32.mrb[49].mxu1 }
 0x14d   : > { %v1528_v8 = vmax.f32 %v9232_v38, %v1409_v57 }
 0x14e   : > { %v1553_v18 = vmax.f32 %v943_v7, %v1529_v59 }
 0x14f   : > { %v1552_v63 = vmax.f32 %v942_v9, %v1528_v8  ;;  %v6622_v6 = vpop.f32.mrb[50].mxu1  ;;  %v11008_v9 = vmax.f32 %v9222_v33, %v9318_v20  ;;  %v11009_v33 = vmax.f32 %v9224_v34, %v9324_v24  ;;  %v1666_v34 = vld [vmem:[%s10967_s6 + $0x18] sm:$0xff] }
 0x150   : > { %v1584_v14 = vadd.f32 %v9402_v31, %v1553_v18  ;;  %v1531_v16 = vmax.f32 %v9236_v40, %v6622_v6  ;;  %v1419_v1 = vpop.f32.mrb[51].mxu1  ;;  %v11010_v18 = vmax.f32 %v9226_v35, %v9330_v28  ;;  %v11011_v28 = vmax.f32 %v9230_v37, %v9334_v30  ;;  %v1667_v37 = vld [vmem:[%s10967_s6 + $0x20] sm:$0xff]  ;;  %v1668_v30 = vld [vmem:[%s10967_s6 + $0x28] sm:$0xff] }
 0x151   : > { %v9408_v29 = vadd.f32 %v9402_v31, %v1552_v63  ;;  %v1530_v36 = vmax.f32 %v9240_v42, %v1419_v1  ;;  %v11007_v1 = vmax.f32 %v9220_v32, %v9312_v17 }
 0x152   : > { %v1608_v10 = vmax.f32 %v1584_v14, 0.0  ;;  %v1555_v12 = vmax.f32 %v945_v13, %v1531_v16 }
 0x153   : > { %v1607_v3 = vmax.f32 %v9408_v29, 0.0  ;;  %v1554_v61 = vmax.f32 %v944_v15, %v1530_v36  ;;  %v6625_v55 = vpop.f32.mrb[52].mxu1  ;;  %v5568_v29 = vld [vmem:[%s10967_s6 + $0x670] sm:$0xff] }
 0x154   : > { %1632 = vst [vmem:[#allocation2 + $0x8] sm:$0xff] %v1608_v10  ;;  %v1586_v38 = vadd.f32 %v9402_v31, %v1555_v12  ;;  %v1533_v57 = vmax.f32 %v9244_v44, %v6625_v55  ;;  %v1429_v59 = vpop.f32.mrb[53].mxu1 }
 0x155   : > { %1631 = vst [vmem:[#allocation2] sm:$0xff] %v1607_v3  ;;  %v9417_v40 = vadd.f32 %v9402_v31, %v1554_v61  ;;  %v1532_v42 = vmax.f32 %v9248_v46, %v1429_v59  ;;  %v11012_v59 = vmax.f32 %v9234_v39, %v9338_v5 }
 0x156   : > { %v1610_v63 = vmax.f32 %v1586_v38, 0.0  ;;  %v1557_v6 = vmax.f32 %v11007_v1, %v1533_v57 }
 0x157   : > { %v1609_v7 = vmax.f32 %v9417_v40, 0.0  ;;  %v1556_v44 = vmax.f32 %v11008_v9, %v1532_v42  ;;  %v6628_v55 = vpop.f32.mrb[54].mxu1 }
 0x158   : > { %1634 = vst [vmem:[#allocation2 + $0x18] sm:$0xff] %v1610_v63  ;;  %v1588_v12 = vadd.f32 %v9402_v31, %v1557_v6  ;;  %v1535_v61 = vmax.f32 %v9252_v48, %v6628_v55  ;;  %v1439_v13 = vpop.f32.mrb[55].mxu1  ;;  %v11013_v55 = vmax.f32 %v9238_v41, %v9342_v11  ;;  %v1670_v41 = vld [vmem:[%s10967_s6 + $0x38] sm:$0xff] }
 0x159   : > { %1633 = vst [vmem:[#allocation2 + $0x10] sm:$0xff] %v1609_v7  ;;  %v9432_v46 = vadd.f32 %v9402_v31, %v1556_v44  ;;  %v1534_v32 = vmax.f32 %v9256_v50, %v1439_v13  ;;  %v1665_v50 = vld [vmem:[%s10967_s6 + $0x10] sm:$0xff]  ;;  %v11014_v13 = vmax.f32 %v9242_v43, %v9346_v26  ;;  %v5557_v26 = vld [vmem:[%s10967_s6 + $0x618] sm:$0xff] }
 0x15a   : > { %v1612_v15 = vmax.f32 %v1588_v12, 0.0  ;;  %v1559_v16 = vmax.f32 %v11009_v33, %v1535_v61  ;;  %v7821_v1 = vpack.c.bf16 %v1666_v34, %v1665_v50  ;;  %v7825_v33 = vpack.c.bf16 %v1668_v30, %v1667_v37  ;;  %v5556_v43 = vld [vmem:[%s10967_s6 + $0x610] sm:$0xff] }
 0x15b   : > { %v1611_v17 = vmax.f32 %v9432_v46, 0.0  ;;  %v1558_v48 = vmax.f32 %v11010_v18, %v1534_v32  ;;  %v6631_v20 = vpop.f32.mrb[56].mxu1  ;;  %v5401_v46 = vld [vmem:[%s10967_s6 + $0x138] sm:$0xff] }
 0x15c   : > { %1636 = vst [vmem:[#allocation2 + $0x28] sm:$0xff] %v1612_v15  ;;  %v1590_v8 = vadd.f32 %v9402_v31, %v1559_v16  ;;  %v1537_v14 = vmax.f32 %v9260_v52, %v6631_v20  ;;  %v1449_v36 = vpop.f32.mrb[57].mxu1  ;;  %v1679_v10 = vld [vmem:[#allocation2 + $0x1] sm:$0xff] }
 0x15d   : > { %1635 = vst [vmem:[#allocation2 + $0x20] sm:$0xff] %v1611_v17  ;;  %v9453_v35 = vadd.f32 %v9402_v31, %v1558_v48  ;;  %v1536_v24 = vmax.f32 %v9264_v54, %v1449_v36  ;;  %6685 = vmatprep.mubr.f32.mxu1 %v1679_v10  ;;  %v11016_v10 = vmax.f32 %v9250_v47, %v9354_v19  ;;  %v5558_v19 = vld [vmem:[%s10967_s6 + $0x620] sm:$0xff] }
 0x15e   : > { %v1614_v52 = vmax.f32 %v1590_v8, 0.0  ;;  %v1561_v38 = vmax.f32 %v11011_v28, %v1537_v14  ;;  %v11015_v8 = vmax.f32 %v9246_v45, %v9350_v22  ;;  %v1672_v45 = vld [vmem:[%s10967_s6 + $0x48] sm:$0xff] }
 0x15f   : > { %v1613_v57 = vmax.f32 %v9453_v35, 0.0  ;;  %v1560_v42 = vmax.f32 %v11012_v59, %v1536_v24  ;;  %v6634_v63 = vpop.f32.mrb[58].mxu1  ;;  %v5559_v59 = vld [vmem:[%s10967_s6 + $0x628] sm:$0xff]  ;;  %v5573_v35 = vld [vmem:[%s10967_s6 + $0x698] sm:$0xff] }
 0x160   : > { %1638 = vst [vmem:[#allocation2 + $0x38] sm:$0xff] %v1614_v52  ;;  %v1592_v6 = vadd.f32 %v9402_v31, %v1561_v38  ;;  %v1539_v9 = vmax.f32 %v9268_v56, %v6634_v63  ;;  %v1459_v54 = vpop.f32.mrb[59].mxu1  ;;  %v1680_v44 = vld [vmem:[#allocation2 + $0x11] sm:$0xff]  ;;  %v8173_v52 = vpack.c.bf16 %v5557_v26, %v5556_v43  ;;  %v8177_v30 = vpack.c.bf16 %v5559_v59, %v5558_v19 }
 0x161   : > { %1637 = vst [vmem:[#allocation2 + $0x30] sm:$0xff] %v1613_v57  ;;  %v9474_v39 = vadd.f32 %v9402_v31, %v1560_v42  ;;  %v1538_v5 = vmax.f32 %v9272_v58, %v1459_v54  ;;  %6686 = vmatmul.mubr.f32.vlgmr.msra.gmra.mrb[72].mxu1 %v1680_v44  ;;  %v1669_v58 = vld [vmem:[%s10967_s6 + $0x30] sm:$0xff]  ;;  %v11018_v54 = vmax.f32 %v9258_v51, %v9362_v23 }
 0x162   : > { %v1616_v56 = vmax.f32 %v1592_v6, 0.0  ;;  %v1563_v12 = vmax.f32 %v11013_v55, %v1539_v9  ;;  %7820 = vmatpush3.bf16.msra.mxu1 %v9194_v21  ;;  %v7829_v24 = vpack.c.bf16 %v1670_v41, %v1669_v58  ;;  %v5561_v55 = vld [vmem:[%s10967_s6 + $0x638] sm:$0xff] }
 0x163   : > { %v1615_v61 = vmax.f32 %v9474_v39, 0.0  ;;  %v1562_v32 = vmax.f32 %v11014_v13, %v1538_v5  ;;  %v6637_v15 = vpop.f32.mrb[60].mxu1  ;;  %7822 = vmatprep.subr.bf16.mxu1 %v7821_v1  ;;  %v1673_v5 = vld [vmem:[%s10967_s6 + $0x50] sm:$0xff]  ;;  %v11019_v13 = vld [vmem:[#allocation10_spill] sm:$0xff] }
 0x164   : > { %1640 = vst [vmem:[#allocation2 + $0x48] sm:$0xff] %v1616_v56  ;;  %v1594_v21 = vadd.f32 %v9402_v31, %v1563_v12  ;;  %v1541_v11 = vmax.f32 %v9276_v60, %v6637_v15  ;;  %v1469_v16 = vpop.f32.mrb[61].mxu1  ;;  %v1681_v18 = vld [vmem:[#allocation2 + $0x21] sm:$0xff]  ;;  %v5560_v56 = vld [vmem:[%s10967_s6 + $0x630] sm:$0xff] }
 0x165   : > { %1639 = vst [vmem:[#allocation2 + $0x40] sm:$0xff] %v1615_v61  ;;  %v9502_v48 = vadd.f32 %v9402_v31, %v1562_v32  ;;  %v1540_v20 = vmax.f32 %v9280_v62, %v1469_v16  ;;  %6688 = vmatprep.mubr.f32.mxu1 %v1681_v18  ;;  %7169 = vmatprep.mubr.f32.mxu0 %v1681_v18  ;;  %v1671_v62 = vld [vmem:[%s10967_s6 + $0x40] sm:$0xff]  ;;  %v11020_v15 = vld [vmem:[#allocation17_spill] sm:$0xff] }
 0x166   : > { %v1618_v60 = vmax.f32 %v1594_v21, 0.0  ;;  %v1565_v14 = vmax.f32 %v11015_v8, %v1541_v11  ;;  %7824 = vmatpush3.bf16.msra.mxu1 %v7821_v1  ;;  %v11017_v1 = vmax.f32 %v9254_v49, %v9358_v25  ;;  %v1674_v49 = vld [vmem:[%s10967_s6 + $0x58] sm:$0xff]  ;;  %v11022_v21 = vld [vmem:[#allocation3_spill] sm:$0xff] }
 0x167   : > { %v1617_v36 = vmax.f32 %v9502_v48, 0.0  ;;  %v1564_v50 = vmax.f32 %v11016_v10, %v1540_v20  ;;  %v6640_v34 = vpop.f32.mrb[62].mxu1  ;;  %7826 = vmatprep.subr.bf16.mxu1 %v7825_v33  ;;  %v11023_v11 = vld [vmem:[#allocation18_spill] sm:$0xff]  ;;  %v7837_v26 = vpack.c.bf16 %v1674_v49, %v1673_v5  ;;  %v8181_v20 = vpack.c.bf16 %v5561_v55, %v5560_v56  ;;  %v5574_v48 = vld [vmem:[%s10967_s6 + $0x6a0] sm:$0xff] }
 0x168   : > { %1642 = vst [vmem:[#allocation2 + $0x58] sm:$0xff] %v1618_v60  ;;  %v1596_v22 = vadd.f32 %v9402_v31, %v1565_v14  ;;  %v1543_v28 = vmax.f32 %v9284_v0, %v6640_v34  ;;  %v1479_v38 = vpop.f32.mrb[63].mxu1  ;;  %v1682_v47 = vld [vmem:[#allocation2 + $0x31] sm:$0xff]  ;;  %v11024_v16 = vmax.f32 %v11022_v21, %v11023_v11  ;;  %v1675_v60 = vld [vmem:[%s10967_s6 + $0x60] sm:$0xff] }
 0x169   : > { %1641 = vst [vmem:[#allocation2 + $0x50] sm:$0xff] %v1617_v36  ;;  %v9529_v42 = vadd.f32 %v9402_v31, %v1564_v50  ;;  %v1542_v63 = vmax.f32 %v9288_v2, %v1479_v38  ;;  %6689 = vmatmul.mubr.f32.gmra.mrb[74].mxu1 %v1682_v47  ;;  %7170 = vmatmul.mubr.f32.vlgmr.msra.gmra.mrb[24].mxu0 %v1682_v47  ;;  %v11025_v14 = vld [vmem:[#allocation11_spill] sm:$0xff]  ;;  %v11027_v38 = vld [vmem:[#allocation4_spill] sm:$0xff]  ;;  %v11034_v55 = vld [vmem:[#allocation14_spill] sm:$0xff] }
 0x16a   : > { %v1620_v0 = vmax.f32 %v1596_v22, 0.0  ;;  %v1567_v6 = vmax.f32 %v11017_v1, %v1543_v28  ;;  %7828 = vmatpush3.bf16.msra.mxu1 %v7825_v33  ;;  %8172 = vmatpush3.bf16.msra.mxu0 %v9209_v27  ;;  %v7833_v2 = vpack.c.bf16 %v1672_v45, %v1671_v62  ;;  %v11021_v33 = vmax.f32 %v9262_v53, %v11020_v15  ;;  %v1676_v53 = vld [vmem:[%s10967_s6 + $0x68] sm:$0xff]  ;;  %v11028_v47 = vld [vmem:[#allocation19_spill] sm:$0xff] }
 0x16b   : > { %v1619_v9 = vmax.f32 %v9529_v42, 0.0  ;;  %v1566_v44 = vmax.f32 %v11018_v54, %v1542_v63  ;;  %v6643_v37 = vpop.f32.mrb[64].mxu1  ;;  %7830 = vmatprep.subr.bf16.mxu1 %v7829_v24  ;;  %8174 = vmatprep.subr.bf16.mxu0 %v8173_v52  ;;  %v11026_v45 = vld [vmem:[#allocation12_spill] sm:$0xff]  ;;  %v11029_v19 = vmax.f32 %v11027_v38, %v11028_v47  ;;  %v5404_v42 = vld [vmem:[%s10967_s6 + $0x150] sm:$0xff] }
 0x16c   : > { %1644 = vst [vmem:[#allocation2 + $0x68] sm:$0xff] %v1620_v0  ;;  %v1598_v27 = vadd.f32 %v9402_v31, %v1567_v6  ;;  %v1545_v25 = vmax.f32 %v9292_v4, %v6643_v37  ;;  %v1489_v51 = vpop.f32.mrb[65].mxu1  ;;  %v1683_v23 = vld [vmem:[#allocation2 + $0x41] sm:$0xff]  ;;  %v11030_v0 = vld [vmem:[#allocation5_spill] sm:$0xff]  ;;  %v7841_v37 = vpack.c.bf16 %v1676_v53, %v1675_v60 }
 0x16d   : > { %1643 = vst [vmem:[#allocation2 + $0x60] sm:$0xff] %v1619_v9  ;;  %v9557_v12 = vadd.f32 %v9402_v31, %v1566_v44  ;;  %v1544_v32 = vmax.f32 %v11019_v13, %v1489_v51  ;;  %6691 = vmatprep.mubr.f32.mxu1 %v1683_v23  ;;  %7172 = vmatprep.mubr.f32.mxu0 %v1683_v23  ;;  %v11031_v1 = vld [vmem:[#allocation20_spill] sm:$0xff] }
 0x16e   : > { %v1622_v4 = vmax.f32 %v1598_v27, 0.0  ;;  %v1569_v58 = vmax.f32 %v11021_v33, %v1545_v25  ;;  %7832 = vmatpush3.bf16.msra.mxu1 %v7829_v24  ;;  %8176 = vmatpush3.bf16.msra.mxu0 %v8173_v52  ;;  %v5562_v24 = vld [vmem:[%s10967_s6 + $0x640] sm:$0xff]  ;;  %v5563_v52 = vld [vmem:[%s10967_s6 + $0x648] sm:$0xff]  ;;  %v11032_v6 = vmax.f32 %v11030_v0, %v11031_v1  ;;  %v11033_v27 = vld [vmem:[#allocation13_spill] sm:$0xff] }
 0x16f   : > { %v1621_v41 = vmax.f32 %v9557_v12, 0.0  ;;  %v1568_v18 = vmax.f32 %v11024_v16, %v1544_v32  ;;  %v6646_v43 = vpop.f32.mrb[66].mxu1  ;;  %7834 = vmatprep.subr.bf16.mxu1 %v7833_v2  ;;  %8178 = vmatprep.subr.bf16.mxu0 %v8177_v30  ;;  %v8185_v5 = vpack.c.bf16 %v5563_v52, %v5562_v24  ;;  %v5564_v32 = vld [vmem:[%s10967_s6 + $0x650] sm:$0xff]  ;;  %v11035_v33 = vld [vmem:[#allocation6_spill] sm:$0xff]  ;;  %v11042_v38 = vld [vmem:[#allocation16_spill] sm:$0xff] }
 0x170   : > { %1646 = vst [vmem:[#allocation2 + $0x78] sm:$0xff] %v1622_v4  ;;  %v1600_v8 = vadd.f32 %v9402_v31, %v1569_v58  ;;  %v1547_v10 = vmax.f32 %v11025_v14, %v6646_v43  ;;  %v1499_v50 = vpop.f32.mrb[67].mxu1  ;;  %v1684_v34 = vld [vmem:[#allocation2 + $0x51] sm:$0xff] }
 0x171   : > { %1645 = vst [vmem:[#allocation2 + $0x70] sm:$0xff] %v1621_v41  ;;  %v1599_v62 = vadd.f32 %v9402_v31, %v1568_v18  ;;  %v1546_v22 = vmax.f32 %v11026_v45, %v1499_v50  ;;  %6692 = vmatmul.mubr.f32.gmra.mrb[76].mxu1 %v1684_v34  ;;  %7173 = vmatmul.mubr.f32.gmra.mrb[26].mxu0 %v1684_v34  ;;  %v5565_v4 = vld [vmem:[%s10967_s6 + $0x658] sm:$0xff]  ;;  %v11036_v58 = vld [vmem:[#allocation21_spill] sm:$0xff]  ;;  %v11038_v18 = vld [vmem:[#allocation7_spill] sm:$0xff] }
 0x172   : > { %v1624_v28 = vmax.f32 %v1600_v8, 0.0  ;;  %v1571_v59 = vmax.f32 %v11029_v19, %v1547_v10  ;;  %7836 = vmatpush3.bf16.msra.mxu1 %v7833_v2  ;;  %8180 = vmatpush3.bf16.msra.mxu0 %v8177_v30  ;;  %v1677_v2 = vld [vmem:[%s10967_s6 + $0x70] sm:$0xff]  ;;  %v1678_v30 = vld [vmem:[%s10967_s6 + $0x78] sm:$0xff]  ;;  %v11037_v21 = vmax.f32 %v11035_v33, %v11036_v58  ;;  %v5394_v10 = vld [vmem:[%s10967_s6 + $0x100] sm:$0xff] }
 0x173   : > { %v1623_v63 = vmax.f32 %v1599_v62, 0.0  ;;  %v1570_v54 = vmax.f32 %v11032_v6, %v1546_v22  ;;  %v6649_v44 = vpop.f32.mrb[68].mxu1  ;;  %7838 = vmatprep.subr.bf16.mxu1 %v7837_v26  ;;  %8182 = vmatprep.subr.bf16.mxu0 %v8181_v20  ;;  %v11039_v43 = vld [vmem:[#allocation22_spill] sm:$0xff]  ;;  %v7845_v14 = vpack.c.bf16 %v1678_v30, %v1677_v2  ;;  %v5395_v50 = vld [vmem:[%s10967_s6 + $0x108] sm:$0xff]  ;;  %v8189_v62 = vpack.c.bf16 %v5565_v4, %v5564_v32  ;;  %v5566_v45 = vld [vmem:[%s10967_s6 + $0x660] sm:$0xff] }
 0x174   : > { %1648 = vst [vmem:[#allocation2 + $0x88] sm:$0xff] %v1624_v28  ;;  %v1602_v49 = vadd.f32 %v9402_v31, %v1571_v59  ;;  %v1549_v25 = vmax.f32 %v11033_v27, %v6649_v44  ;;  %v1509_v51 = vpop.f32.mrb[69].mxu1  ;;  %v1685_v23 = vld [vmem:[#allocation2 + $0x61] sm:$0xff]  ;;  %v11040_v60 = vmax.f32 %v11038_v18, %v11039_v43  ;;  %v5569_v30 = vld [vmem:[%s10967_s6 + $0x678] sm:$0xff]  ;;  %v5400_v18 = vld [vmem:[%s10967_s6 + $0x130] sm:$0xff] }
 0x175   : > { %1647 = vst [vmem:[#allocation2 + $0x80] sm:$0xff] %v1623_v63  ;;  %v9600_v56 = vadd.f32 %v9402_v31, %v1570_v54  ;;  %v1548_v13 = vmax.f32 %v11034_v55, %v1509_v51  ;;  %6694 = vmatprep.mubr.f32.mxu1 %v1685_v23  ;;  %7175 = vmatprep.mubr.f32.mxu0 %v1685_v23  ;;  %v5567_v22 = vld [vmem:[%s10967_s6 + $0x668] sm:$0xff]  ;;  %v11044_v63 = vld [vmem:[#allocation23_spill] sm:$0xff]  ;;  %v11046_v54 = vld [vmem:[#allocation9_spill] sm:$0xff] }
 0x176   : > { %v1626_v15 = vmax.f32 %v1602_v49, 0.0  ;;  %v1573_v11 = vmax.f32 %v11037_v21, %v1549_v25  ;;  %7840 = vmatpush3.bf16.msra.mxu1 %v7837_v26  ;;  %8184 = vmatpush3.bf16.msra.mxu0 %v8181_v20  ;;  %v11041_v20 = vld [vmem:[#allocation15_spill] sm:$0xff]  ;;  %v11043_v59 = vld [vmem:[#allocation8_spill] sm:$0xff]  ;;  %v7849_v25 = vpack.c.bf16 %v5395_v50, %v5394_v10  ;;  %v8193_v51 = vpack.c.bf16 %v5567_v22, %v5566_v45  ;;  %v9698_v43 = vld [vmem:[#allocation2 + $0x32] sm:$0xff] }
 0x177   : > { %v1625_v16 = vmax.f32 %v9600_v56, 0.0  ;;  %v1572_v53 = vmax.f32 %v11040_v60, %v1548_v13  ;;  %v6652_v8 = vpop.f32.mrb[70].mxu1  ;;  %7842 = vmatprep.subr.bf16.mxu1 %v7841_v37  ;;  %8186 = vmatprep.subr.bf16.mxu0 %v8185_v5  ;;  %v11045_v0 = vmax.f32 %v11043_v59, %v11044_v63  ;;  %v11047_v44 = vld [vmem:[#allocation24_spill] sm:$0xff]  ;;  %v8197_v4 = vpack.c.bf16 %v5569_v30, %v5568_v29  ;;  %v5570_v58 = vld [vmem:[%s10967_s6 + $0x680] sm:$0xff]  ;;  %v5405_v50 = vld [vmem:[%s10967_s6 + $0x158] sm:$0xff] }
 0x178   : > { %1650 = vst [vmem:[#allocation2 + $0x98] sm:$0xff] %v1626_v15  ;;  %v1604_v26 = vadd.f32 %v9402_v31, %v1573_v11  ;;  %v1551_v34 = vmax.f32 %v11041_v20, %v6652_v8  ;;  %v1519_v24 = vpop.f32.mrb[71].mxu1  ;;  %v1686_v52 = vld [vmem:[#allocation2 + $0x71] sm:$0xff]  ;;  %v11048_v49 = vmax.f32 %v11046_v54, %v11047_v44  ;;  %v5398_v15 = vld [vmem:[%s10967_s6 + $0x120] sm:$0xff]  ;;  %v5399_v33 = vld [vmem:[%s10967_s6 + $0x128] sm:$0xff] }
 0x179   : > { %1649 = vst [vmem:[#allocation2 + $0x90] sm:$0xff] %v1625_v16  ;;  %v9633_v28 = vadd.f32 %v9402_v31, %v1572_v53  ;;  %v1550_v47 = vmax.f32 %v11042_v38, %v1519_v24  ;;  %6695 = vmatmul.mubr.f32.gmra.mrb[78].mxu1 %v1686_v52  ;;  %7176 = vmatmul.mubr.f32.gmra.mrb[28].mxu0 %v1686_v52  ;;  %v5571_v21 = vld [vmem:[%s10967_s6 + $0x688] sm:$0xff]  ;;  %v5576_v20 = vld [vmem:[%s10967_s6 + $0x6b0] sm:$0xff]  ;;  %v5577_v12 = vld [vmem:[%s10967_s6 + $0x6b8] sm:$0xff] }
 0x17a   : > { %v1628_v19 = vmax.f32 %v1604_v26, 0.0  ;;  %v1575_v1 = vmax.f32 %v11045_v0, %v1551_v34  ;;  %7844 = vmatpush3.bf16.msra.mxu1 %v7841_v37  ;;  %8188 = vmatpush3.bf16.msra.mxu0 %v8185_v5  ;;  %v5396_v37 = vld [vmem:[%s10967_s6 + $0x110] sm:$0xff]  ;;  %v9677_v11 = vld [vmem:[#allocation2 + $0x22] sm:$0xff]  ;;  %v7857_v40 = vpack.c.bf16 %v5399_v33, %v5398_v15  ;;  %v8213_v24 = vpack.c.bf16 %v5577_v12, %v5576_v20  ;;  %v5409_v0 = vld [vmem:[%s10967_s6 + $0x178] sm:$0xff] }
 0x17b   : > { %v1627_v6 = vmax.f32 %v9633_v28, 0.0  ;;  %v1574_v27 = vmax.f32 %v11048_v49, %v1550_v47  ;;  %6729 = vmatprep.mubr.f32.mxu1 %v1607_v3  ;;  %7846 = vmatprep.subr.bf16.mxu1 %v7845_v14  ;;  %v5397_v3 = vld [vmem:[%s10967_s6 + $0x118] sm:$0xff]  ;;  %v5403_v60 = vld [vmem:[%s10967_s6 + $0x148] sm:$0xff]  ;;  %v5406_v52 = vld [vmem:[%s10967_s6 + $0x160] sm:$0xff] }
 0x17c   : > { %1652 = vst [vmem:[#allocation2 + $0xa8] sm:$0xff] %v1628_v19  ;;  %v1606_v23 = vadd.f32 %v9402_v31, %v1575_v1  ;;  %8190 = vmatprep.subr.bf16.mxu0 %v8189_v62  ;;  %v3164_v2 = vld [vmem:[#allocation2 + $0x81] sm:$0xff]  ;;  %v7853_v32 = vpack.c.bf16 %v5397_v3, %v5396_v37  ;;  %v9738_v34 = vld [vmem:[#allocation2 + $0x72] sm:$0xff] }
 0x17d   : > { %1651 = vst [vmem:[#allocation2 + $0xa0] sm:$0xff] %v1627_v6  ;;  %v1605_v5 = vadd.f32 %v9402_v31, %v1574_v27  ;;  %7178 = vmatprep.mubr.f32.mxu0 %v3164_v2  ;;  %v9709_v53 = vld [vmem:[#allocation2 + $0x42] sm:$0xff]  ;;  %v5408_v63 = vld [vmem:[%s10967_s6 + $0x170] sm:$0xff]  ;;  %v5581_v44 = vld [vmem:[%s10967_s6 + $0x6d8] sm:$0xff] }
 0x17e   : > { %v1630_v55 = vmax.f32 %v1606_v23, 0.0  ;;  %7848 = vmatpush3.bf16.msra.mxu1 %v7845_v14  ;;  %8192 = vmatpush3.bf16.msra.mxu0 %v8189_v62  ;;  %v1914_v14 = vld [vmem:[#allocation2 + $0x2] sm:$0xff]  ;;  %v5580_v54 = vld [vmem:[%s10967_s6 + $0x6d0] sm:$0xff]  ;;  %v7877_v49 = vpack.c.bf16 %v5409_v0, %v5408_v63  ;;  %v5413_v29 = vld [vmem:[%s10967_s6 + $0x198] sm:$0xff] }
 0x17f   : > { %v1629_v13 = vmax.f32 %v1605_v5, 0.0  ;;  %7850 = vmatprep.subr.bf16.mxu1 %v7849_v25  ;;  %8194 = vmatprep.subr.bf16.mxu0 %v8193_v51  ;;  %v9729_v26 = vld [vmem:[#allocation2 + $0x62] sm:$0xff]  ;;  %v8221_v27 = vpack.c.bf16 %v5581_v44, %v5580_v54  ;;  %v5412_v3 = vld [vmem:[%s10967_s6 + $0x190] sm:$0xff]  ;;  %v5593_v20 = vld [vmem:[%s10967_s6 + $0x738] sm:$0xff] }
 0x180   : > { %1654 = vst [vmem:[#allocation2 + $0xb8] sm:$0xff] %v1630_v55  ;;  %v3165_v31 = vld [vmem:[#allocation2 + $0x91] sm:$0xff]  ;;  %v5407_v62 = vld [vmem:[%s10967_s6 + $0x168] sm:$0xff]  ;;  %v5578_v22 = vld [vmem:[%s10967_s6 + $0x6c0] sm:$0xff] }
 0x181   : > { %1653 = vst [vmem:[#allocation2 + $0xb0] sm:$0xff] %v1629_v13  ;;  %6730 = vmatmul.mubr.f32.vlgmr.msra.gmra.mrb[72].mxu1 %v1609_v7  ;;  %7179 = vmatmul.mubr.f32.gmra.mrb[30].mxu0 %v3165_v31  ;;  %v8201_v7 = vpack.c.bf16 %v5571_v21, %v5570_v58  ;;  %v3302_v45 = vld [vmem:[#allocation2 + $0x82] sm:$0xff]  ;;  %v7873_v47 = vpack.c.bf16 %v5407_v62, %v5406_v52  ;;  %v3303_v19 = vld [vmem:[#allocation2 + $0x92] sm:$0xff] }
 0x182   : > { %6732 = vmatprep.mubr.f32.mxu1 %v1611_v17  ;;  %7852 = vmatpush3.bf16.msra.mxu1 %v7849_v25  ;;  %v5572_v17 = vld [vmem:[%s10967_s6 + $0x690] sm:$0xff]  ;;  %v5579_v38 = vld [vmem:[%s10967_s6 + $0x6c8] sm:$0xff]  ;;  %v5410_v25 = vld [vmem:[%s10967_s6 + $0x180] sm:$0xff]  ;;  %v7885_v13 = vpack.c.bf16 %v5413_v29, %v5412_v3 }
 0x183   : > { %8196 = vmatpush3.bf16.msra.mxu0 %v8193_v51  ;;  %7213 = vmatprep.mubr.f32.mxu0 %v9677_v11  ;;  %v8205_v39 = vpack.c.bf16 %v5573_v35, %v5572_v17  ;;  %v8217_v59 = vpack.c.bf16 %v5579_v38, %v5578_v22  ;;  %v9759_v1 = vld [vmem:[#allocation2 + $0x23] sm:$0xff]  ;;  %v5584_v30 = vld [vmem:[%s10967_s6 + $0x6f0] sm:$0xff]  ;;  %v5585_v55 = vld [vmem:[%s10967_s6 + $0x6f8] sm:$0xff] }
 0x184   : > { %7854 = vmatprep.subr.bf16.mxu1 %v7853_v32  ;;  %8198 = vmatprep.subr.bf16.mxu0 %v8197_v4  ;;  %v5411_v51 = vld [vmem:[%s10967_s6 + $0x188] sm:$0xff]  ;;  %v5582_v23 = vld [vmem:[%s10967_s6 + $0x6e0] sm:$0xff]  ;;  %v9792_v31 = vld [vmem:[#allocation2 + $0x12] sm:$0xff] }
 0x185   : > { %6733 = vmatmul.mubr.f32.gmra.mrb[74].mxu1 %v1613_v57  ;;  %v7861_v57 = vpack.c.bf16 %v5401_v46, %v5400_v18  ;;  %v5583_v2 = vld [vmem:[%s10967_s6 + $0x6e8] sm:$0xff]  ;;  %v7881_v37 = vpack.c.bf16 %v5411_v51, %v5410_v25  ;;  %v5586_v33 = vld [vmem:[%s10967_s6 + $0x700] sm:$0xff]  ;;  %v5417_v18 = vld [vmem:[%s10967_s6 + $0x1b8] sm:$0xff] }
 0x186   : > { %6735 = vmatprep.mubr.f32.mxu1 %v1615_v61  ;;  %7856 = vmatpush3.bf16.msra.mxu1 %v7853_v32  ;;  %v5402_v61 = vld [vmem:[%s10967_s6 + $0x140] sm:$0xff]  ;;  %v8225_v5 = vpack.c.bf16 %v5583_v2, %v5582_v23  ;;  %v8229_v32 = vpack.c.bf16 %v5585_v55, %v5584_v30  ;;  %v5415_v15 = vld [vmem:[%s10967_s6 + $0x1a8] sm:$0xff]  ;;  %v5589_v46 = vld [vmem:[%s10967_s6 + $0x718] sm:$0xff] }
 0x187   : > { %8200 = vmatpush3.bf16.msra.mxu0 %v8197_v4  ;;  %7858 = vmatprep.subr.bf16.mxu1 %v7857_v40  ;;  %v7865_v8 = vpack.c.bf16 %v5403_v60, %v5402_v61  ;;  %v5414_v4 = vld [vmem:[%s10967_s6 + $0x1a0] sm:$0xff]  ;;  %v5587_v58 = vld [vmem:[%s10967_s6 + $0x708] sm:$0xff]  ;;  %v9823_v35 = vld [vmem:[#allocation2 + $0x33] sm:$0xff] }
 0x188   : > { %8202 = vmatprep.subr.bf16.mxu0 %v8201_v7  ;;  %v7889_v21 = vpack.c.bf16 %v5415_v15, %v5414_v4  ;;  %v5419_v61 = vld [vmem:[%s10967_s6 + $0x1c8] sm:$0xff]  ;;  %v5425_v63 = vld [vmem:[%s10967_s6 + $0x1f8] sm:$0xff]  ;;  %v5596_v54 = vld [vmem:[%s10967_s6 + $0x750] sm:$0xff] }
 0x189   : > { %6736 = vmatmul.mubr.f32.gmra.mrb[76].mxu1 %v1617_v36  ;;  %v5575_v36 = vld [vmem:[%s10967_s6 + $0x6a8] sm:$0xff]  ;;  %v5597_v44 = vld [vmem:[%s10967_s6 + $0x758] sm:$0xff]  ;;  %v5426_v25 = vld [vmem:[%s10967_s6 + $0x200] sm:$0xff] }
 0x18a   : > { %7214 = vmatmul.mubr.f32.vlgmr.msra.gmra.mrb[24].mxu0 %v9698_v43  ;;  %6738 = vmatprep.mubr.f32.mxu1 %v1619_v9  ;;  %v9723_v9 = vld [vmem:[#allocation2 + $0x52] sm:$0xff]  ;;  %v8209_v10 = vpack.c.bf16 %v5575_v36, %v5574_v48  ;;  %v9833_v60 = vld [vmem:[#allocation2 + $0x43] sm:$0xff] }
 0x18b   : > { %7860 = vmatpush3.bf16.msra.mxu1 %v7857_v40  ;;  %7216 = vmatprep.mubr.f32.mxu0 %v9709_v53  ;;  %v8233_v40 = vpack.c.bf16 %v5587_v58, %v5586_v33  ;;  %v5591_v48 = vld [vmem:[%s10967_s6 + $0x728] sm:$0xff]  ;;  %v5598_v23 = vld [vmem:[%s10967_s6 + $0x760] sm:$0xff]  ;;  %v5428_v3 = vld [vmem:[%s10967_s6 + $0x210] sm:$0xff] }
 0x18c   : > { %8204 = vmatpush3.bf16.msra.mxu0 %v8201_v7  ;;  %7862 = vmatprep.subr.bf16.mxu1 %v7861_v57  ;;  %v5416_v7 = vld [vmem:[%s10967_s6 + $0x1b0] sm:$0xff]  ;;  %v5423_v52 = vld [vmem:[%s10967_s6 + $0x1e8] sm:$0xff]  ;;  %v5429_v29 = vld [vmem:[%s10967_s6 + $0x218] sm:$0xff] }
 0x18d   : > { %6739 = vmatmul.mubr.f32.gmra.mrb[78].mxu1 %v1621_v41  ;;  %8206 = vmatprep.subr.bf16.mxu0 %v8205_v39  ;;  %v7869_v41 = vpack.c.bf16 %v5405_v50, %v5404_v42  ;;  %v7893_v17 = vpack.c.bf16 %v5417_v18, %v5416_v7  ;;  %v9846_v42 = vld [vmem:[#allocation2 + $0x53] sm:$0xff]  ;;  %v9852_v50 = vld [vmem:[#allocation2 + $0x63] sm:$0xff] }
 0x18e   : > { %7217 = vmatmul.mubr.f32.gmra.mrb[26].mxu0 %v9723_v9  ;;  %6773 = vmatprep.mubr.f32.mxu1 %v1914_v14  ;;  %v3440_v62 = vld [vmem:[#allocation2 + $0x83] sm:$0xff]  ;;  %v5600_v30 = vld [vmem:[%s10967_s6 + $0x770] sm:$0xff]  ;;  %v5601_v55 = vld [vmem:[%s10967_s6 + $0x778] sm:$0xff] }
 0x18f   : > { %7864 = vmatpush3.bf16.msra.mxu1 %v7861_v57  ;;  %7219 = vmatprep.mubr.f32.mxu0 %v9729_v26  ;;  %v5595_v22 = vld [vmem:[%s10967_s6 + $0x748] sm:$0xff]  ;;  %v8261_v4 = vpack.c.bf16 %v5601_v55, %v5600_v30  ;;  %v5430_v15 = vld [vmem:[%s10967_s6 + $0x220] sm:$0xff]  ;;  %v5432_v18 = vld [vmem:[%s10967_s6 + $0x230] sm:$0xff] }
 0x190   : > { %8208 = vmatpush3.bf16.msra.mxu0 %v8205_v39  ;;  %7866 = vmatprep.subr.bf16.mxu1 %v7865_v8  ;;  %v5418_v39 = vld [vmem:[%s10967_s6 + $0x1c0] sm:$0xff]  ;;  %v5427_v51 = vld [vmem:[%s10967_s6 + $0x208] sm:$0xff]  ;;  %v5444_v30 = vld [vmem:[%s10967_s6 + $0x290] sm:$0xff] }
 0x191   : > { %8210 = vmatprep.subr.bf16.mxu0 %v8209_v10  ;;  %v7897_v36 = vpack.c.bf16 %v5419_v61, %v5418_v39  ;;  %v9882_v0 = vld [vmem:[#allocation2 + $0x24] sm:$0xff]  ;;  %v5445_v55 = vld [vmem:[%s10967_s6 + $0x298] sm:$0xff]  ;;  %v5628_v56 = vld [vmem:[%s10967_s6 + $0x850] sm:$0xff] }
 0x192   : > { %7220 = vmatmul.mubr.f32.gmra.mrb[28].mxu0 %v9738_v34  ;;  %v5599_v2 = vld [vmem:[%s10967_s6 + $0x768] sm:$0xff]  ;;  %v5602_v58 = vld [vmem:[%s10967_s6 + $0x780] sm:$0xff] }
 0x193   : > { %7868 = vmatpush3.bf16.msra.mxu1 %v7865_v8  ;;  %7222 = vmatprep.mubr.f32.mxu0 %v3302_v45  ;;  %v5420_v8 = vld [vmem:[%s10967_s6 + $0x1d0] sm:$0xff]  ;;  %v5594_v45 = vld [vmem:[%s10967_s6 + $0x740] sm:$0xff]  ;;  %v5431_v33 = vld [vmem:[%s10967_s6 + $0x228] sm:$0xff] }
 0x194   : > { %8212 = vmatpush3.bf16.msra.mxu0 %v8209_v10  ;;  %7870 = vmatprep.subr.bf16.mxu1 %v7869_v41  ;;  %v5421_v10 = vld [vmem:[%s10967_s6 + $0x1d8] sm:$0xff]  ;;  %v5434_v61 = vld [vmem:[%s10967_s6 + $0x240] sm:$0xff] }
 0x195   : > { %8214 = vmatprep.subr.bf16.mxu0 %v8213_v24  ;;  %v7901_v12 = vpack.c.bf16 %v5421_v10, %v5420_v8  ;;  %v5458_v28 = vld [vmem:[%s10967_s6 + $0x300] sm:$0xff] }
 0x196   : > { %7223 = vmatmul.mubr.f32.gmra.mrb[30].mxu0 %v3303_v19  ;;  %v8249_v19 = vpack.c.bf16 %v5595_v22, %v5594_v45  ;;  %v3578_v45 = vld [vmem:[#allocation2 + $0x84] sm:$0xff] }
 0x197   : > { %7872 = vmatpush3.bf16.msra.mxu1 %v7869_v41  ;;  %7257 = vmatprep.mubr.f32.mxu0 %v9759_v1  ;;  %v9861_v41 = vld [vmem:[#allocation2 + $0x73] sm:$0xff]  ;;  %v5610_v22 = vld [vmem:[%s10967_s6 + $0x7c0] sm:$0xff] }
 0x198   : > { %8216 = vmatpush3.bf16.msra.mxu0 %v8213_v24  ;;  %7874 = vmatprep.subr.bf16.mxu1 %v7873_v47  ;;  %v5422_v24 = vld [vmem:[%s10967_s6 + $0x1e0] sm:$0xff] }
 0x199   : > { %8218 = vmatprep.subr.bf16.mxu0 %v8217_v59  ;;  %v7905_v38 = vpack.c.bf16 %v5423_v52, %v5422_v24  ;;  %v5438_v52 = vld [vmem:[%s10967_s6 + $0x260] sm:$0xff] }
 0x19b   : > { %7876 = vmatpush3.bf16.msra.mxu1 %v7873_v47  ;;  %v3441_v47 = vld [vmem:[#allocation2 + $0x93] sm:$0xff] }
 0x19c   : > { %8220 = vmatpush3.bf16.msra.mxu0 %v8217_v59  ;;  %7878 = vmatprep.subr.bf16.mxu1 %v7877_v49  ;;  %v5424_v59 = vld [vmem:[%s10967_s6 + $0x1f0] sm:$0xff] }
 0x19d   : > { %8222 = vmatprep.subr.bf16.mxu0 %v8221_v27 }
 0x19f   : > { %7880 = vmatpush3.bf16.msra.mxu1 %v7877_v49  ;;  %v7909_v49 = vpack.c.bf16 %v5425_v63, %v5424_v59  ;;  %v5440_v63 = vld [vmem:[%s10967_s6 + $0x270] sm:$0xff] }
 0x1a0   : > { %8224 = vmatpush3.bf16.msra.mxu0 %v8221_v27  ;;  %7882 = vmatprep.subr.bf16.mxu1 %v7881_v37  ;;  %v8253_v27 = vpack.c.bf16 %v5597_v44, %v5596_v54  ;;  %v5441_v54 = vld [vmem:[%s10967_s6 + $0x278] sm:$0xff]  ;;  %v10005_v44 = vld [vmem:[#allocation2 + $0x30] sm:$0xff] }
 0x1a1   : > { %8226 = vmatprep.subr.bf16.mxu0 %v8225_v5 }
 0x1a2   : > { %6774 = vmatmul.mubr.f32.vlgmr.msra.gmra.mrb[72].mxu1 %v9792_v31 }
 0x1a3   : > { %6776 = vmatprep.mubr.f32.mxu1 %v9677_v11  ;;  %7884 = vmatpush3.bf16.msra.mxu1 %v7881_v37  ;;  %v5588_v11 = vld [vmem:[%s10967_s6 + $0x710] sm:$0xff]  ;;  %v7913_v37 = vpack.c.bf16 %v5427_v51, %v5426_v25  ;;  %v7941_v25 = vpack.c.bf16 %v5441_v54, %v5440_v63 }
 0x1a4   : > { %8228 = vmatpush3.bf16.msra.mxu0 %v8225_v5  ;;  %7886 = vmatprep.subr.bf16.mxu1 %v7885_v13  ;;  %v8237_v57 = vpack.c.bf16 %v5589_v46, %v5588_v11  ;;  %v8257_v5 = vpack.c.bf16 %v5599_v2, %v5598_v23  ;;  %v5433_v11 = vld [vmem:[%s10967_s6 + $0x238] sm:$0xff]  ;;  %v5442_v23 = vld [vmem:[%s10967_s6 + $0x280] sm:$0xff]  ;;  %v5443_v2 = vld [vmem:[%s10967_s6 + $0x288] sm:$0xff] }
 0x1a5   : > { %8230 = vmatprep.subr.bf16.mxu0 %v8229_v32  ;;  %v5605_v46 = vld [vmem:[%s10967_s6 + $0x798] sm:$0xff]  ;;  %v5456_v54 = vld [vmem:[%s10967_s6 + $0x2f0] sm:$0xff] }
 0x1a6   : > { %6777 = vmatmul.mubr.f32.gmra.mrb[74].mxu1 %v9698_v43 }
 0x1a7   : > { %6779 = vmatprep.mubr.f32.mxu1 %v9709_v53  ;;  %7888 = vmatpush3.bf16.msra.mxu1 %v7885_v13  ;;  %v5590_v53 = vld [vmem:[%s10967_s6 + $0x720] sm:$0xff]  ;;  %v7917_v13 = vpack.c.bf16 %v5429_v29, %v5428_v3  ;;  %v7945_v3 = vpack.c.bf16 %v5443_v2, %v5442_v23  ;;  %v5631_v2 = vld [vmem:[%s10967_s6 + $0x868] sm:$0xff] }
 0x1a8   : > { %8232 = vmatpush3.bf16.msra.mxu0 %v8229_v32  ;;  %7890 = vmatprep.subr.bf16.mxu1 %v7889_v21  ;;  %v8241_v14 = vpack.c.bf16 %v5591_v48, %v5590_v53  ;;  %v9915_v32 = vld [vmem:[#allocation2 + $0x13] sm:$0xff]  ;;  %v9956_v53 = vld [vmem:[#allocation2 + $0x44] sm:$0xff] }
 0x1a9   : > { %8234 = vmatprep.subr.bf16.mxu0 %v8233_v40  ;;  %v5606_v48 = vld [vmem:[%s10967_s6 + $0x7a0] sm:$0xff] }
 0x1aa   : > { %6780 = vmatmul.mubr.f32.gmra.mrb[76].mxu1 %v9723_v9  ;;  %v2052_v9 = vld [vmem:[#allocation2 + $0x3] sm:$0xff] }
 0x1ab   : > { %7258 = vmatmul.mubr.f32.vlgmr.msra.gmra.mrb[24].mxu0 %v9823_v35  ;;  %6782 = vmatprep.mubr.f32.mxu1 %v9729_v26  ;;  %v5592_v26 = vld [vmem:[%s10967_s6 + $0x730] sm:$0xff]  ;;  %v5630_v23 = vld [vmem:[%s10967_s6 + $0x860] sm:$0xff] }
 0x1ac   : > { %7892 = vmatpush3.bf16.msra.mxu1 %v7889_v21  ;;  %7260 = vmatprep.mubr.f32.mxu0 %v9833_v60  ;;  %v5603_v21 = vld [vmem:[%s10967_s6 + $0x788] sm:$0xff] }
 0x1ad   : > { %8236 = vmatpush3.bf16.msra.mxu0 %v8233_v40  ;;  %7894 = vmatprep.subr.bf16.mxu1 %v7893_v17  ;;  %v7921_v40 = vpack.c.bf16 %v5431_v33, %v5430_v15  ;;  %v8265_v7 = vpack.c.bf16 %v5603_v21, %v5602_v58  ;;  %v7949_v15 = vpack.c.bf16 %v5445_v55, %v5444_v30  ;;  %v10038_v33 = vld [vmem:[#allocation2 + $0x14] sm:$0xff]  ;;  %v5446_v21 = vld [vmem:[%s10967_s6 + $0x2a0] sm:$0xff] }
 0x1ae   : > { %6783 = vmatmul.mubr.f32.gmra.mrb[78].mxu1 %v9738_v34  ;;  %8238 = vmatprep.subr.bf16.mxu0 %v8237_v57  ;;  %v8245_v34 = vpack.c.bf16 %v5593_v20, %v5592_v26  ;;  %v9975_v26 = vld [vmem:[#allocation2 + $0x64] sm:$0xff]  ;;  %v5608_v20 = vld [vmem:[%s10967_s6 + $0x7b0] sm:$0xff]  ;;  %v5633_v55 = vld [vmem:[%s10967_s6 + $0x878] sm:$0xff] }
 0x1af   : > { %7261 = vmatmul.mubr.f32.gmra.mrb[26].mxu0 %v9846_v42  ;;  %6817 = vmatprep.mubr.f32.mxu1 %v2052_v9  ;;  %v9969_v9 = vld [vmem:[#allocation2 + $0x54] sm:$0xff] }
 0x1b0   : > { %7896 = vmatpush3.bf16.msra.mxu1 %v7893_v17  ;;  %7263 = vmatprep.mubr.f32.mxu0 %v9852_v50  ;;  %v7925_v17 = vpack.c.bf16 %v5433_v11, %v5432_v18  ;;  %v5619_v18 = vld [vmem:[%s10967_s6 + $0x808] sm:$0xff]  ;;  %v5632_v30 = vld [vmem:[%s10967_s6 + $0x870] sm:$0xff] }
 0x1b1   : > { %8240 = vmatpush3.bf16.msra.mxu0 %v8237_v57  ;;  %7898 = vmatprep.subr.bf16.mxu1 %v7897_v36  ;;  %v9946_v57 = vld [vmem:[#allocation2 + $0x34] sm:$0xff] }
 0x1b2   : > { %8242 = vmatprep.subr.bf16.mxu0 %v8241_v14 }
 0x1b3   : > { %7264 = vmatmul.mubr.f32.gmra.mrb[28].mxu0 %v9861_v41 }
 0x1b4   : > { %7900 = vmatpush3.bf16.msra.mxu1 %v7897_v36  ;;  %7266 = vmatprep.mubr.f32.mxu0 %v3440_v62  ;;  %v5607_v36 = vld [vmem:[%s10967_s6 + $0x7a8] sm:$0xff] }
 0x1b5   : > { %8244 = vmatpush3.bf16.msra.mxu0 %v8241_v14  ;;  %7902 = vmatprep.subr.bf16.mxu1 %v7901_v12  ;;  %v2190_v14 = vld [vmem:[#allocation2 + $0x4] sm:$0xff]  ;;  %v8273_v10 = vpack.c.bf16 %v5607_v36, %v5606_v48 }
 0x1b6   : > { %8246 = vmatprep.subr.bf16.mxu0 %v8245_v34  ;;  %v5439_v62 = vld [vmem:[%s10967_s6 + $0x268] sm:$0xff] }
 0x1b7   : > { %7267 = vmatmul.mubr.f32.gmra.mrb[30].mxu0 %v3441_v47  ;;  %v7937_v47 = vpack.c.bf16 %v5439_v62, %v5438_v52  ;;  %v5451_v36 = vld [vmem:[%s10967_s6 + $0x2c8] sm:$0xff]  ;;  %v10107_v62 = vld [vmem:[#allocation2 + $0x80] sm:$0xff] }
 0x1b8   : > { %7904 = vmatpush3.bf16.msra.mxu1 %v7901_v12  ;;  %7301 = vmatprep.mubr.f32.mxu0 %v9882_v0  ;;  %v5609_v12 = vld [vmem:[%s10967_s6 + $0x7b8] sm:$0xff] }
 0x1b9   : > { %8248 = vmatpush3.bf16.msra.mxu0 %v8245_v34  ;;  %7906 = vmatprep.subr.bf16.mxu1 %v7905_v38  ;;  %v9984_v34 = vld [vmem:[#allocation2 + $0x74] sm:$0xff]  ;;  %v8277_v24 = vpack.c.bf16 %v5609_v12, %v5608_v20 }
 0x1ba   : > { %8250 = vmatprep.subr.bf16.mxu0 %v8249_v19  ;;  %v5452_v20 = vld [vmem:[%s10967_s6 + $0x2d0] sm:$0xff]  ;;  %v5453_v12 = vld [vmem:[%s10967_s6 + $0x2d8] sm:$0xff] }
 0x1bb   : > { %v7965_v52 = vpack.c.bf16 %v5453_v12, %v5452_v20  ;;  %v5469_v20 = vld [vmem:[%s10967_s6 + $0x358] sm:$0xff] }
 0x1bc   : > { %7908 = vmatpush3.bf16.msra.mxu1 %v7905_v38  ;;  %v5611_v38 = vld [vmem:[%s10967_s6 + $0x7c8] sm:$0xff]  ;;  %v10225_v12 = vld [vmem:[#allocation2 + $0x71] sm:$0xff] }
 0x1bd   : > { %8252 = vmatpush3.bf16.msra.mxu0 %v8249_v19  ;;  %7910 = vmatprep.subr.bf16.mxu1 %v7909_v49  ;;  %v3579_v19 = vld [vmem:[#allocation2 + $0x94] sm:$0xff]  ;;  %v8281_v59 = vpack.c.bf16 %v5611_v38, %v5610_v22  ;;  %v5454_v22 = vld [vmem:[%s10967_s6 + $0x2e0] sm:$0xff]  ;;  %v5455_v38 = vld [vmem:[%s10967_s6 + $0x2e8] sm:$0xff] }
 0x1be   : > { %8254 = vmatprep.subr.bf16.mxu0 %v8253_v27 }
 0x1c0   : > { %7912 = vmatpush3.bf16.msra.mxu1 %v7909_v49  ;;  %v5612_v49 = vld [vmem:[%s10967_s6 + $0x7d0] sm:$0xff] }
 0x1c1   : > { %8256 = vmatpush3.bf16.msra.mxu0 %v8253_v27  ;;  %7914 = vmatprep.subr.bf16.mxu1 %v7913_v37  ;;  %v5613_v27 = vld [vmem:[%s10967_s6 + $0x7d8] sm:$0xff] }
 0x1c2   : > { %8258 = vmatprep.subr.bf16.mxu0 %v8257_v5  ;;  %v8285_v51 = vpack.c.bf16 %v5613_v27, %v5612_v49  ;;  %v5457_v49 = vld [vmem:[%s10967_s6 + $0x2f8] sm:$0xff] }
 0x1c3   : > { %6818 = vmatmul.mubr.f32.vlgmr.msra.gmra.mrb[72].mxu1 %v9915_v32  ;;  %v10132_v27 = vld [vmem:[#allocation2 + $0x31] sm:$0xff] }
 0x1c4   : > { %6820 = vmatprep.mubr.f32.mxu1 %v9759_v1  ;;  %7916 = vmatpush3.bf16.msra.mxu1 %v7913_v37  ;;  %v5604_v1 = vld [vmem:[%s10967_s6 + $0x790] sm:$0xff]  ;;  %v5614_v37 = vld [vmem:[%s10967_s6 + $0x7e0] sm:$0xff] }
 0x1c5   : > { %8260 = vmatpush3.bf16.msra.mxu0 %v8257_v5  ;;  %7918 = vmatprep.subr.bf16.mxu1 %v7917_v13  ;;  %v8269_v39 = vpack.c.bf16 %v5605_v46, %v5604_v1  ;;  %v5615_v5 = vld [vmem:[%s10967_s6 + $0x7e8] sm:$0xff]  ;;  %v5448_v46 = vld [vmem:[%s10967_s6 + $0x2b0] sm:$0xff] }
 0x1c6   : > { %8262 = vmatprep.subr.bf16.mxu0 %v8261_v4  ;;  %v8289_v29 = vpack.c.bf16 %v5615_v5, %v5614_v37  ;;  %v8321_v5 = vpack.c.bf16 %v5631_v2, %v5630_v23  ;;  %v5475_v23 = vld [vmem:[%s10967_s6 + $0x388] sm:$0xff]  ;;  %v5646_v2 = vld [vmem:[%s10967_s6 + $0x8e0] sm:$0xff] }
 0x1c7   : > { %6821 = vmatmul.mubr.f32.gmra.mrb[74].mxu1 %v9823_v35 }
 0x1c8   : > { %6823 = vmatprep.mubr.f32.mxu1 %v9833_v60  ;;  %7920 = vmatpush3.bf16.msra.mxu1 %v7917_v13  ;;  %v5435_v60 = vld [vmem:[%s10967_s6 + $0x248] sm:$0xff]  ;;  %v5616_v13 = vld [vmem:[%s10967_s6 + $0x7f0] sm:$0xff] }
 0x1c9   : > { %8264 = vmatpush3.bf16.msra.mxu0 %v8261_v4  ;;  %7922 = vmatprep.subr.bf16.mxu1 %v7921_v40  ;;  %v7929_v8 = vpack.c.bf16 %v5435_v60, %v5434_v61  ;;  %v5617_v4 = vld [vmem:[%s10967_s6 + $0x7f8] sm:$0xff]  ;;  %v10069_v60 = vld [vmem:[#allocation2 + $0x40] sm:$0xff] }
 0x1ca   : > { %8266 = vmatprep.subr.bf16.mxu0 %v8265_v7  ;;  %v8293_v58 = vpack.c.bf16 %v5617_v4, %v5616_v13  ;;  %v10165_v4 = vld [vmem:[#allocation2 + $0x20] sm:$0xff] }
 0x1cb   : > { %6824 = vmatmul.mubr.f32.gmra.mrb[76].mxu1 %v9846_v42  ;;  %v5436_v42 = vld [vmem:[%s10967_s6 + $0x250] sm:$0xff] }
 0x1cc   : > { %7302 = vmatmul.mubr.f32.vlgmr.msra.gmra.mrb[24].mxu0 %v9946_v57  ;;  %6826 = vmatprep.mubr.f32.mxu1 %v9852_v50  ;;  %v5437_v50 = vld [vmem:[%s10967_s6 + $0x258] sm:$0xff] }
 0x1cd   : > { %7924 = vmatpush3.bf16.msra.mxu1 %v7921_v40  ;;  %7304 = vmatprep.mubr.f32.mxu0 %v9956_v53  ;;  %v5447_v40 = vld [vmem:[%s10967_s6 + $0x2a8] sm:$0xff] }
 0x1ce   : > { %8268 = vmatpush3.bf16.msra.mxu0 %v8265_v7  ;;  %7926 = vmatprep.subr.bf16.mxu1 %v7925_v17  ;;  %v5618_v7 = vld [vmem:[%s10967_s6 + $0x800] sm:$0xff]  ;;  %v7953_v11 = vpack.c.bf16 %v5447_v40, %v5446_v21  ;;  %v5463_v21 = vld [vmem:[%s10967_s6 + $0x328] sm:$0xff] }
 0x1cf   : > { %6827 = vmatmul.mubr.f32.gmra.mrb[78].mxu1 %v9861_v41  ;;  %8270 = vmatprep.subr.bf16.mxu0 %v8269_v39  ;;  %v7933_v41 = vpack.c.bf16 %v5437_v50, %v5436_v42  ;;  %v8297_v1 = vpack.c.bf16 %v5619_v18, %v5618_v7  ;;  %v5622_v42 = vld [vmem:[%s10967_s6 + $0x820] sm:$0xff]  ;;  %v5635_v7 = vld [vmem:[%s10967_s6 + $0x888] sm:$0xff] }
 0x1d0   : > { %7305 = vmatmul.mubr.f32.gmra.mrb[26].mxu0 %v9969_v9  ;;  %6861 = vmatprep.mubr.f32.mxu1 %v2190_v14  ;;  %v2329_v14 = vld [vmem:[#allocation2 + $0x10] sm:$0xff]  ;;  %v10089_v50 = vld [vmem:[#allocation2 + $0x60] sm:$0xff] }
 0x1d1   : > { %7928 = vmatpush3.bf16.msra.mxu1 %v7925_v17  ;;  %7307 = vmatprep.mubr.f32.mxu0 %v9975_v26  ;;  %v5449_v17 = vld [vmem:[%s10967_s6 + $0x2b8] sm:$0xff]  ;;  %v5634_v40 = vld [vmem:[%s10967_s6 + $0x880] sm:$0xff] }
 0x1d2   : > { %8272 = vmatpush3.bf16.msra.mxu0 %v8269_v39  ;;  %7930 = vmatprep.subr.bf16.mxu1 %v7929_v8  ;;  %v5621_v39 = vld [vmem:[%s10967_s6 + $0x818] sm:$0xff]  ;;  %v7957_v61 = vpack.c.bf16 %v5449_v17, %v5448_v46 }
 0x1d3   : > { %8274 = vmatprep.subr.bf16.mxu0 %v8273_v10  ;;  %v5465_v46 = vld [vmem:[%s10967_s6 + $0x338] sm:$0xff] }
 0x1d4   : > { %7308 = vmatmul.mubr.f32.gmra.mrb[28].mxu0 %v9984_v34  ;;  %v5637_v17 = vld [vmem:[%s10967_s6 + $0x898] sm:$0xff] }
 0x1d5   : > { %7932 = vmatpush3.bf16.msra.mxu1 %v7929_v8  ;;  %7310 = vmatprep.mubr.f32.mxu0 %v3578_v45  ;;  %v10079_v8 = vld [vmem:[#allocation2 + $0x50] sm:$0xff] }
 0x1d6   : > { %8276 = vmatpush3.bf16.msra.mxu0 %v8273_v10  ;;  %7934 = vmatprep.subr.bf16.mxu1 %v7933_v41 }
 0x1d7   : > { %8278 = vmatprep.subr.bf16.mxu0 %v8277_v24 }
 0x1d8   : > { %7311 = vmatmul.mubr.f32.gmra.mrb[30].mxu0 %v3579_v19  ;;  %v5627_v19 = vld [vmem:[%s10967_s6 + $0x848] sm:$0xff] }
 0x1d9   : > { %7936 = vmatpush3.bf16.msra.mxu1 %v7933_v41  ;;  %7345 = vmatprep.mubr.f32.mxu0 %v10005_v44  ;;  %v10098_v41 = vld [vmem:[#allocation2 + $0x70] sm:$0xff] }
 0x1da   : > { %8280 = vmatpush3.bf16.msra.mxu0 %v8277_v24  ;;  %7938 = vmatprep.subr.bf16.mxu1 %v7937_v47  ;;  %v5625_v24 = vld [vmem:[%s10967_s6 + $0x838] sm:$0xff] }
 0x1db   : > { %8282 = vmatprep.subr.bf16.mxu0 %v8281_v59 }
 0x1dd   : > { %7940 = vmatpush3.bf16.msra.mxu1 %v7937_v47  ;;  %v5626_v47 = vld [vmem:[%s10967_s6 + $0x840] sm:$0xff] }
 0x1de   : > { %8284 = vmatpush3.bf16.msra.mxu0 %v8281_v59  ;;  %7942 = vmatprep.subr.bf16.mxu1 %v7941_v25  ;;  %v7969_v59 = vpack.c.bf16 %v5455_v38, %v5454_v22  ;;  %v8313_v63 = vpack.c.bf16 %v5627_v19, %v5626_v47  ;;  %v5471_v22 = vld [vmem:[%s10967_s6 + $0x368] sm:$0xff]  ;;  %v3855_v38 = vld [vmem:[#allocation2 + $0x91] sm:$0xff]  ;;  %v5642_v47 = vld [vmem:[%s10967_s6 + $0x8c0] sm:$0xff] }
 0x1df   : > { %8286 = vmatprep.subr.bf16.mxu0 %v8285_v51  ;;  %v5643_v19 = vld [vmem:[%s10967_s6 + $0x8c8] sm:$0xff] }
 0x1e1   : > { %7944 = vmatpush3.bf16.msra.mxu1 %v7941_v25  ;;  %v7973_v25 = vpack.c.bf16 %v5457_v49, %v5456_v54  ;;  %v8345_v54 = vpack.c.bf16 %v5643_v19, %v5642_v47  ;;  %v5472_v49 = vld [vmem:[%s10967_s6 + $0x370] sm:$0xff]  ;;  %v5659_v47 = vld [vmem:[%s10967_s6 + $0x948] sm:$0xff] }
 0x1e2   : > { %8288 = vmatpush3.bf16.msra.mxu0 %v8285_v51  ;;  %7946 = vmatprep.subr.bf16.mxu1 %v7945_v3 }
 0x1e3   : > { %8290 = vmatprep.subr.bf16.mxu0 %v8289_v29 }
 0x1e4   : > { %6862 = vmatmul.mubr.f32.vlgmr.msra.gmra.mrb[72].mxu1 %v10038_v33 }
 0x1e5   : > { %6864 = vmatprep.mubr.f32.mxu1 %v9882_v0  ;;  %7948 = vmatpush3.bf16.msra.mxu1 %v7945_v3  ;;  %v5620_v0 = vld [vmem:[%s10967_s6 + $0x810] sm:$0xff] }
 0x1e6   : > { %8292 = vmatpush3.bf16.msra.mxu0 %v8289_v29  ;;  %7950 = vmatprep.subr.bf16.mxu1 %v7949_v15  ;;  %v8301_v48 = vpack.c.bf16 %v5621_v39, %v5620_v0  ;;  %v5460_v3 = vld [vmem:[%s10967_s6 + $0x310] sm:$0xff]  ;;  %v5461_v29 = vld [vmem:[%s10967_s6 + $0x318] sm:$0xff]  ;;  %v10196_v39 = vld [vmem:[#allocation2 + $0x41] sm:$0xff] }
 0x1e7   : > { %8294 = vmatprep.subr.bf16.mxu0 %v8293_v58  ;;  %v7981_v13 = vpack.c.bf16 %v5461_v29, %v5460_v3  ;;  %v5476_v3 = vld [vmem:[%s10967_s6 + $0x390] sm:$0xff]  ;;  %v5477_v29 = vld [vmem:[%s10967_s6 + $0x398] sm:$0xff] }
 0x1e8   : > { %6865 = vmatmul.mubr.f32.gmra.mrb[74].mxu1 %v9946_v57 }
 0x1e9   : > { %6867 = vmatprep.mubr.f32.mxu1 %v9956_v53  ;;  %7952 = vmatpush3.bf16.msra.mxu1 %v7949_v15  ;;  %v5450_v53 = vld [vmem:[%s10967_s6 + $0x2c0] sm:$0xff]  ;;  %v8325_v15 = vpack.c.bf16 %v5633_v55, %v5632_v30  ;;  %v5648_v30 = vld [vmem:[%s10967_s6 + $0x8f0] sm:$0xff]  ;;  %v5649_v55 = vld [vmem:[%s10967_s6 + $0x8f8] sm:$0xff] }
 0x1ea   : > { %8296 = vmatpush3.bf16.msra.mxu0 %v8293_v58  ;;  %7954 = vmatprep.subr.bf16.mxu1 %v7953_v11  ;;  %v7961_v10 = vpack.c.bf16 %v5451_v36, %v5450_v53  ;;  %v5462_v58 = vld [vmem:[%s10967_s6 + $0x320] sm:$0xff]  ;;  %v5467_v53 = vld [vmem:[%s10967_s6 + $0x348] sm:$0xff]  ;;  %v10206_v36 = vld [vmem:[#allocation2 + $0x51] sm:$0xff] }
 0x1eb   : > { %8298 = vmatprep.subr.bf16.mxu0 %v8297_v1  ;;  %v7985_v18 = vpack.c.bf16 %v5463_v21, %v5462_v58  ;;  %v8357_v58 = vpack.c.bf16 %v5649_v55, %v5648_v30  ;;  %v5478_v21 = vld [vmem:[%s10967_s6 + $0x3a0] sm:$0xff] }
 0x1ec   : > { %6868 = vmatmul.mubr.f32.gmra.mrb[76].mxu1 %v9969_v9  ;;  %v5623_v9 = vld [vmem:[%s10967_s6 + $0x828] sm:$0xff] }
 0x1ed   : > { %7346 = vmatmul.mubr.f32.vlgmr.msra.gmra.mrb[24].mxu0 %v10069_v60  ;;  %6870 = vmatprep.mubr.f32.mxu1 %v9975_v26  ;;  %v8305_v26 = vpack.c.bf16 %v5623_v9, %v5622_v42  ;;  %v5639_v42 = vld [vmem:[%s10967_s6 + $0x8a8] sm:$0xff]  ;;  %v2467_v9 = vld [vmem:[#allocation2 + $0x11] sm:$0xff] }
 0x1ee   : > { %7956 = vmatpush3.bf16.msra.mxu1 %v7953_v11  ;;  %7348 = vmatprep.mubr.f32.mxu0 %v10079_v8  ;;  %v8329_v11 = vpack.c.bf16 %v5635_v7, %v5634_v40  ;;  %v5479_v40 = vld [vmem:[%s10967_s6 + $0x3a8] sm:$0xff]  ;;  %v5650_v7 = vld [vmem:[%s10967_s6 + $0x900] sm:$0xff] }
 0x1ef   : > { %8300 = vmatpush3.bf16.msra.mxu0 %v8297_v1  ;;  %7958 = vmatprep.subr.bf16.mxu1 %v7957_v61  ;;  %v5464_v1 = vld [vmem:[%s10967_s6 + $0x330] sm:$0xff]  ;;  %v2606_v55 = vld [vmem:[#allocation2 + $0x22] sm:$0xff] }
 0x1f0   : > { %6871 = vmatmul.mubr.f32.gmra.mrb[78].mxu1 %v9984_v34  ;;  %8302 = vmatprep.subr.bf16.mxu0 %v8301_v48  ;;  %v5624_v34 = vld [vmem:[%s10967_s6 + $0x830] sm:$0xff]  ;;  %v7989_v0 = vpack.c.bf16 %v5465_v46, %v5464_v1 }
 0x1f1   : > { %7349 = vmatmul.mubr.f32.gmra.mrb[26].mxu0 %v10089_v50  ;;  %6905 = vmatprep.mubr.f32.mxu1 %v2329_v14  ;;  %v8309_v45 = vpack.c.bf16 %v5625_v24, %v5624_v34  ;;  %v5641_v34 = vld [vmem:[%s10967_s6 + $0x8b8] sm:$0xff]  ;;  %v5480_v46 = vld [vmem:[%s10967_s6 + $0x3b0] sm:$0xff] }
 0x1f2   : > { %7960 = vmatpush3.bf16.msra.mxu1 %v7957_v61  ;;  %7351 = vmatprep.mubr.f32.mxu0 %v10098_v41 }
 0x1f3   : > { %8304 = vmatpush3.bf16.msra.mxu0 %v8301_v48  ;;  %7962 = vmatprep.subr.bf16.mxu1 %v7961_v10  ;;  %v5466_v48 = vld [vmem:[%s10967_s6 + $0x340] sm:$0xff] }
 0x1f4   : > { %8306 = vmatprep.subr.bf16.mxu0 %v8305_v26  ;;  %v7993_v14 = vpack.c.bf16 %v5467_v53, %v5466_v48  ;;  %v5482_v53 = vld [vmem:[%s10967_s6 + $0x3c0] sm:$0xff] }
 0x1f5   : > { %7352 = vmatmul.mubr.f32.gmra.mrb[28].mxu0 %v10107_v62 }
 0x1f6   : > { %7964 = vmatpush3.bf16.msra.mxu1 %v7961_v10  ;;  %7354 = vmatprep.mubr.f32.mxu0 %v1625_v16  ;;  %v5629_v16 = vld [vmem:[%s10967_s6 + $0x858] sm:$0xff]  ;;  %v10216_v10 = vld [vmem:[#allocation2 + $0x61] sm:$0xff] }
 0x1f7   : > { %8308 = vmatpush3.bf16.msra.mxu0 %v8305_v26  ;;  %7966 = vmatprep.subr.bf16.mxu1 %v7965_v52  ;;  %v8317_v51 = vpack.c.bf16 %v5629_v16, %v5628_v56  ;;  %v5468_v26 = vld [vmem:[%s10967_s6 + $0x350] sm:$0xff]  ;;  %v5473_v56 = vld [vmem:[%s10967_s6 + $0x378] sm:$0xff] }
 0x1f8   : > { %8310 = vmatprep.subr.bf16.mxu0 %v8309_v45  ;;  %v7997_v24 = vpack.c.bf16 %v5469_v20, %v5468_v26  ;;  %v5644_v16 = vld [vmem:[%s10967_s6 + $0x8d0] sm:$0xff]  ;;  %v5485_v20 = vld [vmem:[%s10967_s6 + $0x3d8] sm:$0xff] }
 0x1f9   : > { %7355 = vmatmul.mubr.f32.gmra.mrb[30].mxu0 %v1627_v6  ;;  %v5459_v6 = vld [vmem:[%s10967_s6 + $0x308] sm:$0xff]  ;;  %v5484_v26 = vld [vmem:[%s10967_s6 + $0x3d0] sm:$0xff] }
 0x1fa   : > { %7968 = vmatpush3.bf16.msra.mxu1 %v7965_v52  ;;  %7389 = vmatprep.mubr.f32.mxu0 %v10132_v27  ;;  %v7977_v37 = vpack.c.bf16 %v5459_v6, %v5458_v28  ;;  %v10234_v52 = vld [vmem:[#allocation2 + $0x81] sm:$0xff] }
 0x1fb   : > { %8312 = vmatpush3.bf16.msra.mxu0 %v8309_v45  ;;  %7970 = vmatprep.subr.bf16.mxu1 %v7969_v59  ;;  %v5470_v45 = vld [vmem:[%s10967_s6 + $0x360] sm:$0xff] }
 0x1fc   : > { %8314 = vmatprep.subr.bf16.mxu0 %v8313_v63  ;;  %v5474_v6 = vld [vmem:[%s10967_s6 + $0x380] sm:$0xff] }
 0x1fe   : > { %7972 = vmatpush3.bf16.msra.mxu1 %v7969_v59  ;;  %v8001_v59 = vpack.c.bf16 %v5471_v22, %v5470_v45  ;;  %v5487_v45 = vld [vmem:[%s10967_s6 + $0x3e8] sm:$0xff]  ;;  %v10362_v22 = vld [vmem:[#allocation2 + $0x92] sm:$0xff] }
 0x1ff   : > { %8316 = vmatpush3.bf16.msra.mxu0 %v8313_v63  ;;  %7974 = vmatprep.subr.bf16.mxu1 %v7973_v25  ;;  %v3856_v63 = vld [vmem:[#allocation2 + $0xa1] sm:$0xff] }
 0x200   : > { %8318 = vmatprep.subr.bf16.mxu0 %v8317_v51 }
 0x202   : > { %7976 = vmatpush3.bf16.msra.mxu1 %v7973_v25  ;;  %v5645_v25 = vld [vmem:[%s10967_s6 + $0x8d8] sm:$0xff] }
 0x203   : > { %8320 = vmatpush3.bf16.msra.mxu0 %v8317_v51  ;;  %7978 = vmatprep.subr.bf16.mxu1 %v7977_v37  ;;  %v8005_v51 = vpack.c.bf16 %v5473_v56, %v5472_v49  ;;  %v8349_v28 = vpack.c.bf16 %v5645_v25, %v5644_v16  ;;  %v5489_v49 = vld [vmem:[%s10967_s6 + $0x3f8] sm:$0xff]  ;;  %v5660_v56 = vld [vmem:[%s10967_s6 + $0x950] sm:$0xff] }
 0x204   : > { %8322 = vmatprep.subr.bf16.mxu0 %v8321_v5  ;;  %v5661_v16 = vld [vmem:[%s10967_s6 + $0x958] sm:$0xff] }
 0x205   : > { %6906 = vmatmul.mubr.f32.vlgmr.msra.gmra.mrb[72].mxu1 %v10165_v4 }
 0x206   : > { %6908 = vmatprep.mubr.f32.mxu1 %v10005_v44  ;;  %7980 = vmatpush3.bf16.msra.mxu1 %v7977_v37  ;;  %v5636_v44 = vld [vmem:[%s10967_s6 + $0x890] sm:$0xff]  ;;  %v8009_v37 = vpack.c.bf16 %v5475_v23, %v5474_v6  ;;  %v5491_v6 = vld [vmem:[%s10967_s6 + $0x408] sm:$0xff]  ;;  %v5662_v23 = vld [vmem:[%s10967_s6 + $0x960] sm:$0xff] }
 0x207   : > { %8324 = vmatpush3.bf16.msra.mxu0 %v8321_v5  ;;  %7982 = vmatprep.subr.bf16.mxu1 %v7981_v13  ;;  %v8333_v61 = vpack.c.bf16 %v5637_v17, %v5636_v44  ;;  %v5481_v44 = vld [vmem:[%s10967_s6 + $0x3b8] sm:$0xff] }
 0x208   : > { %8326 = vmatprep.subr.bf16.mxu0 %v8325_v15  ;;  %v5653_v17 = vld [vmem:[%s10967_s6 + $0x918] sm:$0xff] }
 0x209   : > { %6909 = vmatmul.mubr.f32.gmra.mrb[74].mxu1 %v10069_v60 }
 0x20a   : > { %6911 = vmatprep.mubr.f32.mxu1 %v10079_v8  ;;  %7984 = vmatpush3.bf16.msra.mxu1 %v7981_v13  ;;  %v5638_v8 = vld [vmem:[%s10967_s6 + $0x8a0] sm:$0xff]  ;;  %v8013_v13 = vpack.c.bf16 %v5477_v29, %v5476_v3  ;;  %v5664_v3 = vld [vmem:[%s10967_s6 + $0x970] sm:$0xff]  ;;  %v5665_v29 = vld [vmem:[%s10967_s6 + $0x978] sm:$0xff] }
 0x20b   : > { %8328 = vmatpush3.bf16.msra.mxu0 %v8325_v15  ;;  %7986 = vmatprep.subr.bf16.mxu1 %v7985_v18  ;;  %v2468_v15 = vld [vmem:[#allocation2 + $0x21] sm:$0xff] }
 0x20c   : > { %8330 = vmatprep.subr.bf16.mxu0 %v8329_v11 }
 0x20d   : > { %6912 = vmatmul.mubr.f32.gmra.mrb[76].mxu1 %v10089_v50  ;;  %v8337_v50 = vpack.c.bf16 %v5639_v42, %v5638_v8  ;;  %v10324_v8 = vld [vmem:[#allocation2 + $0x52] sm:$0xff]  ;;  %v5654_v42 = vld [vmem:[%s10967_s6 + $0x920] sm:$0xff] }
 0x20e   : > { %7390 = vmatmul.mubr.f32.vlgmr.msra.gmra.mrb[24].mxu0 %v10196_v39  ;;  %6914 = vmatprep.mubr.f32.mxu1 %v10098_v41  ;;  %v5640_v41 = vld [vmem:[%s10967_s6 + $0x8b0] sm:$0xff] }
 0x20f   : > { %7988 = vmatpush3.bf16.msra.mxu1 %v7985_v18  ;;  %7392 = vmatprep.mubr.f32.mxu0 %v10206_v36  ;;  %v5651_v18 = vld [vmem:[%s10967_s6 + $0x908] sm:$0xff] }
 0x210   : > { %8332 = vmatpush3.bf16.msra.mxu0 %v8329_v11  ;;  %7990 = vmatprep.subr.bf16.mxu1 %v7989_v0  ;;  %v8017_v11 = vpack.c.bf16 %v5479_v40, %v5478_v21  ;;  %v8361_v1 = vpack.c.bf16 %v5651_v18, %v5650_v7  ;;  %v2607_v21 = vld [vmem:[#allocation2 + $0x32] sm:$0xff]  ;;  %v5666_v40 = vld [vmem:[%s10967_s6 + $0x980] sm:$0xff]  ;;  %v5667_v7 = vld [vmem:[%s10967_s6 + $0x988] sm:$0xff] }
 0x211   : > { %6915 = vmatmul.mubr.f32.gmra.mrb[78].mxu1 %v10107_v62  ;;  %8334 = vmatprep.subr.bf16.mxu0 %v8333_v61  ;;  %v8341_v62 = vpack.c.bf16 %v5641_v34, %v5640_v41  ;;  %v5656_v41 = vld [vmem:[%s10967_s6 + $0x930] sm:$0xff]  ;;  %v5657_v34 = vld [vmem:[%s10967_s6 + $0x938] sm:$0xff] }
 0x212   : > { %7393 = vmatmul.mubr.f32.gmra.mrb[26].mxu0 %v10216_v10  ;;  %6949 = vmatprep.mubr.f32.mxu1 %v2467_v9  ;;  %v5655_v9 = vld [vmem:[%s10967_s6 + $0x928] sm:$0xff] }
 0x213   : > { %7992 = vmatpush3.bf16.msra.mxu1 %v7989_v0  ;;  %7395 = vmatprep.mubr.f32.mxu0 %v10225_v12  ;;  %v8021_v0 = vpack.c.bf16 %v5481_v44, %v5480_v46  ;;  %v5497_v46 = vld [vmem:[%s10967_s6 + $0x438] sm:$0xff]  ;;  %v5668_v44 = vld [vmem:[%s10967_s6 + $0x990] sm:$0xff] }
 0x214   : > { %8336 = vmatpush3.bf16.msra.mxu0 %v8333_v61  ;;  %7994 = vmatprep.subr.bf16.mxu1 %v7993_v14  ;;  %v10314_v61 = vld [vmem:[#allocation2 + $0x42] sm:$0xff] }
 0x215   : > { %8338 = vmatprep.subr.bf16.mxu0 %v8337_v50 }
 0x216   : > { %7396 = vmatmul.mubr.f32.gmra.mrb[28].mxu0 %v10234_v52 }
 0x217   : > { %7996 = vmatpush3.bf16.msra.mxu1 %v7993_v14  ;;  %7398 = vmatprep.mubr.f32.mxu0 %v3855_v38  ;;  %v5658_v38 = vld [vmem:[%s10967_s6 + $0x940] sm:$0xff] }
 0x218   : > { %8340 = vmatpush3.bf16.msra.mxu0 %v8337_v50  ;;  %7998 = vmatprep.subr.bf16.mxu1 %v7997_v24  ;;  %v8369_v50 = vpack.c.bf16 %v5655_v9, %v5654_v42  ;;  %v10448_v42 = vld [vmem:[#allocation2 + $0x53] sm:$0xff]  ;;  %v5670_v9 = vld [vmem:[%s10967_s6 + $0x9a0] sm:$0xff] }
 0x219   : > { %8342 = vmatprep.subr.bf16.mxu0 %v8341_v62 }
 0x21a   : > { %7399 = vmatmul.mubr.f32.gmra.mrb[30].mxu0 %v3856_v63  ;;  %v8377_v63 = vpack.c.bf16 %v5659_v47, %v5658_v38  ;;  %v10477_v38 = vld [vmem:[#allocation2 + $0x83] sm:$0xff] }
 0x21b   : > { %8000 = vmatpush3.bf16.msra.mxu1 %v7997_v24  ;;  %7433 = vmatprep.mubr.f32.mxu0 %v9698_v43  ;;  %v5647_v43 = vld [vmem:[%s10967_s6 + $0x8e8] sm:$0xff]  ;;  %v8029_v24 = vpack.c.bf16 %v5485_v20, %v5484_v26  ;;  %v5502_v47 = vld [vmem:[%s10967_s6 + $0x460] sm:$0xff] }
 0x21c   : > { %8344 = vmatpush3.bf16.msra.mxu0 %v8341_v62  ;;  %8002 = vmatprep.subr.bf16.mxu1 %v8001_v59  ;;  %v8353_v5 = vpack.c.bf16 %v5647_v43, %v5646_v2  ;;  %v5486_v62 = vld [vmem:[%s10967_s6 + $0x3e0] sm:$0xff] }
 0x21d   : > { %8346 = vmatprep.subr.bf16.mxu0 %v8345_v54  ;;  %v8033_v19 = vpack.c.bf16 %v5487_v45, %v5486_v62  ;;  %v10458_v26 = vld [vmem:[#allocation2 + $0x63] sm:$0xff]  ;;  %v5673_v62 = vld [vmem:[%s10967_s6 + $0x9b8] sm:$0xff] }
 0x21f   : > { %8004 = vmatpush3.bf16.msra.mxu1 %v8001_v59  ;;  %v10371_v59 = vld [vmem:[#allocation2 + $0xa2] sm:$0xff] }
 0x220   : > { %8348 = vmatpush3.bf16.msra.mxu0 %v8345_v54  ;;  %8006 = vmatprep.subr.bf16.mxu1 %v8005_v51  ;;  %v5488_v54 = vld [vmem:[%s10967_s6 + $0x3f0] sm:$0xff] }
 0x221   : > { %8350 = vmatprep.subr.bf16.mxu0 %v8349_v28  ;;  %v8037_v25 = vpack.c.bf16 %v5489_v49, %v5488_v54  ;;  %v5674_v54 = vld [vmem:[%s10967_s6 + $0x9c0] sm:$0xff]  ;;  %v5675_v49 = vld [vmem:[%s10967_s6 + $0x9c8] sm:$0xff] }
 0x223   : > { %8008 = vmatpush3.bf16.msra.mxu1 %v8005_v51  ;;  %v8381_v51 = vpack.c.bf16 %v5661_v16, %v5660_v56  ;;  %v10495_v16 = vld [vmem:[#allocation2 + $0xa3] sm:$0xff] }
 0x224   : > { %8352 = vmatpush3.bf16.msra.mxu0 %v8349_v28  ;;  %8010 = vmatprep.subr.bf16.mxu1 %v8009_v37  ;;  %v5490_v28 = vld [vmem:[%s10967_s6 + $0x400] sm:$0xff] }
 0x225   : > { %8354 = vmatprep.subr.bf16.mxu0 %v8353_v5  ;;  %v8041_v2 = vpack.c.bf16 %v5491_v6, %v5490_v28  ;;  %v5505_v28 = vld [vmem:[%s10967_s6 + $0x478] sm:$0xff]  ;;  %v5676_v6 = vld [vmem:[%s10967_s6 + $0x9d0] sm:$0xff] }
 0x226   : > { %6950 = vmatmul.mubr.f32.vlgmr.msra.gmra.mrb[72].mxu1 %v2468_v15  ;;  %v5494_v15 = vld [vmem:[%s10967_s6 + $0x420] sm:$0xff] }
 0x227   : > { %6952 = vmatprep.mubr.f32.mxu1 %v10132_v27  ;;  %8012 = vmatpush3.bf16.msra.mxu1 %v8009_v37  ;;  %v5652_v27 = vld [vmem:[%s10967_s6 + $0x910] sm:$0xff] }
 0x228   : > { %8356 = vmatpush3.bf16.msra.mxu0 %v8353_v5  ;;  %8014 = vmatprep.subr.bf16.mxu1 %v8013_v13  ;;  %v8365_v48 = vpack.c.bf16 %v5653_v17, %v5652_v27  ;;  %v5492_v37 = vld [vmem:[%s10967_s6 + $0x410] sm:$0xff]  ;;  %v5493_v5 = vld [vmem:[%s10967_s6 + $0x418] sm:$0xff] }
 0x229   : > { %8358 = vmatprep.subr.bf16.mxu0 %v8357_v58  ;;  %v8045_v30 = vpack.c.bf16 %v5493_v5, %v5492_v37  ;;  %v5669_v27 = vld [vmem:[%s10967_s6 + $0x998] sm:$0xff]  ;;  %v5507_v37 = vld [vmem:[%s10967_s6 + $0x488] sm:$0xff]  ;;  %v5678_v5 = vld [vmem:[%s10967_s6 + $0x9e0] sm:$0xff] }
 0x22a   : > { %6953 = vmatmul.mubr.f32.gmra.mrb[74].mxu1 %v10196_v39 }
 0x22b   : > { %6955 = vmatprep.mubr.f32.mxu1 %v10206_v36  ;;  %8016 = vmatpush3.bf16.msra.mxu1 %v8013_v13  ;;  %v5483_v36 = vld [vmem:[%s10967_s6 + $0x3c8] sm:$0xff]  ;;  %v8389_v13 = vpack.c.bf16 %v5665_v29, %v5664_v3 }
 0x22c   : > { %8360 = vmatpush3.bf16.msra.mxu0 %v8357_v58  ;;  %8018 = vmatprep.subr.bf16.mxu1 %v8017_v11  ;;  %v8025_v14 = vpack.c.bf16 %v5483_v36, %v5482_v53  ;;  %v5495_v58 = vld [vmem:[%s10967_s6 + $0x428] sm:$0xff]  ;;  %v5498_v53 = vld [vmem:[%s10967_s6 + $0x440] sm:$0xff] }
 0x22d   : > { %8362 = vmatprep.subr.bf16.mxu0 %v8361_v1  ;;  %v8049_v18 = vpack.c.bf16 %v5495_v58, %v5494_v15  ;;  %v5499_v36 = vld [vmem:[%s10967_s6 + $0x448] sm:$0xff]  ;;  %v5681_v15 = vld [vmem:[%s10967_s6 + $0x9f8] sm:$0xff] }
 0x22e   : > { %6956 = vmatmul.mubr.f32.gmra.mrb[76].mxu1 %v10216_v10  ;;  %v10334_v10 = vld [vmem:[#allocation2 + $0x62] sm:$0xff] }
 0x22f   : > { %7434 = vmatmul.mubr.f32.vlgmr.msra.gmra.mrb[24].mxu0 %v10314_v61  ;;  %6958 = vmatprep.mubr.f32.mxu1 %v10225_v12  ;;  %v10344_v12 = vld [vmem:[#allocation2 + $0x72] sm:$0xff] }
 0x230   : > { %8020 = vmatpush3.bf16.msra.mxu1 %v8017_v11  ;;  %7436 = vmatprep.mubr.f32.mxu0 %v10324_v8  ;;  %v8393_v11 = vpack.c.bf16 %v5667_v7, %v5666_v40  ;;  %v5510_v7 = vld [vmem:[%s10967_s6 + $0x4a0] sm:$0xff] }
 0x231   : > { %8364 = vmatpush3.bf16.msra.mxu0 %v8361_v1  ;;  %8022 = vmatprep.subr.bf16.mxu1 %v8021_v0  ;;  %v5496_v1 = vld [vmem:[%s10967_s6 + $0x430] sm:$0xff] }
 0x232   : > { %6959 = vmatmul.mubr.f32.gmra.mrb[78].mxu1 %v10234_v52  ;;  %8366 = vmatprep.subr.bf16.mxu0 %v8365_v48  ;;  %v10353_v52 = vld [vmem:[#allocation2 + $0x82] sm:$0xff]  ;;  %v8053_v17 = vpack.c.bf16 %v5497_v46, %v5496_v1 }
 0x233   : > { %7437 = vmatmul.mubr.f32.gmra.mrb[26].mxu0 %v10334_v10  ;;  %6993 = vmatprep.mubr.f32.mxu1 %v9792_v31  ;;  %v8373_v31 = vpack.c.bf16 %v5657_v34, %v5656_v41  ;;  %v5500_v41 = vld [vmem:[%s10967_s6 + $0x450] sm:$0xff]  ;;  %v5501_v34 = vld [vmem:[%s10967_s6 + $0x458] sm:$0xff]  ;;  %v5682_v1 = vld [vmem:[%s10967_s6 + $0xa00] sm:$0xff] }
 0x234   : > { %8024 = vmatpush3.bf16.msra.mxu1 %v8021_v0  ;;  %7439 = vmatprep.mubr.f32.mxu0 %v10344_v12  ;;  %v10438_v0 = vld [vmem:[#allocation2 + $0x43] sm:$0xff]  ;;  %v8061_v45 = vpack.c.bf16 %v5501_v34, %v5500_v41  ;;  %v10572_v34 = vld [vmem:[#allocation2 + $0x54] sm:$0xff] }
 0x235   : > { %8368 = vmatpush3.bf16.msra.mxu0 %v8365_v48  ;;  %8026 = vmatprep.subr.bf16.mxu1 %v8025_v14  ;;  %v8397_v48 = vpack.c.bf16 %v5669_v27, %v5668_v44  ;;  %v5683_v46 = vld [vmem:[%s10967_s6 + $0xa08] sm:$0xff] }
 0x236   : > { %8370 = vmatprep.subr.bf16.mxu0 %v8369_v50  ;;  %v8425_v27 = vpack.c.bf16 %v5683_v46, %v5682_v1  ;;  %v5515_v41 = vld [vmem:[%s10967_s6 + $0x4c8] sm:$0xff]  ;;  %v5525_v1 = vld [vmem:[%s10967_s6 + $0x518] sm:$0xff]  ;;  %v5696_v46 = vld [vmem:[%s10967_s6 + $0xa70] sm:$0xff] }
 0x237   : > { %7440 = vmatmul.mubr.f32.gmra.mrb[28].mxu0 %v10353_v52 }
 0x238   : > { %8028 = vmatpush3.bf16.msra.mxu1 %v8025_v14  ;;  %7442 = vmatprep.mubr.f32.mxu0 %v10362_v22  ;;  %v5671_v14 = vld [vmem:[%s10967_s6 + $0x9a8] sm:$0xff] }
 0x239   : > { %8372 = vmatpush3.bf16.msra.mxu0 %v8369_v50  ;;  %8030 = vmatprep.subr.bf16.mxu1 %v8029_v24  ;;  %v8057_v50 = vpack.c.bf16 %v5499_v36, %v5498_v53  ;;  %v8401_v20 = vpack.c.bf16 %v5671_v14, %v5670_v9  ;;  %v5684_v53 = vld [vmem:[%s10967_s6 + $0xa10] sm:$0xff]  ;;  %v5685_v36 = vld [vmem:[%s10967_s6 + $0xa18] sm:$0xff]  ;;  %v10562_v14 = vld [vmem:[#allocation2 + $0x44] sm:$0xff] }
 0x23a   : > { %8374 = vmatprep.subr.bf16.mxu0 %v8373_v31 }
 0x23b   : > { %7443 = vmatmul.mubr.f32.gmra.mrb[30].mxu0 %v10371_v59 }
 0x23c   : > { %8032 = vmatpush3.bf16.msra.mxu1 %v8029_v24  ;;  %7477 = vmatprep.mubr.f32.mxu0 %v9823_v35  ;;  %v5663_v35 = vld [vmem:[%s10967_s6 + $0x968] sm:$0xff]  ;;  %v10468_v24 = vld [vmem:[#allocation2 + $0x73] sm:$0xff] }
 0x23d   : > { %8376 = vmatpush3.bf16.msra.mxu0 %v8373_v31  ;;  %8034 = vmatprep.subr.bf16.mxu1 %v8033_v19  ;;  %v8385_v43 = vpack.c.bf16 %v5663_v35, %v5662_v23  ;;  %v5672_v31 = vld [vmem:[%s10967_s6 + $0x9b0] sm:$0xff]  ;;  %v5677_v23 = vld [vmem:[%s10967_s6 + $0x9d8] sm:$0xff] }
 0x23e   : > { %8378 = vmatprep.subr.bf16.mxu0 %v8377_v63 }
 0x240   : > { %8036 = vmatpush3.bf16.msra.mxu1 %v8033_v19  ;;  %v5503_v19 = vld [vmem:[%s10967_s6 + $0x468] sm:$0xff] }
 0x241   : > { %8380 = vmatpush3.bf16.msra.mxu0 %v8377_v63  ;;  %8038 = vmatprep.subr.bf16.mxu1 %v8037_v25  ;;  %v10486_v63 = vld [vmem:[#allocation2 + $0x93] sm:$0xff]  ;;  %v8065_v56 = vpack.c.bf16 %v5503_v19, %v5502_v47 }
 0x242   : > { %8382 = vmatprep.subr.bf16.mxu0 %v8381_v51  ;;  %v5516_v19 = vld [vmem:[%s10967_s6 + $0x4d0] sm:$0xff] }
 0x244   : > { %8040 = vmatpush3.bf16.msra.mxu1 %v8037_v25  ;;  %v8409_v25 = vpack.c.bf16 %v5675_v49, %v5674_v54  ;;  %v5517_v54 = vld [vmem:[%s10967_s6 + $0x4d8] sm:$0xff] }
 0x245   : > { %8384 = vmatpush3.bf16.msra.mxu0 %v8381_v51  ;;  %8042 = vmatprep.subr.bf16.mxu1 %v8041_v2  ;;  %v5504_v51 = vld [vmem:[%s10967_s6 + $0x470] sm:$0xff] }
 0x246   : > { %8386 = vmatprep.subr.bf16.mxu0 %v8385_v43  ;;  %v8069_v35 = vpack.c.bf16 %v5505_v28, %v5504_v51  ;;  %v10592_v49 = vld [vmem:[#allocation2 + $0x74] sm:$0xff]  ;;  %v8093_v51 = vpack.c.bf16 %v5517_v54, %v5516_v19  ;;  %v10601_v28 = vld [vmem:[#allocation2 + $0x84] sm:$0xff] }
 0x247   : > { %6994 = vmatmul.mubr.f32.vlgmr.msra.gmra.mrb[72].mxu1 %v2606_v55  ;;  %v5509_v55 = vld [vmem:[%s10967_s6 + $0x498] sm:$0xff] }
 0x248   : > { %6996 = vmatprep.mubr.f32.mxu1 %v2607_v21  ;;  %8044 = vmatpush3.bf16.msra.mxu1 %v8041_v2  ;;  %v8413_v2 = vpack.c.bf16 %v5677_v23, %v5676_v6  ;;  %v2744_v21 = vld [vmem:[#allocation2 + $0x23] sm:$0xff]  ;;  %v5701_v19 = vld [vmem:[%s10967_s6 + $0xa98] sm:$0xff] }
 0x249   : > { %8388 = vmatpush3.bf16.msra.mxu0 %v8385_v43  ;;  %8046 = vmatprep.subr.bf16.mxu1 %v8045_v30  ;;  %v5506_v43 = vld [vmem:[%s10967_s6 + $0x480] sm:$0xff]  ;;  %v5519_v23 = vld [vmem:[%s10967_s6 + $0x4e8] sm:$0xff] }
 0x24a   : > { %8390 = vmatprep.subr.bf16.mxu0 %v8389_v13  ;;  %v8073_v3 = vpack.c.bf16 %v5507_v37, %v5506_v43  ;;  %v5518_v6 = vld [vmem:[%s10967_s6 + $0x4e0] sm:$0xff]  ;;  %v5691_v43 = vld [vmem:[%s10967_s6 + $0xa48] sm:$0xff] }
 0x24b   : > { %6997 = vmatmul.mubr.f32.gmra.mrb[74].mxu1 %v10314_v61  ;;  %v8097_v37 = vpack.c.bf16 %v5519_v23, %v5518_v6  ;;  %v10696_v6 = vld [vmem:[#allocation2 + $0x60] sm:$0xff] }
 0x24c   : > { %6999 = vmatprep.mubr.f32.mxu1 %v10324_v8  ;;  %8048 = vmatpush3.bf16.msra.mxu1 %v8045_v30  ;;  %v5508_v30 = vld [vmem:[%s10967_s6 + $0x490] sm:$0xff]  ;;  %v5702_v23 = vld [vmem:[%s10967_s6 + $0xaa0] sm:$0xff] }
 0x24d   : > { %8392 = vmatpush3.bf16.msra.mxu0 %v8389_v13  ;;  %8050 = vmatprep.subr.bf16.mxu1 %v8049_v18  ;;  %v5680_v13 = vld [vmem:[%s10967_s6 + $0x9f0] sm:$0xff]  ;;  %v8077_v58 = vpack.c.bf16 %v5509_v55, %v5508_v30  ;;  %v5693_v55 = vld [vmem:[%s10967_s6 + $0xa58] sm:$0xff] }
 0x24e   : > { %8394 = vmatprep.subr.bf16.mxu0 %v8393_v11  ;;  %v8421_v40 = vpack.c.bf16 %v5681_v15, %v5680_v13  ;;  %v5692_v30 = vld [vmem:[%s10967_s6 + $0xa50] sm:$0xff] }
 0x24f   : > { %7000 = vmatmul.mubr.f32.gmra.mrb[76].mxu1 %v10334_v10  ;;  %v8445_v15 = vpack.c.bf16 %v5693_v55, %v5692_v30  ;;  %v10716_v30 = vld [vmem:[#allocation2 + $0x80] sm:$0xff]  ;;  %v5704_v55 = vld [vmem:[%s10967_s6 + $0xab0] sm:$0xff] }
 0x250   : > { %7478 = vmatmul.mubr.f32.vlgmr.msra.gmra.mrb[24].mxu0 %v10438_v0  ;;  %7002 = vmatprep.mubr.f32.mxu1 %v10344_v12 }
 0x251   : > { %8052 = vmatpush3.bf16.msra.mxu1 %v8049_v18  ;;  %7480 = vmatprep.mubr.f32.mxu0 %v10448_v42  ;;  %v5511_v18 = vld [vmem:[%s10967_s6 + $0x4a8] sm:$0xff] }
 0x252   : > { %8396 = vmatpush3.bf16.msra.mxu0 %v8393_v11  ;;  %8054 = vmatprep.subr.bf16.mxu1 %v8053_v17  ;;  %v2745_v11 = vld [vmem:[#allocation2 + $0x33] sm:$0xff]  ;;  %v8081_v44 = vpack.c.bf16 %v5511_v18, %v5510_v7 }
 0x253   : > { %7003 = vmatmul.mubr.f32.gmra.mrb[78].mxu1 %v10353_v52  ;;  %8398 = vmatprep.subr.bf16.mxu0 %v8397_v48 }
 0x254   : > { %7481 = vmatmul.mubr.f32.gmra.mrb[26].mxu0 %v10458_v26  ;;  %7037 = vmatprep.mubr.f32.mxu1 %v9915_v32  ;;  %v8405_v32 = vpack.c.bf16 %v5673_v62, %v5672_v31  ;;  %v5686_v31 = vld [vmem:[%s10967_s6 + $0xa20] sm:$0xff]  ;;  %v5687_v62 = vld [vmem:[%s10967_s6 + $0xa28] sm:$0xff] }
 0x255   : > { %8056 = vmatpush3.bf16.msra.mxu1 %v8053_v17  ;;  %7483 = vmatprep.mubr.f32.mxu0 %v10468_v24  ;;  %v5512_v17 = vld [vmem:[%s10967_s6 + $0x4b0] sm:$0xff]  ;;  %v8433_v47 = vpack.c.bf16 %v5687_v62, %v5686_v31 }
 0x256   : > { %8400 = vmatpush3.bf16.msra.mxu0 %v8397_v48  ;;  %8058 = vmatprep.subr.bf16.mxu1 %v8057_v50  ;;  %v5513_v48 = vld [vmem:[%s10967_s6 + $0x4b8] sm:$0xff]  ;;  %v5528_v62 = vld [vmem:[%s10967_s6 + $0x530] sm:$0xff] }
 0x257   : > { %8402 = vmatprep.subr.bf16.mxu0 %v8401_v20  ;;  %v8085_v9 = vpack.c.bf16 %v5513_v48, %v5512_v17  ;;  %v2882_v17 = vld [vmem:[#allocation2 + $0x24] sm:$0xff] }
 0x258   : > { %7484 = vmatmul.mubr.f32.gmra.mrb[28].mxu0 %v10477_v38 }
 0x259   : > { %8060 = vmatpush3.bf16.msra.mxu1 %v8057_v50  ;;  %7486 = vmatprep.mubr.f32.mxu0 %v10486_v63  ;;  %v8429_v50 = vpack.c.bf16 %v5685_v36, %v5684_v53  ;;  %v5526_v53 = vld [vmem:[%s10967_s6 + $0x520] sm:$0xff]  ;;  %v5527_v36 = vld [vmem:[%s10967_s6 + $0x528] sm:$0xff] }
 0x25a   : > { %8404 = vmatpush3.bf16.msra.mxu0 %v8401_v20  ;;  %8062 = vmatprep.subr.bf16.mxu1 %v8061_v45  ;;  %v5514_v20 = vld [vmem:[%s10967_s6 + $0x4c0] sm:$0xff] }
 0x25b   : > { %8406 = vmatprep.subr.bf16.mxu0 %v8405_v32 }
 0x25c   : > { %7487 = vmatmul.mubr.f32.gmra.mrb[30].mxu0 %v10495_v16 }
 0x25d   : > { %8064 = vmatpush3.bf16.msra.mxu1 %v8061_v45  ;;  %7521 = vmatprep.mubr.f32.mxu0 %v9946_v57  ;;  %v5679_v57 = vld [vmem:[%s10967_s6 + $0x9e8] sm:$0xff]  ;;  %v8089_v45 = vpack.c.bf16 %v5515_v41, %v5514_v20  ;;  %v8113_v41 = vpack.c.bf16 %v5527_v36, %v5526_v53 }
 0x25e   : > { %8408 = vmatpush3.bf16.msra.mxu0 %v8405_v32  ;;  %8066 = vmatprep.subr.bf16.mxu1 %v8065_v56  ;;  %v8417_v29 = vpack.c.bf16 %v5679_v57, %v5678_v5  ;;  %v10582_v32 = vld [vmem:[#allocation2 + $0x64] sm:$0xff] }
 0x25f   : > { %8410 = vmatprep.subr.bf16.mxu0 %v8409_v25  ;;  %v10619_v5 = vld [vmem:[#allocation2 + $0xa4] sm:$0xff] }
 0x260   : > { %v5699_v20 = vld [vmem:[%s10967_s6 + $0xa88] sm:$0xff] }
 0x261   : > { %8068 = vmatpush3.bf16.msra.mxu1 %v8065_v56  ;;  %v5688_v56 = vld [vmem:[%s10967_s6 + $0xa30] sm:$0xff] }
 0x262   : > { %8412 = vmatpush3.bf16.msra.mxu0 %v8409_v25  ;;  %8070 = vmatprep.subr.bf16.mxu1 %v8069_v35  ;;  %v5689_v25 = vld [vmem:[%s10967_s6 + $0xa38] sm:$0xff] }
 0x263   : > { %8414 = vmatprep.subr.bf16.mxu0 %v8413_v2 }
 0x265   : > { %8072 = vmatpush3.bf16.msra.mxu1 %v8069_v35  ;;  %v10610_v35 = vld [vmem:[#allocation2 + $0x94] sm:$0xff] }
 0x266   : > { %8416 = vmatpush3.bf16.msra.mxu0 %v8413_v2  ;;  %8074 = vmatprep.subr.bf16.mxu1 %v8073_v3  ;;  %v5690_v2 = vld [vmem:[%s10967_s6 + $0xa40] sm:$0xff] }
 0x267   : > { %8418 = vmatprep.subr.bf16.mxu0 %v8417_v29  ;;  %v8441_v57 = vpack.c.bf16 %v5691_v43, %v5690_v2  ;;  %v5703_v2 = vld [vmem:[%s10967_s6 + $0xaa8] sm:$0xff] }
 0x268   : > { %7038 = vmatmul.mubr.f32.vlgmr.msra.gmra.mrb[72].mxu1 %v2744_v21  ;;  %v5523_v21 = vld [vmem:[%s10967_s6 + $0x508] sm:$0xff] }
 0x269   : > { %7040 = vmatprep.mubr.f32.mxu1 %v2745_v11  ;;  %8076 = vmatpush3.bf16.msra.mxu1 %v8073_v3  ;;  %v5520_v3 = vld [vmem:[%s10967_s6 + $0x4f0] sm:$0xff] }
 0x26a   : > { %8420 = vmatpush3.bf16.msra.mxu0 %v8417_v29  ;;  %8078 = vmatprep.subr.bf16.mxu1 %v8077_v58  ;;  %v5521_v29 = vld [vmem:[%s10967_s6 + $0x4f8] sm:$0xff]  ;;  %v5524_v11 = vld [vmem:[%s10967_s6 + $0x510] sm:$0xff] }
 0x26b   : > { %8422 = vmatprep.subr.bf16.mxu0 %v8421_v40  ;;  %v8101_v13 = vpack.c.bf16 %v5521_v29, %v5520_v3  ;;  %v5532_v3 = vld [vmem:[%s10967_s6 + $0x550] sm:$0xff]  ;;  %v5533_v29 = vld [vmem:[%s10967_s6 + $0x558] sm:$0xff] }
 0x26c   : > { %7041 = vmatmul.mubr.f32.gmra.mrb[74].mxu1 %v10438_v0 }
 0x26d   : > { %7043 = vmatprep.mubr.f32.mxu1 %v10448_v42  ;;  %8080 = vmatpush3.bf16.msra.mxu1 %v8077_v58  ;;  %v5522_v58 = vld [vmem:[%s10967_s6 + $0x500] sm:$0xff] }
 0x26e   : > { %8424 = vmatpush3.bf16.msra.mxu0 %v8421_v40  ;;  %8082 = vmatprep.subr.bf16.mxu1 %v8081_v44  ;;  %v5694_v40 = vld [vmem:[%s10967_s6 + $0xa60] sm:$0xff]  ;;  %v8105_v7 = vpack.c.bf16 %v5523_v21, %v5522_v58  ;;  %v10725_v58 = vld [vmem:[#allocation2 + $0x90] sm:$0xff] }
 0x26f   : > { %8426 = vmatprep.subr.bf16.mxu0 %v8425_v27  ;;  %v5534_v21 = vld [vmem:[%s10967_s6 + $0x560] sm:$0xff] }
 0x270   : > { %7044 = vmatmul.mubr.f32.gmra.mrb[76].mxu1 %v10458_v26 }
 0x271   : > { %7522 = vmatmul.mubr.f32.vlgmr.msra.gmra.mrb[24].mxu0 %v10562_v14  ;;  %7046 = vmatprep.mubr.f32.mxu1 %v10468_v24 }
 0x272   : > { %8084 = vmatpush3.bf16.msra.mxu1 %v8081_v44  ;;  %7524 = vmatprep.mubr.f32.mxu0 %v10572_v34  ;;  %v5697_v44 = vld [vmem:[%s10967_s6 + $0xa78] sm:$0xff] }
 0x273   : > { %8428 = vmatpush3.bf16.msra.mxu0 %v8425_v27  ;;  %8086 = vmatprep.subr.bf16.mxu1 %v8085_v9  ;;  %v8109_v27 = vpack.c.bf16 %v5525_v1, %v5524_v11  ;;  %v8453_v48 = vpack.c.bf16 %v5697_v44, %v5696_v46  ;;  %v4409_v1 = vld [vmem:[#allocation2 + $0xb0] sm:$0xff] }
 0x274   : > { %7047 = vmatmul.mubr.f32.gmra.mrb[78].mxu1 %v10477_v38  ;;  %8430 = vmatprep.subr.bf16.mxu0 %v8429_v50  ;;  %v5536_v44 = vld [vmem:[%s10967_s6 + $0x570] sm:$0xff] }
 0x275   : > { %7525 = vmatmul.mubr.f32.gmra.mrb[26].mxu0 %v10582_v32  ;;  %7081 = vmatprep.mubr.f32.mxu1 %v10038_v33  ;;  %v8437_v33 = vpack.c.bf16 %v5689_v25, %v5688_v56  ;;  %v10686_v56 = vld [vmem:[#allocation2 + $0x50] sm:$0xff] }
 0x276   : > { %8088 = vmatpush3.bf16.msra.mxu1 %v8085_v9  ;;  %7527 = vmatprep.mubr.f32.mxu0 %v10592_v49  ;;  %v2883_v9 = vld [vmem:[#allocation2 + $0x34] sm:$0xff] }
 0x277   : > { %8432 = vmatpush3.bf16.msra.mxu0 %v8429_v50  ;;  %8090 = vmatprep.subr.bf16.mxu1 %v8089_v45  ;;  %v5698_v50 = vld [vmem:[%s10967_s6 + $0xa80] sm:$0xff] }
 0x278   : > { %8434 = vmatprep.subr.bf16.mxu0 %v8433_v47  ;;  %v8457_v31 = vpack.c.bf16 %v5699_v20, %v5698_v50  ;;  %v5711_v50 = vld [vmem:[%s10967_s6 + $0xae8] sm:$0xff] }
 0x279   : > { %7528 = vmatmul.mubr.f32.gmra.mrb[28].mxu0 %v10601_v28 }
 0x27a   : > { %8092 = vmatpush3.bf16.msra.mxu1 %v8089_v45  ;;  %7530 = vmatprep.mubr.f32.mxu0 %v10610_v35  ;;  %v5529_v45 = vld [vmem:[%s10967_s6 + $0x538] sm:$0xff] }
 0x27b   : > { %8436 = vmatpush3.bf16.msra.mxu0 %v8433_v47  ;;  %8094 = vmatprep.subr.bf16.mxu1 %v8093_v51  ;;  %v5700_v47 = vld [vmem:[%s10967_s6 + $0xa90] sm:$0xff]  ;;  %v8117_v54 = vpack.c.bf16 %v5529_v45, %v5528_v62  ;;  %v3022_v45 = vld [vmem:[#allocation2 + $0x40] sm:$0xff] }
 0x27c   : > { %8438 = vmatprep.subr.bf16.mxu0 %v8437_v33  ;;  %v8461_v25 = vpack.c.bf16 %v5701_v19, %v5700_v47  ;;  %v5714_v47 = vld [vmem:[%s10967_s6 + $0xb00] sm:$0xff]  ;;  %v5715_v19 = vld [vmem:[%s10967_s6 + $0xb08] sm:$0xff] }
 0x27d   : > { %7531 = vmatmul.mubr.f32.gmra.mrb[30].mxu0 %v10619_v5 }
 0x27e   : > { %8096 = vmatpush3.bf16.msra.mxu1 %v8093_v51  ;;  %7565 = vmatprep.mubr.f32.mxu0 %v10069_v60  ;;  %v5695_v60 = vld [vmem:[%s10967_s6 + $0xa68] sm:$0xff]  ;;  %v5530_v51 = vld [vmem:[%s10967_s6 + $0x540] sm:$0xff] }
 0x27f   : > { %8440 = vmatpush3.bf16.msra.mxu0 %v8437_v33  ;;  %8098 = vmatprep.subr.bf16.mxu1 %v8097_v37  ;;  %v8449_v18 = vpack.c.bf16 %v5695_v60, %v5694_v40  ;;  %v5531_v33 = vld [vmem:[%s10967_s6 + $0x548] sm:$0xff]  ;;  %v4408_v60 = vld [vmem:[#allocation2 + $0xa0] sm:$0xff] }
 0x280   : > { %8442 = vmatprep.subr.bf16.mxu0 %v8441_v57  ;;  %v8121_v43 = vpack.c.bf16 %v5531_v33, %v5530_v51  ;;  %v5535_v40 = vld [vmem:[%s10967_s6 + $0x568] sm:$0xff]  ;;  %v5717_v51 = vld [vmem:[%s10967_s6 + $0xb18] sm:$0xff] }
 0x281   : > { %v8129_v11 = vpack.c.bf16 %v5535_v40, %v5534_v21  ;;  %v4547_v21 = vld [vmem:[#allocation2 + $0xb1] sm:$0xff] }
 0x282   : > { %8100 = vmatpush3.bf16.msra.mxu1 %v8097_v37  ;;  %v10706_v37 = vld [vmem:[#allocation2 + $0x70] sm:$0xff] }
 0x283   : > { %8444 = vmatpush3.bf16.msra.mxu0 %v8441_v57  ;;  %8102 = vmatprep.subr.bf16.mxu1 %v8101_v13  ;;  %v8465_v57 = vpack.c.bf16 %v5703_v2, %v5702_v23  ;;  %v4541_v23 = vld [vmem:[#allocation2 + $0x51] sm:$0xff]  ;;  %v5719_v2 = vld [vmem:[%s10967_s6 + $0xb28] sm:$0xff] }
 0x284   : > { %8446 = vmatprep.subr.bf16.mxu0 %v8445_v15  ;;  %v5724_v40 = vld [vmem:[%s10967_s6 + $0xb50] sm:$0xff] }
 0x286   : > { %8104 = vmatpush3.bf16.msra.mxu1 %v8101_v13  ;;  %v5705_v13 = vld [vmem:[%s10967_s6 + $0xab8] sm:$0xff] }
 0x287   : > { %8448 = vmatpush3.bf16.msra.mxu0 %v8445_v15  ;;  %8106 = vmatprep.subr.bf16.mxu1 %v8105_v7  ;;  %v8125_v15 = vpack.c.bf16 %v5533_v29, %v5532_v3  ;;  %v5721_v3 = vld [vmem:[%s10967_s6 + $0xb38] sm:$0xff]  ;;  %v4544_v29 = vld [vmem:[#allocation2 + $0x81] sm:$0xff] }
 0x288   : > { %8450 = vmatprep.subr.bf16.mxu0 %v8449_v18 }
 0x289   : > { %7082 = vmatmul.mubr.f32.vlgmr.msra.gmra.mrb[72].mxu1 %v2882_v17  ;;  %v5708_v17 = vld [vmem:[%s10967_s6 + $0xad0] sm:$0xff] }
 0x28a   : > { %7084 = vmatprep.mubr.f32.mxu1 %v2883_v9  ;;  %8108 = vmatpush3.bf16.msra.mxu1 %v8105_v7  ;;  %v5706_v7 = vld [vmem:[%s10967_s6 + $0xac0] sm:$0xff] }
 0x28b   : > { %8452 = vmatpush3.bf16.msra.mxu0 %v8449_v18  ;;  %8110 = vmatprep.subr.bf16.mxu1 %v8109_v27  ;;  %v5707_v18 = vld [vmem:[%s10967_s6 + $0xac8] sm:$0xff]  ;;  %v5710_v9 = vld [vmem:[%s10967_s6 + $0xae0] sm:$0xff] }
 0x28c   : > { %8454 = vmatprep.subr.bf16.mxu0 %v8453_v48  ;;  %v8473_v46 = vpack.c.bf16 %v5707_v18, %v5706_v7  ;;  %v8481_v20 = vpack.c.bf16 %v5711_v50, %v5710_v9  ;;  %v5726_v18 = vld [vmem:[%s10967_s6 + $0xb60] sm:$0xff] }
 0x28d   : > { %7085 = vmatmul.mubr.f32.gmra.mrb[74].mxu1 %v10562_v14  ;;  %v5734_v50 = vld [vmem:[%s10967_s6 + $0xba0] sm:$0xff] }
 0x28e   : > { %7087 = vmatprep.mubr.f32.mxu1 %v10572_v34  ;;  %8112 = vmatpush3.bf16.msra.mxu1 %v8109_v27  ;;  %v5537_v27 = vld [vmem:[%s10967_s6 + $0x578] sm:$0xff] }
 0x28f   : > { %8456 = vmatpush3.bf16.msra.mxu0 %v8453_v48  ;;  %8114 = vmatprep.subr.bf16.mxu1 %v8113_v41  ;;  %v5709_v48 = vld [vmem:[%s10967_s6 + $0xad8] sm:$0xff]  ;;  %v8133_v53 = vpack.c.bf16 %v5537_v27, %v5536_v44  ;;  %v5730_v27 = vld [vmem:[%s10967_s6 + $0xb80] sm:$0xff] }
 0x290   : > { %8458 = vmatprep.subr.bf16.mxu0 %v8457_v31  ;;  %v8477_v36 = vpack.c.bf16 %v5709_v48, %v5708_v17  ;;  %v5731_v17 = vld [vmem:[%s10967_s6 + $0xb88] sm:$0xff] }
 0x291   : > { %7088 = vmatmul.mubr.f32.gmra.mrb[76].mxu1 %v10582_v32  ;;  %v8521_v48 = vpack.c.bf16 %v5731_v17, %v5730_v27 }
 0x292   : > { %7566 = vmatmul.mubr.f32.vlgmr.msra.gmra.mrb[24].mxu0 %v10686_v56  ;;  %7090 = vmatprep.mubr.f32.mxu1 %v10592_v49 }
 0x293   : > { %8116 = vmatpush3.bf16.msra.mxu1 %v8113_v41  ;;  %7568 = vmatprep.mubr.f32.mxu0 %v10696_v6  ;;  %v5713_v41 = vld [vmem:[%s10967_s6 + $0xaf8] sm:$0xff] }
 0x294   : > { %8460 = vmatpush3.bf16.msra.mxu0 %v8457_v31  ;;  %8118 = vmatprep.subr.bf16.mxu1 %v8117_v54  ;;  %v3021_v31 = vld [vmem:[#allocation2 + $0x30] sm:$0xff] }
 0x295   : > { %7091 = vmatmul.mubr.f32.gmra.mrb[78].mxu1 %v10601_v28  ;;  %8462 = vmatprep.subr.bf16.mxu0 %v8461_v25 }
 0x296   : > { %7569 = vmatmul.mubr.f32.gmra.mrb[26].mxu0 %v10706_v37  ;;  %7125 = vmatprep.mubr.f32.mxu1 %v10165_v4  ;;  %v8469_v4 = vpack.c.bf16 %v5705_v13, %v5704_v55  ;;  %v4545_v55 = vld [vmem:[#allocation2 + $0x91] sm:$0xff]  ;;  %v5722_v13 = vld [vmem:[%s10967_s6 + $0xb40] sm:$0xff] }
 0x297   : > { %8120 = vmatpush3.bf16.msra.mxu1 %v8117_v54  ;;  %7571 = vmatprep.mubr.f32.mxu0 %v10716_v30  ;;  %v8489_v54 = vpack.c.bf16 %v5715_v19, %v5714_v47  ;;  %v5741_v47 = vld [vmem:[%s10967_s6 + $0xbd8] sm:$0xff]  ;;  %v5743_v19 = vld [vmem:[%s10967_s6 + $0xbe8] sm:$0xff] }
 0x298   : > { %8464 = vmatpush3.bf16.msra.mxu0 %v8461_v25  ;;  %8122 = vmatprep.subr.bf16.mxu1 %v8121_v43  ;;  %v5716_v25 = vld [vmem:[%s10967_s6 + $0xb10] sm:$0xff] }
 0x299   : > { %8466 = vmatprep.subr.bf16.mxu0 %v8465_v57  ;;  %v8493_v33 = vpack.c.bf16 %v5717_v51, %v5716_v25  ;;  %v5744_v25 = vld [vmem:[%s10967_s6 + $0xbf0] sm:$0xff] }
 0x29a   : > { %7572 = vmatmul.mubr.f32.gmra.mrb[28].mxu0 %v10725_v58 }
 0x29b   : > { %8124 = vmatpush3.bf16.msra.mxu1 %v8121_v43  ;;  %7574 = vmatprep.mubr.f32.mxu0 %v4408_v60  ;;  %v4542_v43 = vld [vmem:[#allocation2 + $0x61] sm:$0xff]  ;;  %v5725_v60 = vld [vmem:[%s10967_s6 + $0xb58] sm:$0xff] }
 0x29c   : > { %8468 = vmatpush3.bf16.msra.mxu0 %v8465_v57  ;;  %8126 = vmatprep.subr.bf16.mxu1 %v8125_v15  ;;  %v5720_v57 = vld [vmem:[%s10967_s6 + $0xb30] sm:$0xff]  ;;  %v8509_v7 = vpack.c.bf16 %v5725_v60, %v5724_v40 }
 0x29d   : > { %8470 = vmatprep.subr.bf16.mxu0 %v8469_v4  ;;  %v4961_v60 = vld [vmem:[#allocation2 + $0xb4] sm:$0xff] }
 0x29e   : > { %7575 = vmatmul.mubr.f32.gmra.mrb[30].mxu0 %v4409_v1 }
 0x29f   : > { %8128 = vmatpush3.bf16.msra.mxu1 %v8125_v15  ;;  %7609 = vmatprep.mubr.f32.mxu0 %v10196_v39  ;;  %v5712_v39 = vld [vmem:[%s10967_s6 + $0xaf0] sm:$0xff]  ;;  %v5723_v15 = vld [vmem:[%s10967_s6 + $0xb48] sm:$0xff] }
 0x2a0   : > { %8472 = vmatpush3.bf16.msra.mxu0 %v8469_v4  ;;  %8130 = vmatprep.subr.bf16.mxu1 %v8129_v11  ;;  %v8485_v62 = vpack.c.bf16 %v5713_v41, %v5712_v39  ;;  %v8505_v4 = vpack.c.bf16 %v5723_v15, %v5722_v13  ;;  %v5736_v41 = vld [vmem:[%s10967_s6 + $0xbb0] sm:$0xff]  ;;  %v5757_v15 = vld [vmem:[%s10967_s6 + $0xc58] sm:$0xff] }
 0x2a1   : > { %8474 = vmatprep.subr.bf16.mxu0 %v8473_v46  ;;  %v4823_v13 = vld [vmem:[#allocation2 + $0xb3] sm:$0xff] }
 0x2a3   : > { %8132 = vmatpush3.bf16.msra.mxu1 %v8129_v11  ;;  %v5727_v11 = vld [vmem:[%s10967_s6 + $0xb68] sm:$0xff] }
 0x2a4   : > { %8476 = vmatpush3.bf16.msra.mxu0 %v8473_v46  ;;  %8134 = vmatprep.subr.bf16.mxu1 %v8133_v53  ;;  %v8513_v1 = vpack.c.bf16 %v5727_v11, %v5726_v18  ;;  %v5728_v46 = vld [vmem:[%s10967_s6 + $0xb70] sm:$0xff] }
 0x2a5   : > { %8478 = vmatprep.subr.bf16.mxu0 %v8477_v36 }
 0x2a7   : > { %8136 = vmatpush3.bf16.msra.mxu1 %v8133_v53  ;;  %v5732_v53 = vld [vmem:[%s10967_s6 + $0xb90] sm:$0xff] }
 0x2a8   : > { %8480 = vmatpush3.bf16.msra.mxu0 %v8477_v36  ;;  %v5733_v36 = vld [vmem:[%s10967_s6 + $0xb98] sm:$0xff] }
 0x2a9   : > { %8482 = vmatprep.subr.bf16.mxu0 %v8481_v20  ;;  %v8525_v9 = vpack.c.bf16 %v5733_v36, %v5732_v53 }
 0x2aa   : > { %7126 = vmatmul.mubr.f32.vlgmr.msra.gmra.mrb[72].mxu1 %v3021_v31  ;;  %v5737_v31 = vld [vmem:[%s10967_s6 + $0xbb8] sm:$0xff] }
 0x2ab   : > { %7128 = vmatprep.mubr.f32.mxu1 %v3022_v45  ;;  %v4685_v45 = vld [vmem:[#allocation2 + $0xb2] sm:$0xff] }
 0x2ac   : > { %8484 = vmatpush3.bf16.msra.mxu0 %v8481_v20  ;;  %v5735_v20 = vld [vmem:[%s10967_s6 + $0xba8] sm:$0xff] }
 0x2ad   : > { %8486 = vmatprep.subr.bf16.mxu0 %v8485_v62  ;;  %v8529_v39 = vpack.c.bf16 %v5735_v20, %v5734_v50 }
 0x2ae   : > { %7129 = vmatmul.mubr.f32.gmra.mrb[74].mxu1 %v10686_v56  ;;  %v5718_v56 = vld [vmem:[%s10967_s6 + $0xb20] sm:$0xff] }
 0x2af   : > { %7131 = vmatprep.mubr.f32.mxu1 %v10696_v6  ;;  %v8497_v6 = vpack.c.bf16 %v5719_v2, %v5718_v56  ;;  %v5748_v2 = vld [vmem:[%s10967_s6 + $0xc10] sm:$0xff] }
 0x2b0   : > { %8488 = vmatpush3.bf16.msra.mxu0 %v8485_v62  ;;  %v5739_v62 = vld [vmem:[%s10967_s6 + $0xbc8] sm:$0xff] }
 0x2b1   : > { %8490 = vmatprep.subr.bf16.mxu0 %v8489_v54 }
 0x2b2   : > { %7132 = vmatmul.mubr.f32.gmra.mrb[76].mxu1 %v10706_v37  ;;  %v4543_v37 = vld [vmem:[#allocation2 + $0x71] sm:$0xff] }
 0x2b3   : > { %7610 = vmatmul.mubr.f32.vlgmr.msra.gmra.mrb[24].mxu0 %v4541_v23  ;;  %7134 = vmatprep.mubr.f32.mxu1 %v10716_v30  ;;  %v8501_v30 = vpack.c.bf16 %v5721_v3, %v5720_v57  ;;  %v5747_v23 = vld [vmem:[%s10967_s6 + $0xc08] sm:$0xff] }
 0x2b4   : > { %7612 = vmatprep.mubr.f32.mxu0 %v4542_v43  ;;  %8492 = vmatpush3.bf16.msra.mxu0 %v8489_v54  ;;  %v5749_v43 = vld [vmem:[%s10967_s6 + $0xc18] sm:$0xff]  ;;  %v5751_v57 = vld [vmem:[%s10967_s6 + $0xc28] sm:$0xff] }
 0x2b5   : > { %8494 = vmatprep.subr.bf16.mxu0 %v8493_v33 }
 0x2b6   : > { %7135 = vmatmul.mubr.f32.gmra.mrb[78].mxu1 %v10725_v58  ;;  %v4546_v58 = vld [vmem:[#allocation2 + $0xa1] sm:$0xff] }
 0x2b7   : > { %7613 = vmatmul.mubr.f32.gmra.mrb[26].mxu0 %v4543_v37  ;;  %v5750_v37 = vld [vmem:[%s10967_s6 + $0xc20] sm:$0xff] }
 0x2b8   : > { %7615 = vmatprep.mubr.f32.mxu0 %v4544_v29  ;;  %8496 = vmatpush3.bf16.msra.mxu0 %v8493_v33  ;;  %v5746_v33 = vld [vmem:[%s10967_s6 + $0xc00] sm:$0xff]  ;;  %v8561_v3 = vpack.c.bf16 %v5751_v57, %v5750_v37  ;;  %v5752_v29 = vld [vmem:[%s10967_s6 + $0xc30] sm:$0xff] }
 0x2b9   : > { %8498 = vmatprep.subr.bf16.mxu0 %v8497_v6  ;;  %v8553_v56 = vpack.c.bf16 %v5747_v23, %v5746_v33  ;;  %v5762_v37 = vld [vmem:[%s10968_s7] ss:$0 sm:$0xff] }
 0x2bb   : > { %7616 = vmatmul.mubr.f32.gmra.mrb[28].mxu0 %v4545_v55  ;;  %v5755_v55 = vld [vmem:[%s10967_s6 + $0xc48] sm:$0xff] }
 0x2bc   : > { %7618 = vmatprep.mubr.f32.mxu0 %v4546_v58  ;;  %8500 = vmatpush3.bf16.msra.mxu0 %v8497_v6  ;;  %v8557_v6 = vpack.c.bf16 %v5749_v43, %v5748_v2  ;;  %v5759_v58 = vld [vmem:[%s10967_s6 + $0xc68] sm:$0xff] }
 0x2bd   : > { %8502 = vmatprep.subr.bf16.mxu0 %v8501_v30 }
 0x2bf   : > { %7619 = vmatmul.mubr.f32.gmra.mrb[30].mxu0 %v4547_v21  ;;  %v5760_v21 = vld [vmem:[%s10967_s6 + $0xc70] sm:$0xff] }
 0x2c0   : > { %8504 = vmatpush3.bf16.msra.mxu0 %v8501_v30  ;;  %7653 = vmatprep.mubr.f32.mxu0 %v10314_v61  ;;  %v5729_v61 = vld [vmem:[%s10967_s6 + $0xb78] sm:$0xff] }
 0x2c1   : > { %8506 = vmatprep.subr.bf16.mxu0 %v8505_v4  ;;  %v8517_v44 = vpack.c.bf16 %v5729_v61, %v5728_v46  ;;  %v5753_v30 = vld [vmem:[%s10967_s6 + $0xc38] sm:$0xff] }
 0x2c4   : > { %8508 = vmatpush3.bf16.msra.mxu0 %v8505_v4 }
 0x2c5   : > { %8510 = vmatprep.subr.bf16.mxu0 %v8509_v7 }
 0x2c8   : > { %8512 = vmatpush3.bf16.msra.mxu0 %v8509_v7 }
 0x2c9   : > { %8514 = vmatprep.subr.bf16.mxu0 %v8513_v1 }
 0x2cc   : > { %8516 = vmatpush3.bf16.msra.mxu0 %v8513_v1 }
 0x2cd   : > { %8518 = vmatprep.subr.bf16.mxu0 %v8517_v44 }
 0x2d0   : > { %8520 = vmatpush3.bf16.msra.mxu0 %v8517_v44 }
 0x2d1   : > { %8522 = vmatprep.subr.bf16.mxu0 %v8521_v48 }
 0x2d3   : > { %7654 = vmatmul.mubr.f32.vlgmr.msra.gmra.mrb[24].mxu0 %v10324_v8  ;;  %v8533_v8 = vpack.c.bf16 %v5737_v31, %v5736_v41 }
 0x2d4   : > { %7656 = vmatprep.mubr.f32.mxu0 %v10334_v10  ;;  %8524 = vmatpush3.bf16.msra.mxu0 %v8521_v48  ;;  %v5738_v10 = vld [vmem:[%s10967_s6 + $0xbc0] sm:$0xff] }
 0x2d5   : > { %8526 = vmatprep.subr.bf16.mxu0 %v8525_v9 }
 0x2d7   : > { %7657 = vmatmul.mubr.f32.gmra.mrb[26].mxu0 %v10344_v12  ;;  %v8537_v12 = vpack.c.bf16 %v5739_v62, %v5738_v10 }
 0x2d8   : > { %7659 = vmatprep.mubr.f32.mxu0 %v10353_v52  ;;  %8528 = vmatpush3.bf16.msra.mxu0 %v8525_v9  ;;  %v5740_v52 = vld [vmem:[%s10967_s6 + $0xbd0] sm:$0xff] }
 0x2d9   : > { %8530 = vmatprep.subr.bf16.mxu0 %v8529_v39 }
 0x2db   : > { %7660 = vmatmul.mubr.f32.gmra.mrb[28].mxu0 %v10362_v22  ;;  %v8541_v22 = vpack.c.bf16 %v5741_v47, %v5740_v52 }
 0x2dc   : > { %7662 = vmatprep.mubr.f32.mxu0 %v10371_v59  ;;  %8532 = vmatpush3.bf16.msra.mxu0 %v8529_v39  ;;  %v5742_v59 = vld [vmem:[%s10967_s6 + $0xbe0] sm:$0xff] }
 0x2dd   : > { %8534 = vmatprep.subr.bf16.mxu0 %v8533_v8  ;;  %v8545_v54 = vpack.c.bf16 %v5743_v19, %v5742_v59 }
 0x2df   : > { %7663 = vmatmul.mubr.f32.gmra.mrb[30].mxu0 %v4685_v45 }
 0x2e0   : > { %8536 = vmatpush3.bf16.msra.mxu0 %v8533_v8  ;;  %7697 = vmatprep.mubr.f32.mxu0 %v10438_v0  ;;  %v5745_v0 = vld [vmem:[%s10967_s6 + $0xbf8] sm:$0xff] }
 0x2e1   : > { %8538 = vmatprep.subr.bf16.mxu0 %v8537_v12  ;;  %v8549_v51 = vpack.c.bf16 %v5745_v0, %v5744_v25 }
 0x2e4   : > { %8540 = vmatpush3.bf16.msra.mxu0 %v8537_v12 }
 0x2e5   : > { %8542 = vmatprep.subr.bf16.mxu0 %v8541_v22 }
 0x2e8   : > { %8544 = vmatpush3.bf16.msra.mxu0 %v8541_v22 }
 0x2e9   : > { %8546 = vmatprep.subr.bf16.mxu0 %v8545_v54 }
 0x2ec   : > { %8548 = vmatpush3.bf16.msra.mxu0 %v8545_v54 }
 0x2ed   : > { %8550 = vmatprep.subr.bf16.mxu0 %v8549_v51 }
 0x2f0   : > { %8552 = vmatpush3.bf16.msra.mxu0 %v8549_v51 }
 0x2f1   : > { %8554 = vmatprep.subr.bf16.mxu0 %v8553_v56 }
 0x2f3   : > { %7698 = vmatmul.mubr.f32.vlgmr.msra.gmra.mrb[24].mxu0 %v10448_v42  ;;  %v8565_v42 = vpack.c.bf16 %v5753_v30, %v5752_v29 }
 0x2f4   : > { %7700 = vmatprep.mubr.f32.mxu0 %v10458_v26  ;;  %8556 = vmatpush3.bf16.msra.mxu0 %v8553_v56  ;;  %v5754_v26 = vld [vmem:[%s10967_s6 + $0xc40] sm:$0xff] }
 0x2f5   : > { %8558 = vmatprep.subr.bf16.mxu0 %v8557_v6 }
 0x2f7   : > { %7701 = vmatmul.mubr.f32.gmra.mrb[26].mxu0 %v10468_v24  ;;  %v8569_v24 = vpack.c.bf16 %v5755_v55, %v5754_v26 }
 0x2f8   : > { %7703 = vmatprep.mubr.f32.mxu0 %v10477_v38  ;;  %8560 = vmatpush3.bf16.msra.mxu0 %v8557_v6  ;;  %v5756_v38 = vld [vmem:[%s10967_s6 + $0xc50] sm:$0xff] }
 0x2f9   : > { %8562 = vmatprep.subr.bf16.mxu0 %v8561_v3 }
 0x2fb   : > { %7704 = vmatmul.mubr.f32.gmra.mrb[28].mxu0 %v10486_v63  ;;  %v8573_v63 = vpack.c.bf16 %v5757_v15, %v5756_v38 }
 0x2fc   : > { %7706 = vmatprep.mubr.f32.mxu0 %v10495_v16  ;;  %8564 = vmatpush3.bf16.msra.mxu0 %v8561_v3  ;;  %v5758_v16 = vld [vmem:[%s10967_s6 + $0xc60] sm:$0xff] }
 0x2fd   : > { %8566 = vmatprep.subr.bf16.mxu0 %v8565_v42  ;;  %v8577_v4 = vpack.c.bf16 %v5759_v58, %v5758_v16 }
 0x2ff   : > { %7707 = vmatmul.mubr.f32.gmra.mrb[30].mxu0 %v4823_v13 }
 0x300   : > { %8568 = vmatpush3.bf16.msra.mxu0 %v8565_v42  ;;  %7741 = vmatprep.mubr.f32.mxu0 %v10562_v14  ;;  %v5761_v14 = vld [vmem:[%s10967_s6 + $0xc78] sm:$0xff] }
 0x301   : > { %8570 = vmatprep.subr.bf16.mxu0 %v8569_v24  ;;  %v8581_v40 = vpack.c.bf16 %v5761_v14, %v5760_v21 }
 0x304   : > { %8572 = vmatpush3.bf16.msra.mxu0 %v8569_v24 }
 0x305   : > { %8574 = vmatprep.subr.bf16.mxu0 %v8573_v63 }
 0x308   : > { %8576 = vmatpush3.bf16.msra.mxu0 %v8573_v63 }
 0x309   : > { %8578 = vmatprep.subr.bf16.mxu0 %v8577_v4 }
 0x30c   : > { %8580 = vmatpush3.bf16.msra.mxu0 %v8577_v4 }
 0x30d   : > { %8582 = vmatprep.subr.bf16.mxu0 %v8581_v40 }
 0x310   : > { %8584 = vmatpush3.bf16.msra.mxu0 %v8581_v40 }
 0x313   : > { %7742 = vmatmul.mubr.f32.vlgmr.msra.gmra.mrb[24].mxu0 %v10572_v34 }
 0x314   : > { %7744 = vmatprep.mubr.f32.mxu0 %v10582_v32 }
 0x317   : > { %7745 = vmatmul.mubr.f32.gmra.mrb[26].mxu0 %v10592_v49 }
 0x318   : > { %7747 = vmatprep.mubr.f32.mxu0 %v10601_v28 }
 0x31b   : > { %7748 = vmatmul.mubr.f32.gmra.mrb[28].mxu0 %v10610_v35 }
 0x31c   : > { %7750 = vmatprep.mubr.f32.mxu0 %v10619_v5 }
 0x31f   : > { %7751 = vmatmul.mubr.f32.gmra.mrb[30].mxu0 %v4961_v60 }
 0x37d   : > { %v7127_v7 = vpop.f32.mrb[72].mxu1 }
 0x37e   : > { %v3111_v18 = vpop.f32.mrb[73].mxu1 }
 0x381   : > { %v7130_v11 = vpop.f32.mrb[74].mxu1 }
 0x382   : > { %v3121_v1 = vpop.f32.mrb[75].mxu1 }
 0x385   : > { %v7133_v46 = vpop.f32.mrb[76].mxu1 }
 0x386   : > { %v3131_v61 = vpop.f32.mrb[77].mxu1 }
 0x389   : > { %v7136_v34 = vpop.f32.mrb[78].mxu1 }
 0x38a   : > { %v3141_v44 = vpop.f32.mrb[79].mxu1 }
 0x3e6   : > { %v7743_v32 = vpop.f32.mrb[24].mxu0 }
 0x3e7   : > { %v8585_v27 = vadd.f32 %v7743_v32, %v7127_v7  ;;  %v5045_v49 = vpop.f32.mrb[25].mxu0 }
 0x3e8   : > { %v8586_v17 = vadd.f32 %v5045_v49, %v3111_v18 }
 0x3ea   : > { %v5092_v28 = vmax.f32 %v8586_v17, %v8585_v27  ;;  %v7746_v48 = vpop.f32.mrb[26].mxu0 }
 0x3eb   : > { %v8587_v35 = vadd.f32 %v7746_v48, %v7130_v11  ;;  %v5055_v53 = vpop.f32.mrb[27].mxu0 }
 0x3ec   : > { %v5094_v5 = vrot.slane %v5092_v28, 1  ;;  %v8588_v36 = vadd.f32 %v5055_v53, %v3121_v1 }
 0x3ee   : > { %v5096_v9 = vmax.f32 %v5092_v28, %v5094_v5  ;;  %v5097_v50 = vmax.f32 %v8588_v36, %v8587_v35  ;;  %v7749_v20 = vpop.f32.mrb[28].mxu0 }
 0x3ef   : > { %v8589_v39 = vadd.f32 %v7749_v20, %v7133_v46  ;;  %v5065_v41 = vpop.f32.mrb[29].mxu0 }
 0x3f0   : > { %v5113_v31 = vrot.slane %v5096_v9, 1  ;;  %v5115_v8 = vrot.slane %v5096_v9, 2  ;;  %v5099_v10 = vrot.slane %v5097_v50, 1  ;;  %v8590_v62 = vadd.f32 %v5065_v41, %v3131_v61 }
 0x3f1   : > { %v5117_v12 = vrot.slane %v5096_v9, 3 }
 0x3f2   : > { %v5145_v45 = vsel %vm5144_vm1, %v5096_v9, %v5113_v31  ;;  %v5101_v52 = vmax.f32 %v5097_v50, %v5099_v10  ;;  %v7752_v47 = vpop.f32.mrb[30].mxu0  ;;  %v5102_v59 = vmax.f32 %v8590_v62, %v8589_v39 }
 0x3f3   : > { %v5147_v22 = vsel %vm5146_vm2, %v5145_v45, %v5115_v8  ;;  %v8591_v19 = vadd.f32 %v7752_v47, %v7136_v34  ;;  %v5075_v54 = vpop.f32.mrb[31].mxu0 }
 0x3f4   : > { %v5149_v25 = vsel %vm5148_vm3, %v5147_v22, %v5117_v12  ;;  %v5120_v0 = vrot.slane %v5101_v52, 4  ;;  %v5122_v51 = vrot.slane %v5101_v52, 5  ;;  %v5104_v33 = vrot.slane %v5102_v59, 1 }
 0x3f5   : > { %v8592_v23 = vadd.f32 %v5075_v54, %v3141_v44  ;;  %v5124_v56 = vrot.slane %v5101_v52, 6  ;;  %v5126_v43 = vrot.slane %v5101_v52, 7 }
 0x3f6   : > { %v5151_v2 = vsel %vm5150_vm4, %v5149_v25, %v5120_v0  ;;  %v5106_v57 = vmax.f32 %v5102_v59, %v5104_v33 }
 0x3f7   : > { %v5153_v6 = vsel %vm5152_vm5, %v5151_v2, %v5122_v51  ;;  %v5107_v3 = vmax.f32 %v8592_v23, %v8591_v19 }
 0x3f8   : > { %v5155_v29 = vsel %vm5154_vm6, %v5153_v6, %v5124_v56  ;;  %v5129_v42 = vrot.slane %v5106_v57, 1  ;;  %v5131_v26 = vrot.slane %v5106_v57, 2  ;;  %v5133_v13 = vrot.slane %v5106_v57, 3 }
 0x3f9   : > { %v5157_v30 = vsel %vm5156_vm7, %v5155_v29, %v5126_v43  ;;  %v5109_v24 = vrot.slane %v5107_v3, 1 }
 0x3fa   : > { %v5172_v55 = vadd.f32 %v5762_v37, %v5157_v30  ;;  %v5158_v38 = vsel %vm5144_vm1, %v5106_v57, %v5129_v42 }
 0x3fb   : > { %v5159_v63 = vsel %vm5146_vm2, %v5158_v38, %v5131_v26  ;;  %v5111_v16 = vmax.f32 %v5107_v3, %v5109_v24 }
 0x3fc   : > { %v5174_v15 = vmax.f32 %v5172_v55, 0.0  ;;  %v5160_v58 = vsel %vm5148_vm3, %v5159_v63, %v5133_v13 }
 0x3fd   : > { %v5136_v4 = vrot.slane %v5111_v16, 4  ;;  %v5138_v21 = vrot.slane %v5111_v16, 5  ;;  %v5140_v14 = vrot.slane %v5111_v16, 6  ;;  %v5142_v60 = vrot.slane %v5111_v16, 7 }
 0x3fe   : > { %5176 = vst [vmem:[%s373_s16] sm:$0xff] %v5174_v15 }
 0x3ff   : > { %v5161_v40 = vsel %vm5150_vm4, %v5160_v58, %v5136_v4 }
 0x400   : > { %v5162_v7 = vsel %vm5152_vm5, %v5161_v40, %v5138_v21 }
 0x401   : > { %v5163_v18 = vsel %vm5154_vm6, %v5162_v7, %v5140_v14 }
 0x402   : > { %v5164_v11 = vsel %vm5156_vm7, %v5163_v18, %v5142_v60 }
 0x403   : > { %v5173_v1 = vadd.f32 %v5762_v37, %v5164_v11 }
 0x405   : > { %v5175_v46 = vmax.f32 %v5173_v1, 0.0 }
 0x407   : > { %5177 = vst [vmem:[%s373_s16 + $0x8] sm:$0xff] %v5175_v46 }
 0x408 PF: > { %s18_s27 = sadd.s32 1, %s8791_s27  }
 0x409   : > { %p15_p5 = scmp.ge.s32.totalorder %s18_s27, 4  }
 0x40b   :  { %17 = sbr.rel (!%p15_p5) target bundleno = 1 (0x1), region = 119 }

// kernel: lenet_forward.3
= control target key start
LH: loop header
LB: loop body
LE: loop exit
PB: predicated region body
PF: predicated region fallthrough
CT: control target
= control target key end

     0   :  { %s6995_s1 = inlined_call_operand.vmem [shape: f32[2048,512], index: 1, kind: input, shape index: {}]   ;;  %s6996_s0 = inlined_call_operand.vmem [shape: f32[8,2048], index: 0, kind: input, shape index: {}]   ;;  %s6997_s3 = inlined_call_operand.vmem [shape: f32[512,128], index: 3, kind: input, shape index: {}]   ;;  %s6998_s2 = inlined_call_operand.vmem [shape: f32[1,512], index: 2, kind: input, shape index: {}]   ;;  %s6999_s4 = inlined_call_operand.vmem [shape: f32[1,128], index: 4, kind: input, shape index: {}]   ;;  %s7000_s5 = inlined_call_operand.vmem [shape: f32[8,128], index: 5, kind: output, shape index: {}]  }
   0x1   :  { %v37_v0 = vld [vmem:[%s6995_s1 + $0x8] sm:$0xff]  ;;  %v39_v2 = vld [vmem:[%s6995_s1 + $0x18] sm:$0xff]  ;;  %v36_v5 = vld [vmem:[%s6995_s1] sm:$0xff] }
   0x2   :  { %v41_v1 = vld [vmem:[%s6995_s1 + $0x28] sm:$0xff]  ;;  %v43_v4 = vld [vmem:[%s6995_s1 + $0x38] sm:$0xff]  ;;  %v40_v6 = vld [vmem:[%s6995_s1 + $0x20] sm:$0xff] }
   0x3   :  { %v2520_v3 = vpack.c.bf16 %v41_v1, %v37_v0  ;;  %v3032_v7 = vpack.c.bf16 %v43_v4, %v39_v2  ;;  %v2522_v8 = vpack.c.bf16 %v40_v6, %v36_v5  ;;  %v38_v9 = vld [vmem:[%s6995_s1 + $0x10] sm:$0xff]  ;;  %v45_v11 = vld [vmem:[%s6995_s1 + $0x48] sm:$0xff]  ;;  %v47_v14 = vld [vmem:[%s6995_s1 + $0x58] sm:$0xff] }
   0x4   :  { %v42_v10 = vld [vmem:[%s6995_s1 + $0x30] sm:$0xff]  ;;  %v49_v13 = vld [vmem:[%s6995_s1 + $0x68] sm:$0xff]  ;;  %v51_v15 = vld [vmem:[%s6995_s1 + $0x78] sm:$0xff] }
   0x5   :  { %2521 = vmatprep.subr.bf16.mxu0 %v2520_v3  ;;  %v3034_v12 = vpack.c.bf16 %v42_v10, %v38_v9  ;;  %3033 = vmatprep.subr.bf16.mxu1 %v3032_v7  ;;  %v2524_v16 = vpack.c.bf16 %v49_v13, %v45_v11  ;;  %v3036_v17 = vpack.c.bf16 %v51_v15, %v47_v14  ;;  %v44_v18 = vld [vmem:[%s6995_s1 + $0x40] sm:$0xff]  ;;  %v46_v20 = vld [vmem:[%s6995_s1 + $0x50] sm:$0xff]  ;;  %v53_v23 = vld [vmem:[%s6995_s1 + $0x88] sm:$0xff] }
   0x6   :  { %2523 = vmatpush1.bf16.msra.mxu0 %v2522_v8  ;;  %v48_v19 = vld [vmem:[%s6995_s1 + $0x60] sm:$0xff]  ;;  %v50_v22 = vld [vmem:[%s6995_s1 + $0x70] sm:$0xff]  ;;  %v57_v24 = vld [vmem:[%s6995_s1 + $0xa8] sm:$0xff] }
   0x7   :  { %3035 = vmatpush1.bf16.msra.mxu1 %v3034_v12  ;;  %v2526_v21 = vpack.c.bf16 %v48_v19, %v44_v18  ;;  %2525 = vmatprep.subr.bf16.mxu0 %v2524_v16  ;;  %v3038_v25 = vpack.c.bf16 %v50_v22, %v46_v20  ;;  %v2528_v26 = vpack.c.bf16 %v57_v24, %v53_v23  ;;  %v55_v27 = vld [vmem:[%s6995_s1 + $0x98] sm:$0xff]  ;;  %v52_v29 = vld [vmem:[%s6995_s1 + $0x80] sm:$0xff]  ;;  %v54_v32 = vld [vmem:[%s6995_s1 + $0x90] sm:$0xff] }
   0x8   :  { %3037 = vmatprep.subr.bf16.mxu1 %v3036_v17  ;;  %v59_v28 = vld [vmem:[%s6995_s1 + $0xb8] sm:$0xff]  ;;  %v56_v31 = vld [vmem:[%s6995_s1 + $0xa0] sm:$0xff]  ;;  %v58_v33 = vld [vmem:[%s6995_s1 + $0xb0] sm:$0xff] }
   0x9   :  { %v3040_v30 = vpack.c.bf16 %v59_v28, %v55_v27  ;;  %v2530_v34 = vpack.c.bf16 %v56_v31, %v52_v29  ;;  %v61_v35 = vld [vmem:[%s6995_s1 + $0xc8] sm:$0xff]  ;;  %v63_v37 = vld [vmem:[%s6995_s1 + $0xd8] sm:$0xff]  ;;  %v3042_v38 = vpack.c.bf16 %v58_v33, %v54_v32  ;;  %v60_v41 = vld [vmem:[%s6995_s1 + $0xc0] sm:$0xff] }
   0xa   :  { %2527 = vmatpush1.bf16.msra.mxu0 %v2526_v21  ;;  %v65_v36 = vld [vmem:[%s6995_s1 + $0xe8] sm:$0xff]  ;;  %v67_v40 = vld [vmem:[%s6995_s1 + $0xf8] sm:$0xff]  ;;  %v64_v42 = vld [vmem:[%s6995_s1 + $0xe0] sm:$0xff] }
   0xb   :  { %3039 = vmatpush1.bf16.msra.mxu1 %v3038_v25  ;;  %2529 = vmatprep.subr.bf16.mxu0 %v2528_v26  ;;  %v2532_v39 = vpack.c.bf16 %v65_v36, %v61_v35  ;;  %v3044_v43 = vpack.c.bf16 %v67_v40, %v63_v37  ;;  %v62_v44 = vld [vmem:[%s6995_s1 + $0xd0] sm:$0xff]  ;;  %v69_v46 = vld [vmem:[%s6995_s1 + $0x108] sm:$0xff]  ;;  %v71_v48 = vld [vmem:[%s6995_s1 + $0x118] sm:$0xff]  ;;  %v2534_v50 = vpack.c.bf16 %v64_v42, %v60_v41 }
   0xc   :  { %3041 = vmatprep.subr.bf16.mxu1 %v3040_v30  ;;  %v66_v45 = vld [vmem:[%s6995_s1 + $0xf0] sm:$0xff]  ;;  %v73_v47 = vld [vmem:[%s6995_s1 + $0x128] sm:$0xff]  ;;  %v75_v49 = vld [vmem:[%s6995_s1 + $0x138] sm:$0xff] }
   0xd   :  { %v3046_v51 = vpack.c.bf16 %v66_v45, %v62_v44  ;;  %v2536_v52 = vpack.c.bf16 %v73_v47, %v69_v46  ;;  %v68_v53 = vld [vmem:[%s6995_s1 + $0x100] sm:$0xff]  ;;  %v70_v55 = vld [vmem:[%s6995_s1 + $0x110] sm:$0xff]  ;;  %v3048_v56 = vpack.c.bf16 %v75_v49, %v71_v48  ;;  %v77_v58 = vld [vmem:[%s6995_s1 + $0x148] sm:$0xff] }
   0xe   :  { %2531 = vmatpush1.bf16.msra.mxu0 %v2530_v34  ;;  %v72_v54 = vld [vmem:[%s6995_s1 + $0x120] sm:$0xff]  ;;  %v74_v57 = vld [vmem:[%s6995_s1 + $0x130] sm:$0xff]  ;;  %v81_v59 = vld [vmem:[%s6995_s1 + $0x168] sm:$0xff] }
   0xf   :  { %3043 = vmatpush1.bf16.msra.mxu1 %v3042_v38  ;;  %2533 = vmatprep.subr.bf16.mxu0 %v2532_v39  ;;  %v79_v60 = vld [vmem:[%s6995_s1 + $0x158] sm:$0xff]  ;;  %v2538_v62 = vpack.c.bf16 %v72_v54, %v68_v53  ;;  %v3050_v63 = vpack.c.bf16 %v74_v57, %v70_v55  ;;  %v2540_v0 = vpack.c.bf16 %v81_v59, %v77_v58  ;;  %v76_v1 = vld [vmem:[%s6995_s1 + $0x140] sm:$0xff]  ;;  %v78_v3 = vld [vmem:[%s6995_s1 + $0x150] sm:$0xff] }
  0x10   :  { %3045 = vmatprep.subr.bf16.mxu1 %v3044_v43  ;;  %v83_v61 = vld [vmem:[%s6995_s1 + $0x178] sm:$0xff]  ;;  %v80_v2 = vld [vmem:[%s6995_s1 + $0x160] sm:$0xff]  ;;  %v82_v5 = vld [vmem:[%s6995_s1 + $0x170] sm:$0xff] }
  0x11   :  { %v3052_v4 = vpack.c.bf16 %v83_v61, %v79_v60  ;;  %v85_v6 = vld [vmem:[%s6995_s1 + $0x188] sm:$0xff]  ;;  %v87_v8 = vld [vmem:[%s6995_s1 + $0x198] sm:$0xff]  ;;  %v2542_v10 = vpack.c.bf16 %v80_v2, %v76_v1  ;;  %v3054_v11 = vpack.c.bf16 %v82_v5, %v78_v3  ;;  %v84_v13 = vld [vmem:[%s6995_s1 + $0x180] sm:$0xff] }
  0x12   :  { %2535 = vmatpush1.bf16.msra.mxu0 %v2534_v50  ;;  %v89_v7 = vld [vmem:[%s6995_s1 + $0x1a8] sm:$0xff]  ;;  %v91_v9 = vld [vmem:[%s6995_s1 + $0x1b8] sm:$0xff]  ;;  %v88_v14 = vld [vmem:[%s6995_s1 + $0x1a0] sm:$0xff] }
  0x13   :  { %3047 = vmatpush1.bf16.msra.mxu1 %v3046_v51  ;;  %2537 = vmatprep.subr.bf16.mxu0 %v2536_v52  ;;  %v2544_v12 = vpack.c.bf16 %v89_v7, %v85_v6  ;;  %v86_v15 = vld [vmem:[%s6995_s1 + $0x190] sm:$0xff]  ;;  %v3056_v16 = vpack.c.bf16 %v91_v9, %v87_v8  ;;  %v93_v18 = vld [vmem:[%s6995_s1 + $0x1c8] sm:$0xff]  ;;  %v95_v20 = vld [vmem:[%s6995_s1 + $0x1d8] sm:$0xff]  ;;  %v2546_v22 = vpack.c.bf16 %v88_v14, %v84_v13 }
  0x14   :  { %3049 = vmatprep.subr.bf16.mxu1 %v3048_v56  ;;  %v90_v17 = vld [vmem:[%s6995_s1 + $0x1b0] sm:$0xff]  ;;  %v97_v19 = vld [vmem:[%s6995_s1 + $0x1e8] sm:$0xff]  ;;  %v99_v21 = vld [vmem:[%s6995_s1 + $0x1f8] sm:$0xff] }
  0x15   :  { %v3058_v23 = vpack.c.bf16 %v90_v17, %v86_v15  ;;  %v2548_v24 = vpack.c.bf16 %v97_v19, %v93_v18  ;;  %v92_v25 = vld [vmem:[%s6995_s1 + $0x1c0] sm:$0xff]  ;;  %v94_v27 = vld [vmem:[%s6995_s1 + $0x1d0] sm:$0xff]  ;;  %v3060_v28 = vpack.c.bf16 %v99_v21, %v95_v20  ;;  %v101_v30 = vld [vmem:[%s6995_s1 + $0x208] sm:$0xff] }
  0x16   :  { %2539 = vmatpush1.bf16.msra.mxu0 %v2538_v62  ;;  %v96_v26 = vld [vmem:[%s6995_s1 + $0x1e0] sm:$0xff]  ;;  %v98_v29 = vld [vmem:[%s6995_s1 + $0x1f0] sm:$0xff]  ;;  %v105_v31 = vld [vmem:[%s6995_s1 + $0x228] sm:$0xff] }
  0x17   :  { %3051 = vmatpush1.bf16.msra.mxu1 %v3050_v63  ;;  %2541 = vmatprep.subr.bf16.mxu0 %v2540_v0  ;;  %v103_v32 = vld [vmem:[%s6995_s1 + $0x218] sm:$0xff]  ;;  %v2550_v34 = vpack.c.bf16 %v96_v26, %v92_v25  ;;  %v3062_v35 = vpack.c.bf16 %v98_v29, %v94_v27  ;;  %v2552_v36 = vpack.c.bf16 %v105_v31, %v101_v30  ;;  %v100_v37 = vld [vmem:[%s6995_s1 + $0x200] sm:$0xff]  ;;  %v102_v39 = vld [vmem:[%s6995_s1 + $0x210] sm:$0xff] }
  0x18   :  { %3053 = vmatprep.subr.bf16.mxu1 %v3052_v4  ;;  %v107_v33 = vld [vmem:[%s6995_s1 + $0x238] sm:$0xff]  ;;  %v104_v38 = vld [vmem:[%s6995_s1 + $0x220] sm:$0xff]  ;;  %v106_v41 = vld [vmem:[%s6995_s1 + $0x230] sm:$0xff] }
  0x19   :  { %v3064_v40 = vpack.c.bf16 %v107_v33, %v103_v32  ;;  %v109_v42 = vld [vmem:[%s6995_s1 + $0x248] sm:$0xff]  ;;  %v111_v44 = vld [vmem:[%s6995_s1 + $0x258] sm:$0xff]  ;;  %v2554_v46 = vpack.c.bf16 %v104_v38, %v100_v37  ;;  %v3066_v47 = vpack.c.bf16 %v106_v41, %v102_v39  ;;  %v108_v49 = vld [vmem:[%s6995_s1 + $0x240] sm:$0xff] }
  0x1a   :  { %2543 = vmatpush1.bf16.msra.mxu0 %v2542_v10  ;;  %v113_v43 = vld [vmem:[%s6995_s1 + $0x268] sm:$0xff]  ;;  %v115_v45 = vld [vmem:[%s6995_s1 + $0x278] sm:$0xff]  ;;  %v112_v50 = vld [vmem:[%s6995_s1 + $0x260] sm:$0xff] }
  0x1b   :  { %3055 = vmatpush1.bf16.msra.mxu1 %v3054_v11  ;;  %2545 = vmatprep.subr.bf16.mxu0 %v2544_v12  ;;  %v2556_v48 = vpack.c.bf16 %v113_v43, %v109_v42  ;;  %v110_v51 = vld [vmem:[%s6995_s1 + $0x250] sm:$0xff]  ;;  %v3068_v52 = vpack.c.bf16 %v115_v45, %v111_v44  ;;  %v117_v54 = vld [vmem:[%s6995_s1 + $0x288] sm:$0xff]  ;;  %v119_v56 = vld [vmem:[%s6995_s1 + $0x298] sm:$0xff]  ;;  %v2558_v58 = vpack.c.bf16 %v112_v50, %v108_v49 }
  0x1c   :  { %3057 = vmatprep.subr.bf16.mxu1 %v3056_v16  ;;  %v114_v53 = vld [vmem:[%s6995_s1 + $0x270] sm:$0xff]  ;;  %v121_v55 = vld [vmem:[%s6995_s1 + $0x2a8] sm:$0xff]  ;;  %v123_v57 = vld [vmem:[%s6995_s1 + $0x2b8] sm:$0xff] }
  0x1d   :  { %v3070_v59 = vpack.c.bf16 %v114_v53, %v110_v51  ;;  %v2560_v60 = vpack.c.bf16 %v121_v55, %v117_v54  ;;  %v116_v61 = vld [vmem:[%s6995_s1 + $0x280] sm:$0xff]  ;;  %v118_v63 = vld [vmem:[%s6995_s1 + $0x290] sm:$0xff]  ;;  %v3072_v0 = vpack.c.bf16 %v123_v57, %v119_v56  ;;  %v125_v2 = vld [vmem:[%s6995_s1 + $0x2c8] sm:$0xff] }
  0x1e   :  { %2547 = vmatpush1.bf16.msra.mxu0 %v2546_v22  ;;  %v120_v62 = vld [vmem:[%s6995_s1 + $0x2a0] sm:$0xff]  ;;  %v122_v1 = vld [vmem:[%s6995_s1 + $0x2b0] sm:$0xff]  ;;  %v129_v3 = vld [vmem:[%s6995_s1 + $0x2e8] sm:$0xff] }
  0x1f   :  { %3059 = vmatpush1.bf16.msra.mxu1 %v3058_v23  ;;  %2549 = vmatprep.subr.bf16.mxu0 %v2548_v24  ;;  %v127_v4 = vld [vmem:[%s6995_s1 + $0x2d8] sm:$0xff]  ;;  %v2562_v6 = vpack.c.bf16 %v120_v62, %v116_v61  ;;  %v124_v7 = vld [vmem:[%s6995_s1 + $0x2c0] sm:$0xff]  ;;  %v3074_v8 = vpack.c.bf16 %v122_v1, %v118_v63  ;;  %v2564_v9 = vpack.c.bf16 %v129_v3, %v125_v2  ;;  %v126_v11 = vld [vmem:[%s6995_s1 + $0x2d0] sm:$0xff] }
  0x20   :  { %3061 = vmatprep.subr.bf16.mxu1 %v3060_v28  ;;  %v131_v5 = vld [vmem:[%s6995_s1 + $0x2f8] sm:$0xff]  ;;  %v128_v10 = vld [vmem:[%s6995_s1 + $0x2e0] sm:$0xff]  ;;  %v130_v12 = vld [vmem:[%s6995_s1 + $0x2f0] sm:$0xff] }
  0x21   :  { %v3076_v13 = vpack.c.bf16 %v131_v5, %v127_v4  ;;  %v133_v14 = vld [vmem:[%s6995_s1 + $0x308] sm:$0xff]  ;;  %v135_v17 = vld [vmem:[%s6995_s1 + $0x318] sm:$0xff]  ;;  %v2566_v19 = vpack.c.bf16 %v128_v10, %v124_v7  ;;  %v3078_v20 = vpack.c.bf16 %v130_v12, %v126_v11  ;;  %v132_v22 = vld [vmem:[%s6995_s1 + $0x300] sm:$0xff] }
  0x22   :  { %2551 = vmatpush1.bf16.msra.mxu0 %v2550_v34  ;;  %v137_v15 = vld [vmem:[%s6995_s1 + $0x328] sm:$0xff]  ;;  %v139_v18 = vld [vmem:[%s6995_s1 + $0x338] sm:$0xff]  ;;  %v136_v23 = vld [vmem:[%s6995_s1 + $0x320] sm:$0xff] }
  0x23   :  { %3063 = vmatpush1.bf16.msra.mxu1 %v3062_v35  ;;  %2553 = vmatprep.subr.bf16.mxu0 %v2552_v36  ;;  %v21_v16 = vld [vmem:[%s6996_s0 + $0x8] sm:$0xff]  ;;  %v2568_v21 = vpack.c.bf16 %v137_v15, %v133_v14  ;;  %v134_v24 = vld [vmem:[%s6995_s1 + $0x310] sm:$0xff]  ;;  %v3080_v25 = vpack.c.bf16 %v139_v18, %v135_v17  ;;  %v143_v29 = vld [vmem:[%s6995_s1 + $0x358] sm:$0xff]  ;;  %v2570_v31 = vpack.c.bf16 %v136_v23, %v132_v22 }
  0x24   :  { %3065 = vmatprep.subr.bf16.mxu1 %v3064_v40  ;;  %1146 = vmatprep.mubr.f32.mxu0 %v21_v16  ;;  %v138_v26 = vld [vmem:[%s6995_s1 + $0x330] sm:$0xff]  ;;  %v141_v27 = vld [vmem:[%s6995_s1 + $0x348] sm:$0xff]  ;;  %v147_v30 = vld [vmem:[%s6995_s1 + $0x378] sm:$0xff] }
  0x25   :  { %1714 = vmatprep.mubr.f32.mxu1 %v21_v16  ;;  %v145_v28 = vld [vmem:[%s6995_s1 + $0x368] sm:$0xff]  ;;  %v3082_v32 = vpack.c.bf16 %v138_v26, %v134_v24  ;;  %v140_v34 = vld [vmem:[%s6995_s1 + $0x340] sm:$0xff]  ;;  %v142_v36 = vld [vmem:[%s6995_s1 + $0x350] sm:$0xff]  ;;  %v3084_v37 = vpack.c.bf16 %v147_v30, %v143_v29 }
  0x26   :  { %2555 = vmatpush1.bf16.msra.mxu0 %v2554_v46  ;;  %v2572_v33 = vpack.c.bf16 %v145_v28, %v141_v27  ;;  %v144_v35 = vld [vmem:[%s6995_s1 + $0x360] sm:$0xff]  ;;  %v146_v38 = vld [vmem:[%s6995_s1 + $0x370] sm:$0xff]  ;;  %v149_v39 = vld [vmem:[%s6995_s1 + $0x388] sm:$0xff] }
  0x27   :  { %3067 = vmatpush1.bf16.msra.mxu1 %v3066_v47  ;;  %2557 = vmatprep.subr.bf16.mxu0 %v2556_v48  ;;  %v153_v40 = vld [vmem:[%s6995_s1 + $0x3a8] sm:$0xff]  ;;  %v151_v41 = vld [vmem:[%s6995_s1 + $0x398] sm:$0xff]  ;;  %v2574_v43 = vpack.c.bf16 %v144_v35, %v140_v34  ;;  %v3086_v44 = vpack.c.bf16 %v146_v38, %v142_v36  ;;  %v148_v46 = vld [vmem:[%s6995_s1 + $0x380] sm:$0xff] }
  0x28   :  { %3069 = vmatprep.subr.bf16.mxu1 %v3068_v52  ;;  %v155_v42 = vld [vmem:[%s6995_s1 + $0x3b8] sm:$0xff]  ;;  %v2576_v45 = vpack.c.bf16 %v153_v40, %v149_v39  ;;  %v152_v47 = vld [vmem:[%s6995_s1 + $0x3a0] sm:$0xff]  ;;  %v150_v48 = vld [vmem:[%s6995_s1 + $0x390] sm:$0xff] }
  0x29   :  { %v3088_v49 = vpack.c.bf16 %v155_v42, %v151_v41  ;;  %v154_v50 = vld [vmem:[%s6995_s1 + $0x3b0] sm:$0xff]  ;;  %v157_v51 = vld [vmem:[%s6995_s1 + $0x3c8] sm:$0xff]  ;;  %v159_v53 = vld [vmem:[%s6995_s1 + $0x3d8] sm:$0xff]  ;;  %v2578_v55 = vpack.c.bf16 %v152_v47, %v148_v46 }
  0x2a   :  { %2559 = vmatpush1.bf16.msra.mxu0 %v2558_v58  ;;  %v161_v52 = vld [vmem:[%s6995_s1 + $0x3e8] sm:$0xff]  ;;  %v163_v54 = vld [vmem:[%s6995_s1 + $0x3f8] sm:$0xff]  ;;  %v3090_v56 = vpack.c.bf16 %v154_v50, %v150_v48  ;;  %v156_v58 = vld [vmem:[%s6995_s1 + $0x3c0] sm:$0xff] }
  0x2b   :  { %3071 = vmatpush1.bf16.msra.mxu1 %v3070_v59  ;;  %2561 = vmatprep.subr.bf16.mxu0 %v2560_v60  ;;  %v2580_v57 = vpack.c.bf16 %v161_v52, %v157_v51  ;;  %v160_v59 = vld [vmem:[%s6995_s1 + $0x3e0] sm:$0xff]  ;;  %v158_v60 = vld [vmem:[%s6995_s1 + $0x3d0] sm:$0xff]  ;;  %v3092_v61 = vpack.c.bf16 %v163_v54, %v159_v53  ;;  %v165_v63 = vld [vmem:[%s6995_s1 + $0x408] sm:$0xff] }
  0x2c   :  { %3073 = vmatprep.subr.bf16.mxu1 %v3072_v0  ;;  %v162_v62 = vld [vmem:[%s6995_s1 + $0x3f0] sm:$0xff]  ;;  %v169_v0 = vld [vmem:[%s6995_s1 + $0x428] sm:$0xff]  ;;  %v167_v1 = vld [vmem:[%s6995_s1 + $0x418] sm:$0xff]  ;;  %v2582_v3 = vpack.c.bf16 %v160_v59, %v156_v58 }
  0x2d   :  { %v171_v2 = vld [vmem:[%s6995_s1 + $0x438] sm:$0xff]  ;;  %v3094_v4 = vpack.c.bf16 %v162_v62, %v158_v60  ;;  %v2584_v5 = vpack.c.bf16 %v169_v0, %v165_v63  ;;  %v168_v7 = vld [vmem:[%s6995_s1 + $0x420] sm:$0xff]  ;;  %v170_v10 = vld [vmem:[%s6995_s1 + $0x430] sm:$0xff] }
  0x2e   :  { %2563 = vmatpush1.bf16.msra.mxu0 %v2562_v6  ;;  %v164_v6 = vld [vmem:[%s6995_s1 + $0x400] sm:$0xff]  ;;  %v173_v11 = vld [vmem:[%s6995_s1 + $0x448] sm:$0xff]  ;;  %v179_v14 = vld [vmem:[%s6995_s1 + $0x478] sm:$0xff] }
  0x2f   :  { %3075 = vmatpush1.bf16.msra.mxu1 %v3074_v8  ;;  %2565 = vmatprep.subr.bf16.mxu0 %v2564_v9  ;;  %v166_v8 = vld [vmem:[%s6995_s1 + $0x410] sm:$0xff]  ;;  %v3096_v9 = vpack.c.bf16 %v171_v2, %v167_v1  ;;  %v177_v12 = vld [vmem:[%s6995_s1 + $0x468] sm:$0xff]  ;;  %v20_v15 = vld [vmem:[%s6996_s0] sm:$0xff]  ;;  %v2586_v16 = vpack.c.bf16 %v168_v7, %v164_v6 }
  0x30   :  { %3077 = vmatprep.subr.bf16.mxu1 %v3076_v13  ;;  %v175_v13 = vld [vmem:[%s6995_s1 + $0x458] sm:$0xff]  ;;  %v3098_v17 = vpack.c.bf16 %v170_v10, %v166_v8  ;;  %v2588_v18 = vpack.c.bf16 %v177_v12, %v173_v11  ;;  %v178_v23 = vld [vmem:[%s6995_s1 + $0x470] sm:$0xff]  ;;  %v181_v24 = vld [vmem:[%s6995_s1 + $0x488] sm:$0xff] }
  0x31   :  { %v3100_v22 = vpack.c.bf16 %v179_v14, %v175_v13  ;;  %v183_v26 = vld [vmem:[%s6995_s1 + $0x498] sm:$0xff]  ;;  %v186_v35 = vld [vmem:[%s6995_s1 + $0x4b0] sm:$0xff]  ;;  %v189_v36 = vld [vmem:[%s6995_s1 + $0x4c8] sm:$0xff] }
  0x32   :  { %2567 = vmatpush1.bf16.msra.mxu0 %v2566_v19  ;;  %v172_v19 = vld [vmem:[%s6995_s1 + $0x440] sm:$0xff]  ;;  %v187_v27 = vld [vmem:[%s6995_s1 + $0x4b8] sm:$0xff]  ;;  %v194_v47 = vld [vmem:[%s6995_s1 + $0x4f0] sm:$0xff] }
  0x33   :  { %3079 = vmatpush1.bf16.msra.mxu1 %v3078_v20  ;;  %2569 = vmatprep.subr.bf16.mxu0 %v2568_v21  ;;  %v176_v20 = vld [vmem:[%s6995_s1 + $0x460] sm:$0xff]  ;;  %v174_v21 = vld [vmem:[%s6995_s1 + $0x450] sm:$0xff]  ;;  %v3104_v34 = vpack.c.bf16 %v187_v27, %v183_v26  ;;  %v191_v38 = vld [vmem:[%s6995_s1 + $0x4d8] sm:$0xff] }
  0x34   :  { %3081 = vmatprep.subr.bf16.mxu1 %v3080_v25  ;;  %v185_v25 = vld [vmem:[%s6995_s1 + $0x4a8] sm:$0xff]  ;;  %v2590_v28 = vpack.c.bf16 %v176_v20, %v172_v19  ;;  %v3102_v29 = vpack.c.bf16 %v178_v23, %v174_v21  ;;  %v195_v39 = vld [vmem:[%s6995_s1 + $0x4f8] sm:$0xff]  ;;  %v202_v59 = vld [vmem:[%s6995_s1 + $0x530] sm:$0xff] }
  0x35   :  { %v2592_v30 = vpack.c.bf16 %v185_v25, %v181_v24  ;;  %v3108_v46 = vpack.c.bf16 %v195_v39, %v191_v38  ;;  %v197_v48 = vld [vmem:[%s6995_s1 + $0x508] sm:$0xff]  ;;  %v199_v50 = vld [vmem:[%s6995_s1 + $0x518] sm:$0xff]  ;;  %v210_v7 = vld [vmem:[%s6995_s1 + $0x570] sm:$0xff] }
  0x36   :  { %2571 = vmatpush1.bf16.msra.mxu0 %v2570_v31  ;;  %v180_v31 = vld [vmem:[%s6995_s1 + $0x480] sm:$0xff]  ;;  %v203_v51 = vld [vmem:[%s6995_s1 + $0x538] sm:$0xff]  ;;  %v205_v60 = vld [vmem:[%s6995_s1 + $0x548] sm:$0xff] }
  0x37   :  { %3083 = vmatpush1.bf16.msra.mxu1 %v3082_v32  ;;  %2573 = vmatprep.subr.bf16.mxu0 %v2572_v33  ;;  %v184_v32 = vld [vmem:[%s6995_s1 + $0x4a0] sm:$0xff]  ;;  %v182_v33 = vld [vmem:[%s6995_s1 + $0x490] sm:$0xff]  ;;  %v3112_v58 = vpack.c.bf16 %v203_v51, %v199_v50  ;;  %v207_v62 = vld [vmem:[%s6995_s1 + $0x558] sm:$0xff] }
  0x38   :  { %3085 = vmatprep.subr.bf16.mxu1 %v3084_v37  ;;  %v193_v37 = vld [vmem:[%s6995_s1 + $0x4e8] sm:$0xff]  ;;  %v2594_v40 = vpack.c.bf16 %v184_v32, %v180_v31  ;;  %v3106_v41 = vpack.c.bf16 %v186_v35, %v182_v33  ;;  %v211_v63 = vld [vmem:[%s6995_s1 + $0x578] sm:$0xff]  ;;  %v212_v13 = vld [vmem:[%s6995_s1 + $0x580] sm:$0xff] }
  0x39   :  { %v2596_v42 = vpack.c.bf16 %v193_v37, %v189_v36  ;;  %v3116_v6 = vpack.c.bf16 %v211_v63, %v207_v62  ;;  %v213_v8 = vld [vmem:[%s6995_s1 + $0x588] sm:$0xff]  ;;  %v215_v10 = vld [vmem:[%s6995_s1 + $0x598] sm:$0xff]  ;;  %v226_v32 = vld [vmem:[%s6995_s1 + $0x5f0] sm:$0xff] }
  0x3a   :  { %2575 = vmatpush1.bf16.msra.mxu0 %v2574_v43  ;;  %v188_v43 = vld [vmem:[%s6995_s1 + $0x4c0] sm:$0xff]  ;;  %v219_v11 = vld [vmem:[%s6995_s1 + $0x5b8] sm:$0xff]  ;;  %v221_v20 = vld [vmem:[%s6995_s1 + $0x5c8] sm:$0xff] }
  0x3b   :  { %3087 = vmatpush1.bf16.msra.mxu1 %v3086_v44  ;;  %2577 = vmatprep.subr.bf16.mxu0 %v2576_v45  ;;  %v192_v44 = vld [vmem:[%s6995_s1 + $0x4e0] sm:$0xff]  ;;  %v190_v45 = vld [vmem:[%s6995_s1 + $0x4d0] sm:$0xff]  ;;  %v3120_v19 = vpack.c.bf16 %v219_v11, %v215_v10  ;;  %v225_v21 = vld [vmem:[%s6995_s1 + $0x5e8] sm:$0xff] }
  0x3c   :  { %3089 = vmatprep.subr.bf16.mxu1 %v3088_v49  ;;  %v201_v49 = vld [vmem:[%s6995_s1 + $0x528] sm:$0xff]  ;;  %v2598_v52 = vpack.c.bf16 %v192_v44, %v188_v43  ;;  %v3110_v53 = vpack.c.bf16 %v194_v47, %v190_v45  ;;  %v223_v23 = vld [vmem:[%s6995_s1 + $0x5d8] sm:$0xff]  ;;  %v2612_v27 = vpack.c.bf16 %v225_v21, %v221_v20  ;;  %v234_v44 = vld [vmem:[%s6995_s1 + $0x630] sm:$0xff] }
  0x3d   :  { %v2600_v54 = vpack.c.bf16 %v201_v49, %v197_v48  ;;  %v227_v24 = vld [vmem:[%s6995_s1 + $0x5f8] sm:$0xff]  ;;  %v229_v33 = vld [vmem:[%s6995_s1 + $0x608] sm:$0xff] }
  0x3e   :  { %2579 = vmatpush1.bf16.msra.mxu0 %v2578_v55  ;;  %v196_v55 = vld [vmem:[%s6995_s1 + $0x500] sm:$0xff]  ;;  %v3124_v31 = vpack.c.bf16 %v227_v24, %v223_v23  ;;  %v231_v35 = vld [vmem:[%s6995_s1 + $0x618] sm:$0xff]  ;;  %v237_v45 = vld [vmem:[%s6995_s1 + $0x648] sm:$0xff] }
  0x3f   :  { %3091 = vmatpush1.bf16.msra.mxu1 %v3090_v56  ;;  %2581 = vmatprep.subr.bf16.mxu0 %v2580_v57  ;;  %v200_v56 = vld [vmem:[%s6995_s1 + $0x520] sm:$0xff]  ;;  %v198_v57 = vld [vmem:[%s6995_s1 + $0x510] sm:$0xff]  ;;  %v235_v36 = vld [vmem:[%s6995_s1 + $0x638] sm:$0xff] }
  0x40   :  { %3093 = vmatprep.subr.bf16.mxu1 %v3092_v61  ;;  %v209_v61 = vld [vmem:[%s6995_s1 + $0x568] sm:$0xff]  ;;  %v2602_v0 = vpack.c.bf16 %v200_v56, %v196_v55  ;;  %v3114_v1 = vpack.c.bf16 %v202_v59, %v198_v57  ;;  %v3128_v43 = vpack.c.bf16 %v235_v36, %v231_v35  ;;  %v239_v47 = vld [vmem:[%s6995_s1 + $0x658] sm:$0xff]  ;;  %v242_v56 = vld [vmem:[%s6995_s1 + $0x670] sm:$0xff] }
  0x41   :  { %v2604_v2 = vpack.c.bf16 %v209_v61, %v205_v60  ;;  %v243_v48 = vld [vmem:[%s6995_s1 + $0x678] sm:$0xff]  ;;  %v245_v57 = vld [vmem:[%s6995_s1 + $0x688] sm:$0xff]  ;;  %v260_v24 = vld [vmem:[%s6995_s1 + $0x700] sm:$0xff] }
  0x42   :  { %2583 = vmatpush1.bf16.msra.mxu0 %v2582_v3  ;;  %v204_v3 = vld [vmem:[%s6995_s1 + $0x540] sm:$0xff]  ;;  %v3132_v55 = vpack.c.bf16 %v243_v48, %v239_v47  ;;  %v247_v59 = vld [vmem:[%s6995_s1 + $0x698] sm:$0xff] }
  0x43   :  { %3095 = vmatpush1.bf16.msra.mxu1 %v3094_v4  ;;  %2585 = vmatprep.subr.bf16.mxu0 %v2584_v5  ;;  %v208_v4 = vld [vmem:[%s6995_s1 + $0x560] sm:$0xff]  ;;  %v206_v5 = vld [vmem:[%s6995_s1 + $0x550] sm:$0xff]  ;;  %v251_v60 = vld [vmem:[%s6995_s1 + $0x6b8] sm:$0xff] }
  0x44   :  { %3097 = vmatprep.subr.bf16.mxu1 %v3096_v9  ;;  %v217_v9 = vld [vmem:[%s6995_s1 + $0x5a8] sm:$0xff]  ;;  %v2606_v12 = vpack.c.bf16 %v208_v4, %v204_v3  ;;  %v3118_v14 = vpack.c.bf16 %v210_v7, %v206_v5  ;;  %v3136_v3 = vpack.c.bf16 %v251_v60, %v247_v59  ;;  %v250_v4 = vld [vmem:[%s6995_s1 + $0x6b0] sm:$0xff]  ;;  %v255_v7 = vld [vmem:[%s6995_s1 + $0x6d8] sm:$0xff] }
  0x45   :  { %1147 = vmatmul.mubr.f32.vlgmr.msra.gmra.mrb[0].mxu0 %v20_v15  ;;  %v253_v5 = vld [vmem:[%s6995_s1 + $0x6c8] sm:$0xff]  ;;  %v267_v20 = vld [vmem:[%s6995_s1 + $0x738] sm:$0xff]  ;;  %v268_v36 = vld [vmem:[%s6995_s1 + $0x740] sm:$0xff] }
  0x46   :  { %2587 = vmatpush1.bf16.msra.mxu0 %v2586_v16  ;;  %1715 = vmatmul.mubr.f32.vlgmr.msra.gmra.mrb[0].mxu1 %v20_v15  ;;  %v2608_v15 = vpack.c.bf16 %v217_v9, %v213_v8  ;;  %v216_v16 = vld [vmem:[%s6995_s1 + $0x5a0] sm:$0xff]  ;;  %v259_v8 = vld [vmem:[%s6995_s1 + $0x6f8] sm:$0xff] }
  0x47   :  { %3099 = vmatpush1.bf16.msra.mxu1 %v3098_v17  ;;  %2589 = vmatprep.subr.bf16.mxu0 %v2588_v18  ;;  %v214_v17 = vld [vmem:[%s6995_s1 + $0x590] sm:$0xff]  ;;  %v2610_v25 = vpack.c.bf16 %v216_v16, %v212_v13  ;;  %v256_v13 = vld [vmem:[%s6995_s1 + $0x6e0] sm:$0xff] }
  0x48   :  { %3101 = vmatprep.subr.bf16.mxu1 %v3100_v22  ;;  %v218_v18 = vld [vmem:[%s6995_s1 + $0x5b0] sm:$0xff]  ;;  %v23_v22 = vld [vmem:[%s6996_s0 + $0x18] sm:$0xff]  ;;  %v276_v48 = vld [vmem:[%s6995_s1 + $0x780] sm:$0xff] }
  0x49   :  { %1217 = vmatprep.mubr.f32.mxu0 %v23_v22  ;;  %1785 = vmatprep.mubr.f32.mxu1 %v23_v22  ;;  %v3122_v26 = vpack.c.bf16 %v218_v18, %v214_v17  ;;  %v258_v16 = vld [vmem:[%s6995_s1 + $0x6f0] sm:$0xff]  ;;  %v261_v17 = vld [vmem:[%s6995_s1 + $0x708] sm:$0xff]  ;;  %v284_v60 = vld [vmem:[%s6995_s1 + $0x7c0] sm:$0xff] }
  0x4a   :  { %2591 = vmatpush1.bf16.msra.mxu0 %v2590_v28  ;;  %v220_v28 = vld [vmem:[%s6995_s1 + $0x5c0] sm:$0xff]  ;;  %v265_v18 = vld [vmem:[%s6995_s1 + $0x728] sm:$0xff] }
  0x4b   :  { %3103 = vmatpush1.bf16.msra.mxu1 %v3102_v29  ;;  %2593 = vmatprep.subr.bf16.mxu0 %v2592_v30  ;;  %v224_v29 = vld [vmem:[%s6995_s1 + $0x5e0] sm:$0xff]  ;;  %v222_v30 = vld [vmem:[%s6995_s1 + $0x5d0] sm:$0xff]  ;;  %v2632_v23 = vpack.c.bf16 %v265_v18, %v261_v17 }
  0x4c   :  { %3105 = vmatprep.subr.bf16.mxu1 %v3104_v34  ;;  %v233_v34 = vld [vmem:[%s6995_s1 + $0x628] sm:$0xff]  ;;  %v2614_v37 = vpack.c.bf16 %v224_v29, %v220_v28  ;;  %v3126_v38 = vpack.c.bf16 %v226_v32, %v222_v30  ;;  %v266_v28 = vld [vmem:[%s6995_s1 + $0x730] sm:$0xff]  ;;  %v275_v32 = vld [vmem:[%s6995_s1 + $0x778] sm:$0xff] }
  0x4d   :  { %v2616_v39 = vpack.c.bf16 %v233_v34, %v229_v33  ;;  %v269_v29 = vld [vmem:[%s6995_s1 + $0x748] sm:$0xff]  ;;  %v22_v17 = vld [vmem:[%s6996_s0 + $0x10] sm:$0xff] }
  0x4e   :  { %2595 = vmatpush1.bf16.msra.mxu0 %v2594_v40  ;;  %v228_v40 = vld [vmem:[%s6995_s1 + $0x600] sm:$0xff]  ;;  %v273_v30 = vld [vmem:[%s6995_s1 + $0x768] sm:$0xff] }
  0x4f   :  { %3107 = vmatpush1.bf16.msra.mxu1 %v3106_v41  ;;  %2597 = vmatprep.subr.bf16.mxu0 %v2596_v42  ;;  %v232_v41 = vld [vmem:[%s6995_s1 + $0x620] sm:$0xff]  ;;  %v230_v42 = vld [vmem:[%s6995_s1 + $0x610] sm:$0xff]  ;;  %v2636_v35 = vpack.c.bf16 %v273_v30, %v269_v29  ;;  %v315_v29 = vld [vmem:[%s6995_s1 + $0x8b8] sm:$0xff] }
  0x50   :  { %3109 = vmatprep.subr.bf16.mxu1 %v3108_v46  ;;  %v241_v46 = vld [vmem:[%s6995_s1 + $0x668] sm:$0xff]  ;;  %v2618_v49 = vpack.c.bf16 %v232_v41, %v228_v40  ;;  %v3130_v50 = vpack.c.bf16 %v234_v44, %v230_v42  ;;  %v274_v40 = vld [vmem:[%s6995_s1 + $0x770] sm:$0xff]  ;;  %v283_v44 = vld [vmem:[%s6995_s1 + $0x7b8] sm:$0xff] }
  0x51   :  { %v2620_v51 = vpack.c.bf16 %v241_v46, %v237_v45  ;;  %v277_v41 = vld [vmem:[%s6995_s1 + $0x788] sm:$0xff] }
  0x52   :  { %2599 = vmatpush1.bf16.msra.mxu0 %v2598_v52  ;;  %v236_v52 = vld [vmem:[%s6995_s1 + $0x640] sm:$0xff]  ;;  %v281_v42 = vld [vmem:[%s6995_s1 + $0x7a8] sm:$0xff] }
  0x53   :  { %3111 = vmatpush1.bf16.msra.mxu1 %v3110_v53  ;;  %2601 = vmatprep.subr.bf16.mxu0 %v2600_v54  ;;  %v240_v53 = vld [vmem:[%s6995_s1 + $0x660] sm:$0xff]  ;;  %v238_v54 = vld [vmem:[%s6995_s1 + $0x650] sm:$0xff]  ;;  %v2640_v47 = vpack.c.bf16 %v281_v42, %v277_v41  ;;  %v25_v30 = vld [vmem:[%s6996_s0 + $0x28] sm:$0xff] }
  0x54   :  { %3113 = vmatprep.subr.bf16.mxu1 %v3112_v58  ;;  %v249_v58 = vld [vmem:[%s6995_s1 + $0x6a8] sm:$0xff]  ;;  %v2622_v61 = vpack.c.bf16 %v240_v53, %v236_v52  ;;  %v3134_v62 = vpack.c.bf16 %v242_v56, %v238_v54  ;;  %v282_v52 = vld [vmem:[%s6995_s1 + $0x7b0] sm:$0xff]  ;;  %v291_v56 = vld [vmem:[%s6995_s1 + $0x7f8] sm:$0xff] }
  0x55   :  { %v2624_v63 = vpack.c.bf16 %v249_v58, %v245_v57  ;;  %v285_v53 = vld [vmem:[%s6995_s1 + $0x7c8] sm:$0xff]  ;;  %v319_v41 = vld [vmem:[%s6995_s1 + $0x8d8] sm:$0xff] }
  0x56   :  { %2603 = vmatpush1.bf16.msra.mxu0 %v2602_v0  ;;  %v244_v0 = vld [vmem:[%s6995_s1 + $0x680] sm:$0xff]  ;;  %v289_v54 = vld [vmem:[%s6995_s1 + $0x7e8] sm:$0xff]  ;;  %v323_v42 = vld [vmem:[%s6995_s1 + $0x8f8] sm:$0xff] }
  0x57   :  { %3115 = vmatpush1.bf16.msra.mxu1 %v3114_v1  ;;  %2605 = vmatprep.subr.bf16.mxu0 %v2604_v2  ;;  %v248_v1 = vld [vmem:[%s6995_s1 + $0x6a0] sm:$0xff]  ;;  %v246_v2 = vld [vmem:[%s6995_s1 + $0x690] sm:$0xff]  ;;  %v2644_v59 = vpack.c.bf16 %v289_v54, %v285_v53  ;;  %v327_v53 = vld [vmem:[%s6995_s1 + $0x918] sm:$0xff] }
  0x58   :  { %3117 = vmatprep.subr.bf16.mxu1 %v3116_v6  ;;  %v257_v6 = vld [vmem:[%s6995_s1 + $0x6e8] sm:$0xff]  ;;  %v2626_v9 = vpack.c.bf16 %v248_v1, %v244_v0  ;;  %v3138_v10 = vpack.c.bf16 %v250_v4, %v246_v2  ;;  %v290_v0 = vld [vmem:[%s6995_s1 + $0x7f0] sm:$0xff]  ;;  %v299_v4 = vld [vmem:[%s6995_s1 + $0x838] sm:$0xff] }
  0x59   :  { %v2628_v11 = vpack.c.bf16 %v257_v6, %v253_v5  ;;  %v293_v1 = vld [vmem:[%s6995_s1 + $0x808] sm:$0xff]  ;;  %v331_v54 = vld [vmem:[%s6995_s1 + $0x938] sm:$0xff] }
  0x5a   :  { %2607 = vmatpush1.bf16.msra.mxu0 %v2606_v12  ;;  %v252_v12 = vld [vmem:[%s6995_s1 + $0x6c0] sm:$0xff]  ;;  %v297_v2 = vld [vmem:[%s6995_s1 + $0x828] sm:$0xff] }
  0x5b   :  { %3119 = vmatpush1.bf16.msra.mxu1 %v3118_v14  ;;  %2609 = vmatprep.subr.bf16.mxu0 %v2608_v15  ;;  %v254_v14 = vld [vmem:[%s6995_s1 + $0x6d0] sm:$0xff]  ;;  %v3140_v15 = vpack.c.bf16 %v259_v8, %v255_v7  ;;  %v2630_v21 = vpack.c.bf16 %v256_v13, %v252_v12  ;;  %v2648_v7 = vpack.c.bf16 %v297_v2, %v293_v1  ;;  %v292_v8 = vld [vmem:[%s6995_s1 + $0x800] sm:$0xff]  ;;  %v301_v13 = vld [vmem:[%s6995_s1 + $0x848] sm:$0xff] }
  0x5c   :  { %3121 = vmatprep.subr.bf16.mxu1 %v3120_v19  ;;  %v263_v19 = vld [vmem:[%s6995_s1 + $0x718] sm:$0xff]  ;;  %v3142_v22 = vpack.c.bf16 %v258_v16, %v254_v14  ;;  %v298_v12 = vld [vmem:[%s6995_s1 + $0x830] sm:$0xff]  ;;  %v305_v14 = vld [vmem:[%s6995_s1 + $0x868] sm:$0xff] }
  0x5d   :  { %v307_v16 = vld [vmem:[%s6995_s1 + $0x878] sm:$0xff] }
  0x5e   :  { %2611 = vmatpush1.bf16.msra.mxu0 %v2610_v25  ;;  %v264_v25 = vld [vmem:[%s6995_s1 + $0x720] sm:$0xff]  ;;  %v335_v1 = vld [vmem:[%s6995_s1 + $0x958] sm:$0xff] }
  0x5f   :  { %3123 = vmatpush1.bf16.msra.mxu1 %v3122_v26  ;;  %2613 = vmatprep.subr.bf16.mxu0 %v2612_v27  ;;  %v262_v26 = vld [vmem:[%s6995_s1 + $0x710] sm:$0xff]  ;;  %v3144_v27 = vpack.c.bf16 %v267_v20, %v263_v19  ;;  %v2634_v33 = vpack.c.bf16 %v264_v25, %v260_v24  ;;  %v2652_v20 = vpack.c.bf16 %v305_v14, %v301_v13  ;;  %v339_v2 = vld [vmem:[%s6995_s1 + $0x978] sm:$0xff] }
  0x60   :  { %3125 = vmatprep.subr.bf16.mxu1 %v3124_v31  ;;  %v271_v31 = vld [vmem:[%s6995_s1 + $0x758] sm:$0xff]  ;;  %v3146_v34 = vpack.c.bf16 %v266_v28, %v262_v26  ;;  %v306_v25 = vld [vmem:[%s6995_s1 + $0x870] sm:$0xff]  ;;  %v309_v26 = vld [vmem:[%s6995_s1 + $0x888] sm:$0xff] }
  0x61   :  { %v311_v28 = vld [vmem:[%s6995_s1 + $0x898] sm:$0xff] }
  0x62   :  { %2615 = vmatpush1.bf16.msra.mxu0 %v2614_v37  ;;  %v272_v37 = vld [vmem:[%s6995_s1 + $0x760] sm:$0xff]  ;;  %v343_v13 = vld [vmem:[%s6995_s1 + $0x998] sm:$0xff] }
  0x63   :  { %3127 = vmatpush1.bf16.msra.mxu1 %v3126_v38  ;;  %2617 = vmatprep.subr.bf16.mxu0 %v2616_v39  ;;  %v270_v38 = vld [vmem:[%s6995_s1 + $0x750] sm:$0xff]  ;;  %v3148_v39 = vpack.c.bf16 %v275_v32, %v271_v31  ;;  %v2638_v45 = vpack.c.bf16 %v272_v37, %v268_v36  ;;  %v3168_v37 = vpack.c.bf16 %v315_v29, %v311_v28  ;;  %v347_v14 = vld [vmem:[%s6995_s1 + $0x9b8] sm:$0xff] }
  0x64   :  { %3129 = vmatprep.subr.bf16.mxu1 %v3128_v43  ;;  %v279_v43 = vld [vmem:[%s6995_s1 + $0x798] sm:$0xff]  ;;  %v3150_v46 = vpack.c.bf16 %v274_v40, %v270_v38  ;;  %v310_v36 = vld [vmem:[%s6995_s1 + $0x890] sm:$0xff]  ;;  %v321_v40 = vld [vmem:[%s6995_s1 + $0x8e8] sm:$0xff] }
  0x65   :  { %v314_v38 = vld [vmem:[%s6995_s1 + $0x8b0] sm:$0xff] }
  0x66   :  { %2619 = vmatpush1.bf16.msra.mxu0 %v2618_v49  ;;  %v280_v49 = vld [vmem:[%s6995_s1 + $0x7a0] sm:$0xff] }
  0x67   :  { %3131 = vmatpush1.bf16.msra.mxu1 %v3130_v50  ;;  %2621 = vmatprep.subr.bf16.mxu0 %v2620_v51  ;;  %v278_v50 = vld [vmem:[%s6995_s1 + $0x790] sm:$0xff]  ;;  %v3152_v51 = vpack.c.bf16 %v283_v44, %v279_v43  ;;  %v2642_v57 = vpack.c.bf16 %v280_v49, %v276_v48  ;;  %v3170_v44 = vpack.c.bf16 %v314_v38, %v310_v36  ;;  %v361_v36 = vld [vmem:[%s6995_s1 + $0xa28] sm:$0xff]  ;;  %v363_v38 = vld [vmem:[%s6995_s1 + $0xa38] sm:$0xff] }
  0x68   :  { %3133 = vmatprep.subr.bf16.mxu1 %v3132_v55  ;;  %v287_v55 = vld [vmem:[%s6995_s1 + $0x7d8] sm:$0xff]  ;;  %v3154_v58 = vpack.c.bf16 %v282_v52, %v278_v50  ;;  %v318_v48 = vld [vmem:[%s6995_s1 + $0x8d0] sm:$0xff]  ;;  %v3172_v49 = vpack.c.bf16 %v323_v42, %v319_v41  ;;  %v329_v52 = vld [vmem:[%s6995_s1 + $0x928] sm:$0xff] }
  0x69   :  { %v322_v50 = vld [vmem:[%s6995_s1 + $0x8f0] sm:$0xff]  ;;  %v356_v42 = vld [vmem:[%s6995_s1 + $0xa00] sm:$0xff] }
  0x6a   :  { %2623 = vmatpush1.bf16.msra.mxu0 %v2622_v61  ;;  %v288_v61 = vld [vmem:[%s6995_s1 + $0x7e0] sm:$0xff] }
  0x6b   :  { %3135 = vmatpush1.bf16.msra.mxu1 %v3134_v62  ;;  %2625 = vmatprep.subr.bf16.mxu0 %v2624_v63  ;;  %v286_v62 = vld [vmem:[%s6995_s1 + $0x7d0] sm:$0xff]  ;;  %v3156_v63 = vpack.c.bf16 %v291_v56, %v287_v55  ;;  %v2646_v5 = vpack.c.bf16 %v288_v61, %v284_v60  ;;  %v3174_v56 = vpack.c.bf16 %v322_v50, %v318_v48  ;;  %v369_v48 = vld [vmem:[%s6995_s1 + $0xa68] sm:$0xff]  ;;  %v371_v50 = vld [vmem:[%s6995_s1 + $0xa78] sm:$0xff] }
  0x6c   :  { %3137 = vmatprep.subr.bf16.mxu1 %v3136_v3  ;;  %v295_v3 = vld [vmem:[%s6995_s1 + $0x818] sm:$0xff]  ;;  %v3158_v6 = vpack.c.bf16 %v290_v0, %v286_v62  ;;  %v326_v60 = vld [vmem:[%s6995_s1 + $0x910] sm:$0xff]  ;;  %v3176_v61 = vpack.c.bf16 %v331_v54, %v327_v53  ;;  %v337_v0 = vld [vmem:[%s6995_s1 + $0x968] sm:$0xff] }
  0x6d   :  { %v330_v62 = vld [vmem:[%s6995_s1 + $0x930] sm:$0xff]  ;;  %v364_v54 = vld [vmem:[%s6995_s1 + $0xa40] sm:$0xff] }
  0x6e   :  { %2627 = vmatpush1.bf16.msra.mxu0 %v2626_v9  ;;  %v296_v9 = vld [vmem:[%s6995_s1 + $0x820] sm:$0xff] }
  0x6f   :  { %3139 = vmatpush1.bf16.msra.mxu1 %v3138_v10  ;;  %2629 = vmatprep.subr.bf16.mxu0 %v2628_v11  ;;  %v294_v10 = vld [vmem:[%s6995_s1 + $0x810] sm:$0xff]  ;;  %v3160_v11 = vpack.c.bf16 %v299_v4, %v295_v3  ;;  %v2650_v18 = vpack.c.bf16 %v296_v9, %v292_v8  ;;  %v3178_v4 = vpack.c.bf16 %v330_v62, %v326_v60  ;;  %v377_v60 = vld [vmem:[%s6995_s1 + $0xaa8] sm:$0xff]  ;;  %v379_v62 = vld [vmem:[%s6995_s1 + $0xab8] sm:$0xff] }
  0x70   :  { %3141 = vmatprep.subr.bf16.mxu1 %v3140_v15  ;;  %v303_v15 = vld [vmem:[%s6995_s1 + $0x858] sm:$0xff]  ;;  %v3162_v19 = vpack.c.bf16 %v298_v12, %v294_v10  ;;  %v334_v8 = vld [vmem:[%s6995_s1 + $0x950] sm:$0xff]  ;;  %v3180_v9 = vpack.c.bf16 %v339_v2, %v335_v1  ;;  %v345_v12 = vld [vmem:[%s6995_s1 + $0x9a8] sm:$0xff] }
  0x71   :  { %v3164_v24 = vpack.c.bf16 %v307_v16, %v303_v15  ;;  %v338_v10 = vld [vmem:[%s6995_s1 + $0x970] sm:$0xff]  ;;  %v372_v2 = vld [vmem:[%s6995_s1 + $0xa80] sm:$0xff] }
  0x72   :  { %2631 = vmatpush1.bf16.msra.mxu0 %v2630_v21  ;;  %v300_v21 = vld [vmem:[%s6995_s1 + $0x840] sm:$0xff]  ;;  %v3182_v16 = vpack.c.bf16 %v338_v10, %v334_v8  ;;  %v385_v8 = vld [vmem:[%s6995_s1 + $0xae8] sm:$0xff]  ;;  %v387_v10 = vld [vmem:[%s6995_s1 + $0xaf8] sm:$0xff] }
  0x73   :  { %3143 = vmatpush1.bf16.msra.mxu1 %v3142_v22  ;;  %2633 = vmatprep.subr.bf16.mxu0 %v2632_v23  ;;  %v304_v22 = vld [vmem:[%s6995_s1 + $0x860] sm:$0xff]  ;;  %v302_v23 = vld [vmem:[%s6995_s1 + $0x850] sm:$0xff] }
  0x74   :  { %3145 = vmatprep.subr.bf16.mxu1 %v3144_v27  ;;  %v313_v27 = vld [vmem:[%s6995_s1 + $0x8a8] sm:$0xff]  ;;  %v2654_v31 = vpack.c.bf16 %v304_v22, %v300_v21  ;;  %v3166_v32 = vpack.c.bf16 %v306_v25, %v302_v23  ;;  %v3184_v21 = vpack.c.bf16 %v347_v14, %v343_v13  ;;  %v346_v22 = vld [vmem:[%s6995_s1 + $0x9b0] sm:$0xff]  ;;  %v351_v25 = vld [vmem:[%s6995_s1 + $0x9d8] sm:$0xff] }
  0x75   :  { %v349_v23 = vld [vmem:[%s6995_s1 + $0x9c8] sm:$0xff]  ;;  %v380_v14 = vld [vmem:[%s6995_s1 + $0xac0] sm:$0xff] }
  0x76   :  { %2635 = vmatpush1.bf16.msra.mxu0 %v2634_v33  ;;  %v2656_v33 = vpack.c.bf16 %v313_v27, %v309_v26  ;;  %v355_v26 = vld [vmem:[%s6995_s1 + $0x9f8] sm:$0xff] }
  0x77   :  { %3147 = vmatpush1.bf16.msra.mxu1 %v3146_v34  ;;  %2637 = vmatprep.subr.bf16.mxu0 %v2636_v35  ;;  %v308_v34 = vld [vmem:[%s6995_s1 + $0x880] sm:$0xff] }
  0x78   :  { %3149 = vmatprep.subr.bf16.mxu1 %v3148_v39  ;;  %v312_v35 = vld [vmem:[%s6995_s1 + $0x8a0] sm:$0xff]  ;;  %v317_v39 = vld [vmem:[%s6995_s1 + $0x8c8] sm:$0xff] }
  0x79   :  { %v2658_v43 = vpack.c.bf16 %v312_v35, %v308_v34  ;;  %v354_v34 = vld [vmem:[%s6995_s1 + $0x9f0] sm:$0xff]  ;;  %v357_v35 = vld [vmem:[%s6995_s1 + $0xa08] sm:$0xff] }
  0x7a   :  { %2639 = vmatpush1.bf16.msra.mxu0 %v2638_v45  ;;  %v2660_v45 = vpack.c.bf16 %v321_v40, %v317_v39  ;;  %v2680_v41 = vpack.c.bf16 %v361_v36, %v357_v35 }
  0x7b   :  { %3151 = vmatpush1.bf16.msra.mxu1 %v3150_v46  ;;  %2641 = vmatprep.subr.bf16.mxu0 %v2640_v47  ;;  %v316_v46 = vld [vmem:[%s6995_s1 + $0x8c0] sm:$0xff] }
  0x7c   :  { %3153 = vmatprep.subr.bf16.mxu1 %v3152_v51  ;;  %v320_v47 = vld [vmem:[%s6995_s1 + $0x8e0] sm:$0xff]  ;;  %v325_v51 = vld [vmem:[%s6995_s1 + $0x908] sm:$0xff] }
  0x7d   :  { %v2662_v55 = vpack.c.bf16 %v320_v47, %v316_v46  ;;  %v362_v46 = vld [vmem:[%s6995_s1 + $0xa30] sm:$0xff]  ;;  %v365_v47 = vld [vmem:[%s6995_s1 + $0xa48] sm:$0xff] }
  0x7e   :  { %2643 = vmatpush1.bf16.msra.mxu0 %v2642_v57  ;;  %v2664_v57 = vpack.c.bf16 %v329_v52, %v325_v51  ;;  %v2684_v53 = vpack.c.bf16 %v369_v48, %v365_v47 }
  0x7f   :  { %3155 = vmatpush1.bf16.msra.mxu1 %v3154_v58  ;;  %2645 = vmatprep.subr.bf16.mxu0 %v2644_v59  ;;  %v324_v58 = vld [vmem:[%s6995_s1 + $0x900] sm:$0xff] }
  0x80   :  { %3157 = vmatprep.subr.bf16.mxu1 %v3156_v63  ;;  %v328_v59 = vld [vmem:[%s6995_s1 + $0x920] sm:$0xff]  ;;  %v333_v63 = vld [vmem:[%s6995_s1 + $0x948] sm:$0xff] }
  0x81   :  { %v2666_v3 = vpack.c.bf16 %v328_v59, %v324_v58  ;;  %v370_v58 = vld [vmem:[%s6995_s1 + $0xa70] sm:$0xff]  ;;  %v373_v59 = vld [vmem:[%s6995_s1 + $0xa88] sm:$0xff] }
  0x82   :  { %2647 = vmatpush1.bf16.msra.mxu0 %v2646_v5  ;;  %v2668_v5 = vpack.c.bf16 %v337_v0, %v333_v63  ;;  %v2688_v1 = vpack.c.bf16 %v377_v60, %v373_v59 }
  0x83   :  { %3159 = vmatpush1.bf16.msra.mxu1 %v3158_v6  ;;  %2649 = vmatprep.subr.bf16.mxu0 %v2648_v7  ;;  %v332_v6 = vld [vmem:[%s6995_s1 + $0x940] sm:$0xff] }
  0x84   :  { %3161 = vmatprep.subr.bf16.mxu1 %v3160_v11  ;;  %v336_v7 = vld [vmem:[%s6995_s1 + $0x960] sm:$0xff]  ;;  %v341_v11 = vld [vmem:[%s6995_s1 + $0x988] sm:$0xff] }
  0x85   :  { %1218 = vmatmul.mubr.f32.vlgmr.msra.gmra.mrb[0].mxu0 %v22_v17  ;;  %v2670_v15 = vpack.c.bf16 %v336_v7, %v332_v6  ;;  %v378_v6 = vld [vmem:[%s6995_s1 + $0xab0] sm:$0xff]  ;;  %v381_v7 = vld [vmem:[%s6995_s1 + $0xac8] sm:$0xff] }
  0x86   :  { %2651 = vmatpush1.bf16.msra.mxu0 %v2650_v18  ;;  %1786 = vmatmul.mubr.f32.vlgmr.msra.gmra.mrb[0].mxu1 %v22_v17  ;;  %v2672_v17 = vpack.c.bf16 %v345_v12, %v341_v11  ;;  %v340_v18 = vld [vmem:[%s6995_s1 + $0x980] sm:$0xff]  ;;  %v2692_v13 = vpack.c.bf16 %v385_v8, %v381_v7 }
  0x87   :  { %3163 = vmatpush1.bf16.msra.mxu1 %v3162_v19  ;;  %2653 = vmatprep.subr.bf16.mxu0 %v2652_v20  ;;  %v344_v19 = vld [vmem:[%s6995_s1 + $0x9a0] sm:$0xff]  ;;  %v342_v20 = vld [vmem:[%s6995_s1 + $0x990] sm:$0xff] }
  0x88   :  { %3165 = vmatprep.subr.bf16.mxu1 %v3164_v24  ;;  %1288 = vmatprep.mubr.f32.mxu0 %v25_v30  ;;  %v353_v24 = vld [vmem:[%s6995_s1 + $0x9e8] sm:$0xff]  ;;  %v2674_v27 = vpack.c.bf16 %v344_v19, %v340_v18  ;;  %v3186_v28 = vpack.c.bf16 %v346_v22, %v342_v20  ;;  %v386_v18 = vld [vmem:[%s6995_s1 + $0xaf0] sm:$0xff]  ;;  %v395_v22 = vld [vmem:[%s6995_s1 + $0xb38] sm:$0xff] }
  0x89   :  { %1856 = vmatprep.mubr.f32.mxu1 %v25_v30  ;;  %v2676_v29 = vpack.c.bf16 %v353_v24, %v349_v23  ;;  %v348_v30 = vld [vmem:[%s6995_s1 + $0x9c0] sm:$0xff]  ;;  %v389_v19 = vld [vmem:[%s6995_s1 + $0xb08] sm:$0xff] }
  0x8a   :  { %2655 = vmatpush1.bf16.msra.mxu0 %v2654_v31  ;;  %v352_v31 = vld [vmem:[%s6995_s1 + $0x9e0] sm:$0xff]  ;;  %v393_v20 = vld [vmem:[%s6995_s1 + $0xb28] sm:$0xff] }
  0x8b   :  { %3167 = vmatpush1.bf16.msra.mxu1 %v3166_v32  ;;  %2657 = vmatprep.subr.bf16.mxu0 %v2656_v33  ;;  %v350_v32 = vld [vmem:[%s6995_s1 + $0x9d0] sm:$0xff]  ;;  %v3188_v33 = vpack.c.bf16 %v355_v26, %v351_v25  ;;  %v2678_v39 = vpack.c.bf16 %v352_v31, %v348_v30  ;;  %v2696_v25 = vpack.c.bf16 %v393_v20, %v389_v19  ;;  %v388_v26 = vld [vmem:[%s6995_s1 + $0xb00] sm:$0xff]  ;;  %v397_v31 = vld [vmem:[%s6995_s1 + $0xb48] sm:$0xff] }
  0x8c   :  { %3169 = vmatprep.subr.bf16.mxu1 %v3168_v37  ;;  %v359_v37 = vld [vmem:[%s6995_s1 + $0xa18] sm:$0xff]  ;;  %v3190_v40 = vpack.c.bf16 %v354_v34, %v350_v32  ;;  %v394_v30 = vld [vmem:[%s6995_s1 + $0xb30] sm:$0xff]  ;;  %v401_v32 = vld [vmem:[%s6995_s1 + $0xb68] sm:$0xff] }
  0x8d   :  { %v403_v34 = vld [vmem:[%s6995_s1 + $0xb78] sm:$0xff]  ;;  %v24_v19 = vld [vmem:[%s6996_s0 + $0x20] sm:$0xff] }
  0x8e   :  { %2659 = vmatpush1.bf16.msra.mxu0 %v2658_v43  ;;  %v360_v43 = vld [vmem:[%s6995_s1 + $0xa20] sm:$0xff] }
  0x8f   :  { %3171 = vmatpush1.bf16.msra.mxu1 %v3170_v44  ;;  %2661 = vmatprep.subr.bf16.mxu0 %v2660_v45  ;;  %v358_v44 = vld [vmem:[%s6995_s1 + $0xa10] sm:$0xff]  ;;  %v3192_v45 = vpack.c.bf16 %v363_v38, %v359_v37  ;;  %v2682_v51 = vpack.c.bf16 %v360_v43, %v356_v42  ;;  %v2700_v37 = vpack.c.bf16 %v401_v32, %v397_v31  ;;  %v396_v38 = vld [vmem:[%s6995_s1 + $0xb40] sm:$0xff]  ;;  %v405_v43 = vld [vmem:[%s6995_s1 + $0xb88] sm:$0xff] }
  0x90   :  { %3173 = vmatprep.subr.bf16.mxu1 %v3172_v49  ;;  %v367_v49 = vld [vmem:[%s6995_s1 + $0xa58] sm:$0xff]  ;;  %v3194_v52 = vpack.c.bf16 %v362_v46, %v358_v44  ;;  %v402_v42 = vld [vmem:[%s6995_s1 + $0xb70] sm:$0xff]  ;;  %v409_v44 = vld [vmem:[%s6995_s1 + $0xba8] sm:$0xff] }
  0x91   :  { %v411_v46 = vld [vmem:[%s6995_s1 + $0xbb8] sm:$0xff] }
  0x92   :  { %2663 = vmatpush1.bf16.msra.mxu0 %v2662_v55  ;;  %v368_v55 = vld [vmem:[%s6995_s1 + $0xa60] sm:$0xff]  ;;  %v443_v31 = vld [vmem:[%s6995_s1 + $0xcb8] sm:$0xff] }
  0x93   :  { %3175 = vmatpush1.bf16.msra.mxu1 %v3174_v56  ;;  %2665 = vmatprep.subr.bf16.mxu0 %v2664_v57  ;;  %v366_v56 = vld [vmem:[%s6995_s1 + $0xa50] sm:$0xff]  ;;  %v3196_v57 = vpack.c.bf16 %v371_v50, %v367_v49  ;;  %v2686_v63 = vpack.c.bf16 %v368_v55, %v364_v54  ;;  %v2704_v49 = vpack.c.bf16 %v409_v44, %v405_v43  ;;  %v404_v50 = vld [vmem:[%s6995_s1 + $0xb80] sm:$0xff]  ;;  %v413_v55 = vld [vmem:[%s6995_s1 + $0xbc8] sm:$0xff] }
  0x94   :  { %3177 = vmatprep.subr.bf16.mxu1 %v3176_v61  ;;  %v375_v61 = vld [vmem:[%s6995_s1 + $0xa98] sm:$0xff]  ;;  %v3198_v0 = vpack.c.bf16 %v370_v58, %v366_v56  ;;  %v410_v54 = vld [vmem:[%s6995_s1 + $0xbb0] sm:$0xff]  ;;  %v417_v56 = vld [vmem:[%s6995_s1 + $0xbe8] sm:$0xff] }
  0x95   :  { %v419_v58 = vld [vmem:[%s6995_s1 + $0xbf8] sm:$0xff] }
  0x96   :  { %2667 = vmatpush1.bf16.msra.mxu0 %v2666_v3  ;;  %v376_v3 = vld [vmem:[%s6995_s1 + $0xaa0] sm:$0xff]  ;;  %v27_v32 = vld [vmem:[%s6996_s0 + $0x38] sm:$0xff] }
  0x97   :  { %3179 = vmatpush1.bf16.msra.mxu1 %v3178_v4  ;;  %2669 = vmatprep.subr.bf16.mxu0 %v2668_v5  ;;  %v374_v4 = vld [vmem:[%s6995_s1 + $0xa90] sm:$0xff]  ;;  %v3200_v5 = vpack.c.bf16 %v379_v62, %v375_v61  ;;  %v2690_v11 = vpack.c.bf16 %v376_v3, %v372_v2  ;;  %v2708_v61 = vpack.c.bf16 %v417_v56, %v413_v55  ;;  %v412_v62 = vld [vmem:[%s6995_s1 + $0xbc0] sm:$0xff]  ;;  %v421_v3 = vld [vmem:[%s6995_s1 + $0xc08] sm:$0xff] }
  0x98   :  { %3181 = vmatprep.subr.bf16.mxu1 %v3180_v9  ;;  %v383_v9 = vld [vmem:[%s6995_s1 + $0xad8] sm:$0xff]  ;;  %v3202_v12 = vpack.c.bf16 %v378_v6, %v374_v4  ;;  %v418_v2 = vld [vmem:[%s6995_s1 + $0xbf0] sm:$0xff]  ;;  %v425_v4 = vld [vmem:[%s6995_s1 + $0xc28] sm:$0xff] }
  0x99   :  { %v427_v6 = vld [vmem:[%s6995_s1 + $0xc38] sm:$0xff] }
  0x9a   :  { %2671 = vmatpush1.bf16.msra.mxu0 %v2670_v15  ;;  %v384_v15 = vld [vmem:[%s6995_s1 + $0xae0] sm:$0xff]  ;;  %v447_v43 = vld [vmem:[%s6995_s1 + $0xcd8] sm:$0xff] }
  0x9b   :  { %3183 = vmatpush1.bf16.msra.mxu1 %v3182_v16  ;;  %2673 = vmatprep.subr.bf16.mxu0 %v2672_v17  ;;  %v382_v16 = vld [vmem:[%s6995_s1 + $0xad0] sm:$0xff]  ;;  %v3204_v17 = vpack.c.bf16 %v387_v10, %v383_v9  ;;  %v2694_v23 = vpack.c.bf16 %v384_v15, %v380_v14  ;;  %v2712_v9 = vpack.c.bf16 %v425_v4, %v421_v3  ;;  %v420_v10 = vld [vmem:[%s6995_s1 + $0xc00] sm:$0xff]  ;;  %v429_v15 = vld [vmem:[%s6995_s1 + $0xc48] sm:$0xff] }
  0x9c   :  { %3185 = vmatprep.subr.bf16.mxu1 %v3184_v21  ;;  %v391_v21 = vld [vmem:[%s6995_s1 + $0xb18] sm:$0xff]  ;;  %v3206_v24 = vpack.c.bf16 %v386_v18, %v382_v16  ;;  %v426_v14 = vld [vmem:[%s6995_s1 + $0xc30] sm:$0xff]  ;;  %v433_v16 = vld [vmem:[%s6995_s1 + $0xc68] sm:$0xff] }
  0x9d   :  { %v435_v18 = vld [vmem:[%s6995_s1 + $0xc78] sm:$0xff] }
  0x9e   :  { %2675 = vmatpush1.bf16.msra.mxu0 %v2674_v27  ;;  %v392_v27 = vld [vmem:[%s6995_s1 + $0xb20] sm:$0xff]  ;;  %v451_v44 = vld [vmem:[%s6995_s1 + $0xcf8] sm:$0xff] }
  0x9f   :  { %3187 = vmatpush1.bf16.msra.mxu1 %v3186_v28  ;;  %2677 = vmatprep.subr.bf16.mxu0 %v2676_v29  ;;  %v390_v28 = vld [vmem:[%s6995_s1 + $0xb10] sm:$0xff]  ;;  %v3208_v29 = vpack.c.bf16 %v395_v22, %v391_v21  ;;  %v2698_v35 = vpack.c.bf16 %v392_v27, %v388_v26  ;;  %v2716_v22 = vpack.c.bf16 %v433_v16, %v429_v15  ;;  %v455_v55 = vld [vmem:[%s6995_s1 + $0xd18] sm:$0xff] }
  0xa0   :  { %3189 = vmatprep.subr.bf16.mxu1 %v3188_v33  ;;  %v399_v33 = vld [vmem:[%s6995_s1 + $0xb58] sm:$0xff]  ;;  %v3210_v36 = vpack.c.bf16 %v394_v30, %v390_v28  ;;  %v434_v27 = vld [vmem:[%s6995_s1 + $0xc70] sm:$0xff]  ;;  %v437_v28 = vld [vmem:[%s6995_s1 + $0xc88] sm:$0xff] }
  0xa1   :  { %v439_v30 = vld [vmem:[%s6995_s1 + $0xc98] sm:$0xff] }
  0xa2   :  { %2679 = vmatpush1.bf16.msra.mxu0 %v2678_v39  ;;  %v400_v39 = vld [vmem:[%s6995_s1 + $0xb60] sm:$0xff]  ;;  %v459_v56 = vld [vmem:[%s6995_s1 + $0xd38] sm:$0xff] }
  0xa3   :  { %3191 = vmatpush1.bf16.msra.mxu1 %v3190_v40  ;;  %2681 = vmatprep.subr.bf16.mxu0 %v2680_v41  ;;  %v398_v40 = vld [vmem:[%s6995_s1 + $0xb50] sm:$0xff]  ;;  %v3212_v41 = vpack.c.bf16 %v403_v34, %v399_v33  ;;  %v2702_v47 = vpack.c.bf16 %v400_v39, %v396_v38  ;;  %v3232_v39 = vpack.c.bf16 %v443_v31, %v439_v30  ;;  %v463_v3 = vld [vmem:[%s6995_s1 + $0xd58] sm:$0xff] }
  0xa4   :  { %3193 = vmatprep.subr.bf16.mxu1 %v3192_v45  ;;  %v407_v45 = vld [vmem:[%s6995_s1 + $0xb98] sm:$0xff]  ;;  %v3214_v48 = vpack.c.bf16 %v402_v42, %v398_v40  ;;  %v438_v38 = vld [vmem:[%s6995_s1 + $0xc90] sm:$0xff]  ;;  %v449_v42 = vld [vmem:[%s6995_s1 + $0xce8] sm:$0xff] }
  0xa5   :  { %v442_v40 = vld [vmem:[%s6995_s1 + $0xcb0] sm:$0xff]  ;;  %v467_v4 = vld [vmem:[%s6995_s1 + $0xd78] sm:$0xff] }
  0xa6   :  { %2683 = vmatpush1.bf16.msra.mxu0 %v2682_v51  ;;  %v408_v51 = vld [vmem:[%s6995_s1 + $0xba0] sm:$0xff]  ;;  %v471_v15 = vld [vmem:[%s6995_s1 + $0xd98] sm:$0xff] }
  0xa7   :  { %3195 = vmatpush1.bf16.msra.mxu1 %v3194_v52  ;;  %2685 = vmatprep.subr.bf16.mxu0 %v2684_v53  ;;  %v406_v52 = vld [vmem:[%s6995_s1 + $0xb90] sm:$0xff]  ;;  %v3216_v53 = vpack.c.bf16 %v411_v46, %v407_v45  ;;  %v2706_v59 = vpack.c.bf16 %v408_v51, %v404_v50  ;;  %v3234_v46 = vpack.c.bf16 %v442_v40, %v438_v38  ;;  %v475_v16 = vld [vmem:[%s6995_s1 + $0xdb8] sm:$0xff]  ;;  %v489_v38 = vld [vmem:[%s6995_s1 + $0xe28] sm:$0xff] }
  0xa8   :  { %3197 = vmatprep.subr.bf16.mxu1 %v3196_v57  ;;  %v415_v57 = vld [vmem:[%s6995_s1 + $0xbd8] sm:$0xff]  ;;  %v3218_v60 = vpack.c.bf16 %v410_v54, %v406_v52  ;;  %v446_v50 = vld [vmem:[%s6995_s1 + $0xcd0] sm:$0xff]  ;;  %v3236_v51 = vpack.c.bf16 %v451_v44, %v447_v43  ;;  %v457_v54 = vld [vmem:[%s6995_s1 + $0xd28] sm:$0xff] }
  0xa9   :  { %v450_v52 = vld [vmem:[%s6995_s1 + $0xcf0] sm:$0xff]  ;;  %v491_v40 = vld [vmem:[%s6995_s1 + $0xe38] sm:$0xff]  ;;  %v484_v44 = vld [vmem:[%s6995_s1 + $0xe00] sm:$0xff] }
  0xaa   :  { %2687 = vmatpush1.bf16.msra.mxu0 %v2686_v63  ;;  %v416_v63 = vld [vmem:[%s6995_s1 + $0xbe0] sm:$0xff] }
  0xab   :  { %3199 = vmatpush1.bf16.msra.mxu1 %v3198_v0  ;;  %2689 = vmatprep.subr.bf16.mxu0 %v2688_v1  ;;  %v414_v0 = vld [vmem:[%s6995_s1 + $0xbd0] sm:$0xff]  ;;  %v3220_v1 = vpack.c.bf16 %v419_v58, %v415_v57  ;;  %v2710_v7 = vpack.c.bf16 %v416_v63, %v412_v62  ;;  %v3238_v58 = vpack.c.bf16 %v450_v52, %v446_v50  ;;  %v497_v50 = vld [vmem:[%s6995_s1 + $0xe68] sm:$0xff]  ;;  %v499_v52 = vld [vmem:[%s6995_s1 + $0xe78] sm:$0xff] }
  0xac   :  { %3201 = vmatprep.subr.bf16.mxu1 %v3200_v5  ;;  %v423_v5 = vld [vmem:[%s6995_s1 + $0xc18] sm:$0xff]  ;;  %v3222_v8 = vpack.c.bf16 %v418_v2, %v414_v0  ;;  %v454_v62 = vld [vmem:[%s6995_s1 + $0xd10] sm:$0xff]  ;;  %v3240_v63 = vpack.c.bf16 %v459_v56, %v455_v55  ;;  %v465_v2 = vld [vmem:[%s6995_s1 + $0xd68] sm:$0xff] }
  0xad   :  { %v458_v0 = vld [vmem:[%s6995_s1 + $0xd30] sm:$0xff]  ;;  %v492_v56 = vld [vmem:[%s6995_s1 + $0xe40] sm:$0xff] }
  0xae   :  { %2691 = vmatpush1.bf16.msra.mxu0 %v2690_v11  ;;  %v424_v11 = vld [vmem:[%s6995_s1 + $0xc20] sm:$0xff] }
  0xaf   :  { %3203 = vmatpush1.bf16.msra.mxu1 %v3202_v12  ;;  %2693 = vmatprep.subr.bf16.mxu0 %v2692_v13  ;;  %v422_v12 = vld [vmem:[%s6995_s1 + $0xc10] sm:$0xff]  ;;  %v3224_v13 = vpack.c.bf16 %v427_v6, %v423_v5  ;;  %v2714_v20 = vpack.c.bf16 %v424_v11, %v420_v10  ;;  %v3242_v6 = vpack.c.bf16 %v458_v0, %v454_v62  ;;  %v505_v62 = vld [vmem:[%s6995_s1 + $0xea8] sm:$0xff]  ;;  %v507_v0 = vld [vmem:[%s6995_s1 + $0xeb8] sm:$0xff] }
  0xb0   :  { %3205 = vmatprep.subr.bf16.mxu1 %v3204_v17  ;;  %v431_v17 = vld [vmem:[%s6995_s1 + $0xc58] sm:$0xff]  ;;  %v3226_v21 = vpack.c.bf16 %v426_v14, %v422_v12  ;;  %v462_v10 = vld [vmem:[%s6995_s1 + $0xd50] sm:$0xff]  ;;  %v3244_v11 = vpack.c.bf16 %v467_v4, %v463_v3  ;;  %v473_v14 = vld [vmem:[%s6995_s1 + $0xda8] sm:$0xff] }
  0xb1   :  { %v3228_v26 = vpack.c.bf16 %v435_v18, %v431_v17  ;;  %v466_v12 = vld [vmem:[%s6995_s1 + $0xd70] sm:$0xff]  ;;  %v500_v4 = vld [vmem:[%s6995_s1 + $0xe80] sm:$0xff] }
  0xb2   :  { %2695 = vmatpush1.bf16.msra.mxu0 %v2694_v23  ;;  %v428_v23 = vld [vmem:[%s6995_s1 + $0xc40] sm:$0xff]  ;;  %v3246_v18 = vpack.c.bf16 %v466_v12, %v462_v10  ;;  %v513_v10 = vld [vmem:[%s6995_s1 + $0xee8] sm:$0xff]  ;;  %v515_v12 = vld [vmem:[%s6995_s1 + $0xef8] sm:$0xff] }
  0xb3   :  { %3207 = vmatpush1.bf16.msra.mxu1 %v3206_v24  ;;  %2697 = vmatprep.subr.bf16.mxu0 %v2696_v25  ;;  %v432_v24 = vld [vmem:[%s6995_s1 + $0xc60] sm:$0xff]  ;;  %v430_v25 = vld [vmem:[%s6995_s1 + $0xc50] sm:$0xff] }
  0xb4   :  { %3209 = vmatprep.subr.bf16.mxu1 %v3208_v29  ;;  %v441_v29 = vld [vmem:[%s6995_s1 + $0xca8] sm:$0xff]  ;;  %v2718_v33 = vpack.c.bf16 %v432_v24, %v428_v23  ;;  %v3230_v34 = vpack.c.bf16 %v434_v27, %v430_v25  ;;  %v3248_v23 = vpack.c.bf16 %v475_v16, %v471_v15  ;;  %v474_v24 = vld [vmem:[%s6995_s1 + $0xdb0] sm:$0xff]  ;;  %v479_v27 = vld [vmem:[%s6995_s1 + $0xdd8] sm:$0xff] }
  0xb5   :  { %v477_v25 = vld [vmem:[%s6995_s1 + $0xdc8] sm:$0xff]  ;;  %v508_v16 = vld [vmem:[%s6995_s1 + $0xec0] sm:$0xff] }
  0xb6   :  { %2699 = vmatpush1.bf16.msra.mxu0 %v2698_v35  ;;  %v2720_v35 = vpack.c.bf16 %v441_v29, %v437_v28  ;;  %v483_v28 = vld [vmem:[%s6995_s1 + $0xdf8] sm:$0xff] }
  0xb7   :  { %3211 = vmatpush1.bf16.msra.mxu1 %v3210_v36  ;;  %2701 = vmatprep.subr.bf16.mxu0 %v2700_v37  ;;  %v436_v36 = vld [vmem:[%s6995_s1 + $0xc80] sm:$0xff] }
  0xb8   :  { %3213 = vmatprep.subr.bf16.mxu1 %v3212_v41  ;;  %v440_v37 = vld [vmem:[%s6995_s1 + $0xca0] sm:$0xff]  ;;  %v445_v41 = vld [vmem:[%s6995_s1 + $0xcc8] sm:$0xff] }
  0xb9   :  { %v2722_v45 = vpack.c.bf16 %v440_v37, %v436_v36  ;;  %v482_v36 = vld [vmem:[%s6995_s1 + $0xdf0] sm:$0xff]  ;;  %v485_v37 = vld [vmem:[%s6995_s1 + $0xe08] sm:$0xff] }
  0xba   :  { %2703 = vmatpush1.bf16.msra.mxu0 %v2702_v47  ;;  %v2724_v47 = vpack.c.bf16 %v449_v42, %v445_v41  ;;  %v2744_v43 = vpack.c.bf16 %v489_v38, %v485_v37 }
  0xbb   :  { %3215 = vmatpush1.bf16.msra.mxu1 %v3214_v48  ;;  %2705 = vmatprep.subr.bf16.mxu0 %v2704_v49  ;;  %v444_v48 = vld [vmem:[%s6995_s1 + $0xcc0] sm:$0xff] }
  0xbc   :  { %3217 = vmatprep.subr.bf16.mxu1 %v3216_v53  ;;  %v448_v49 = vld [vmem:[%s6995_s1 + $0xce0] sm:$0xff]  ;;  %v453_v53 = vld [vmem:[%s6995_s1 + $0xd08] sm:$0xff] }
  0xbd   :  { %v2726_v57 = vpack.c.bf16 %v448_v49, %v444_v48  ;;  %v490_v48 = vld [vmem:[%s6995_s1 + $0xe30] sm:$0xff]  ;;  %v493_v49 = vld [vmem:[%s6995_s1 + $0xe48] sm:$0xff] }
  0xbe   :  { %2707 = vmatpush1.bf16.msra.mxu0 %v2706_v59  ;;  %v2728_v59 = vpack.c.bf16 %v457_v54, %v453_v53  ;;  %v2748_v55 = vpack.c.bf16 %v497_v50, %v493_v49 }
  0xbf   :  { %3219 = vmatpush1.bf16.msra.mxu1 %v3218_v60  ;;  %2709 = vmatprep.subr.bf16.mxu0 %v2708_v61  ;;  %v452_v60 = vld [vmem:[%s6995_s1 + $0xd00] sm:$0xff] }
  0xc0   :  { %3221 = vmatprep.subr.bf16.mxu1 %v3220_v1  ;;  %v456_v61 = vld [vmem:[%s6995_s1 + $0xd20] sm:$0xff]  ;;  %v461_v1 = vld [vmem:[%s6995_s1 + $0xd48] sm:$0xff] }
  0xc1   :  { %v2730_v5 = vpack.c.bf16 %v456_v61, %v452_v60  ;;  %v498_v60 = vld [vmem:[%s6995_s1 + $0xe70] sm:$0xff]  ;;  %v501_v61 = vld [vmem:[%s6995_s1 + $0xe88] sm:$0xff] }
  0xc2   :  { %2711 = vmatpush1.bf16.msra.mxu0 %v2710_v7  ;;  %v2732_v7 = vpack.c.bf16 %v465_v2, %v461_v1  ;;  %v2752_v3 = vpack.c.bf16 %v505_v62, %v501_v61 }
  0xc3   :  { %3223 = vmatpush1.bf16.msra.mxu1 %v3222_v8  ;;  %2713 = vmatprep.subr.bf16.mxu0 %v2712_v9  ;;  %v460_v8 = vld [vmem:[%s6995_s1 + $0xd40] sm:$0xff] }
  0xc4   :  { %3225 = vmatprep.subr.bf16.mxu1 %v3224_v13  ;;  %v464_v9 = vld [vmem:[%s6995_s1 + $0xd60] sm:$0xff]  ;;  %v469_v13 = vld [vmem:[%s6995_s1 + $0xd88] sm:$0xff] }
  0xc5   :  { %1289 = vmatmul.mubr.f32.vlgmr.msra.gmra.mrb[0].mxu0 %v24_v19  ;;  %v2734_v17 = vpack.c.bf16 %v464_v9, %v460_v8  ;;  %v506_v8 = vld [vmem:[%s6995_s1 + $0xeb0] sm:$0xff]  ;;  %v509_v9 = vld [vmem:[%s6995_s1 + $0xec8] sm:$0xff] }
  0xc6   :  { %2715 = vmatpush1.bf16.msra.mxu0 %v2714_v20  ;;  %1857 = vmatmul.mubr.f32.vlgmr.msra.gmra.mrb[0].mxu1 %v24_v19  ;;  %v2736_v19 = vpack.c.bf16 %v473_v14, %v469_v13  ;;  %v468_v20 = vld [vmem:[%s6995_s1 + $0xd80] sm:$0xff]  ;;  %v2756_v15 = vpack.c.bf16 %v513_v10, %v509_v9 }
  0xc7   :  { %3227 = vmatpush1.bf16.msra.mxu1 %v3226_v21  ;;  %2717 = vmatprep.subr.bf16.mxu0 %v2716_v22  ;;  %v472_v21 = vld [vmem:[%s6995_s1 + $0xda0] sm:$0xff]  ;;  %v470_v22 = vld [vmem:[%s6995_s1 + $0xd90] sm:$0xff] }
  0xc8   :  { %3229 = vmatprep.subr.bf16.mxu1 %v3228_v26  ;;  %1359 = vmatprep.mubr.f32.mxu0 %v27_v32  ;;  %v481_v26 = vld [vmem:[%s6995_s1 + $0xde8] sm:$0xff]  ;;  %v2738_v29 = vpack.c.bf16 %v472_v21, %v468_v20  ;;  %v3250_v30 = vpack.c.bf16 %v474_v24, %v470_v22  ;;  %v514_v20 = vld [vmem:[%s6995_s1 + $0xef0] sm:$0xff]  ;;  %v523_v24 = vld [vmem:[%s6995_s1 + $0xf38] sm:$0xff] }
  0xc9   :  { %1927 = vmatprep.mubr.f32.mxu1 %v27_v32  ;;  %v2740_v31 = vpack.c.bf16 %v481_v26, %v477_v25  ;;  %v476_v32 = vld [vmem:[%s6995_s1 + $0xdc0] sm:$0xff]  ;;  %v517_v21 = vld [vmem:[%s6995_s1 + $0xf08] sm:$0xff] }
  0xca   :  { %2719 = vmatpush1.bf16.msra.mxu0 %v2718_v33  ;;  %v480_v33 = vld [vmem:[%s6995_s1 + $0xde0] sm:$0xff]  ;;  %v521_v22 = vld [vmem:[%s6995_s1 + $0xf28] sm:$0xff] }
  0xcb   :  { %3231 = vmatpush1.bf16.msra.mxu1 %v3230_v34  ;;  %2721 = vmatprep.subr.bf16.mxu0 %v2720_v35  ;;  %v478_v34 = vld [vmem:[%s6995_s1 + $0xdd0] sm:$0xff]  ;;  %v3252_v35 = vpack.c.bf16 %v483_v28, %v479_v27  ;;  %v2742_v41 = vpack.c.bf16 %v480_v33, %v476_v32  ;;  %v2760_v27 = vpack.c.bf16 %v521_v22, %v517_v21  ;;  %v516_v28 = vld [vmem:[%s6995_s1 + $0xf00] sm:$0xff]  ;;  %v525_v33 = vld [vmem:[%s6995_s1 + $0xf48] sm:$0xff] }
  0xcc   :  { %3233 = vmatprep.subr.bf16.mxu1 %v3232_v39  ;;  %v487_v39 = vld [vmem:[%s6995_s1 + $0xe18] sm:$0xff]  ;;  %v3254_v42 = vpack.c.bf16 %v482_v36, %v478_v34  ;;  %v522_v32 = vld [vmem:[%s6995_s1 + $0xf30] sm:$0xff]  ;;  %v529_v34 = vld [vmem:[%s6995_s1 + $0xf68] sm:$0xff] }
  0xcd   :  { %v531_v36 = vld [vmem:[%s6995_s1 + $0xf78] sm:$0xff]  ;;  %v26_v21 = vld [vmem:[%s6996_s0 + $0x30] sm:$0xff] }
  0xce   :  { %2723 = vmatpush1.bf16.msra.mxu0 %v2722_v45  ;;  %v488_v45 = vld [vmem:[%s6995_s1 + $0xe20] sm:$0xff] }
  0xcf   :  { %3235 = vmatpush1.bf16.msra.mxu1 %v3234_v46  ;;  %2725 = vmatprep.subr.bf16.mxu0 %v2724_v47  ;;  %v486_v46 = vld [vmem:[%s6995_s1 + $0xe10] sm:$0xff]  ;;  %v3256_v47 = vpack.c.bf16 %v491_v40, %v487_v39  ;;  %v2746_v53 = vpack.c.bf16 %v488_v45, %v484_v44  ;;  %v2764_v39 = vpack.c.bf16 %v529_v34, %v525_v33  ;;  %v524_v40 = vld [vmem:[%s6995_s1 + $0xf40] sm:$0xff]  ;;  %v533_v45 = vld [vmem:[%s6995_s1 + $0xf88] sm:$0xff] }
  0xd0   :  { %3237 = vmatprep.subr.bf16.mxu1 %v3236_v51  ;;  %v495_v51 = vld [vmem:[%s6995_s1 + $0xe58] sm:$0xff]  ;;  %v3258_v54 = vpack.c.bf16 %v490_v48, %v486_v46  ;;  %v530_v44 = vld [vmem:[%s6995_s1 + $0xf70] sm:$0xff]  ;;  %v537_v46 = vld [vmem:[%s6995_s1 + $0xfa8] sm:$0xff] }
  0xd1   :  { %v539_v48 = vld [vmem:[%s6995_s1 + $0xfb8] sm:$0xff]  ;;  %v29_v34 = vld [vmem:[%s6996_s0 + $0x48] sm:$0xff] }
  0xd2   :  { %2727 = vmatpush1.bf16.msra.mxu0 %v2726_v57  ;;  %v496_v57 = vld [vmem:[%s6995_s1 + $0xe60] sm:$0xff]  ;;  %v571_v33 = vld [vmem:[%s6995_s1 + $0x10b8] sm:$0xff] }
  0xd3   :  { %3239 = vmatpush1.bf16.msra.mxu1 %v3238_v58  ;;  %2729 = vmatprep.subr.bf16.mxu0 %v2728_v59  ;;  %v494_v58 = vld [vmem:[%s6995_s1 + $0xe50] sm:$0xff]  ;;  %v3260_v59 = vpack.c.bf16 %v499_v52, %v495_v51  ;;  %v2750_v1 = vpack.c.bf16 %v496_v57, %v492_v56  ;;  %v2768_v51 = vpack.c.bf16 %v537_v46, %v533_v45  ;;  %v532_v52 = vld [vmem:[%s6995_s1 + $0xf80] sm:$0xff]  ;;  %v541_v57 = vld [vmem:[%s6995_s1 + $0xfc8] sm:$0xff] }
  0xd4   :  { %3241 = vmatprep.subr.bf16.mxu1 %v3240_v63  ;;  %v503_v63 = vld [vmem:[%s6995_s1 + $0xe98] sm:$0xff]  ;;  %v3262_v2 = vpack.c.bf16 %v498_v60, %v494_v58  ;;  %v538_v56 = vld [vmem:[%s6995_s1 + $0xfb0] sm:$0xff]  ;;  %v545_v58 = vld [vmem:[%s6995_s1 + $0xfe8] sm:$0xff] }
  0xd5   :  { %v547_v60 = vld [vmem:[%s6995_s1 + $0xff8] sm:$0xff] }
  0xd6   :  { %2731 = vmatpush1.bf16.msra.mxu0 %v2730_v5  ;;  %v504_v5 = vld [vmem:[%s6995_s1 + $0xea0] sm:$0xff]  ;;  %v575_v45 = vld [vmem:[%s6995_s1 + $0x10d8] sm:$0xff] }
  0xd7   :  { %3243 = vmatpush1.bf16.msra.mxu1 %v3242_v6  ;;  %2733 = vmatprep.subr.bf16.mxu0 %v2732_v7  ;;  %v502_v6 = vld [vmem:[%s6995_s1 + $0xe90] sm:$0xff]  ;;  %v3264_v7 = vpack.c.bf16 %v507_v0, %v503_v63  ;;  %v2754_v13 = vpack.c.bf16 %v504_v5, %v500_v4  ;;  %v2772_v63 = vpack.c.bf16 %v545_v58, %v541_v57  ;;  %v540_v0 = vld [vmem:[%s6995_s1 + $0xfc0] sm:$0xff]  ;;  %v549_v5 = vld [vmem:[%s6995_s1 + $0x1008] sm:$0xff] }
  0xd8   :  { %3245 = vmatprep.subr.bf16.mxu1 %v3244_v11  ;;  %v511_v11 = vld [vmem:[%s6995_s1 + $0xed8] sm:$0xff]  ;;  %v3266_v14 = vpack.c.bf16 %v506_v8, %v502_v6  ;;  %v546_v4 = vld [vmem:[%s6995_s1 + $0xff0] sm:$0xff]  ;;  %v553_v6 = vld [vmem:[%s6995_s1 + $0x1028] sm:$0xff] }
  0xd9   :  { %v555_v8 = vld [vmem:[%s6995_s1 + $0x1038] sm:$0xff] }
  0xda   :  { %2735 = vmatpush1.bf16.msra.mxu0 %v2734_v17  ;;  %v512_v17 = vld [vmem:[%s6995_s1 + $0xee0] sm:$0xff]  ;;  %v579_v46 = vld [vmem:[%s6995_s1 + $0x10f8] sm:$0xff] }
  0xdb   :  { %3247 = vmatpush1.bf16.msra.mxu1 %v3246_v18  ;;  %2737 = vmatprep.subr.bf16.mxu0 %v2736_v19  ;;  %v510_v18 = vld [vmem:[%s6995_s1 + $0xed0] sm:$0xff]  ;;  %v3268_v19 = vpack.c.bf16 %v515_v12, %v511_v11  ;;  %v2758_v25 = vpack.c.bf16 %v512_v17, %v508_v16  ;;  %v2776_v11 = vpack.c.bf16 %v553_v6, %v549_v5  ;;  %v548_v12 = vld [vmem:[%s6995_s1 + $0x1000] sm:$0xff]  ;;  %v557_v17 = vld [vmem:[%s6995_s1 + $0x1048] sm:$0xff] }
  0xdc   :  { %3249 = vmatprep.subr.bf16.mxu1 %v3248_v23  ;;  %v519_v23 = vld [vmem:[%s6995_s1 + $0xf18] sm:$0xff]  ;;  %v3270_v26 = vpack.c.bf16 %v514_v20, %v510_v18  ;;  %v554_v16 = vld [vmem:[%s6995_s1 + $0x1030] sm:$0xff]  ;;  %v561_v18 = vld [vmem:[%s6995_s1 + $0x1068] sm:$0xff] }
  0xdd   :  { %v563_v20 = vld [vmem:[%s6995_s1 + $0x1078] sm:$0xff] }
  0xde   :  { %2739 = vmatpush1.bf16.msra.mxu0 %v2738_v29  ;;  %v520_v29 = vld [vmem:[%s6995_s1 + $0xf20] sm:$0xff]  ;;  %v583_v57 = vld [vmem:[%s6995_s1 + $0x1118] sm:$0xff] }
  0xdf   :  { %3251 = vmatpush1.bf16.msra.mxu1 %v3250_v30  ;;  %2741 = vmatprep.subr.bf16.mxu0 %v2740_v31  ;;  %v518_v30 = vld [vmem:[%s6995_s1 + $0xf10] sm:$0xff]  ;;  %v3272_v31 = vpack.c.bf16 %v523_v24, %v519_v23  ;;  %v2762_v37 = vpack.c.bf16 %v520_v29, %v516_v28  ;;  %v2780_v24 = vpack.c.bf16 %v561_v18, %v557_v17  ;;  %v587_v58 = vld [vmem:[%s6995_s1 + $0x1138] sm:$0xff] }
  0xe0   :  { %3253 = vmatprep.subr.bf16.mxu1 %v3252_v35  ;;  %v527_v35 = vld [vmem:[%s6995_s1 + $0xf58] sm:$0xff]  ;;  %v3274_v38 = vpack.c.bf16 %v522_v32, %v518_v30  ;;  %v562_v29 = vld [vmem:[%s6995_s1 + $0x1070] sm:$0xff]  ;;  %v565_v30 = vld [vmem:[%s6995_s1 + $0x1088] sm:$0xff] }
  0xe1   :  { %v567_v32 = vld [vmem:[%s6995_s1 + $0x1098] sm:$0xff] }
  0xe2   :  { %2743 = vmatpush1.bf16.msra.mxu0 %v2742_v41  ;;  %v528_v41 = vld [vmem:[%s6995_s1 + $0xf60] sm:$0xff]  ;;  %v591_v5 = vld [vmem:[%s6995_s1 + $0x1158] sm:$0xff] }
  0xe3   :  { %3255 = vmatpush1.bf16.msra.mxu1 %v3254_v42  ;;  %2745 = vmatprep.subr.bf16.mxu0 %v2744_v43  ;;  %v526_v42 = vld [vmem:[%s6995_s1 + $0xf50] sm:$0xff]  ;;  %v3276_v43 = vpack.c.bf16 %v531_v36, %v527_v35  ;;  %v2766_v49 = vpack.c.bf16 %v528_v41, %v524_v40  ;;  %v3296_v41 = vpack.c.bf16 %v571_v33, %v567_v32  ;;  %v595_v6 = vld [vmem:[%s6995_s1 + $0x1178] sm:$0xff] }
  0xe4   :  { %3257 = vmatprep.subr.bf16.mxu1 %v3256_v47  ;;  %v535_v47 = vld [vmem:[%s6995_s1 + $0xf98] sm:$0xff]  ;;  %v3278_v50 = vpack.c.bf16 %v530_v44, %v526_v42  ;;  %v566_v40 = vld [vmem:[%s6995_s1 + $0x1090] sm:$0xff]  ;;  %v577_v44 = vld [vmem:[%s6995_s1 + $0x10e8] sm:$0xff] }
  0xe5   :  { %v570_v42 = vld [vmem:[%s6995_s1 + $0x10b0] sm:$0xff]  ;;  %v599_v17 = vld [vmem:[%s6995_s1 + $0x1198] sm:$0xff] }
  0xe6   :  { %2747 = vmatpush1.bf16.msra.mxu0 %v2746_v53  ;;  %v536_v53 = vld [vmem:[%s6995_s1 + $0xfa0] sm:$0xff]  ;;  %v603_v18 = vld [vmem:[%s6995_s1 + $0x11b8] sm:$0xff] }
  0xe7   :  { %3259 = vmatpush1.bf16.msra.mxu1 %v3258_v54  ;;  %2749 = vmatprep.subr.bf16.mxu0 %v2748_v55  ;;  %v534_v54 = vld [vmem:[%s6995_s1 + $0xf90] sm:$0xff]  ;;  %v3280_v55 = vpack.c.bf16 %v539_v48, %v535_v47  ;;  %v2770_v61 = vpack.c.bf16 %v536_v53, %v532_v52  ;;  %v3298_v48 = vpack.c.bf16 %v570_v42, %v566_v40  ;;  %v617_v40 = vld [vmem:[%s6995_s1 + $0x1228] sm:$0xff]  ;;  %v619_v42 = vld [vmem:[%s6995_s1 + $0x1238] sm:$0xff] }
  0xe8   :  { %3261 = vmatprep.subr.bf16.mxu1 %v3260_v59  ;;  %v543_v59 = vld [vmem:[%s6995_s1 + $0xfd8] sm:$0xff]  ;;  %v3282_v62 = vpack.c.bf16 %v538_v56, %v534_v54  ;;  %v574_v52 = vld [vmem:[%s6995_s1 + $0x10d0] sm:$0xff]  ;;  %v3300_v53 = vpack.c.bf16 %v579_v46, %v575_v45  ;;  %v585_v56 = vld [vmem:[%s6995_s1 + $0x1128] sm:$0xff] }
  0xe9   :  { %v578_v54 = vld [vmem:[%s6995_s1 + $0x10f0] sm:$0xff]  ;;  %v612_v46 = vld [vmem:[%s6995_s1 + $0x1200] sm:$0xff] }
  0xea   :  { %2751 = vmatpush1.bf16.msra.mxu0 %v2750_v1  ;;  %v544_v1 = vld [vmem:[%s6995_s1 + $0xfe0] sm:$0xff] }
  0xeb   :  { %3263 = vmatpush1.bf16.msra.mxu1 %v3262_v2  ;;  %2753 = vmatprep.subr.bf16.mxu0 %v2752_v3  ;;  %v542_v2 = vld [vmem:[%s6995_s1 + $0xfd0] sm:$0xff]  ;;  %v3284_v3 = vpack.c.bf16 %v547_v60, %v543_v59  ;;  %v2774_v9 = vpack.c.bf16 %v544_v1, %v540_v0  ;;  %v3302_v60 = vpack.c.bf16 %v578_v54, %v574_v52  ;;  %v625_v52 = vld [vmem:[%s6995_s1 + $0x1268] sm:$0xff]  ;;  %v627_v54 = vld [vmem:[%s6995_s1 + $0x1278] sm:$0xff] }
  0xec   :  { %3265 = vmatprep.subr.bf16.mxu1 %v3264_v7  ;;  %v551_v7 = vld [vmem:[%s6995_s1 + $0x1018] sm:$0xff]  ;;  %v3286_v10 = vpack.c.bf16 %v546_v4, %v542_v2  ;;  %v582_v0 = vld [vmem:[%s6995_s1 + $0x1110] sm:$0xff]  ;;  %v3304_v1 = vpack.c.bf16 %v587_v58, %v583_v57  ;;  %v593_v4 = vld [vmem:[%s6995_s1 + $0x1168] sm:$0xff] }
  0xed   :  { %v586_v2 = vld [vmem:[%s6995_s1 + $0x1130] sm:$0xff]  ;;  %v620_v58 = vld [vmem:[%s6995_s1 + $0x1240] sm:$0xff] }
  0xee   :  { %2755 = vmatpush1.bf16.msra.mxu0 %v2754_v13  ;;  %v552_v13 = vld [vmem:[%s6995_s1 + $0x1020] sm:$0xff] }
  0xef   :  { %3267 = vmatpush1.bf16.msra.mxu1 %v3266_v14  ;;  %2757 = vmatprep.subr.bf16.mxu0 %v2756_v15  ;;  %v550_v14 = vld [vmem:[%s6995_s1 + $0x1010] sm:$0xff]  ;;  %v3288_v15 = vpack.c.bf16 %v555_v8, %v551_v7  ;;  %v2778_v22 = vpack.c.bf16 %v552_v13, %v548_v12  ;;  %v3306_v8 = vpack.c.bf16 %v586_v2, %v582_v0  ;;  %v633_v0 = vld [vmem:[%s6995_s1 + $0x12a8] sm:$0xff]  ;;  %v635_v2 = vld [vmem:[%s6995_s1 + $0x12b8] sm:$0xff] }
  0xf0   :  { %3269 = vmatprep.subr.bf16.mxu1 %v3268_v19  ;;  %v559_v19 = vld [vmem:[%s6995_s1 + $0x1058] sm:$0xff]  ;;  %v3290_v23 = vpack.c.bf16 %v554_v16, %v550_v14  ;;  %v590_v12 = vld [vmem:[%s6995_s1 + $0x1150] sm:$0xff]  ;;  %v3308_v13 = vpack.c.bf16 %v595_v6, %v591_v5  ;;  %v601_v16 = vld [vmem:[%s6995_s1 + $0x11a8] sm:$0xff] }
  0xf1   :  { %v3292_v28 = vpack.c.bf16 %v563_v20, %v559_v19  ;;  %v594_v14 = vld [vmem:[%s6995_s1 + $0x1170] sm:$0xff]  ;;  %v628_v6 = vld [vmem:[%s6995_s1 + $0x1280] sm:$0xff] }
  0xf2   :  { %2759 = vmatpush1.bf16.msra.mxu0 %v2758_v25  ;;  %v556_v25 = vld [vmem:[%s6995_s1 + $0x1040] sm:$0xff]  ;;  %v3310_v20 = vpack.c.bf16 %v594_v14, %v590_v12  ;;  %v641_v12 = vld [vmem:[%s6995_s1 + $0x12e8] sm:$0xff]  ;;  %v643_v14 = vld [vmem:[%s6995_s1 + $0x12f8] sm:$0xff] }
  0xf3   :  { %3271 = vmatpush1.bf16.msra.mxu1 %v3270_v26  ;;  %2761 = vmatprep.subr.bf16.mxu0 %v2760_v27  ;;  %v560_v26 = vld [vmem:[%s6995_s1 + $0x1060] sm:$0xff]  ;;  %v558_v27 = vld [vmem:[%s6995_s1 + $0x1050] sm:$0xff] }
  0xf4   :  { %3273 = vmatprep.subr.bf16.mxu1 %v3272_v31  ;;  %v569_v31 = vld [vmem:[%s6995_s1 + $0x10a8] sm:$0xff]  ;;  %v2782_v35 = vpack.c.bf16 %v560_v26, %v556_v25  ;;  %v3294_v36 = vpack.c.bf16 %v562_v29, %v558_v27  ;;  %v3312_v25 = vpack.c.bf16 %v603_v18, %v599_v17  ;;  %v602_v26 = vld [vmem:[%s6995_s1 + $0x11b0] sm:$0xff]  ;;  %v607_v29 = vld [vmem:[%s6995_s1 + $0x11d8] sm:$0xff] }
  0xf5   :  { %v605_v27 = vld [vmem:[%s6995_s1 + $0x11c8] sm:$0xff]  ;;  %v636_v18 = vld [vmem:[%s6995_s1 + $0x12c0] sm:$0xff] }
  0xf6   :  { %2763 = vmatpush1.bf16.msra.mxu0 %v2762_v37  ;;  %v2784_v37 = vpack.c.bf16 %v569_v31, %v565_v30  ;;  %v611_v30 = vld [vmem:[%s6995_s1 + $0x11f8] sm:$0xff] }
  0xf7   :  { %3275 = vmatpush1.bf16.msra.mxu1 %v3274_v38  ;;  %2765 = vmatprep.subr.bf16.mxu0 %v2764_v39  ;;  %v564_v38 = vld [vmem:[%s6995_s1 + $0x1080] sm:$0xff] }
  0xf8   :  { %3277 = vmatprep.subr.bf16.mxu1 %v3276_v43  ;;  %v568_v39 = vld [vmem:[%s6995_s1 + $0x10a0] sm:$0xff]  ;;  %v573_v43 = vld [vmem:[%s6995_s1 + $0x10c8] sm:$0xff] }
  0xf9   :  { %v2786_v47 = vpack.c.bf16 %v568_v39, %v564_v38  ;;  %v610_v38 = vld [vmem:[%s6995_s1 + $0x11f0] sm:$0xff]  ;;  %v613_v39 = vld [vmem:[%s6995_s1 + $0x1208] sm:$0xff] }
  0xfa   :  { %2767 = vmatpush1.bf16.msra.mxu0 %v2766_v49  ;;  %v2788_v49 = vpack.c.bf16 %v577_v44, %v573_v43  ;;  %v2808_v45 = vpack.c.bf16 %v617_v40, %v613_v39 }
  0xfb   :  { %3279 = vmatpush1.bf16.msra.mxu1 %v3278_v50  ;;  %2769 = vmatprep.subr.bf16.mxu0 %v2768_v51  ;;  %v572_v50 = vld [vmem:[%s6995_s1 + $0x10c0] sm:$0xff] }
  0xfc   :  { %3281 = vmatprep.subr.bf16.mxu1 %v3280_v55  ;;  %v576_v51 = vld [vmem:[%s6995_s1 + $0x10e0] sm:$0xff]  ;;  %v581_v55 = vld [vmem:[%s6995_s1 + $0x1108] sm:$0xff] }
  0xfd   :  { %v2790_v59 = vpack.c.bf16 %v576_v51, %v572_v50  ;;  %v618_v50 = vld [vmem:[%s6995_s1 + $0x1230] sm:$0xff]  ;;  %v621_v51 = vld [vmem:[%s6995_s1 + $0x1248] sm:$0xff] }
  0xfe   :  { %2771 = vmatpush1.bf16.msra.mxu0 %v2770_v61  ;;  %v2792_v61 = vpack.c.bf16 %v585_v56, %v581_v55  ;;  %v2812_v57 = vpack.c.bf16 %v625_v52, %v621_v51 }
  0xff   :  { %3283 = vmatpush1.bf16.msra.mxu1 %v3282_v62  ;;  %2773 = vmatprep.subr.bf16.mxu0 %v2772_v63  ;;  %v580_v62 = vld [vmem:[%s6995_s1 + $0x1100] sm:$0xff] }
 0x100   :  { %3285 = vmatprep.subr.bf16.mxu1 %v3284_v3  ;;  %v584_v63 = vld [vmem:[%s6995_s1 + $0x1120] sm:$0xff]  ;;  %v589_v3 = vld [vmem:[%s6995_s1 + $0x1148] sm:$0xff] }
 0x101   :  { %v2794_v7 = vpack.c.bf16 %v584_v63, %v580_v62  ;;  %v626_v62 = vld [vmem:[%s6995_s1 + $0x1270] sm:$0xff]  ;;  %v629_v63 = vld [vmem:[%s6995_s1 + $0x1288] sm:$0xff] }
 0x102   :  { %2775 = vmatpush1.bf16.msra.mxu0 %v2774_v9  ;;  %v2796_v9 = vpack.c.bf16 %v593_v4, %v589_v3  ;;  %v2816_v5 = vpack.c.bf16 %v633_v0, %v629_v63 }
 0x103   :  { %3287 = vmatpush1.bf16.msra.mxu1 %v3286_v10  ;;  %2777 = vmatprep.subr.bf16.mxu0 %v2776_v11  ;;  %v588_v10 = vld [vmem:[%s6995_s1 + $0x1140] sm:$0xff] }
 0x104   :  { %3289 = vmatprep.subr.bf16.mxu1 %v3288_v15  ;;  %v592_v11 = vld [vmem:[%s6995_s1 + $0x1160] sm:$0xff]  ;;  %v597_v15 = vld [vmem:[%s6995_s1 + $0x1188] sm:$0xff] }
 0x105   :  { %1360 = vmatmul.mubr.f32.vlgmr.msra.gmra.mrb[0].mxu0 %v26_v21  ;;  %v2798_v19 = vpack.c.bf16 %v592_v11, %v588_v10  ;;  %v634_v10 = vld [vmem:[%s6995_s1 + $0x12b0] sm:$0xff]  ;;  %v637_v11 = vld [vmem:[%s6995_s1 + $0x12c8] sm:$0xff] }
 0x106   :  { %2779 = vmatpush1.bf16.msra.mxu0 %v2778_v22  ;;  %1928 = vmatmul.mubr.f32.vlgmr.msra.gmra.mrb[0].mxu1 %v26_v21  ;;  %v2800_v21 = vpack.c.bf16 %v601_v16, %v597_v15  ;;  %v596_v22 = vld [vmem:[%s6995_s1 + $0x1180] sm:$0xff]  ;;  %v2820_v17 = vpack.c.bf16 %v641_v12, %v637_v11 }
 0x107   :  { %3291 = vmatpush1.bf16.msra.mxu1 %v3290_v23  ;;  %2781 = vmatprep.subr.bf16.mxu0 %v2780_v24  ;;  %v600_v23 = vld [vmem:[%s6995_s1 + $0x11a0] sm:$0xff]  ;;  %v598_v24 = vld [vmem:[%s6995_s1 + $0x1190] sm:$0xff] }
 0x108   :  { %3293 = vmatprep.subr.bf16.mxu1 %v3292_v28  ;;  %1430 = vmatprep.mubr.f32.mxu0 %v29_v34  ;;  %v609_v28 = vld [vmem:[%s6995_s1 + $0x11e8] sm:$0xff]  ;;  %v2802_v31 = vpack.c.bf16 %v600_v23, %v596_v22  ;;  %v3314_v32 = vpack.c.bf16 %v602_v26, %v598_v24  ;;  %v642_v22 = vld [vmem:[%s6995_s1 + $0x12f0] sm:$0xff]  ;;  %v651_v26 = vld [vmem:[%s6995_s1 + $0x1338] sm:$0xff] }
 0x109   :  { %1998 = vmatprep.mubr.f32.mxu1 %v29_v34  ;;  %v2804_v33 = vpack.c.bf16 %v609_v28, %v605_v27  ;;  %v604_v34 = vld [vmem:[%s6995_s1 + $0x11c0] sm:$0xff]  ;;  %v645_v23 = vld [vmem:[%s6995_s1 + $0x1308] sm:$0xff] }
 0x10a   :  { %2783 = vmatpush1.bf16.msra.mxu0 %v2782_v35  ;;  %v608_v35 = vld [vmem:[%s6995_s1 + $0x11e0] sm:$0xff]  ;;  %v649_v24 = vld [vmem:[%s6995_s1 + $0x1328] sm:$0xff] }
 0x10b   :  { %3295 = vmatpush1.bf16.msra.mxu1 %v3294_v36  ;;  %2785 = vmatprep.subr.bf16.mxu0 %v2784_v37  ;;  %v606_v36 = vld [vmem:[%s6995_s1 + $0x11d0] sm:$0xff]  ;;  %v3316_v37 = vpack.c.bf16 %v611_v30, %v607_v29  ;;  %v2806_v43 = vpack.c.bf16 %v608_v35, %v604_v34  ;;  %v2824_v29 = vpack.c.bf16 %v649_v24, %v645_v23  ;;  %v644_v30 = vld [vmem:[%s6995_s1 + $0x1300] sm:$0xff]  ;;  %v653_v35 = vld [vmem:[%s6995_s1 + $0x1348] sm:$0xff] }
 0x10c   :  { %3297 = vmatprep.subr.bf16.mxu1 %v3296_v41  ;;  %v615_v41 = vld [vmem:[%s6995_s1 + $0x1218] sm:$0xff]  ;;  %v3318_v44 = vpack.c.bf16 %v610_v38, %v606_v36  ;;  %v650_v34 = vld [vmem:[%s6995_s1 + $0x1330] sm:$0xff]  ;;  %v657_v36 = vld [vmem:[%s6995_s1 + $0x1368] sm:$0xff] }
 0x10d   :  { %v659_v38 = vld [vmem:[%s6995_s1 + $0x1378] sm:$0xff]  ;;  %v28_v23 = vld [vmem:[%s6996_s0 + $0x40] sm:$0xff] }
 0x10e   :  { %2787 = vmatpush1.bf16.msra.mxu0 %v2786_v47  ;;  %v616_v47 = vld [vmem:[%s6995_s1 + $0x1220] sm:$0xff] }
 0x10f   :  { %3299 = vmatpush1.bf16.msra.mxu1 %v3298_v48  ;;  %2789 = vmatprep.subr.bf16.mxu0 %v2788_v49  ;;  %v614_v48 = vld [vmem:[%s6995_s1 + $0x1210] sm:$0xff]  ;;  %v3320_v49 = vpack.c.bf16 %v619_v42, %v615_v41  ;;  %v2810_v55 = vpack.c.bf16 %v616_v47, %v612_v46  ;;  %v2828_v41 = vpack.c.bf16 %v657_v36, %v653_v35  ;;  %v652_v42 = vld [vmem:[%s6995_s1 + $0x1340] sm:$0xff]  ;;  %v661_v47 = vld [vmem:[%s6995_s1 + $0x1388] sm:$0xff] }
 0x110   :  { %3301 = vmatprep.subr.bf16.mxu1 %v3300_v53  ;;  %v623_v53 = vld [vmem:[%s6995_s1 + $0x1258] sm:$0xff]  ;;  %v3322_v56 = vpack.c.bf16 %v618_v50, %v614_v48  ;;  %v658_v46 = vld [vmem:[%s6995_s1 + $0x1370] sm:$0xff]  ;;  %v665_v48 = vld [vmem:[%s6995_s1 + $0x13a8] sm:$0xff] }
 0x111   :  { %v667_v50 = vld [vmem:[%s6995_s1 + $0x13b8] sm:$0xff] }
 0x112   :  { %2791 = vmatpush1.bf16.msra.mxu0 %v2790_v59  ;;  %v624_v59 = vld [vmem:[%s6995_s1 + $0x1260] sm:$0xff]  ;;  %v699_v35 = vld [vmem:[%s6995_s1 + $0x14b8] sm:$0xff] }
 0x113   :  { %3303 = vmatpush1.bf16.msra.mxu1 %v3302_v60  ;;  %2793 = vmatprep.subr.bf16.mxu0 %v2792_v61  ;;  %v622_v60 = vld [vmem:[%s6995_s1 + $0x1250] sm:$0xff]  ;;  %v3324_v61 = vpack.c.bf16 %v627_v54, %v623_v53  ;;  %v2814_v3 = vpack.c.bf16 %v624_v59, %v620_v58  ;;  %v2832_v53 = vpack.c.bf16 %v665_v48, %v661_v47  ;;  %v660_v54 = vld [vmem:[%s6995_s1 + $0x1380] sm:$0xff]  ;;  %v669_v59 = vld [vmem:[%s6995_s1 + $0x13c8] sm:$0xff] }
 0x114   :  { %3305 = vmatprep.subr.bf16.mxu1 %v3304_v1  ;;  %v631_v1 = vld [vmem:[%s6995_s1 + $0x1298] sm:$0xff]  ;;  %v3326_v4 = vpack.c.bf16 %v626_v62, %v622_v60  ;;  %v666_v58 = vld [vmem:[%s6995_s1 + $0x13b0] sm:$0xff]  ;;  %v673_v60 = vld [vmem:[%s6995_s1 + $0x13e8] sm:$0xff] }
 0x115   :  { %v675_v62 = vld [vmem:[%s6995_s1 + $0x13f8] sm:$0xff] }
 0x116   :  { %2795 = vmatpush1.bf16.msra.mxu0 %v2794_v7  ;;  %v632_v7 = vld [vmem:[%s6995_s1 + $0x12a0] sm:$0xff]  ;;  %v31_v36 = vld [vmem:[%s6996_s0 + $0x58] sm:$0xff] }
 0x117   :  { %3307 = vmatpush1.bf16.msra.mxu1 %v3306_v8  ;;  %2797 = vmatprep.subr.bf16.mxu0 %v2796_v9  ;;  %v630_v8 = vld [vmem:[%s6995_s1 + $0x1290] sm:$0xff]  ;;  %v3328_v9 = vpack.c.bf16 %v635_v2, %v631_v1  ;;  %v2818_v15 = vpack.c.bf16 %v632_v7, %v628_v6  ;;  %v2836_v1 = vpack.c.bf16 %v673_v60, %v669_v59  ;;  %v668_v2 = vld [vmem:[%s6995_s1 + $0x13c0] sm:$0xff]  ;;  %v677_v7 = vld [vmem:[%s6995_s1 + $0x1408] sm:$0xff] }
 0x118   :  { %3309 = vmatprep.subr.bf16.mxu1 %v3308_v13  ;;  %v639_v13 = vld [vmem:[%s6995_s1 + $0x12d8] sm:$0xff]  ;;  %v3330_v16 = vpack.c.bf16 %v634_v10, %v630_v8  ;;  %v674_v6 = vld [vmem:[%s6995_s1 + $0x13f0] sm:$0xff]  ;;  %v681_v8 = vld [vmem:[%s6995_s1 + $0x1428] sm:$0xff] }
 0x119   :  { %v683_v10 = vld [vmem:[%s6995_s1 + $0x1438] sm:$0xff] }
 0x11a   :  { %2799 = vmatpush1.bf16.msra.mxu0 %v2798_v19  ;;  %v640_v19 = vld [vmem:[%s6995_s1 + $0x12e0] sm:$0xff]  ;;  %v703_v47 = vld [vmem:[%s6995_s1 + $0x14d8] sm:$0xff] }
 0x11b   :  { %3311 = vmatpush1.bf16.msra.mxu1 %v3310_v20  ;;  %2801 = vmatprep.subr.bf16.mxu0 %v2800_v21  ;;  %v638_v20 = vld [vmem:[%s6995_s1 + $0x12d0] sm:$0xff]  ;;  %v3332_v21 = vpack.c.bf16 %v643_v14, %v639_v13  ;;  %v2822_v27 = vpack.c.bf16 %v640_v19, %v636_v18  ;;  %v2840_v13 = vpack.c.bf16 %v681_v8, %v677_v7  ;;  %v676_v14 = vld [vmem:[%s6995_s1 + $0x1400] sm:$0xff]  ;;  %v685_v19 = vld [vmem:[%s6995_s1 + $0x1448] sm:$0xff] }
 0x11c   :  { %3313 = vmatprep.subr.bf16.mxu1 %v3312_v25  ;;  %v647_v25 = vld [vmem:[%s6995_s1 + $0x1318] sm:$0xff]  ;;  %v3334_v28 = vpack.c.bf16 %v642_v22, %v638_v20  ;;  %v682_v18 = vld [vmem:[%s6995_s1 + $0x1430] sm:$0xff]  ;;  %v689_v20 = vld [vmem:[%s6995_s1 + $0x1468] sm:$0xff] }
 0x11d   :  { %v691_v22 = vld [vmem:[%s6995_s1 + $0x1478] sm:$0xff] }
 0x11e   :  { %2803 = vmatpush1.bf16.msra.mxu0 %v2802_v31  ;;  %v648_v31 = vld [vmem:[%s6995_s1 + $0x1320] sm:$0xff]  ;;  %v707_v48 = vld [vmem:[%s6995_s1 + $0x14f8] sm:$0xff] }
 0x11f   :  { %3315 = vmatpush1.bf16.msra.mxu1 %v3314_v32  ;;  %2805 = vmatprep.subr.bf16.mxu0 %v2804_v33  ;;  %v646_v32 = vld [vmem:[%s6995_s1 + $0x1310] sm:$0xff]  ;;  %v3336_v33 = vpack.c.bf16 %v651_v26, %v647_v25  ;;  %v2826_v39 = vpack.c.bf16 %v648_v31, %v644_v30  ;;  %v2844_v26 = vpack.c.bf16 %v689_v20, %v685_v19  ;;  %v711_v59 = vld [vmem:[%s6995_s1 + $0x1518] sm:$0xff] }
 0x120   :  { %3317 = vmatprep.subr.bf16.mxu1 %v3316_v37  ;;  %v655_v37 = vld [vmem:[%s6995_s1 + $0x1358] sm:$0xff]  ;;  %v3338_v40 = vpack.c.bf16 %v650_v34, %v646_v32  ;;  %v690_v31 = vld [vmem:[%s6995_s1 + $0x1470] sm:$0xff]  ;;  %v693_v32 = vld [vmem:[%s6995_s1 + $0x1488] sm:$0xff] }
 0x121   :  { %v695_v34 = vld [vmem:[%s6995_s1 + $0x1498] sm:$0xff] }
 0x122   :  { %2807 = vmatpush1.bf16.msra.mxu0 %v2806_v43  ;;  %v656_v43 = vld [vmem:[%s6995_s1 + $0x1360] sm:$0xff]  ;;  %v715_v60 = vld [vmem:[%s6995_s1 + $0x1538] sm:$0xff] }
 0x123   :  { %3319 = vmatpush1.bf16.msra.mxu1 %v3318_v44  ;;  %2809 = vmatprep.subr.bf16.mxu0 %v2808_v45  ;;  %v654_v44 = vld [vmem:[%s6995_s1 + $0x1350] sm:$0xff]  ;;  %v3340_v45 = vpack.c.bf16 %v659_v38, %v655_v37  ;;  %v2830_v51 = vpack.c.bf16 %v656_v43, %v652_v42  ;;  %v3360_v43 = vpack.c.bf16 %v699_v35, %v695_v34  ;;  %v719_v7 = vld [vmem:[%s6995_s1 + $0x1558] sm:$0xff] }
 0x124   :  { %3321 = vmatprep.subr.bf16.mxu1 %v3320_v49  ;;  %v663_v49 = vld [vmem:[%s6995_s1 + $0x1398] sm:$0xff]  ;;  %v3342_v52 = vpack.c.bf16 %v658_v46, %v654_v44  ;;  %v694_v42 = vld [vmem:[%s6995_s1 + $0x1490] sm:$0xff]  ;;  %v705_v46 = vld [vmem:[%s6995_s1 + $0x14e8] sm:$0xff] }
 0x125   :  { %v698_v44 = vld [vmem:[%s6995_s1 + $0x14b0] sm:$0xff]  ;;  %v723_v8 = vld [vmem:[%s6995_s1 + $0x1578] sm:$0xff] }
 0x126   :  { %2811 = vmatpush1.bf16.msra.mxu0 %v2810_v55  ;;  %v664_v55 = vld [vmem:[%s6995_s1 + $0x13a0] sm:$0xff]  ;;  %v727_v19 = vld [vmem:[%s6995_s1 + $0x1598] sm:$0xff] }
 0x127   :  { %3323 = vmatpush1.bf16.msra.mxu1 %v3322_v56  ;;  %2813 = vmatprep.subr.bf16.mxu0 %v2812_v57  ;;  %v662_v56 = vld [vmem:[%s6995_s1 + $0x1390] sm:$0xff]  ;;  %v3344_v57 = vpack.c.bf16 %v667_v50, %v663_v49  ;;  %v2834_v63 = vpack.c.bf16 %v664_v55, %v660_v54  ;;  %v3362_v50 = vpack.c.bf16 %v698_v44, %v694_v42  ;;  %v731_v20 = vld [vmem:[%s6995_s1 + $0x15b8] sm:$0xff]  ;;  %v745_v42 = vld [vmem:[%s6995_s1 + $0x1628] sm:$0xff] }
 0x128   :  { %3325 = vmatprep.subr.bf16.mxu1 %v3324_v61  ;;  %v671_v61 = vld [vmem:[%s6995_s1 + $0x13d8] sm:$0xff]  ;;  %v3346_v0 = vpack.c.bf16 %v666_v58, %v662_v56  ;;  %v702_v54 = vld [vmem:[%s6995_s1 + $0x14d0] sm:$0xff]  ;;  %v3364_v55 = vpack.c.bf16 %v707_v48, %v703_v47  ;;  %v713_v58 = vld [vmem:[%s6995_s1 + $0x1528] sm:$0xff] }
 0x129   :  { %v706_v56 = vld [vmem:[%s6995_s1 + $0x14f0] sm:$0xff]  ;;  %v747_v44 = vld [vmem:[%s6995_s1 + $0x1638] sm:$0xff]  ;;  %v740_v48 = vld [vmem:[%s6995_s1 + $0x1600] sm:$0xff] }
 0x12a   :  { %2815 = vmatpush1.bf16.msra.mxu0 %v2814_v3  ;;  %v672_v3 = vld [vmem:[%s6995_s1 + $0x13e0] sm:$0xff] }
 0x12b   :  { %3327 = vmatpush1.bf16.msra.mxu1 %v3326_v4  ;;  %2817 = vmatprep.subr.bf16.mxu0 %v2816_v5  ;;  %v670_v4 = vld [vmem:[%s6995_s1 + $0x13d0] sm:$0xff]  ;;  %v3348_v5 = vpack.c.bf16 %v675_v62, %v671_v61  ;;  %v2838_v11 = vpack.c.bf16 %v672_v3, %v668_v2  ;;  %v3366_v62 = vpack.c.bf16 %v706_v56, %v702_v54  ;;  %v753_v54 = vld [vmem:[%s6995_s1 + $0x1668] sm:$0xff]  ;;  %v755_v56 = vld [vmem:[%s6995_s1 + $0x1678] sm:$0xff] }
 0x12c   :  { %3329 = vmatprep.subr.bf16.mxu1 %v3328_v9  ;;  %v679_v9 = vld [vmem:[%s6995_s1 + $0x1418] sm:$0xff]  ;;  %v3350_v12 = vpack.c.bf16 %v674_v6, %v670_v4  ;;  %v710_v2 = vld [vmem:[%s6995_s1 + $0x1510] sm:$0xff]  ;;  %v3368_v3 = vpack.c.bf16 %v715_v60, %v711_v59  ;;  %v721_v6 = vld [vmem:[%s6995_s1 + $0x1568] sm:$0xff] }
 0x12d   :  { %v714_v4 = vld [vmem:[%s6995_s1 + $0x1530] sm:$0xff]  ;;  %v748_v60 = vld [vmem:[%s6995_s1 + $0x1640] sm:$0xff] }
 0x12e   :  { %2819 = vmatpush1.bf16.msra.mxu0 %v2818_v15  ;;  %v680_v15 = vld [vmem:[%s6995_s1 + $0x1420] sm:$0xff] }
 0x12f   :  { %3331 = vmatpush1.bf16.msra.mxu1 %v3330_v16  ;;  %2821 = vmatprep.subr.bf16.mxu0 %v2820_v17  ;;  %v678_v16 = vld [vmem:[%s6995_s1 + $0x1410] sm:$0xff]  ;;  %v3352_v17 = vpack.c.bf16 %v683_v10, %v679_v9  ;;  %v2842_v24 = vpack.c.bf16 %v680_v15, %v676_v14  ;;  %v3370_v10 = vpack.c.bf16 %v714_v4, %v710_v2  ;;  %v761_v2 = vld [vmem:[%s6995_s1 + $0x16a8] sm:$0xff]  ;;  %v763_v4 = vld [vmem:[%s6995_s1 + $0x16b8] sm:$0xff] }
 0x130   :  { %3333 = vmatprep.subr.bf16.mxu1 %v3332_v21  ;;  %v687_v21 = vld [vmem:[%s6995_s1 + $0x1458] sm:$0xff]  ;;  %v3354_v25 = vpack.c.bf16 %v682_v18, %v678_v16  ;;  %v718_v14 = vld [vmem:[%s6995_s1 + $0x1550] sm:$0xff]  ;;  %v3372_v15 = vpack.c.bf16 %v723_v8, %v719_v7  ;;  %v729_v18 = vld [vmem:[%s6995_s1 + $0x15a8] sm:$0xff] }
 0x131   :  { %v3356_v30 = vpack.c.bf16 %v691_v22, %v687_v21  ;;  %v722_v16 = vld [vmem:[%s6995_s1 + $0x1570] sm:$0xff]  ;;  %v756_v8 = vld [vmem:[%s6995_s1 + $0x1680] sm:$0xff] }
 0x132   :  { %2823 = vmatpush1.bf16.msra.mxu0 %v2822_v27  ;;  %v684_v27 = vld [vmem:[%s6995_s1 + $0x1440] sm:$0xff]  ;;  %v3374_v22 = vpack.c.bf16 %v722_v16, %v718_v14  ;;  %v769_v14 = vld [vmem:[%s6995_s1 + $0x16e8] sm:$0xff]  ;;  %v771_v16 = vld [vmem:[%s6995_s1 + $0x16f8] sm:$0xff] }
 0x133   :  { %3335 = vmatpush1.bf16.msra.mxu1 %v3334_v28  ;;  %2825 = vmatprep.subr.bf16.mxu0 %v2824_v29  ;;  %v688_v28 = vld [vmem:[%s6995_s1 + $0x1460] sm:$0xff]  ;;  %v686_v29 = vld [vmem:[%s6995_s1 + $0x1450] sm:$0xff] }
 0x134   :  { %3337 = vmatprep.subr.bf16.mxu1 %v3336_v33  ;;  %v697_v33 = vld [vmem:[%s6995_s1 + $0x14a8] sm:$0xff]  ;;  %v2846_v37 = vpack.c.bf16 %v688_v28, %v684_v27  ;;  %v3358_v38 = vpack.c.bf16 %v690_v31, %v686_v29  ;;  %v3376_v27 = vpack.c.bf16 %v731_v20, %v727_v19  ;;  %v730_v28 = vld [vmem:[%s6995_s1 + $0x15b0] sm:$0xff]  ;;  %v735_v31 = vld [vmem:[%s6995_s1 + $0x15d8] sm:$0xff] }
 0x135   :  { %v733_v29 = vld [vmem:[%s6995_s1 + $0x15c8] sm:$0xff]  ;;  %v764_v20 = vld [vmem:[%s6995_s1 + $0x16c0] sm:$0xff] }
 0x136   :  { %2827 = vmatpush1.bf16.msra.mxu0 %v2826_v39  ;;  %v2848_v39 = vpack.c.bf16 %v697_v33, %v693_v32  ;;  %v739_v32 = vld [vmem:[%s6995_s1 + $0x15f8] sm:$0xff] }
 0x137   :  { %3339 = vmatpush1.bf16.msra.mxu1 %v3338_v40  ;;  %2829 = vmatprep.subr.bf16.mxu0 %v2828_v41  ;;  %v692_v40 = vld [vmem:[%s6995_s1 + $0x1480] sm:$0xff] }
 0x138   :  { %3341 = vmatprep.subr.bf16.mxu1 %v3340_v45  ;;  %v696_v41 = vld [vmem:[%s6995_s1 + $0x14a0] sm:$0xff]  ;;  %v701_v45 = vld [vmem:[%s6995_s1 + $0x14c8] sm:$0xff] }
 0x139   :  { %v2850_v49 = vpack.c.bf16 %v696_v41, %v692_v40  ;;  %v738_v40 = vld [vmem:[%s6995_s1 + $0x15f0] sm:$0xff]  ;;  %v741_v41 = vld [vmem:[%s6995_s1 + $0x1608] sm:$0xff] }
 0x13a   :  { %2831 = vmatpush1.bf16.msra.mxu0 %v2830_v51  ;;  %v2852_v51 = vpack.c.bf16 %v705_v46, %v701_v45  ;;  %v2872_v47 = vpack.c.bf16 %v745_v42, %v741_v41 }
 0x13b   :  { %3343 = vmatpush1.bf16.msra.mxu1 %v3342_v52  ;;  %2833 = vmatprep.subr.bf16.mxu0 %v2832_v53  ;;  %v700_v52 = vld [vmem:[%s6995_s1 + $0x14c0] sm:$0xff] }
 0x13c   :  { %3345 = vmatprep.subr.bf16.mxu1 %v3344_v57  ;;  %v704_v53 = vld [vmem:[%s6995_s1 + $0x14e0] sm:$0xff]  ;;  %v709_v57 = vld [vmem:[%s6995_s1 + $0x1508] sm:$0xff] }
 0x13d   :  { %v2854_v61 = vpack.c.bf16 %v704_v53, %v700_v52  ;;  %v746_v52 = vld [vmem:[%s6995_s1 + $0x1630] sm:$0xff]  ;;  %v749_v53 = vld [vmem:[%s6995_s1 + $0x1648] sm:$0xff] }
 0x13e   :  { %2835 = vmatpush1.bf16.msra.mxu0 %v2834_v63  ;;  %v2856_v63 = vpack.c.bf16 %v713_v58, %v709_v57  ;;  %v2876_v59 = vpack.c.bf16 %v753_v54, %v749_v53 }
 0x13f   :  { %3347 = vmatpush1.bf16.msra.mxu1 %v3346_v0  ;;  %2837 = vmatprep.subr.bf16.mxu0 %v2836_v1  ;;  %v708_v0 = vld [vmem:[%s6995_s1 + $0x1500] sm:$0xff] }
 0x140   :  { %3349 = vmatprep.subr.bf16.mxu1 %v3348_v5  ;;  %v712_v1 = vld [vmem:[%s6995_s1 + $0x1520] sm:$0xff]  ;;  %v717_v5 = vld [vmem:[%s6995_s1 + $0x1548] sm:$0xff] }
 0x141   :  { %v2858_v9 = vpack.c.bf16 %v712_v1, %v708_v0  ;;  %v754_v0 = vld [vmem:[%s6995_s1 + $0x1670] sm:$0xff]  ;;  %v757_v1 = vld [vmem:[%s6995_s1 + $0x1688] sm:$0xff] }
 0x142   :  { %2839 = vmatpush1.bf16.msra.mxu0 %v2838_v11  ;;  %v2860_v11 = vpack.c.bf16 %v721_v6, %v717_v5  ;;  %v2880_v7 = vpack.c.bf16 %v761_v2, %v757_v1 }
 0x143   :  { %3351 = vmatpush1.bf16.msra.mxu1 %v3350_v12  ;;  %2841 = vmatprep.subr.bf16.mxu0 %v2840_v13  ;;  %v716_v12 = vld [vmem:[%s6995_s1 + $0x1540] sm:$0xff] }
 0x144   :  { %3353 = vmatprep.subr.bf16.mxu1 %v3352_v17  ;;  %v720_v13 = vld [vmem:[%s6995_s1 + $0x1560] sm:$0xff]  ;;  %v725_v17 = vld [vmem:[%s6995_s1 + $0x1588] sm:$0xff] }
 0x145   :  { %1431 = vmatmul.mubr.f32.vlgmr.msra.gmra.mrb[0].mxu0 %v28_v23  ;;  %v2862_v21 = vpack.c.bf16 %v720_v13, %v716_v12  ;;  %v762_v12 = vld [vmem:[%s6995_s1 + $0x16b0] sm:$0xff]  ;;  %v765_v13 = vld [vmem:[%s6995_s1 + $0x16c8] sm:$0xff] }
 0x146   :  { %2843 = vmatpush1.bf16.msra.mxu0 %v2842_v24  ;;  %1999 = vmatmul.mubr.f32.vlgmr.msra.gmra.mrb[0].mxu1 %v28_v23  ;;  %v2864_v23 = vpack.c.bf16 %v729_v18, %v725_v17  ;;  %v724_v24 = vld [vmem:[%s6995_s1 + $0x1580] sm:$0xff]  ;;  %v2884_v19 = vpack.c.bf16 %v769_v14, %v765_v13 }
 0x147   :  { %3355 = vmatpush1.bf16.msra.mxu1 %v3354_v25  ;;  %2845 = vmatprep.subr.bf16.mxu0 %v2844_v26  ;;  %v728_v25 = vld [vmem:[%s6995_s1 + $0x15a0] sm:$0xff]  ;;  %v726_v26 = vld [vmem:[%s6995_s1 + $0x1590] sm:$0xff] }
 0x148   :  { %3357 = vmatprep.subr.bf16.mxu1 %v3356_v30  ;;  %1501 = vmatprep.mubr.f32.mxu0 %v31_v36  ;;  %v737_v30 = vld [vmem:[%s6995_s1 + $0x15e8] sm:$0xff]  ;;  %v2866_v33 = vpack.c.bf16 %v728_v25, %v724_v24  ;;  %v3378_v34 = vpack.c.bf16 %v730_v28, %v726_v26  ;;  %v770_v24 = vld [vmem:[%s6995_s1 + $0x16f0] sm:$0xff]  ;;  %v779_v28 = vld [vmem:[%s6995_s1 + $0x1738] sm:$0xff] }
 0x149   :  { %2069 = vmatprep.mubr.f32.mxu1 %v31_v36  ;;  %v2868_v35 = vpack.c.bf16 %v737_v30, %v733_v29  ;;  %v732_v36 = vld [vmem:[%s6995_s1 + $0x15c0] sm:$0xff]  ;;  %v773_v25 = vld [vmem:[%s6995_s1 + $0x1708] sm:$0xff] }
 0x14a   :  { %2847 = vmatpush1.bf16.msra.mxu0 %v2846_v37  ;;  %v736_v37 = vld [vmem:[%s6995_s1 + $0x15e0] sm:$0xff]  ;;  %v777_v26 = vld [vmem:[%s6995_s1 + $0x1728] sm:$0xff] }
 0x14b   :  { %3359 = vmatpush1.bf16.msra.mxu1 %v3358_v38  ;;  %2849 = vmatprep.subr.bf16.mxu0 %v2848_v39  ;;  %v734_v38 = vld [vmem:[%s6995_s1 + $0x15d0] sm:$0xff]  ;;  %v3380_v39 = vpack.c.bf16 %v739_v32, %v735_v31  ;;  %v2870_v45 = vpack.c.bf16 %v736_v37, %v732_v36  ;;  %v2888_v31 = vpack.c.bf16 %v777_v26, %v773_v25  ;;  %v772_v32 = vld [vmem:[%s6995_s1 + $0x1700] sm:$0xff]  ;;  %v781_v37 = vld [vmem:[%s6995_s1 + $0x1748] sm:$0xff] }
 0x14c   :  { %3361 = vmatprep.subr.bf16.mxu1 %v3360_v43  ;;  %v743_v43 = vld [vmem:[%s6995_s1 + $0x1618] sm:$0xff]  ;;  %v3382_v46 = vpack.c.bf16 %v738_v40, %v734_v38  ;;  %v778_v36 = vld [vmem:[%s6995_s1 + $0x1730] sm:$0xff]  ;;  %v785_v38 = vld [vmem:[%s6995_s1 + $0x1768] sm:$0xff] }
 0x14d   :  { %v787_v40 = vld [vmem:[%s6995_s1 + $0x1778] sm:$0xff]  ;;  %v30_v25 = vld [vmem:[%s6996_s0 + $0x50] sm:$0xff] }
 0x14e   :  { %2851 = vmatpush1.bf16.msra.mxu0 %v2850_v49  ;;  %v744_v49 = vld [vmem:[%s6995_s1 + $0x1620] sm:$0xff] }
 0x14f   :  { %3363 = vmatpush1.bf16.msra.mxu1 %v3362_v50  ;;  %2853 = vmatprep.subr.bf16.mxu0 %v2852_v51  ;;  %v742_v50 = vld [vmem:[%s6995_s1 + $0x1610] sm:$0xff]  ;;  %v3384_v51 = vpack.c.bf16 %v747_v44, %v743_v43  ;;  %v2874_v57 = vpack.c.bf16 %v744_v49, %v740_v48  ;;  %v2892_v43 = vpack.c.bf16 %v785_v38, %v781_v37  ;;  %v780_v44 = vld [vmem:[%s6995_s1 + $0x1740] sm:$0xff]  ;;  %v789_v49 = vld [vmem:[%s6995_s1 + $0x1788] sm:$0xff] }
 0x150   :  { %3365 = vmatprep.subr.bf16.mxu1 %v3364_v55  ;;  %v751_v55 = vld [vmem:[%s6995_s1 + $0x1658] sm:$0xff]  ;;  %v3386_v58 = vpack.c.bf16 %v746_v52, %v742_v50  ;;  %v786_v48 = vld [vmem:[%s6995_s1 + $0x1770] sm:$0xff]  ;;  %v793_v50 = vld [vmem:[%s6995_s1 + $0x17a8] sm:$0xff] }
 0x151   :  { %v795_v52 = vld [vmem:[%s6995_s1 + $0x17b8] sm:$0xff]  ;;  %v33_v38 = vld [vmem:[%s6996_s0 + $0x68] sm:$0xff] }
 0x152   :  { %2855 = vmatpush1.bf16.msra.mxu0 %v2854_v61  ;;  %v752_v61 = vld [vmem:[%s6995_s1 + $0x1660] sm:$0xff]  ;;  %v827_v37 = vld [vmem:[%s6995_s1 + $0x18b8] sm:$0xff] }
 0x153   :  { %3367 = vmatpush1.bf16.msra.mxu1 %v3366_v62  ;;  %2857 = vmatprep.subr.bf16.mxu0 %v2856_v63  ;;  %v750_v62 = vld [vmem:[%s6995_s1 + $0x1650] sm:$0xff]  ;;  %v3388_v63 = vpack.c.bf16 %v755_v56, %v751_v55  ;;  %v2878_v5 = vpack.c.bf16 %v752_v61, %v748_v60  ;;  %v2896_v55 = vpack.c.bf16 %v793_v50, %v789_v49  ;;  %v788_v56 = vld [vmem:[%s6995_s1 + $0x1780] sm:$0xff]  ;;  %v797_v61 = vld [vmem:[%s6995_s1 + $0x17c8] sm:$0xff] }
 0x154   :  { %3369 = vmatprep.subr.bf16.mxu1 %v3368_v3  ;;  %v759_v3 = vld [vmem:[%s6995_s1 + $0x1698] sm:$0xff]  ;;  %v3390_v6 = vpack.c.bf16 %v754_v0, %v750_v62  ;;  %v794_v60 = vld [vmem:[%s6995_s1 + $0x17b0] sm:$0xff]  ;;  %v801_v62 = vld [vmem:[%s6995_s1 + $0x17e8] sm:$0xff] }
 0x155   :  { %v803_v0 = vld [vmem:[%s6995_s1 + $0x17f8] sm:$0xff] }
 0x156   :  { %2859 = vmatpush1.bf16.msra.mxu0 %v2858_v9  ;;  %v760_v9 = vld [vmem:[%s6995_s1 + $0x16a0] sm:$0xff]  ;;  %v831_v49 = vld [vmem:[%s6995_s1 + $0x18d8] sm:$0xff] }
 0x157   :  { %3371 = vmatpush1.bf16.msra.mxu1 %v3370_v10  ;;  %2861 = vmatprep.subr.bf16.mxu0 %v2860_v11  ;;  %v758_v10 = vld [vmem:[%s6995_s1 + $0x1690] sm:$0xff]  ;;  %v3392_v11 = vpack.c.bf16 %v763_v4, %v759_v3  ;;  %v2882_v17 = vpack.c.bf16 %v760_v9, %v756_v8  ;;  %v2900_v3 = vpack.c.bf16 %v801_v62, %v797_v61  ;;  %v796_v4 = vld [vmem:[%s6995_s1 + $0x17c0] sm:$0xff]  ;;  %v805_v9 = vld [vmem:[%s6995_s1 + $0x1808] sm:$0xff] }
 0x158   :  { %3373 = vmatprep.subr.bf16.mxu1 %v3372_v15  ;;  %v767_v15 = vld [vmem:[%s6995_s1 + $0x16d8] sm:$0xff]  ;;  %v3394_v18 = vpack.c.bf16 %v762_v12, %v758_v10  ;;  %v802_v8 = vld [vmem:[%s6995_s1 + $0x17f0] sm:$0xff]  ;;  %v809_v10 = vld [vmem:[%s6995_s1 + $0x1828] sm:$0xff] }
 0x159   :  { %v811_v12 = vld [vmem:[%s6995_s1 + $0x1838] sm:$0xff] }
 0x15a   :  { %2863 = vmatpush1.bf16.msra.mxu0 %v2862_v21  ;;  %v768_v21 = vld [vmem:[%s6995_s1 + $0x16e0] sm:$0xff]  ;;  %v835_v50 = vld [vmem:[%s6995_s1 + $0x18f8] sm:$0xff] }
 0x15b   :  { %3375 = vmatpush1.bf16.msra.mxu1 %v3374_v22  ;;  %2865 = vmatprep.subr.bf16.mxu0 %v2864_v23  ;;  %v766_v22 = vld [vmem:[%s6995_s1 + $0x16d0] sm:$0xff]  ;;  %v3396_v23 = vpack.c.bf16 %v771_v16, %v767_v15  ;;  %v2886_v29 = vpack.c.bf16 %v768_v21, %v764_v20  ;;  %v2904_v15 = vpack.c.bf16 %v809_v10, %v805_v9  ;;  %v804_v16 = vld [vmem:[%s6995_s1 + $0x1800] sm:$0xff]  ;;  %v813_v21 = vld [vmem:[%s6995_s1 + $0x1848] sm:$0xff] }
 0x15c   :  { %3377 = vmatprep.subr.bf16.mxu1 %v3376_v27  ;;  %v775_v27 = vld [vmem:[%s6995_s1 + $0x1718] sm:$0xff]  ;;  %v3398_v30 = vpack.c.bf16 %v770_v24, %v766_v22  ;;  %v810_v20 = vld [vmem:[%s6995_s1 + $0x1830] sm:$0xff]  ;;  %v817_v22 = vld [vmem:[%s6995_s1 + $0x1868] sm:$0xff] }
 0x15d   :  { %v819_v24 = vld [vmem:[%s6995_s1 + $0x1878] sm:$0xff] }
 0x15e   :  { %2867 = vmatpush1.bf16.msra.mxu0 %v2866_v33  ;;  %v776_v33 = vld [vmem:[%s6995_s1 + $0x1720] sm:$0xff]  ;;  %v839_v61 = vld [vmem:[%s6995_s1 + $0x1918] sm:$0xff] }
 0x15f   :  { %3379 = vmatpush1.bf16.msra.mxu1 %v3378_v34  ;;  %2869 = vmatprep.subr.bf16.mxu0 %v2868_v35  ;;  %v774_v34 = vld [vmem:[%s6995_s1 + $0x1710] sm:$0xff]  ;;  %v3400_v35 = vpack.c.bf16 %v779_v28, %v775_v27  ;;  %v2890_v41 = vpack.c.bf16 %v776_v33, %v772_v32  ;;  %v2908_v28 = vpack.c.bf16 %v817_v22, %v813_v21  ;;  %v843_v62 = vld [vmem:[%s6995_s1 + $0x1938] sm:$0xff] }
 0x160   :  { %3381 = vmatprep.subr.bf16.mxu1 %v3380_v39  ;;  %v783_v39 = vld [vmem:[%s6995_s1 + $0x1758] sm:$0xff]  ;;  %v3402_v42 = vpack.c.bf16 %v778_v36, %v774_v34  ;;  %v818_v33 = vld [vmem:[%s6995_s1 + $0x1870] sm:$0xff]  ;;  %v821_v34 = vld [vmem:[%s6995_s1 + $0x1888] sm:$0xff] }
 0x161   :  { %v823_v36 = vld [vmem:[%s6995_s1 + $0x1898] sm:$0xff] }
 0x162   :  { %2871 = vmatpush1.bf16.msra.mxu0 %v2870_v45  ;;  %v784_v45 = vld [vmem:[%s6995_s1 + $0x1760] sm:$0xff]  ;;  %v847_v9 = vld [vmem:[%s6995_s1 + $0x1958] sm:$0xff] }
 0x163   :  { %3383 = vmatpush1.bf16.msra.mxu1 %v3382_v46  ;;  %2873 = vmatprep.subr.bf16.mxu0 %v2872_v47  ;;  %v782_v46 = vld [vmem:[%s6995_s1 + $0x1750] sm:$0xff]  ;;  %v3404_v47 = vpack.c.bf16 %v787_v40, %v783_v39  ;;  %v2894_v53 = vpack.c.bf16 %v784_v45, %v780_v44  ;;  %v3424_v45 = vpack.c.bf16 %v827_v37, %v823_v36  ;;  %v851_v10 = vld [vmem:[%s6995_s1 + $0x1978] sm:$0xff] }
 0x164   :  { %3385 = vmatprep.subr.bf16.mxu1 %v3384_v51  ;;  %v791_v51 = vld [vmem:[%s6995_s1 + $0x1798] sm:$0xff]  ;;  %v3406_v54 = vpack.c.bf16 %v786_v48, %v782_v46  ;;  %v822_v44 = vld [vmem:[%s6995_s1 + $0x1890] sm:$0xff]  ;;  %v833_v48 = vld [vmem:[%s6995_s1 + $0x18e8] sm:$0xff] }
 0x165   :  { %v826_v46 = vld [vmem:[%s6995_s1 + $0x18b0] sm:$0xff]  ;;  %v855_v21 = vld [vmem:[%s6995_s1 + $0x1998] sm:$0xff] }
 0x166   :  { %2875 = vmatpush1.bf16.msra.mxu0 %v2874_v57  ;;  %v792_v57 = vld [vmem:[%s6995_s1 + $0x17a0] sm:$0xff]  ;;  %v859_v22 = vld [vmem:[%s6995_s1 + $0x19b8] sm:$0xff] }
 0x167   :  { %3387 = vmatpush1.bf16.msra.mxu1 %v3386_v58  ;;  %2877 = vmatprep.subr.bf16.mxu0 %v2876_v59  ;;  %v790_v58 = vld [vmem:[%s6995_s1 + $0x1790] sm:$0xff]  ;;  %v3408_v59 = vpack.c.bf16 %v795_v52, %v791_v51  ;;  %v2898_v1 = vpack.c.bf16 %v792_v57, %v788_v56  ;;  %v3426_v52 = vpack.c.bf16 %v826_v46, %v822_v44  ;;  %v873_v44 = vld [vmem:[%s6995_s1 + $0x1a28] sm:$0xff]  ;;  %v875_v46 = vld [vmem:[%s6995_s1 + $0x1a38] sm:$0xff] }
 0x168   :  { %3389 = vmatprep.subr.bf16.mxu1 %v3388_v63  ;;  %v799_v63 = vld [vmem:[%s6995_s1 + $0x17d8] sm:$0xff]  ;;  %v3410_v2 = vpack.c.bf16 %v794_v60, %v790_v58  ;;  %v830_v56 = vld [vmem:[%s6995_s1 + $0x18d0] sm:$0xff]  ;;  %v3428_v57 = vpack.c.bf16 %v835_v50, %v831_v49  ;;  %v841_v60 = vld [vmem:[%s6995_s1 + $0x1928] sm:$0xff] }
 0x169   :  { %v834_v58 = vld [vmem:[%s6995_s1 + $0x18f0] sm:$0xff]  ;;  %v868_v50 = vld [vmem:[%s6995_s1 + $0x1a00] sm:$0xff] }
 0x16a   :  { %2879 = vmatpush1.bf16.msra.mxu0 %v2878_v5  ;;  %v800_v5 = vld [vmem:[%s6995_s1 + $0x17e0] sm:$0xff] }
 0x16b   :  { %3391 = vmatpush1.bf16.msra.mxu1 %v3390_v6  ;;  %2881 = vmatprep.subr.bf16.mxu0 %v2880_v7  ;;  %v798_v6 = vld [vmem:[%s6995_s1 + $0x17d0] sm:$0xff]  ;;  %v3412_v7 = vpack.c.bf16 %v803_v0, %v799_v63  ;;  %v2902_v13 = vpack.c.bf16 %v800_v5, %v796_v4  ;;  %v3430_v0 = vpack.c.bf16 %v834_v58, %v830_v56  ;;  %v881_v56 = vld [vmem:[%s6995_s1 + $0x1a68] sm:$0xff]  ;;  %v883_v58 = vld [vmem:[%s6995_s1 + $0x1a78] sm:$0xff] }
 0x16c   :  { %3393 = vmatprep.subr.bf16.mxu1 %v3392_v11  ;;  %v807_v11 = vld [vmem:[%s6995_s1 + $0x1818] sm:$0xff]  ;;  %v3414_v14 = vpack.c.bf16 %v802_v8, %v798_v6  ;;  %v838_v4 = vld [vmem:[%s6995_s1 + $0x1910] sm:$0xff]  ;;  %v3432_v5 = vpack.c.bf16 %v843_v62, %v839_v61  ;;  %v849_v8 = vld [vmem:[%s6995_s1 + $0x1968] sm:$0xff] }
 0x16d   :  { %v842_v6 = vld [vmem:[%s6995_s1 + $0x1930] sm:$0xff]  ;;  %v876_v62 = vld [vmem:[%s6995_s1 + $0x1a40] sm:$0xff] }
 0x16e   :  { %2883 = vmatpush1.bf16.msra.mxu0 %v2882_v17  ;;  %v808_v17 = vld [vmem:[%s6995_s1 + $0x1820] sm:$0xff] }
 0x16f   :  { %3395 = vmatpush1.bf16.msra.mxu1 %v3394_v18  ;;  %2885 = vmatprep.subr.bf16.mxu0 %v2884_v19  ;;  %v806_v18 = vld [vmem:[%s6995_s1 + $0x1810] sm:$0xff]  ;;  %v3416_v19 = vpack.c.bf16 %v811_v12, %v807_v11  ;;  %v2906_v26 = vpack.c.bf16 %v808_v17, %v804_v16  ;;  %v3434_v12 = vpack.c.bf16 %v842_v6, %v838_v4  ;;  %v889_v4 = vld [vmem:[%s6995_s1 + $0x1aa8] sm:$0xff]  ;;  %v891_v6 = vld [vmem:[%s6995_s1 + $0x1ab8] sm:$0xff] }
 0x170   :  { %3397 = vmatprep.subr.bf16.mxu1 %v3396_v23  ;;  %v815_v23 = vld [vmem:[%s6995_s1 + $0x1858] sm:$0xff]  ;;  %v3418_v27 = vpack.c.bf16 %v810_v20, %v806_v18  ;;  %v846_v16 = vld [vmem:[%s6995_s1 + $0x1950] sm:$0xff]  ;;  %v3436_v17 = vpack.c.bf16 %v851_v10, %v847_v9  ;;  %v857_v20 = vld [vmem:[%s6995_s1 + $0x19a8] sm:$0xff] }
 0x171   :  { %v3420_v32 = vpack.c.bf16 %v819_v24, %v815_v23  ;;  %v850_v18 = vld [vmem:[%s6995_s1 + $0x1970] sm:$0xff]  ;;  %v884_v10 = vld [vmem:[%s6995_s1 + $0x1a80] sm:$0xff] }
 0x172   :  { %2887 = vmatpush1.bf16.msra.mxu0 %v2886_v29  ;;  %v812_v29 = vld [vmem:[%s6995_s1 + $0x1840] sm:$0xff]  ;;  %v3438_v24 = vpack.c.bf16 %v850_v18, %v846_v16  ;;  %v897_v16 = vld [vmem:[%s6995_s1 + $0x1ae8] sm:$0xff]  ;;  %v899_v18 = vld [vmem:[%s6995_s1 + $0x1af8] sm:$0xff] }
 0x173   :  { %3399 = vmatpush1.bf16.msra.mxu1 %v3398_v30  ;;  %2889 = vmatprep.subr.bf16.mxu0 %v2888_v31  ;;  %v816_v30 = vld [vmem:[%s6995_s1 + $0x1860] sm:$0xff]  ;;  %v814_v31 = vld [vmem:[%s6995_s1 + $0x1850] sm:$0xff] }
 0x174   :  { %3401 = vmatprep.subr.bf16.mxu1 %v3400_v35  ;;  %v825_v35 = vld [vmem:[%s6995_s1 + $0x18a8] sm:$0xff]  ;;  %v2910_v39 = vpack.c.bf16 %v816_v30, %v812_v29  ;;  %v3422_v40 = vpack.c.bf16 %v818_v33, %v814_v31  ;;  %v3440_v29 = vpack.c.bf16 %v859_v22, %v855_v21  ;;  %v858_v30 = vld [vmem:[%s6995_s1 + $0x19b0] sm:$0xff]  ;;  %v863_v33 = vld [vmem:[%s6995_s1 + $0x19d8] sm:$0xff] }
 0x175   :  { %v861_v31 = vld [vmem:[%s6995_s1 + $0x19c8] sm:$0xff]  ;;  %v892_v22 = vld [vmem:[%s6995_s1 + $0x1ac0] sm:$0xff] }
 0x176   :  { %2891 = vmatpush1.bf16.msra.mxu0 %v2890_v41  ;;  %v2912_v41 = vpack.c.bf16 %v825_v35, %v821_v34  ;;  %v867_v34 = vld [vmem:[%s6995_s1 + $0x19f8] sm:$0xff] }
 0x177   :  { %3403 = vmatpush1.bf16.msra.mxu1 %v3402_v42  ;;  %2893 = vmatprep.subr.bf16.mxu0 %v2892_v43  ;;  %v820_v42 = vld [vmem:[%s6995_s1 + $0x1880] sm:$0xff] }
 0x178   :  { %3405 = vmatprep.subr.bf16.mxu1 %v3404_v47  ;;  %v824_v43 = vld [vmem:[%s6995_s1 + $0x18a0] sm:$0xff]  ;;  %v829_v47 = vld [vmem:[%s6995_s1 + $0x18c8] sm:$0xff] }
 0x179   :  { %v2914_v51 = vpack.c.bf16 %v824_v43, %v820_v42  ;;  %v866_v42 = vld [vmem:[%s6995_s1 + $0x19f0] sm:$0xff]  ;;  %v869_v43 = vld [vmem:[%s6995_s1 + $0x1a08] sm:$0xff] }
 0x17a   :  { %2895 = vmatpush1.bf16.msra.mxu0 %v2894_v53  ;;  %v2916_v53 = vpack.c.bf16 %v833_v48, %v829_v47  ;;  %v2936_v49 = vpack.c.bf16 %v873_v44, %v869_v43 }
 0x17b   :  { %3407 = vmatpush1.bf16.msra.mxu1 %v3406_v54  ;;  %2897 = vmatprep.subr.bf16.mxu0 %v2896_v55  ;;  %v828_v54 = vld [vmem:[%s6995_s1 + $0x18c0] sm:$0xff] }
 0x17c   :  { %3409 = vmatprep.subr.bf16.mxu1 %v3408_v59  ;;  %v832_v55 = vld [vmem:[%s6995_s1 + $0x18e0] sm:$0xff]  ;;  %v837_v59 = vld [vmem:[%s6995_s1 + $0x1908] sm:$0xff] }
 0x17d   :  { %v2918_v63 = vpack.c.bf16 %v832_v55, %v828_v54  ;;  %v874_v54 = vld [vmem:[%s6995_s1 + $0x1a30] sm:$0xff]  ;;  %v877_v55 = vld [vmem:[%s6995_s1 + $0x1a48] sm:$0xff] }
 0x17e   :  { %2899 = vmatpush1.bf16.msra.mxu0 %v2898_v1  ;;  %v2920_v1 = vpack.c.bf16 %v841_v60, %v837_v59  ;;  %v2940_v61 = vpack.c.bf16 %v881_v56, %v877_v55 }
 0x17f   :  { %3411 = vmatpush1.bf16.msra.mxu1 %v3410_v2  ;;  %2901 = vmatprep.subr.bf16.mxu0 %v2900_v3  ;;  %v836_v2 = vld [vmem:[%s6995_s1 + $0x1900] sm:$0xff] }
 0x180   :  { %3413 = vmatprep.subr.bf16.mxu1 %v3412_v7  ;;  %v840_v3 = vld [vmem:[%s6995_s1 + $0x1920] sm:$0xff]  ;;  %v845_v7 = vld [vmem:[%s6995_s1 + $0x1948] sm:$0xff] }
 0x181   :  { %v2922_v11 = vpack.c.bf16 %v840_v3, %v836_v2  ;;  %v882_v2 = vld [vmem:[%s6995_s1 + $0x1a70] sm:$0xff]  ;;  %v885_v3 = vld [vmem:[%s6995_s1 + $0x1a88] sm:$0xff] }
 0x182   :  { %2903 = vmatpush1.bf16.msra.mxu0 %v2902_v13  ;;  %v2924_v13 = vpack.c.bf16 %v849_v8, %v845_v7  ;;  %v2944_v9 = vpack.c.bf16 %v889_v4, %v885_v3 }
 0x183   :  { %3415 = vmatpush1.bf16.msra.mxu1 %v3414_v14  ;;  %2905 = vmatprep.subr.bf16.mxu0 %v2904_v15  ;;  %v844_v14 = vld [vmem:[%s6995_s1 + $0x1940] sm:$0xff] }
 0x184   :  { %3417 = vmatprep.subr.bf16.mxu1 %v3416_v19  ;;  %v848_v15 = vld [vmem:[%s6995_s1 + $0x1960] sm:$0xff]  ;;  %v853_v19 = vld [vmem:[%s6995_s1 + $0x1988] sm:$0xff] }
 0x185   :  { %1502 = vmatmul.mubr.f32.vlgmr.msra.gmra.mrb[0].mxu0 %v30_v25  ;;  %v2926_v23 = vpack.c.bf16 %v848_v15, %v844_v14  ;;  %v890_v14 = vld [vmem:[%s6995_s1 + $0x1ab0] sm:$0xff]  ;;  %v893_v15 = vld [vmem:[%s6995_s1 + $0x1ac8] sm:$0xff] }
 0x186   :  { %2907 = vmatpush1.bf16.msra.mxu0 %v2906_v26  ;;  %2070 = vmatmul.mubr.f32.vlgmr.msra.gmra.mrb[0].mxu1 %v30_v25  ;;  %v2928_v25 = vpack.c.bf16 %v857_v20, %v853_v19  ;;  %v852_v26 = vld [vmem:[%s6995_s1 + $0x1980] sm:$0xff]  ;;  %v2948_v21 = vpack.c.bf16 %v897_v16, %v893_v15 }
 0x187   :  { %3419 = vmatpush1.bf16.msra.mxu1 %v3418_v27  ;;  %2909 = vmatprep.subr.bf16.mxu0 %v2908_v28  ;;  %v856_v27 = vld [vmem:[%s6995_s1 + $0x19a0] sm:$0xff]  ;;  %v854_v28 = vld [vmem:[%s6995_s1 + $0x1990] sm:$0xff] }
 0x188   :  { %3421 = vmatprep.subr.bf16.mxu1 %v3420_v32  ;;  %1572 = vmatprep.mubr.f32.mxu0 %v33_v38  ;;  %v865_v32 = vld [vmem:[%s6995_s1 + $0x19e8] sm:$0xff]  ;;  %v2930_v35 = vpack.c.bf16 %v856_v27, %v852_v26  ;;  %v3442_v36 = vpack.c.bf16 %v858_v30, %v854_v28  ;;  %v898_v26 = vld [vmem:[%s6995_s1 + $0x1af0] sm:$0xff]  ;;  %v907_v30 = vld [vmem:[%s6995_s1 + $0x1b38] sm:$0xff] }
 0x189   :  { %2140 = vmatprep.mubr.f32.mxu1 %v33_v38  ;;  %v2932_v37 = vpack.c.bf16 %v865_v32, %v861_v31  ;;  %v860_v38 = vld [vmem:[%s6995_s1 + $0x19c0] sm:$0xff]  ;;  %v901_v27 = vld [vmem:[%s6995_s1 + $0x1b08] sm:$0xff] }
 0x18a   :  { %2911 = vmatpush1.bf16.msra.mxu0 %v2910_v39  ;;  %v864_v39 = vld [vmem:[%s6995_s1 + $0x19e0] sm:$0xff]  ;;  %v905_v28 = vld [vmem:[%s6995_s1 + $0x1b28] sm:$0xff] }
 0x18b   :  { %3423 = vmatpush1.bf16.msra.mxu1 %v3422_v40  ;;  %2913 = vmatprep.subr.bf16.mxu0 %v2912_v41  ;;  %v862_v40 = vld [vmem:[%s6995_s1 + $0x19d0] sm:$0xff]  ;;  %v3444_v41 = vpack.c.bf16 %v867_v34, %v863_v33  ;;  %v2934_v47 = vpack.c.bf16 %v864_v39, %v860_v38  ;;  %v2952_v33 = vpack.c.bf16 %v905_v28, %v901_v27  ;;  %v900_v34 = vld [vmem:[%s6995_s1 + $0x1b00] sm:$0xff]  ;;  %v909_v39 = vld [vmem:[%s6995_s1 + $0x1b48] sm:$0xff] }
 0x18c   :  { %3425 = vmatprep.subr.bf16.mxu1 %v3424_v45  ;;  %v871_v45 = vld [vmem:[%s6995_s1 + $0x1a18] sm:$0xff]  ;;  %v3446_v48 = vpack.c.bf16 %v866_v42, %v862_v40  ;;  %v906_v38 = vld [vmem:[%s6995_s1 + $0x1b30] sm:$0xff]  ;;  %v913_v40 = vld [vmem:[%s6995_s1 + $0x1b68] sm:$0xff] }
 0x18d   :  { %v915_v42 = vld [vmem:[%s6995_s1 + $0x1b78] sm:$0xff]  ;;  %v32_v27 = vld [vmem:[%s6996_s0 + $0x60] sm:$0xff] }
 0x18e   :  { %2915 = vmatpush1.bf16.msra.mxu0 %v2914_v51  ;;  %v872_v51 = vld [vmem:[%s6995_s1 + $0x1a20] sm:$0xff] }
 0x18f   :  { %3427 = vmatpush1.bf16.msra.mxu1 %v3426_v52  ;;  %2917 = vmatprep.subr.bf16.mxu0 %v2916_v53  ;;  %v870_v52 = vld [vmem:[%s6995_s1 + $0x1a10] sm:$0xff]  ;;  %v3448_v53 = vpack.c.bf16 %v875_v46, %v871_v45  ;;  %v2938_v59 = vpack.c.bf16 %v872_v51, %v868_v50  ;;  %v2956_v45 = vpack.c.bf16 %v913_v40, %v909_v39  ;;  %v908_v46 = vld [vmem:[%s6995_s1 + $0x1b40] sm:$0xff]  ;;  %v917_v51 = vld [vmem:[%s6995_s1 + $0x1b88] sm:$0xff] }
 0x190   :  { %3429 = vmatprep.subr.bf16.mxu1 %v3428_v57  ;;  %v879_v57 = vld [vmem:[%s6995_s1 + $0x1a58] sm:$0xff]  ;;  %v3450_v60 = vpack.c.bf16 %v874_v54, %v870_v52  ;;  %v914_v50 = vld [vmem:[%s6995_s1 + $0x1b70] sm:$0xff]  ;;  %v921_v52 = vld [vmem:[%s6995_s1 + $0x1ba8] sm:$0xff] }
 0x191   :  { %v923_v54 = vld [vmem:[%s6995_s1 + $0x1bb8] sm:$0xff] }
 0x192   :  { %2919 = vmatpush1.bf16.msra.mxu0 %v2918_v63  ;;  %v880_v63 = vld [vmem:[%s6995_s1 + $0x1a60] sm:$0xff]  ;;  %v955_v39 = vld [vmem:[%s6995_s1 + $0x1cb8] sm:$0xff] }
 0x193   :  { %3431 = vmatpush1.bf16.msra.mxu1 %v3430_v0  ;;  %2921 = vmatprep.subr.bf16.mxu0 %v2920_v1  ;;  %v878_v0 = vld [vmem:[%s6995_s1 + $0x1a50] sm:$0xff]  ;;  %v3452_v1 = vpack.c.bf16 %v883_v58, %v879_v57  ;;  %v2942_v7 = vpack.c.bf16 %v880_v63, %v876_v62  ;;  %v2960_v57 = vpack.c.bf16 %v921_v52, %v917_v51  ;;  %v916_v58 = vld [vmem:[%s6995_s1 + $0x1b80] sm:$0xff]  ;;  %v925_v63 = vld [vmem:[%s6995_s1 + $0x1bc8] sm:$0xff] }
 0x194   :  { %3433 = vmatprep.subr.bf16.mxu1 %v3432_v5  ;;  %v887_v5 = vld [vmem:[%s6995_s1 + $0x1a98] sm:$0xff]  ;;  %v3454_v8 = vpack.c.bf16 %v882_v2, %v878_v0  ;;  %v922_v62 = vld [vmem:[%s6995_s1 + $0x1bb0] sm:$0xff]  ;;  %v929_v0 = vld [vmem:[%s6995_s1 + $0x1be8] sm:$0xff] }
 0x195   :  { %v931_v2 = vld [vmem:[%s6995_s1 + $0x1bf8] sm:$0xff] }
 0x196   :  { %2923 = vmatpush1.bf16.msra.mxu0 %v2922_v11  ;;  %v888_v11 = vld [vmem:[%s6995_s1 + $0x1aa0] sm:$0xff]  ;;  %v35_v40 = vld [vmem:[%s6996_s0 + $0x78] sm:$0xff] }
 0x197   :  { %3435 = vmatpush1.bf16.msra.mxu1 %v3434_v12  ;;  %2925 = vmatprep.subr.bf16.mxu0 %v2924_v13  ;;  %v886_v12 = vld [vmem:[%s6995_s1 + $0x1a90] sm:$0xff]  ;;  %v3456_v13 = vpack.c.bf16 %v891_v6, %v887_v5  ;;  %v2946_v19 = vpack.c.bf16 %v888_v11, %v884_v10  ;;  %v2964_v5 = vpack.c.bf16 %v929_v0, %v925_v63  ;;  %v924_v6 = vld [vmem:[%s6995_s1 + $0x1bc0] sm:$0xff]  ;;  %v933_v11 = vld [vmem:[%s6995_s1 + $0x1c08] sm:$0xff] }
 0x198   :  { %3437 = vmatprep.subr.bf16.mxu1 %v3436_v17  ;;  %v895_v17 = vld [vmem:[%s6995_s1 + $0x1ad8] sm:$0xff]  ;;  %v3458_v20 = vpack.c.bf16 %v890_v14, %v886_v12  ;;  %v930_v10 = vld [vmem:[%s6995_s1 + $0x1bf0] sm:$0xff]  ;;  %v937_v12 = vld [vmem:[%s6995_s1 + $0x1c28] sm:$0xff] }
 0x199   :  { %v939_v14 = vld [vmem:[%s6995_s1 + $0x1c38] sm:$0xff] }
 0x19a   :  { %2927 = vmatpush1.bf16.msra.mxu0 %v2926_v23  ;;  %v896_v23 = vld [vmem:[%s6995_s1 + $0x1ae0] sm:$0xff]  ;;  %v959_v51 = vld [vmem:[%s6995_s1 + $0x1cd8] sm:$0xff] }
 0x19b   :  { %3439 = vmatpush1.bf16.msra.mxu1 %v3438_v24  ;;  %2929 = vmatprep.subr.bf16.mxu0 %v2928_v25  ;;  %v894_v24 = vld [vmem:[%s6995_s1 + $0x1ad0] sm:$0xff]  ;;  %v3460_v25 = vpack.c.bf16 %v899_v18, %v895_v17  ;;  %v2950_v31 = vpack.c.bf16 %v896_v23, %v892_v22  ;;  %v2968_v17 = vpack.c.bf16 %v937_v12, %v933_v11  ;;  %v932_v18 = vld [vmem:[%s6995_s1 + $0x1c00] sm:$0xff]  ;;  %v941_v23 = vld [vmem:[%s6995_s1 + $0x1c48] sm:$0xff] }
 0x19c   :  { %3441 = vmatprep.subr.bf16.mxu1 %v3440_v29  ;;  %v903_v29 = vld [vmem:[%s6995_s1 + $0x1b18] sm:$0xff]  ;;  %v3462_v32 = vpack.c.bf16 %v898_v26, %v894_v24  ;;  %v938_v22 = vld [vmem:[%s6995_s1 + $0x1c30] sm:$0xff]  ;;  %v945_v24 = vld [vmem:[%s6995_s1 + $0x1c68] sm:$0xff] }
 0x19d   :  { %v947_v26 = vld [vmem:[%s6995_s1 + $0x1c78] sm:$0xff] }
 0x19e   :  { %2931 = vmatpush1.bf16.msra.mxu0 %v2930_v35  ;;  %v904_v35 = vld [vmem:[%s6995_s1 + $0x1b20] sm:$0xff]  ;;  %v963_v52 = vld [vmem:[%s6995_s1 + $0x1cf8] sm:$0xff] }
 0x19f   :  { %3443 = vmatpush1.bf16.msra.mxu1 %v3442_v36  ;;  %2933 = vmatprep.subr.bf16.mxu0 %v2932_v37  ;;  %v902_v36 = vld [vmem:[%s6995_s1 + $0x1b10] sm:$0xff]  ;;  %v3464_v37 = vpack.c.bf16 %v907_v30, %v903_v29  ;;  %v2954_v43 = vpack.c.bf16 %v904_v35, %v900_v34  ;;  %v2972_v30 = vpack.c.bf16 %v945_v24, %v941_v23  ;;  %v967_v63 = vld [vmem:[%s6995_s1 + $0x1d18] sm:$0xff] }
 0x1a0   :  { %3445 = vmatprep.subr.bf16.mxu1 %v3444_v41  ;;  %v911_v41 = vld [vmem:[%s6995_s1 + $0x1b58] sm:$0xff]  ;;  %v3466_v44 = vpack.c.bf16 %v906_v38, %v902_v36  ;;  %v946_v35 = vld [vmem:[%s6995_s1 + $0x1c70] sm:$0xff]  ;;  %v949_v36 = vld [vmem:[%s6995_s1 + $0x1c88] sm:$0xff] }
 0x1a1   :  { %v951_v38 = vld [vmem:[%s6995_s1 + $0x1c98] sm:$0xff] }
 0x1a2   :  { %2935 = vmatpush1.bf16.msra.mxu0 %v2934_v47  ;;  %v912_v47 = vld [vmem:[%s6995_s1 + $0x1b60] sm:$0xff]  ;;  %v971_v0 = vld [vmem:[%s6995_s1 + $0x1d38] sm:$0xff] }
 0x1a3   :  { %3447 = vmatpush1.bf16.msra.mxu1 %v3446_v48  ;;  %2937 = vmatprep.subr.bf16.mxu0 %v2936_v49  ;;  %v910_v48 = vld [vmem:[%s6995_s1 + $0x1b50] sm:$0xff]  ;;  %v3468_v49 = vpack.c.bf16 %v915_v42, %v911_v41  ;;  %v2958_v55 = vpack.c.bf16 %v912_v47, %v908_v46  ;;  %v3488_v47 = vpack.c.bf16 %v955_v39, %v951_v38  ;;  %v975_v11 = vld [vmem:[%s6995_s1 + $0x1d58] sm:$0xff] }
 0x1a4   :  { %3449 = vmatprep.subr.bf16.mxu1 %v3448_v53  ;;  %v919_v53 = vld [vmem:[%s6995_s1 + $0x1b98] sm:$0xff]  ;;  %v3470_v56 = vpack.c.bf16 %v914_v50, %v910_v48  ;;  %v950_v46 = vld [vmem:[%s6995_s1 + $0x1c90] sm:$0xff]  ;;  %v961_v50 = vld [vmem:[%s6995_s1 + $0x1ce8] sm:$0xff] }
 0x1a5   :  { %v954_v48 = vld [vmem:[%s6995_s1 + $0x1cb0] sm:$0xff]  ;;  %v979_v12 = vld [vmem:[%s6995_s1 + $0x1d78] sm:$0xff] }
 0x1a6   :  { %2939 = vmatpush1.bf16.msra.mxu0 %v2938_v59  ;;  %v920_v59 = vld [vmem:[%s6995_s1 + $0x1ba0] sm:$0xff]  ;;  %v983_v23 = vld [vmem:[%s6995_s1 + $0x1d98] sm:$0xff] }
 0x1a7   :  { %3451 = vmatpush1.bf16.msra.mxu1 %v3450_v60  ;;  %2941 = vmatprep.subr.bf16.mxu0 %v2940_v61  ;;  %v918_v60 = vld [vmem:[%s6995_s1 + $0x1b90] sm:$0xff]  ;;  %v3472_v61 = vpack.c.bf16 %v923_v54, %v919_v53  ;;  %v2962_v3 = vpack.c.bf16 %v920_v59, %v916_v58  ;;  %v3490_v54 = vpack.c.bf16 %v954_v48, %v950_v46  ;;  %v987_v24 = vld [vmem:[%s6995_s1 + $0x1db8] sm:$0xff]  ;;  %v1001_v46 = vld [vmem:[%s6995_s1 + $0x1e28] sm:$0xff] }
 0x1a8   :  { %3453 = vmatprep.subr.bf16.mxu1 %v3452_v1  ;;  %v927_v1 = vld [vmem:[%s6995_s1 + $0x1bd8] sm:$0xff]  ;;  %v3474_v4 = vpack.c.bf16 %v922_v62, %v918_v60  ;;  %v958_v58 = vld [vmem:[%s6995_s1 + $0x1cd0] sm:$0xff]  ;;  %v3492_v59 = vpack.c.bf16 %v963_v52, %v959_v51  ;;  %v969_v62 = vld [vmem:[%s6995_s1 + $0x1d28] sm:$0xff] }
 0x1a9   :  { %v962_v60 = vld [vmem:[%s6995_s1 + $0x1cf0] sm:$0xff]  ;;  %v1003_v48 = vld [vmem:[%s6995_s1 + $0x1e38] sm:$0xff]  ;;  %v996_v52 = vld [vmem:[%s6995_s1 + $0x1e00] sm:$0xff] }
 0x1aa   :  { %2943 = vmatpush1.bf16.msra.mxu0 %v2942_v7  ;;  %v928_v7 = vld [vmem:[%s6995_s1 + $0x1be0] sm:$0xff] }
 0x1ab   :  { %3455 = vmatpush1.bf16.msra.mxu1 %v3454_v8  ;;  %2945 = vmatprep.subr.bf16.mxu0 %v2944_v9  ;;  %v926_v8 = vld [vmem:[%s6995_s1 + $0x1bd0] sm:$0xff]  ;;  %v3476_v9 = vpack.c.bf16 %v931_v2, %v927_v1  ;;  %v2966_v15 = vpack.c.bf16 %v928_v7, %v924_v6  ;;  %v3494_v2 = vpack.c.bf16 %v962_v60, %v958_v58  ;;  %v1009_v58 = vld [vmem:[%s6995_s1 + $0x1e68] sm:$0xff]  ;;  %v1011_v60 = vld [vmem:[%s6995_s1 + $0x1e78] sm:$0xff] }
 0x1ac   :  { %3457 = vmatprep.subr.bf16.mxu1 %v3456_v13  ;;  %v935_v13 = vld [vmem:[%s6995_s1 + $0x1c18] sm:$0xff]  ;;  %v3478_v16 = vpack.c.bf16 %v930_v10, %v926_v8  ;;  %v966_v6 = vld [vmem:[%s6995_s1 + $0x1d10] sm:$0xff]  ;;  %v3496_v7 = vpack.c.bf16 %v971_v0, %v967_v63  ;;  %v977_v10 = vld [vmem:[%s6995_s1 + $0x1d68] sm:$0xff] }
 0x1ad   :  { %v970_v8 = vld [vmem:[%s6995_s1 + $0x1d30] sm:$0xff]  ;;  %v1004_v0 = vld [vmem:[%s6995_s1 + $0x1e40] sm:$0xff] }
 0x1ae   :  { %2947 = vmatpush1.bf16.msra.mxu0 %v2946_v19  ;;  %v936_v19 = vld [vmem:[%s6995_s1 + $0x1c20] sm:$0xff] }
 0x1af   :  { %3459 = vmatpush1.bf16.msra.mxu1 %v3458_v20  ;;  %2949 = vmatprep.subr.bf16.mxu0 %v2948_v21  ;;  %v934_v20 = vld [vmem:[%s6995_s1 + $0x1c10] sm:$0xff]  ;;  %v3480_v21 = vpack.c.bf16 %v939_v14, %v935_v13  ;;  %v2970_v28 = vpack.c.bf16 %v936_v19, %v932_v18  ;;  %v3498_v14 = vpack.c.bf16 %v970_v8, %v966_v6  ;;  %v1017_v6 = vld [vmem:[%s6995_s1 + $0x1ea8] sm:$0xff]  ;;  %v1019_v8 = vld [vmem:[%s6995_s1 + $0x1eb8] sm:$0xff] }
 0x1b0   :  { %3461 = vmatprep.subr.bf16.mxu1 %v3460_v25  ;;  %v943_v25 = vld [vmem:[%s6995_s1 + $0x1c58] sm:$0xff]  ;;  %v3482_v29 = vpack.c.bf16 %v938_v22, %v934_v20  ;;  %v974_v18 = vld [vmem:[%s6995_s1 + $0x1d50] sm:$0xff]  ;;  %v3500_v19 = vpack.c.bf16 %v979_v12, %v975_v11  ;;  %v985_v22 = vld [vmem:[%s6995_s1 + $0x1da8] sm:$0xff] }
 0x1b1   :  { %v3484_v34 = vpack.c.bf16 %v947_v26, %v943_v25  ;;  %v978_v20 = vld [vmem:[%s6995_s1 + $0x1d70] sm:$0xff]  ;;  %v1012_v12 = vld [vmem:[%s6995_s1 + $0x1e80] sm:$0xff] }
 0x1b2   :  { %2951 = vmatpush1.bf16.msra.mxu0 %v2950_v31  ;;  %v940_v31 = vld [vmem:[%s6995_s1 + $0x1c40] sm:$0xff]  ;;  %v3502_v26 = vpack.c.bf16 %v978_v20, %v974_v18  ;;  %v1025_v18 = vld [vmem:[%s6995_s1 + $0x1ee8] sm:$0xff]  ;;  %v1027_v20 = vld [vmem:[%s6995_s1 + $0x1ef8] sm:$0xff] }
 0x1b3   :  { %3463 = vmatpush1.bf16.msra.mxu1 %v3462_v32  ;;  %2953 = vmatprep.subr.bf16.mxu0 %v2952_v33  ;;  %v944_v32 = vld [vmem:[%s6995_s1 + $0x1c60] sm:$0xff]  ;;  %v942_v33 = vld [vmem:[%s6995_s1 + $0x1c50] sm:$0xff] }
 0x1b4   :  { %3465 = vmatprep.subr.bf16.mxu1 %v3464_v37  ;;  %v953_v37 = vld [vmem:[%s6995_s1 + $0x1ca8] sm:$0xff]  ;;  %v2974_v41 = vpack.c.bf16 %v944_v32, %v940_v31  ;;  %v3486_v42 = vpack.c.bf16 %v946_v35, %v942_v33  ;;  %v3504_v31 = vpack.c.bf16 %v987_v24, %v983_v23  ;;  %v986_v32 = vld [vmem:[%s6995_s1 + $0x1db0] sm:$0xff]  ;;  %v991_v35 = vld [vmem:[%s6995_s1 + $0x1dd8] sm:$0xff] }
 0x1b5   :  { %v989_v33 = vld [vmem:[%s6995_s1 + $0x1dc8] sm:$0xff]  ;;  %v1020_v24 = vld [vmem:[%s6995_s1 + $0x1ec0] sm:$0xff] }
 0x1b6   :  { %2955 = vmatpush1.bf16.msra.mxu0 %v2954_v43  ;;  %v2976_v43 = vpack.c.bf16 %v953_v37, %v949_v36  ;;  %v995_v36 = vld [vmem:[%s6995_s1 + $0x1df8] sm:$0xff] }
 0x1b7   :  { %3467 = vmatpush1.bf16.msra.mxu1 %v3466_v44  ;;  %2957 = vmatprep.subr.bf16.mxu0 %v2956_v45  ;;  %v948_v44 = vld [vmem:[%s6995_s1 + $0x1c80] sm:$0xff] }
 0x1b8   :  { %3469 = vmatprep.subr.bf16.mxu1 %v3468_v49  ;;  %v952_v45 = vld [vmem:[%s6995_s1 + $0x1ca0] sm:$0xff]  ;;  %v957_v49 = vld [vmem:[%s6995_s1 + $0x1cc8] sm:$0xff] }
 0x1b9   :  { %v2978_v53 = vpack.c.bf16 %v952_v45, %v948_v44  ;;  %v994_v44 = vld [vmem:[%s6995_s1 + $0x1df0] sm:$0xff]  ;;  %v997_v45 = vld [vmem:[%s6995_s1 + $0x1e08] sm:$0xff] }
 0x1ba   :  { %2959 = vmatpush1.bf16.msra.mxu0 %v2958_v55  ;;  %v2980_v55 = vpack.c.bf16 %v961_v50, %v957_v49  ;;  %v3000_v51 = vpack.c.bf16 %v1001_v46, %v997_v45 }
 0x1bb   :  { %3471 = vmatpush1.bf16.msra.mxu1 %v3470_v56  ;;  %2961 = vmatprep.subr.bf16.mxu0 %v2960_v57  ;;  %v956_v56 = vld [vmem:[%s6995_s1 + $0x1cc0] sm:$0xff] }
 0x1bc   :  { %3473 = vmatprep.subr.bf16.mxu1 %v3472_v61  ;;  %v960_v57 = vld [vmem:[%s6995_s1 + $0x1ce0] sm:$0xff]  ;;  %v965_v61 = vld [vmem:[%s6995_s1 + $0x1d08] sm:$0xff] }
 0x1bd   :  { %v2982_v1 = vpack.c.bf16 %v960_v57, %v956_v56  ;;  %v1002_v56 = vld [vmem:[%s6995_s1 + $0x1e30] sm:$0xff]  ;;  %v1005_v57 = vld [vmem:[%s6995_s1 + $0x1e48] sm:$0xff] }
 0x1be   :  { %2963 = vmatpush1.bf16.msra.mxu0 %v2962_v3  ;;  %v2984_v3 = vpack.c.bf16 %v969_v62, %v965_v61  ;;  %v3004_v63 = vpack.c.bf16 %v1009_v58, %v1005_v57 }
 0x1bf   :  { %3475 = vmatpush1.bf16.msra.mxu1 %v3474_v4  ;;  %2965 = vmatprep.subr.bf16.mxu0 %v2964_v5  ;;  %v964_v4 = vld [vmem:[%s6995_s1 + $0x1d00] sm:$0xff] }
 0x1c0   :  { %3477 = vmatprep.subr.bf16.mxu1 %v3476_v9  ;;  %v968_v5 = vld [vmem:[%s6995_s1 + $0x1d20] sm:$0xff]  ;;  %v973_v9 = vld [vmem:[%s6995_s1 + $0x1d48] sm:$0xff] }
 0x1c1   :  { %v2986_v13 = vpack.c.bf16 %v968_v5, %v964_v4  ;;  %v1010_v4 = vld [vmem:[%s6995_s1 + $0x1e70] sm:$0xff]  ;;  %v1013_v5 = vld [vmem:[%s6995_s1 + $0x1e88] sm:$0xff] }
 0x1c2   :  { %2967 = vmatpush1.bf16.msra.mxu0 %v2966_v15  ;;  %v2988_v15 = vpack.c.bf16 %v977_v10, %v973_v9  ;;  %v3008_v11 = vpack.c.bf16 %v1017_v6, %v1013_v5 }
 0x1c3   :  { %3479 = vmatpush1.bf16.msra.mxu1 %v3478_v16  ;;  %2969 = vmatprep.subr.bf16.mxu0 %v2968_v17  ;;  %v972_v16 = vld [vmem:[%s6995_s1 + $0x1d40] sm:$0xff] }
 0x1c4   :  { %3481 = vmatprep.subr.bf16.mxu1 %v3480_v21  ;;  %v976_v17 = vld [vmem:[%s6995_s1 + $0x1d60] sm:$0xff]  ;;  %v981_v21 = vld [vmem:[%s6995_s1 + $0x1d88] sm:$0xff] }
 0x1c5   :  { %1573 = vmatmul.mubr.f32.vlgmr.msra.gmra.mrb[0].mxu0 %v32_v27  ;;  %v2990_v25 = vpack.c.bf16 %v976_v17, %v972_v16  ;;  %v1018_v16 = vld [vmem:[%s6995_s1 + $0x1eb0] sm:$0xff]  ;;  %v1021_v17 = vld [vmem:[%s6995_s1 + $0x1ec8] sm:$0xff] }
 0x1c6   :  { %2971 = vmatpush1.bf16.msra.mxu0 %v2970_v28  ;;  %2141 = vmatmul.mubr.f32.vlgmr.msra.gmra.mrb[0].mxu1 %v32_v27  ;;  %v2992_v27 = vpack.c.bf16 %v985_v22, %v981_v21  ;;  %v980_v28 = vld [vmem:[%s6995_s1 + $0x1d80] sm:$0xff]  ;;  %v3012_v23 = vpack.c.bf16 %v1025_v18, %v1021_v17 }
 0x1c7   :  { %3483 = vmatpush1.bf16.msra.mxu1 %v3482_v29  ;;  %2973 = vmatprep.subr.bf16.mxu0 %v2972_v30  ;;  %v984_v29 = vld [vmem:[%s6995_s1 + $0x1da0] sm:$0xff]  ;;  %v982_v30 = vld [vmem:[%s6995_s1 + $0x1d90] sm:$0xff] }
 0x1c8   :  { %3485 = vmatprep.subr.bf16.mxu1 %v3484_v34  ;;  %1643 = vmatprep.mubr.f32.mxu0 %v35_v40  ;;  %v993_v34 = vld [vmem:[%s6995_s1 + $0x1de8] sm:$0xff]  ;;  %v2994_v37 = vpack.c.bf16 %v984_v29, %v980_v28  ;;  %v3506_v38 = vpack.c.bf16 %v986_v32, %v982_v30  ;;  %v1026_v28 = vld [vmem:[%s6995_s1 + $0x1ef0] sm:$0xff]  ;;  %v1035_v32 = vld [vmem:[%s6995_s1 + $0x1f38] sm:$0xff] }
 0x1c9   :  { %2211 = vmatprep.mubr.f32.mxu1 %v35_v40  ;;  %v2996_v39 = vpack.c.bf16 %v993_v34, %v989_v33  ;;  %v988_v40 = vld [vmem:[%s6995_s1 + $0x1dc0] sm:$0xff]  ;;  %v1029_v29 = vld [vmem:[%s6995_s1 + $0x1f08] sm:$0xff] }
 0x1ca   :  { %2975 = vmatpush1.bf16.msra.mxu0 %v2974_v41  ;;  %v992_v41 = vld [vmem:[%s6995_s1 + $0x1de0] sm:$0xff]  ;;  %v1033_v30 = vld [vmem:[%s6995_s1 + $0x1f28] sm:$0xff] }
 0x1cb   :  { %3487 = vmatpush1.bf16.msra.mxu1 %v3486_v42  ;;  %2977 = vmatprep.subr.bf16.mxu0 %v2976_v43  ;;  %v990_v42 = vld [vmem:[%s6995_s1 + $0x1dd0] sm:$0xff]  ;;  %v3508_v43 = vpack.c.bf16 %v995_v36, %v991_v35  ;;  %v2998_v49 = vpack.c.bf16 %v992_v41, %v988_v40  ;;  %v3016_v35 = vpack.c.bf16 %v1033_v30, %v1029_v29  ;;  %v1028_v36 = vld [vmem:[%s6995_s1 + $0x1f00] sm:$0xff]  ;;  %v1037_v41 = vld [vmem:[%s6995_s1 + $0x1f48] sm:$0xff] }
 0x1cc   :  { %3489 = vmatprep.subr.bf16.mxu1 %v3488_v47  ;;  %v999_v47 = vld [vmem:[%s6995_s1 + $0x1e18] sm:$0xff]  ;;  %v3510_v50 = vpack.c.bf16 %v994_v44, %v990_v42  ;;  %v1034_v40 = vld [vmem:[%s6995_s1 + $0x1f30] sm:$0xff]  ;;  %v1041_v42 = vld [vmem:[%s6995_s1 + $0x1f68] sm:$0xff] }
 0x1cd   :  { %v1043_v44 = vld [vmem:[%s6995_s1 + $0x1f78] sm:$0xff]  ;;  %v34_v29 = vld [vmem:[%s6996_s0 + $0x70] sm:$0xff] }
 0x1ce   :  { %2979 = vmatpush1.bf16.msra.mxu0 %v2978_v53  ;;  %v1000_v53 = vld [vmem:[%s6995_s1 + $0x1e20] sm:$0xff] }
 0x1cf   :  { %3491 = vmatpush1.bf16.msra.mxu1 %v3490_v54  ;;  %2981 = vmatprep.subr.bf16.mxu0 %v2980_v55  ;;  %v998_v54 = vld [vmem:[%s6995_s1 + $0x1e10] sm:$0xff]  ;;  %v3512_v55 = vpack.c.bf16 %v1003_v48, %v999_v47  ;;  %v3002_v61 = vpack.c.bf16 %v1000_v53, %v996_v52  ;;  %v3020_v47 = vpack.c.bf16 %v1041_v42, %v1037_v41  ;;  %v1036_v48 = vld [vmem:[%s6995_s1 + $0x1f40] sm:$0xff]  ;;  %v1045_v53 = vld [vmem:[%s6995_s1 + $0x1f88] sm:$0xff] }
 0x1d0   :  { %3493 = vmatprep.subr.bf16.mxu1 %v3492_v59  ;;  %v1007_v59 = vld [vmem:[%s6995_s1 + $0x1e58] sm:$0xff]  ;;  %v3514_v62 = vpack.c.bf16 %v1002_v56, %v998_v54  ;;  %v1042_v52 = vld [vmem:[%s6995_s1 + $0x1f70] sm:$0xff]  ;;  %v1049_v54 = vld [vmem:[%s6995_s1 + $0x1fa8] sm:$0xff] }
 0x1d1   :  { %v1051_v56 = vld [vmem:[%s6995_s1 + $0x1fb8] sm:$0xff]  ;;  %v2275_v41 = vld [vmem:[%s6997_s3 + $0x1a8] sm:$0xff] }
 0x1d2   :  { %2983 = vmatpush1.bf16.msra.mxu0 %v2982_v1  ;;  %v1008_v1 = vld [vmem:[%s6995_s1 + $0x1e60] sm:$0xff] }
 0x1d3   :  { %3495 = vmatpush1.bf16.msra.mxu1 %v3494_v2  ;;  %2985 = vmatprep.subr.bf16.mxu0 %v2984_v3  ;;  %v1006_v2 = vld [vmem:[%s6995_s1 + $0x1e50] sm:$0xff]  ;;  %v3516_v3 = vpack.c.bf16 %v1011_v60, %v1007_v59  ;;  %v3006_v9 = vpack.c.bf16 %v1008_v1, %v1004_v0  ;;  %v3024_v59 = vpack.c.bf16 %v1049_v54, %v1045_v53  ;;  %v1044_v60 = vld [vmem:[%s6995_s1 + $0x1f80] sm:$0xff]  ;;  %v1053_v1 = vld [vmem:[%s6995_s1 + $0x1fc8] sm:$0xff] }
 0x1d4   :  { %3497 = vmatprep.subr.bf16.mxu1 %v3496_v7  ;;  %v1015_v7 = vld [vmem:[%s6995_s1 + $0x1e98] sm:$0xff]  ;;  %v3518_v10 = vpack.c.bf16 %v1010_v4, %v1006_v2  ;;  %v1050_v0 = vld [vmem:[%s6995_s1 + $0x1fb0] sm:$0xff]  ;;  %v1057_v2 = vld [vmem:[%s6995_s1 + $0x1fe8] sm:$0xff] }
 0x1d5   :  { %v1059_v4 = vld [vmem:[%s6995_s1 + $0x1ff8] sm:$0xff] }
 0x1d6   :  { %2987 = vmatpush1.bf16.msra.mxu0 %v2986_v13  ;;  %v1016_v13 = vld [vmem:[%s6995_s1 + $0x1ea0] sm:$0xff]  ;;  %v2277_v53 = vld [vmem:[%s6997_s3 + $0x1b8] sm:$0xff] }
 0x1d7   :  { %3499 = vmatpush1.bf16.msra.mxu1 %v3498_v14  ;;  %2989 = vmatprep.subr.bf16.mxu0 %v2988_v15  ;;  %v1014_v14 = vld [vmem:[%s6995_s1 + $0x1e90] sm:$0xff]  ;;  %v3520_v15 = vpack.c.bf16 %v1019_v8, %v1015_v7  ;;  %v3010_v21 = vpack.c.bf16 %v1016_v13, %v1012_v12  ;;  %v3028_v7 = vpack.c.bf16 %v1057_v2, %v1053_v1  ;;  %v1052_v8 = vld [vmem:[%s6995_s1 + $0x1fc0] sm:$0xff]  ;;  %v2279_v1 = vld [vmem:[%s6997_s3 + $0x1c8] sm:$0xff] }
 0x1d8   :  { %3501 = vmatprep.subr.bf16.mxu1 %v3500_v19  ;;  %v1023_v19 = vld [vmem:[%s6995_s1 + $0x1ed8] sm:$0xff]  ;;  %v3522_v22 = vpack.c.bf16 %v1018_v16, %v1014_v14  ;;  %v1058_v12 = vld [vmem:[%s6995_s1 + $0x1ff0] sm:$0xff]  ;;  %v2238_v13 = vld [vmem:[%s6997_s3 + $0x80] sm:$0xff] }
 0x1d9   :  { %v2239_v14 = vld [vmem:[%s6997_s3 + $0x88] sm:$0xff] }
 0x1da   :  { %2991 = vmatpush1.bf16.msra.mxu0 %v2990_v25  ;;  %v1024_v25 = vld [vmem:[%s6995_s1 + $0x1ee0] sm:$0xff]  ;;  %v2271_v16 = vld [vmem:[%s6997_s3 + $0x188] sm:$0xff] }
 0x1db   :  { %3503 = vmatpush1.bf16.msra.mxu1 %v3502_v26  ;;  %2993 = vmatprep.subr.bf16.mxu0 %v2992_v27  ;;  %v1022_v26 = vld [vmem:[%s6995_s1 + $0x1ed0] sm:$0xff]  ;;  %v3524_v27 = vpack.c.bf16 %v1027_v20, %v1023_v19  ;;  %v3014_v33 = vpack.c.bf16 %v1024_v25, %v1020_v24  ;;  %v3544_v19 = vpack.c.bf16 %v2239_v14, %v2238_v13  ;;  %v2222_v20 = vld [vmem:[%s6997_s3] sm:$0xff]  ;;  %v2255_v24 = vld [vmem:[%s6997_s3 + $0x108] sm:$0xff] }
 0x1dc   :  { %3505 = vmatprep.subr.bf16.mxu1 %v3504_v31  ;;  %v1031_v31 = vld [vmem:[%s6995_s1 + $0x1f18] sm:$0xff]  ;;  %v3526_v34 = vpack.c.bf16 %v1026_v28, %v1022_v26  ;;  %v2240_v25 = vld [vmem:[%s6997_s3 + $0x90] sm:$0xff] }
 0x1dd   :  { %v2241_v26 = vld [vmem:[%s6997_s3 + $0x98] sm:$0xff] }
 0x1de   :  { %2995 = vmatpush1.bf16.msra.mxu0 %v2994_v37  ;;  %v1032_v37 = vld [vmem:[%s6995_s1 + $0x1f20] sm:$0xff]  ;;  %v2273_v28 = vld [vmem:[%s6997_s3 + $0x198] sm:$0xff] }
 0x1df   :  { %3507 = vmatpush1.bf16.msra.mxu1 %v3506_v38  ;;  %2997 = vmatprep.subr.bf16.mxu0 %v2996_v39  ;;  %v1030_v38 = vld [vmem:[%s6995_s1 + $0x1f10] sm:$0xff]  ;;  %v3528_v39 = vpack.c.bf16 %v1035_v32, %v1031_v31  ;;  %v3018_v45 = vpack.c.bf16 %v1032_v37, %v1028_v36  ;;  %v3548_v32 = vpack.c.bf16 %v2241_v26, %v2240_v25  ;;  %v2257_v37 = vld [vmem:[%s6997_s3 + $0x118] sm:$0xff]  ;;  %v2283_v25 = vld [vmem:[%s6997_s3 + $0x1e8] sm:$0xff] }
 0x1e0   :  { %3509 = vmatprep.subr.bf16.mxu1 %v3508_v43  ;;  %v1039_v43 = vld [vmem:[%s6995_s1 + $0x1f58] sm:$0xff]  ;;  %v3530_v46 = vpack.c.bf16 %v1034_v40, %v1030_v38  ;;  %v2242_v38 = vld [vmem:[%s6997_s3 + $0xa0] sm:$0xff] }
 0x1e1   :  { %v2274_v40 = vld [vmem:[%s6997_s3 + $0x1a0] sm:$0xff]  ;;  %v2281_v13 = vld [vmem:[%s6997_s3 + $0x1d8] sm:$0xff] }
 0x1e2   :  { %2999 = vmatpush1.bf16.msra.mxu0 %v2998_v49  ;;  %v1040_v49 = vld [vmem:[%s6995_s1 + $0x1f60] sm:$0xff] }
 0x1e3   :  { %3511 = vmatpush1.bf16.msra.mxu1 %v3510_v50  ;;  %3001 = vmatprep.subr.bf16.mxu0 %v3000_v51  ;;  %v1038_v50 = vld [vmem:[%s6995_s1 + $0x1f50] sm:$0xff]  ;;  %v3532_v51 = vpack.c.bf16 %v1043_v44, %v1039_v43  ;;  %v3022_v57 = vpack.c.bf16 %v1040_v49, %v1036_v48  ;;  %v3584_v48 = vpack.c.bf16 %v2275_v41, %v2274_v40  ;;  %v2259_v49 = vld [vmem:[%s6997_s3 + $0x128] sm:$0xff]  ;;  %v2285_v40 = vld [vmem:[%s6997_s3 + $0x1f8] sm:$0xff] }
 0x1e4   :  { %3513 = vmatprep.subr.bf16.mxu1 %v3512_v55  ;;  %v1047_v55 = vld [vmem:[%s6995_s1 + $0x1f98] sm:$0xff]  ;;  %v3534_v58 = vpack.c.bf16 %v1042_v52, %v1038_v50  ;;  %v2244_v50 = vld [vmem:[%s6997_s3 + $0xb0] sm:$0xff] }
 0x1e5   :  { %v2276_v52 = vld [vmem:[%s6997_s3 + $0x1b0] sm:$0xff] }
 0x1e6   :  { %3003 = vmatpush1.bf16.msra.mxu0 %v3002_v61  ;;  %v1048_v61 = vld [vmem:[%s6995_s1 + $0x1fa0] sm:$0xff]  ;;  %v2236_v41 = vld [vmem:[%s6997_s3 + $0x70] sm:$0xff] }
 0x1e7   :  { %3515 = vmatpush1.bf16.msra.mxu1 %v3514_v62  ;;  %3005 = vmatprep.subr.bf16.mxu0 %v3004_v63  ;;  %v1046_v62 = vld [vmem:[%s6995_s1 + $0x1f90] sm:$0xff]  ;;  %v3536_v63 = vpack.c.bf16 %v1051_v56, %v1047_v55  ;;  %v3026_v5 = vpack.c.bf16 %v1048_v61, %v1044_v60  ;;  %v3588_v60 = vpack.c.bf16 %v2277_v53, %v2276_v52  ;;  %v2261_v61 = vld [vmem:[%s6997_s3 + $0x138] sm:$0xff] }
 0x1e8   :  { %3517 = vmatprep.subr.bf16.mxu1 %v3516_v3  ;;  %v1055_v3 = vld [vmem:[%s6995_s1 + $0x1fd8] sm:$0xff]  ;;  %v3538_v6 = vpack.c.bf16 %v1050_v0, %v1046_v62  ;;  %v2246_v62 = vld [vmem:[%s6997_s3 + $0xc0] sm:$0xff] }
 0x1e9   :  { %v2278_v0 = vld [vmem:[%s6997_s3 + $0x1c0] sm:$0xff] }
 0x1ea   :  { %3007 = vmatpush1.bf16.msra.mxu0 %v3006_v9  ;;  %v1056_v9 = vld [vmem:[%s6995_s1 + $0x1fe0] sm:$0xff] }
 0x1eb   :  { %3519 = vmatpush1.bf16.msra.mxu1 %v3518_v10  ;;  %3009 = vmatprep.subr.bf16.mxu0 %v3008_v11  ;;  %v1054_v10 = vld [vmem:[%s6995_s1 + $0x1fd0] sm:$0xff]  ;;  %v3540_v11 = vpack.c.bf16 %v1059_v4, %v1055_v3  ;;  %v3030_v17 = vpack.c.bf16 %v1056_v9, %v1052_v8  ;;  %v3592_v8 = vpack.c.bf16 %v2279_v1, %v2278_v0  ;;  %v2263_v9 = vld [vmem:[%s6997_s3 + $0x148] sm:$0xff] }
 0x1ec   :  { %3521 = vmatprep.subr.bf16.mxu1 %v3520_v15  ;;  %v2270_v15 = vld [vmem:[%s6997_s3 + $0x180] sm:$0xff]  ;;  %v3542_v18 = vpack.c.bf16 %v1058_v12, %v1054_v10  ;;  %v2248_v10 = vld [vmem:[%s6997_s3 + $0xd0] sm:$0xff] }
 0x1ed   :  { %v2280_v12 = vld [vmem:[%s6997_s3 + $0x1d0] sm:$0xff] }
 0x1ee   :  { %3011 = vmatpush1.bf16.msra.mxu0 %v3010_v21  ;;  %v2223_v21 = vld [vmem:[%s6997_s3 + $0x8] sm:$0xff] }
 0x1ef   :  { %3523 = vmatpush1.bf16.msra.mxu1 %v3522_v22  ;;  %3013 = vmatprep.subr.bf16.mxu0 %v3012_v23  ;;  %v2254_v22 = vld [vmem:[%s6997_s3 + $0x100] sm:$0xff]  ;;  %v3576_v23 = vpack.c.bf16 %v2271_v16, %v2270_v15  ;;  %v3546_v30 = vpack.c.bf16 %v2223_v21, %v2222_v20  ;;  %v3596_v20 = vpack.c.bf16 %v2281_v13, %v2280_v12  ;;  %v2265_v21 = vld [vmem:[%s6997_s3 + $0x158] sm:$0xff] }
 0x1f0   :  { %3525 = vmatprep.subr.bf16.mxu1 %v3524_v27  ;;  %v2272_v27 = vld [vmem:[%s6997_s3 + $0x190] sm:$0xff]  ;;  %v3578_v31 = vpack.c.bf16 %v2255_v24, %v2254_v22  ;;  %v2250_v22 = vld [vmem:[%s6997_s3 + $0xe0] sm:$0xff] }
 0x1f1   :  { %v3580_v36 = vpack.c.bf16 %v2273_v28, %v2272_v27  ;;  %v2282_v24 = vld [vmem:[%s6997_s3 + $0x1e0] sm:$0xff] }
 0x1f2   :  { %3015 = vmatpush1.bf16.msra.mxu0 %v3014_v33  ;;  %v2224_v33 = vld [vmem:[%s6997_s3 + $0x10] sm:$0xff] }
 0x1f3   :  { %3527 = vmatpush1.bf16.msra.mxu1 %v3526_v34  ;;  %3017 = vmatprep.subr.bf16.mxu0 %v3016_v35  ;;  %v2225_v34 = vld [vmem:[%s6997_s3 + $0x18] sm:$0xff]  ;;  %v2256_v35 = vld [vmem:[%s6997_s3 + $0x110] sm:$0xff] }
 0x1f4   :  { %3529 = vmatprep.subr.bf16.mxu1 %v3528_v39  ;;  %v2243_v39 = vld [vmem:[%s6997_s3 + $0xa8] sm:$0xff]  ;;  %v3550_v42 = vpack.c.bf16 %v2225_v34, %v2224_v33  ;;  %v3582_v43 = vpack.c.bf16 %v2257_v37, %v2256_v35  ;;  %v2253_v37 = vld [vmem:[%s6997_s3 + $0xf8] sm:$0xff] }
 0x1f5   :  { %v3552_v44 = vpack.c.bf16 %v2243_v39, %v2242_v38  ;;  %v2267_v34 = vld [vmem:[%s6997_s3 + $0x168] sm:$0xff]  ;;  %v2284_v38 = vld [vmem:[%s6997_s3 + $0x1f0] sm:$0xff] }
 0x1f6   :  { %3019 = vmatpush1.bf16.msra.mxu0 %v3018_v45  ;;  %v2226_v45 = vld [vmem:[%s6997_s3 + $0x20] sm:$0xff] }
 0x1f7   :  { %3531 = vmatpush1.bf16.msra.mxu1 %v3530_v46  ;;  %3021 = vmatprep.subr.bf16.mxu0 %v3020_v47  ;;  %v2227_v46 = vld [vmem:[%s6997_s3 + $0x28] sm:$0xff]  ;;  %v2258_v47 = vld [vmem:[%s6997_s3 + $0x120] sm:$0xff] }
 0x1f8   :  { %3533 = vmatprep.subr.bf16.mxu1 %v3532_v51  ;;  %v2245_v51 = vld [vmem:[%s6997_s3 + $0xb8] sm:$0xff]  ;;  %v3554_v54 = vpack.c.bf16 %v2227_v46, %v2226_v45  ;;  %v3586_v55 = vpack.c.bf16 %v2259_v49, %v2258_v47  ;;  %v2268_v45 = vld [vmem:[%s6997_s3 + $0x170] sm:$0xff] }
 0x1f9   :  { %v3556_v56 = vpack.c.bf16 %v2245_v51, %v2244_v50  ;;  %v2269_v46 = vld [vmem:[%s6997_s3 + $0x178] sm:$0xff]  ;;  %v1060_v51 = vld [vmem:[%s6998_s2] sm:$0xf] }
 0x1fa   :  { %3023 = vmatpush1.bf16.msra.mxu0 %v3022_v57  ;;  %v2228_v57 = vld [vmem:[%s6997_s3 + $0x30] sm:$0xff]  ;;  %v3606_v47 = vpack.c.bf16 %v2269_v46, %v2268_v45 }
 0x1fb   :  { %3535 = vmatpush1.bf16.msra.mxu1 %v3534_v58  ;;  %3025 = vmatprep.subr.bf16.mxu0 %v3024_v59  ;;  %v2229_v58 = vld [vmem:[%s6997_s3 + $0x38] sm:$0xff]  ;;  %v2260_v59 = vld [vmem:[%s6997_s3 + $0x130] sm:$0xff] }
 0x1fc   :  { %3537 = vmatprep.subr.bf16.mxu1 %v3536_v63  ;;  %v2247_v63 = vld [vmem:[%s6997_s3 + $0xc8] sm:$0xff]  ;;  %v3558_v2 = vpack.c.bf16 %v2229_v58, %v2228_v57  ;;  %v3590_v3 = vpack.c.bf16 %v2261_v61, %v2260_v59 }
 0x1fd   :  { %v3560_v4 = vpack.c.bf16 %v2247_v63, %v2246_v62 }
 0x1fe   :  { %3027 = vmatpush1.bf16.msra.mxu0 %v3026_v5  ;;  %v2230_v5 = vld [vmem:[%s6997_s3 + $0x40] sm:$0xff] }
 0x1ff   :  { %3539 = vmatpush1.bf16.msra.mxu1 %v3538_v6  ;;  %3029 = vmatprep.subr.bf16.mxu0 %v3028_v7  ;;  %v2231_v6 = vld [vmem:[%s6997_s3 + $0x48] sm:$0xff]  ;;  %v2262_v7 = vld [vmem:[%s6997_s3 + $0x140] sm:$0xff] }
 0x200   :  { %3541 = vmatprep.subr.bf16.mxu1 %v3540_v11  ;;  %v2249_v11 = vld [vmem:[%s6997_s3 + $0xd8] sm:$0xff]  ;;  %v3562_v14 = vpack.c.bf16 %v2231_v6, %v2230_v5  ;;  %v3594_v15 = vpack.c.bf16 %v2263_v9, %v2262_v7  ;;  %v2449_v9 = vld [vmem:[%s6999_s4] ss:$0 sm:$0xff] }
 0x201   :  { %v3564_v16 = vpack.c.bf16 %v2249_v11, %v2248_v10 }
 0x202   :  { %3031 = vmatpush1.bf16.msra.mxu0 %v3030_v17  ;;  %v2232_v17 = vld [vmem:[%s6997_s3 + $0x50] sm:$0xff] }
 0x203   :  { %3543 = vmatpush1.bf16.msra.mxu1 %v3542_v18  ;;  %3545 = vmatprep.subr.bf16.mxu0 %v3544_v19  ;;  %v2233_v18 = vld [vmem:[%s6997_s3 + $0x58] sm:$0xff]  ;;  %v2264_v19 = vld [vmem:[%s6997_s3 + $0x150] sm:$0xff] }
 0x204   :  { %3577 = vmatprep.subr.bf16.mxu1 %v3576_v23  ;;  %v2251_v23 = vld [vmem:[%s6997_s3 + $0xe8] sm:$0xff]  ;;  %v3566_v26 = vpack.c.bf16 %v2233_v18, %v2232_v17  ;;  %v3598_v27 = vpack.c.bf16 %v2265_v21, %v2264_v19 }
 0x205   :  { %1644 = vmatmul.mubr.f32.vlgmr.msra.gmra.mrb[0].mxu0 %v34_v29  ;;  %v3568_v28 = vpack.c.bf16 %v2251_v23, %v2250_v22 }
 0x206   :  { %2212 = vmatmul.mubr.f32.vlgmr.msra.gmra.mrb[0].mxu1 %v34_v29  ;;  %3547 = vmatpush3.bf16.msra.mxu0 %v3546_v30  ;;  %v3600_v29 = vpack.c.bf16 %v2283_v25, %v2282_v24  ;;  %v2234_v30 = vld [vmem:[%s6997_s3 + $0x60] sm:$0xff] }
 0x207   :  { %3579 = vmatpush3.bf16.msra.mxu1 %v3578_v31  ;;  %3549 = vmatprep.subr.bf16.mxu0 %v3548_v32  ;;  %v2235_v31 = vld [vmem:[%s6997_s3 + $0x68] sm:$0xff]  ;;  %v2266_v32 = vld [vmem:[%s6997_s3 + $0x160] sm:$0xff] }
 0x208   :  { %3581 = vmatprep.subr.bf16.mxu1 %v3580_v36  ;;  %v3570_v33 = vpack.c.bf16 %v2235_v31, %v2234_v30  ;;  %v3602_v35 = vpack.c.bf16 %v2267_v34, %v2266_v32  ;;  %v2252_v36 = vld [vmem:[%s6997_s3 + $0xf0] sm:$0xff] }
 0x209   :  { %v3572_v39 = vpack.c.bf16 %v2253_v37, %v2252_v36 }
 0x20a   :  { %3551 = vmatpush3.bf16.msra.mxu0 %v3550_v42  ;;  %v2237_v42 = vld [vmem:[%s6997_s3 + $0x78] sm:$0xff] }
 0x20b   :  { %3583 = vmatpush3.bf16.msra.mxu1 %v3582_v43  ;;  %3553 = vmatprep.subr.bf16.mxu0 %v3552_v44  ;;  %v3604_v43 = vpack.c.bf16 %v2285_v40, %v2284_v38  ;;  %v3574_v44 = vpack.c.bf16 %v2237_v42, %v2236_v41 }
 0x20c   :  { %3585 = vmatprep.subr.bf16.mxu1 %v3584_v48  ;;  %v1062_v48 = vlaneseq }
 0x20e   :  { %3555 = vmatpush3.bf16.msra.mxu0 %v3554_v54  ;;  %v1063_v49 = vshrl.u32 %v1062_v48, 7 }
 0x20f   :  { %3587 = vmatpush3.bf16.msra.mxu1 %v3586_v55  ;;  %3557 = vmatprep.subr.bf16.mxu0 %v3556_v56 }
 0x210   :  { %3589 = vmatprep.subr.bf16.mxu1 %v3588_v60  ;;  %v1064_v50 = vsub.s32 0, %v1063_v49  ;;  %v1072_v52 = vsub.s32 2, %v1063_v49  ;;  %v1068_v53 = vsub.s32 1, %v1063_v49  ;;  %v1076_v54 = vsub.s32 3, %v1063_v49 }
 0x212   :  { %3559 = vmatpush3.bf16.msra.mxu0 %v3558_v2  ;;  %v1065_v55 = vrot.slane %v1060_v51, %v1064_v50  ;;  %v1073_v56 = vrot.slane %v1060_v51, %v1072_v52  ;;  %v1069_v57 = vrot.slane %v1060_v51, %v1068_v53  ;;  %v1077_v58 = vrot.slane %v1060_v51, %v1076_v54 }
 0x213   :  { %3591 = vmatpush3.bf16.msra.mxu1 %v3590_v3  ;;  %3561 = vmatprep.subr.bf16.mxu0 %v3560_v4 }
 0x214   :  { %3593 = vmatprep.subr.bf16.mxu1 %v3592_v8 }
 0x216   :  { %3563 = vmatpush3.bf16.msra.mxu0 %v3562_v14 }
 0x217   :  { %3595 = vmatpush3.bf16.msra.mxu1 %v3594_v15  ;;  %3565 = vmatprep.subr.bf16.mxu0 %v3564_v16 }
 0x218   :  { %3597 = vmatprep.subr.bf16.mxu1 %v3596_v20 }
 0x21a   :  { %3567 = vmatpush3.bf16.msra.mxu0 %v3566_v26 }
 0x21b   :  { %3599 = vmatpush3.bf16.msra.mxu1 %v3598_v27  ;;  %3569 = vmatprep.subr.bf16.mxu0 %v3568_v28 }
 0x21c   :  { %3601 = vmatprep.subr.bf16.mxu1 %v3600_v29 }
 0x21e   :  { %3571 = vmatpush3.bf16.msra.mxu0 %v3570_v33 }
 0x21f   :  { %3603 = vmatpush3.bf16.msra.mxu1 %v3602_v35  ;;  %3573 = vmatprep.subr.bf16.mxu0 %v3572_v39 }
 0x220   :  { %3605 = vmatprep.subr.bf16.mxu1 %v3604_v43 }
 0x222   :  { %3575 = vmatpush3.bf16.msra.mxu0 %v3574_v44 }
 0x223   :  { %3607 = vmatpush3.bf16.msra.mxu1 %v3606_v47 }
 0x2d8   :  { %v1645_v59 = vpop.f32.mrb[0].mxu0 }
 0x2d9   :  { %v3608_v60 = vadd.f32 %v1645_v59, %v1065_v55  ;;  %v2213_v61 = vpop.f32.mrb[0].mxu1  ;;  %v1647_v62 = vpop.f32.mrb[1].mxu0 }
 0x2da   :  { %v3610_v63 = vadd.f32 %v2213_v61, %v1073_v56  ;;  %v3609_v0 = vadd.f32 %v1647_v62, %v1069_v57  ;;  %v2215_v1 = vpop.f32.mrb[1].mxu1 }
 0x2db   :  { %v3611_v2 = vadd.f32 %v2215_v1, %v1077_v58  ;;  %v2218_v4 = vmax.f32 %v3608_v60, 0.0 }
 0x2dc   :  { %v2219_v3 = vmax.f32 %v3609_v0, 0.0  ;;  %v2220_v6 = vmax.f32 %v3610_v63, 0.0 }
 0x2dd   :  { %v2221_v5 = vmax.f32 %v3611_v2, 0.0 }
 0x2de   :  { %2357 = vmatprep.mubr.f32.mxu0 %v2219_v3 }
 0x2df   :  { %2427 = vmatprep.mubr.f32.mxu1 %v2221_v5  ;;  %2358 = vmatmul.mubr.f32.vlgmr.msra.gmra.mrb[2].mxu0 %v2218_v4 }
 0x2e0   :  { %2428 = vmatmul.mubr.f32.vlgmr.msra.gmra.mrb[2].mxu1 %v2220_v6 }
 0x3b2   :  { %v2482_v7 = vpop.f32.mrb[2].mxu0 }
 0x3b3   :  { %v2517_v8 = vpop.f32.mrb[2].mxu1  ;;  %v2483_v10 = vpop.f32.mrb[3].mxu0 }
 0x3b4   :  { %v2484_v11 = vadd.f32 %v2483_v10, %v2482_v7  ;;  %v2518_v12 = vpop.f32.mrb[3].mxu1 }
 0x3b5   :  { %v2519_v13 = vadd.f32 %v2518_v12, %v2517_v8 }
 0x3b6   :  { %v2360_v14 = vadd.f32 %v2484_v11, %v2449_v9 }
 0x3b8   :  { %v2430_v15 = vadd.f32 %v2519_v13, %v2360_v14 }
 0x3ba   :  { %2433 = vmax.xlane.f32.xlu0 %v2430_v15 }
 0x447   :  { %v2434_v16 = vpop.xlane.xlu0 %2433 }
 0x448   :  { %v2435_v17 = vsub.f32 %v2430_v15, %v2434_v16 }
 0x44a   :  { %v2436_v18 = vmul.f32 1.442695, %v2435_v17 }
 0x44c   :  { %3640 = vpow2.f32 %v2436_v18 }
 0x456   :  { %v3641_v19 = vpop.eup %3640 }
 0x457   :  { %2438 = vadd.xlane.f32.xlu0 %v3641_v19 }
 0x4e4   :  { %v2439_v20 = vpop.xlane.xlu0 %2438 }
 0x4e5   :  { %3642 = vlog2.f32 %v2439_v20 }
 0x4ef   :  { %v3643_v21 = vpop.eup %3642 }
 0x4f0   :  { %v2441_v22 = vmul.f32 0.6931472, %v3643_v21 }
 0x4f2   :  { %v2442_v23 = vadd.f32 %v2441_v22, %v2434_v16 }
 0x4f4   :  { %v2443_v24 = vsub.f32 %v2430_v15, %v2442_v23 }
 0x4f6   :  { %2444 = vst [vmem:[%s7000_s5] sm:$0xff] %v2443_v24 }

</bundles_post_ra>
